<compile_context>
chip_gen: v7x
topology: tpu7x:2x2x1
jax: 0.10.0
libtpu: 0.0.40
codegen_flags: <defaults>
</compile_context>

<pallas_src>
import jax
import jax.numpy as jnp
from jax.experimental import pallas as pl
from jax.experimental.pallas import tpu as pltpu

# ---------------- model sizes ----------------
N_TS = 2        # num_of_time_series
SEQ = 8         # len_of_time_series
BATCH = 8       # batch size
D_IN = 8        # encoder input_size
H_ENC = 16      # encoder hidden_dim (bidirectional -> encoder feature = 2*H_ENC)
A_ATTN = 16     # hidden_size_attn
R_HID = 16      # attention rnn_hidden_size
DEC_OUT = 4     # decoder output_size per time series
G_ENC = 3 * H_ENC   # 48 (GRU gate width, encoder)
G_RNN = 3 * R_HID   # 48 (GRU gate width, attention rnn)

# ---- packed parameter slab row offsets (per time series) ----
# w48 slab: 48 columns, rows 8-aligned per matrix so row slices stay tile-aligned.
R_EWIH_F = 0          # (D_IN, 48)
R_EWHH_F = 8          # (H_ENC, 48)
R_EWIH_B = 24         # (D_IN, 48)
R_EWHH_B = 32         # (H_ENC, 48)
R_EBIH_F, R_EBHH_F, R_EBIH_B, R_EBHH_B = 48, 49, 50, 51
R_RWCF = 56           # (H_ENC, 48)
R_RWCB = 72           # (H_ENC, 48)
R_RWHH = 88           # (R_HID, 48)
R_RWV, R_RBIH, R_RBHH = 104, 105, 106
W48_ROWS = 112        # padded to a multiple of 8

# w16 slab: 16 columns.
R_AWEF = 0            # (H_ENC, 16)
R_AWEB = 16           # (H_ENC, 16)
R_AWV, R_AB, R_AV, R_OW, R_OB = 32, 33, 34, 35, 36
W16_ROWS = 40         # padded to a multiple of 8

# individual (unpacked) per-time-series parameters, as in the PyTorch module
PARAM_DEFS = [
    ("enc_wih_f", (D_IN, G_ENC)),
    ("enc_whh_f", (H_ENC, G_ENC)),
    ("enc_bih_f", (1, G_ENC)),
    ("enc_bhh_f", (1, G_ENC)),
    ("enc_wih_b", (D_IN, G_ENC)),
    ("enc_whh_b", (H_ENC, G_ENC)),
    ("enc_bih_b", (1, G_ENC)),
    ("enc_bhh_b", (1, G_ENC)),
    ("attn_wv", (1, A_ATTN)),
    ("attn_wef", (H_ENC, A_ATTN)),
    ("attn_web", (H_ENC, A_ATTN)),
    ("attn_b", (1, A_ATTN)),
    ("attn_v", (A_ATTN, 1)),
    ("rnn_wv", (1, G_RNN)),
    ("rnn_wcf", (H_ENC, G_RNN)),
    ("rnn_wcb", (H_ENC, G_RNN)),
    ("rnn_whh", (R_HID, G_RNN)),
    ("rnn_bih", (1, G_RNN)),
    ("rnn_bhh", (1, G_RNN)),
    ("out_w", (R_HID, 1)),
    ("out_b", (1, 1)),
]


def _sigmoid(x):
    return 1.0 / (1.0 + jnp.exp(-x))


def _gru_gates(gi, gh, h_prev, hidden):
    """PyTorch GRU cell with precomputed gi = x@Wih^T + b_ih and gh = h@Whh^T + b_hh."""
    r = _sigmoid(gi[:, 0:hidden] + gh[:, 0:hidden])
    z = _sigmoid(gi[:, hidden:2 * hidden] + gh[:, hidden:2 * hidden])
    n = jnp.tanh(gi[:, 2 * hidden:3 * hidden] + r * gh[:, 2 * hidden:3 * hidden])
    return (1.0 - z) * n + z * h_prev


def dp_kernel(x_ref, w48_ref, w16_ref, decw_ref, out_ref, encf_ref, encb_ref, pe_ref):
    """One time series: bidirectional GRU encoder, SEQ attention+GRU decode steps, and this
    time series' rank-SEQ contribution to the final Linear decoder (no bias)."""
    f32 = jnp.float32

    # ---------------- encoder weights (sliced from the packed slab) ----------------
    wih_f = w48_ref[R_EWIH_F:R_EWIH_F + D_IN, :]
    whh_f = w48_ref[R_EWHH_F:R_EWHH_F + H_ENC, :]
    wih_b = w48_ref[R_EWIH_B:R_EWIH_B + D_IN, :]
    whh_b = w48_ref[R_EWHH_B:R_EWHH_B + H_ENC, :]
    bih_f = w48_ref[R_EBIH_F:R_EBIH_F + 1, :]
    bhh_f = w48_ref[R_EBHH_F:R_EBHH_F + 1, :]
    bih_b = w48_ref[R_EBIH_B:R_EBIH_B + 1, :]
    bhh_b = w48_ref[R_EBHH_B:R_EBHH_B + 1, :]

    # ---------------- hoisted input projections (independent of the recurrence) -----------
    gi_f = []
    gi_b = []
    for t in range(SEQ):
        x_t = x_ref[t]                                                   # (BATCH, D_IN)
        gi_f.append(jnp.dot(x_t, wih_f, preferred_element_type=f32) + bih_f)
        gi_b.append(jnp.dot(x_t, wih_b, preferred_element_type=f32) + bih_b)

    # ---------------- interleaved bidirectional GRU recurrence (unrolled) ------------------
    h_f = jnp.full((BATCH, H_ENC), 0.001, f32)    # Encoder.init_hidden
    h_b = jnp.full((BATCH, H_ENC), 0.001, f32)
    for t in range(SEQ):
        tb = SEQ - 1 - t
        gh_f = jnp.dot(h_f, whh_f, preferred_element_type=f32) + bhh_f
        gh_b = jnp.dot(h_b, whh_b, preferred_element_type=f32) + bhh_b
        h_f = _gru_gates(gi_f[t], gh_f, h_f, H_ENC)
        h_b = _gru_gates(gi_b[tb], gh_b, h_b, H_ENC)
        encf_ref[t, :, :] = h_f
        encb_ref[tb, :, :] = h_b

    # ---------------- attention / decode-side weights ----------------
    a_wef = w16_ref[R_AWEF:R_AWEF + H_ENC, :]
    a_web = w16_ref[R_AWEB:R_AWEB + H_ENC, :]
    a_wv = w16_ref[R_AWV:R_AWV + 1, :]            # (1, A_ATTN)   column for v in attn Linear
    a_b = w16_ref[R_AB:R_AB + 1, :]
    a_v = w16_ref[R_AV:R_AV + 1, :]               # attn_activation weight^T  (1, A_ATTN)
    o_w = w16_ref[R_OW:R_OW + 1, :]               # activation Linear weight^T (1, R_HID)
    o_b = w16_ref[R_OB:R_OB + 1, 0:1]             # (1, 1)

    r_wcf = w48_ref[R_RWCF:R_RWCF + H_ENC, :]
    r_wcb = w48_ref[R_RWCB:R_RWCB + H_ENC, :]
    r_whh = w48_ref[R_RWHH:R_RWHH + R_HID, :]
    r_wv = w48_ref[R_RWV:R_RWV + 1, :]
    r_bih = w48_ref[R_RBIH:R_RBIH + 1, :]
    r_bhh = w48_ref[R_RBHH:R_RBHH + 1, :]

    dec_w = decw_ref[...]                         # (SEQ, N_TS*DEC_OUT) rows for this TS

    # attention pre-projection of the encoder outputs (decode-step independent)
    for t in range(SEQ):
        pe_ref[t, :, :] = (jnp.dot(encf_ref[t], a_wef, preferred_element_type=f32)
                           + jnp.dot(encb_ref[t], a_web, preferred_element_type=f32)
                           + a_b)

    # ---------------- decode loop: SEQ attention + GRU steps (unrolled) ---------------------
    v = jnp.full((BATCH, 1), 0.001, f32)          # Attention.init_hidden (v_output_hidden)
    s = jnp.full((BATCH, R_HID), 0.001, f32)      # Attention.init_hidden (s_inner_hidden)
    acc = jnp.zeros((BATCH, N_TS * DEC_OUT), f32)
    for step in range(SEQ):
        # score(): tanh(attn(cat([v, enc_fwd, enc_bwd]))) @ attn_activation
        vw = v * a_wv                                                     # (BATCH, A_ATTN)
        e = []
        for t in range(SEQ):
            et = jnp.sum(jnp.tanh(pe_ref[t] + vw) * a_v, axis=-1, keepdims=True)
            e.append(et)                                                  # (BATCH, 1)
        # softmax over the sequence axis
        m = e[0]
        for t in range(1, SEQ):
            m = jnp.maximum(m, e[t])
        ex = [jnp.exp(e[t] - m) for t in range(SEQ)]
        denom = ex[0]
        for t in range(1, SEQ):
            denom = denom + ex[t]
        inv = 1.0 / denom                                                 # (BATCH, 1)
        # context = bmm(alpha, encoder_outputs), kept split as [fwd | bwd]
        c_f = jnp.zeros((BATCH, H_ENC), f32)
        c_b = jnp.zeros((BATCH, H_ENC), f32)
        for t in range(SEQ):
            a_t = ex[t] * inv
            c_f = c_f + a_t * encf_ref[t]
            c_b = c_b + a_t * encb_ref[t]
        # GRU step on cat([v, context])
        gi = (v * r_wv
              + jnp.dot(c_f, r_wcf, preferred_element_type=f32)
              + jnp.dot(c_b, r_wcb, preferred_element_type=f32)
              + r_bih)
        gh = jnp.dot(s, r_whh, preferred_element_type=f32) + r_bhh
        s = _gru_gates(gi, gh, s, R_HID)
        # activation Linear(rnn_hidden_size, 1)
        v = jnp.sum(s * o_w, axis=-1, keepdims=True) + o_b                # (BATCH, 1)
        # fused final decoder: rank-1 contribution of dp[ts, :, step]
        acc = acc + v * dec_w[step:step + 1, :]

    out_ref[...] = acc
    # TODO(synk): the attention maps stashed on self.alpha / self.beta are attributes, not
    # forward outputs, and are not materialized here.


def _dp_call():
    grid_spec = pltpu.PrefetchScalarGridSpec(
        num_scalar_prefetch=0,
        grid=(N_TS,),
        in_specs=[
            pl.BlockSpec((None, SEQ, BATCH, D_IN), lambda i: (i, 0, 0, 0)),   # model_input
            pl.BlockSpec((None, W48_ROWS, G_ENC), lambda i: (i, 0, 0)),       # packed 48-col slab
            pl.BlockSpec((None, W16_ROWS, A_ATTN), lambda i: (i, 0, 0)),      # packed 16-col slab
            pl.BlockSpec((SEQ, N_TS * DEC_OUT), lambda i: (i, 0)),            # decoder weight rows
        ],
        out_specs=pl.BlockSpec((None, BATCH, N_TS * DEC_OUT), lambda i: (i, 0, 0)),
        scratch_shapes=[
            pltpu.VMEM((SEQ, BATCH, H_ENC), jnp.float32),    # forward encoder outputs
            pltpu.VMEM((SEQ, BATCH, H_ENC), jnp.float32),    # backward encoder outputs
            pltpu.VMEM((SEQ, BATCH, A_ATTN), jnp.float32),   # attention pre-projection
        ],
    )
    return pl.pallas_call(
        dp_kernel,
        out_shape=jax.ShapeDtypeStruct((N_TS, BATCH, N_TS * DEC_OUT), jnp.float32),
        grid_spec=grid_spec,
        compiler_params=pltpu.CompilerParams(
            dimension_semantics=("parallel",)),   # shard the 2 time series across TCs on v7x
    )


@jax.jit
def seq2graph_forward(model_input, packed):
    # model_input: (N_TS, SEQ, BATCH, D_IN) -- native PyTorch seq-first layout, no transpose.
    partial = _dp_call()(model_input, packed["w48"], packed["w16"], packed["dec_w"])
    # partial[i] = dp_i @ dec_w[i*SEQ:(i+1)*SEQ]; sum over time series + bias = final Linear.
    return jnp.sum(partial, axis=0) + packed["dec_b"]


def init_params(key):
    params = {}
    keys = jax.random.split(key, len(PARAM_DEFS) + 2)
    for (name, shape), k in zip(PARAM_DEFS, keys[:len(PARAM_DEFS)]):
        params[name] = 0.1 * jax.random.normal(k, (N_TS,) + shape, dtype=jnp.float32)
    params["dec_w"] = 0.1 * jax.random.normal(
        keys[-2], (N_TS * SEQ, N_TS * DEC_OUT), dtype=jnp.float32)
    params["dec_b"] = 0.1 * jax.random.normal(
        keys[-1], (1, N_TS * DEC_OUT), dtype=jnp.float32)
    return params


def pack_params(p):
    """Pack the 21 per-time-series tensors into two stacked slabs (+ decoder weight/bias)."""
    z48 = lambda r: jnp.zeros((N_TS, r, G_ENC), jnp.float32)
    z16 = lambda r: jnp.zeros((N_TS, r, A_ATTN), jnp.float32)
    w48 = jnp.concatenate([
        p["enc_wih_f"], p["enc_whh_f"], p["enc_wih_b"], p["enc_whh_b"],      # rows 0..47
        p["enc_bih_f"], p["enc_bhh_f"], p["enc_bih_b"], p["enc_bhh_b"],      # rows 48..51
        z48(4),                                                               # rows 52..55 (pad)
        p["rnn_wcf"], p["rnn_wcb"], p["rnn_whh"],                             # rows 56..103
        p["rnn_wv"], p["rnn_bih"], p["rnn_bhh"],                              # rows 104..106
        z48(W48_ROWS - 107),                                                  # rows 107..111 (pad)
    ], axis=1)
    out_b_row = jnp.pad(p["out_b"], ((0, 0), (0, 0), (0, A_ATTN - 1)))
    w16 = jnp.concatenate([
        p["attn_wef"], p["attn_web"],                                         # rows 0..31
        p["attn_wv"], p["attn_b"],                                            # rows 32, 33
        jnp.transpose(p["attn_v"], (0, 2, 1)),                                # row 34 (attn_v^T)
        jnp.transpose(p["out_w"], (0, 2, 1)),                                 # row 35 (out_w^T)
        out_b_row,                                                            # row 36 (out_b @ col 0)
        z16(W16_ROWS - 37),                                                   # rows 37..39 (pad)
    ], axis=1)
    return {"w48": w48, "w16": w16, "dec_w": p["dec_w"], "dec_b": p["dec_b"]}


if __name__ == "__main__":
    key = jax.random.PRNGKey(0)
    k_in, k_par = jax.random.split(key)
    model_input = jax.random.normal(k_in, (N_TS, SEQ, BATCH, D_IN), dtype=jnp.float32)
    packed = pack_params(init_params(k_par))
    out = seq2graph_forward(model_input, packed)
    jax.block_until_ready(out)
    assert out.shape == (BATCH, N_TS * DEC_OUT)
    print("KERNEL_OK")
</pallas_src>

<mosaic_0001>
module attributes {stable_mosaic.version = 11 : i64} {
  func.func @dp_kernel(%arg0: i32, %arg1: memref<1x8x8x8xf32, #tpu.memory_space<vmem>>, %arg2: memref<1x112x48xf32, #tpu.memory_space<vmem>>, %arg3: memref<1x40x16xf32, #tpu.memory_space<vmem>>, %arg4: memref<8x8xf32, #tpu.memory_space<vmem>>, %arg5: memref<1x8x8xf32, #tpu.memory_space<vmem>>, %arg6: memref<8x8x16xf32, #tpu.memory_space<vmem>>, %arg7: memref<8x8x16xf32, #tpu.memory_space<vmem>>, %arg8: memref<8x8x16xf32, #tpu.memory_space<vmem>>) attributes {dimension_semantics = [#tpu.dimension_semantics<parallel>], iteration_bounds = array<i64: 2>, scalar_prefetch = 0 : i64, scratch_operands = 3 : i64, tpu.core_type = #tpu.core_type<tc>, window_params = [{transform_indices = @transform_0, window_bounds = array<i64: 1, 8, 8, 8>}, {transform_indices = @transform_1, window_bounds = array<i64: 1, 112, 48>}, {transform_indices = @transform_2, window_bounds = array<i64: 1, 40, 16>}, {transform_indices = @transform_3, window_bounds = array<i64: 8, 8>}, {transform_indices = @transform_4, window_bounds = array<i64: 1, 8, 8>}]} {
    %c0 = arith.constant 0 : index
    %c0_0 = arith.constant 0 : index
    %c0_1 = arith.constant 0 : index
    %0 = vector.load %arg2[%c0, %c0_0, %c0_1] : memref<1x112x48xf32, #tpu.memory_space<vmem>>, vector<1x8x48xf32>
    %1 = vector.shape_cast %0 : vector<1x8x48xf32> to vector<8x48xf32>
    %c0_2 = arith.constant 0 : index
    %c8 = arith.constant 8 : index
    %c0_3 = arith.constant 0 : index
    %2 = vector.load %arg2[%c0_2, %c8, %c0_3] : memref<1x112x48xf32, #tpu.memory_space<vmem>>, vector<1x16x48xf32>
    %3 = vector.shape_cast %2 : vector<1x16x48xf32> to vector<16x48xf32>
    %c0_4 = arith.constant 0 : index
    %c24 = arith.constant 24 : index
    %c0_5 = arith.constant 0 : index
    %4 = vector.load %arg2[%c0_4, %c24, %c0_5] : memref<1x112x48xf32, #tpu.memory_space<vmem>>, vector<1x8x48xf32>
    %5 = vector.shape_cast %4 : vector<1x8x48xf32> to vector<8x48xf32>
    %c0_6 = arith.constant 0 : index
    %c32 = arith.constant 32 : index
    %c0_7 = arith.constant 0 : index
    %6 = vector.load %arg2[%c0_6, %c32, %c0_7] : memref<1x112x48xf32, #tpu.memory_space<vmem>>, vector<1x16x48xf32>
    %7 = vector.shape_cast %6 : vector<1x16x48xf32> to vector<16x48xf32>
    %c0_8 = arith.constant 0 : index
    %c48 = arith.constant 48 : index
    %c0_9 = arith.constant 0 : index
    %8 = vector.load %arg2[%c0_8, %c48, %c0_9] : memref<1x112x48xf32, #tpu.memory_space<vmem>>, vector<1x1x48xf32>
    %9 = vector.shape_cast %8 : vector<1x1x48xf32> to vector<1x48xf32>
    %c0_10 = arith.constant 0 : index
    %c49 = arith.constant 49 : index
    %c0_11 = arith.constant 0 : index
    %10 = vector.load %arg2[%c0_10, %c49, %c0_11] : memref<1x112x48xf32, #tpu.memory_space<vmem>>, vector<1x1x48xf32>
    %11 = vector.shape_cast %10 : vector<1x1x48xf32> to vector<1x48xf32>
    %c0_12 = arith.constant 0 : index
    %c50 = arith.constant 50 : index
    %c0_13 = arith.constant 0 : index
    %12 = vector.load %arg2[%c0_12, %c50, %c0_13] : memref<1x112x48xf32, #tpu.memory_space<vmem>>, vector<1x1x48xf32>
    %13 = vector.shape_cast %12 : vector<1x1x48xf32> to vector<1x48xf32>
    %c0_14 = arith.constant 0 : index
    %c51 = arith.constant 51 : index
    %c0_15 = arith.constant 0 : index
    %14 = vector.load %arg2[%c0_14, %c51, %c0_15] : memref<1x112x48xf32, #tpu.memory_space<vmem>>, vector<1x1x48xf32>
    %15 = vector.shape_cast %14 : vector<1x1x48xf32> to vector<1x48xf32>
    %c0_16 = arith.constant 0 : index
    %c0_17 = arith.constant 0 : index
    %c0_18 = arith.constant 0 : index
    %c0_19 = arith.constant 0 : index
    %16 = vector.load %arg1[%c0_16, %c0_17, %c0_18, %c0_19] : memref<1x8x8x8xf32, #tpu.memory_space<vmem>>, vector<1x1x8x8xf32>
    %17 = vector.shape_cast %16 : vector<1x1x8x8xf32> to vector<8x8xf32>
    %cst = arith.constant dense<0.000000e+00> : vector<8x48xf32>
    %18 = tpu.matmul %17, %1, %cst {dimension_numbers = #tpu.dot_dimension_numbers<[1], [0], [0], [1], [0, 0, 1, 1], [], []>} : vector<8x8xf32>, vector<8x48xf32>, vector<8x48xf32> -> vector<8x48xf32>
    %19 = vector.broadcast %9 : vector<1x48xf32> to vector<8x48xf32>
    %20 = arith.addf %18, %19 : vector<8x48xf32>
    %cst_20 = arith.constant dense<0.000000e+00> : vector<8x48xf32>
    %21 = tpu.matmul %17, %5, %cst_20 {dimension_numbers = #tpu.dot_dimension_numbers<[1], [0], [0], [1], [0, 0, 1, 1], [], []>} : vector<8x8xf32>, vector<8x48xf32>, vector<8x48xf32> -> vector<8x48xf32>
    %22 = vector.broadcast %13 : vector<1x48xf32> to vector<8x48xf32>
    %23 = arith.addf %21, %22 : vector<8x48xf32>
    %c0_21 = arith.constant 0 : index
    %c1 = arith.constant 1 : index
    %c0_22 = arith.constant 0 : index
    %c0_23 = arith.constant 0 : index
    %24 = vector.load %arg1[%c0_21, %c1, %c0_22, %c0_23] : memref<1x8x8x8xf32, #tpu.memory_space<vmem>>, vector<1x1x8x8xf32>
    %25 = vector.shape_cast %24 : vector<1x1x8x8xf32> to vector<8x8xf32>
    %cst_24 = arith.constant dense<0.000000e+00> : vector<8x48xf32>
    %26 = tpu.matmul %25, %1, %cst_24 {dimension_numbers = #tpu.dot_dimension_numbers<[1], [0], [0], [1], [0, 0, 1, 1], [], []>} : vector<8x8xf32>, vector<8x48xf32>, vector<8x48xf32> -> vector<8x48xf32>
    %27 = vector.broadcast %9 : vector<1x48xf32> to vector<8x48xf32>
    %28 = arith.addf %26, %27 : vector<8x48xf32>
    %cst_25 = arith.constant dense<0.000000e+00> : vector<8x48xf32>
    %29 = tpu.matmul %25, %5, %cst_25 {dimension_numbers = #tpu.dot_dimension_numbers<[1], [0], [0], [1], [0, 0, 1, 1], [], []>} : vector<8x8xf32>, vector<8x48xf32>, vector<8x48xf32> -> vector<8x48xf32>
    %30 = vector.broadcast %13 : vector<1x48xf32> to vector<8x48xf32>
    %31 = arith.addf %29, %30 : vector<8x48xf32>
    %c0_26 = arith.constant 0 : index
    %c2 = arith.constant 2 : index
    %c0_27 = arith.constant 0 : index
    %c0_28 = arith.constant 0 : index
    %32 = vector.load %arg1[%c0_26, %c2, %c0_27, %c0_28] : memref<1x8x8x8xf32, #tpu.memory_space<vmem>>, vector<1x1x8x8xf32>
    %33 = vector.shape_cast %32 : vector<1x1x8x8xf32> to vector<8x8xf32>
    %cst_29 = arith.constant dense<0.000000e+00> : vector<8x48xf32>
    %34 = tpu.matmul %33, %1, %cst_29 {dimension_numbers = #tpu.dot_dimension_numbers<[1], [0], [0], [1], [0, 0, 1, 1], [], []>} : vector<8x8xf32>, vector<8x48xf32>, vector<8x48xf32> -> vector<8x48xf32>
    %35 = vector.broadcast %9 : vector<1x48xf32> to vector<8x48xf32>
    %36 = arith.addf %34, %35 : vector<8x48xf32>
    %cst_30 = arith.constant dense<0.000000e+00> : vector<8x48xf32>
    %37 = tpu.matmul %33, %5, %cst_30 {dimension_numbers = #tpu.dot_dimension_numbers<[1], [0], [0], [1], [0, 0, 1, 1], [], []>} : vector<8x8xf32>, vector<8x48xf32>, vector<8x48xf32> -> vector<8x48xf32>
    %38 = vector.broadcast %13 : vector<1x48xf32> to vector<8x48xf32>
    %39 = arith.addf %37, %38 : vector<8x48xf32>
    %c0_31 = arith.constant 0 : index
    %c3 = arith.constant 3 : index
    %c0_32 = arith.constant 0 : index
    %c0_33 = arith.constant 0 : index
    %40 = vector.load %arg1[%c0_31, %c3, %c0_32, %c0_33] : memref<1x8x8x8xf32, #tpu.memory_space<vmem>>, vector<1x1x8x8xf32>
    %41 = vector.shape_cast %40 : vector<1x1x8x8xf32> to vector<8x8xf32>
    %cst_34 = arith.constant dense<0.000000e+00> : vector<8x48xf32>
    %42 = tpu.matmul %41, %1, %cst_34 {dimension_numbers = #tpu.dot_dimension_numbers<[1], [0], [0], [1], [0, 0, 1, 1], [], []>} : vector<8x8xf32>, vector<8x48xf32>, vector<8x48xf32> -> vector<8x48xf32>
    %43 = vector.broadcast %9 : vector<1x48xf32> to vector<8x48xf32>
    %44 = arith.addf %42, %43 : vector<8x48xf32>
    %cst_35 = arith.constant dense<0.000000e+00> : vector<8x48xf32>
    %45 = tpu.matmul %41, %5, %cst_35 {dimension_numbers = #tpu.dot_dimension_numbers<[1], [0], [0], [1], [0, 0, 1, 1], [], []>} : vector<8x8xf32>, vector<8x48xf32>, vector<8x48xf32> -> vector<8x48xf32>
    %46 = vector.broadcast %13 : vector<1x48xf32> to vector<8x48xf32>
    %47 = arith.addf %45, %46 : vector<8x48xf32>
    %c0_36 = arith.constant 0 : index
    %c4 = arith.constant 4 : index
    %c0_37 = arith.constant 0 : index
    %c0_38 = arith.constant 0 : index
    %48 = vector.load %arg1[%c0_36, %c4, %c0_37, %c0_38] : memref<1x8x8x8xf32, #tpu.memory_space<vmem>>, vector<1x1x8x8xf32>
    %49 = vector.shape_cast %48 : vector<1x1x8x8xf32> to vector<8x8xf32>
    %cst_39 = arith.constant dense<0.000000e+00> : vector<8x48xf32>
    %50 = tpu.matmul %49, %1, %cst_39 {dimension_numbers = #tpu.dot_dimension_numbers<[1], [0], [0], [1], [0, 0, 1, 1], [], []>} : vector<8x8xf32>, vector<8x48xf32>, vector<8x48xf32> -> vector<8x48xf32>
    %51 = vector.broadcast %9 : vector<1x48xf32> to vector<8x48xf32>
    %52 = arith.addf %50, %51 : vector<8x48xf32>
    %cst_40 = arith.constant dense<0.000000e+00> : vector<8x48xf32>
    %53 = tpu.matmul %49, %5, %cst_40 {dimension_numbers = #tpu.dot_dimension_numbers<[1], [0], [0], [1], [0, 0, 1, 1], [], []>} : vector<8x8xf32>, vector<8x48xf32>, vector<8x48xf32> -> vector<8x48xf32>
    %54 = vector.broadcast %13 : vector<1x48xf32> to vector<8x48xf32>
    %55 = arith.addf %53, %54 : vector<8x48xf32>
    %c0_41 = arith.constant 0 : index
    %c5 = arith.constant 5 : index
    %c0_42 = arith.constant 0 : index
    %c0_43 = arith.constant 0 : index
    %56 = vector.load %arg1[%c0_41, %c5, %c0_42, %c0_43] : memref<1x8x8x8xf32, #tpu.memory_space<vmem>>, vector<1x1x8x8xf32>
    %57 = vector.shape_cast %56 : vector<1x1x8x8xf32> to vector<8x8xf32>
    %cst_44 = arith.constant dense<0.000000e+00> : vector<8x48xf32>
    %58 = tpu.matmul %57, %1, %cst_44 {dimension_numbers = #tpu.dot_dimension_numbers<[1], [0], [0], [1], [0, 0, 1, 1], [], []>} : vector<8x8xf32>, vector<8x48xf32>, vector<8x48xf32> -> vector<8x48xf32>
    %59 = vector.broadcast %9 : vector<1x48xf32> to vector<8x48xf32>
    %60 = arith.addf %58, %59 : vector<8x48xf32>
    %cst_45 = arith.constant dense<0.000000e+00> : vector<8x48xf32>
    %61 = tpu.matmul %57, %5, %cst_45 {dimension_numbers = #tpu.dot_dimension_numbers<[1], [0], [0], [1], [0, 0, 1, 1], [], []>} : vector<8x8xf32>, vector<8x48xf32>, vector<8x48xf32> -> vector<8x48xf32>
    %62 = vector.broadcast %13 : vector<1x48xf32> to vector<8x48xf32>
    %63 = arith.addf %61, %62 : vector<8x48xf32>
    %c0_46 = arith.constant 0 : index
    %c6 = arith.constant 6 : index
    %c0_47 = arith.constant 0 : index
    %c0_48 = arith.constant 0 : index
    %64 = vector.load %arg1[%c0_46, %c6, %c0_47, %c0_48] : memref<1x8x8x8xf32, #tpu.memory_space<vmem>>, vector<1x1x8x8xf32>
    %65 = vector.shape_cast %64 : vector<1x1x8x8xf32> to vector<8x8xf32>
    %cst_49 = arith.constant dense<0.000000e+00> : vector<8x48xf32>
    %66 = tpu.matmul %65, %1, %cst_49 {dimension_numbers = #tpu.dot_dimension_numbers<[1], [0], [0], [1], [0, 0, 1, 1], [], []>} : vector<8x8xf32>, vector<8x48xf32>, vector<8x48xf32> -> vector<8x48xf32>
    %67 = vector.broadcast %9 : vector<1x48xf32> to vector<8x48xf32>
    %68 = arith.addf %66, %67 : vector<8x48xf32>
    %cst_50 = arith.constant dense<0.000000e+00> : vector<8x48xf32>
    %69 = tpu.matmul %65, %5, %cst_50 {dimension_numbers = #tpu.dot_dimension_numbers<[1], [0], [0], [1], [0, 0, 1, 1], [], []>} : vector<8x8xf32>, vector<8x48xf32>, vector<8x48xf32> -> vector<8x48xf32>
    %70 = vector.broadcast %13 : vector<1x48xf32> to vector<8x48xf32>
    %71 = arith.addf %69, %70 : vector<8x48xf32>
    %c0_51 = arith.constant 0 : index
    %c7 = arith.constant 7 : index
    %c0_52 = arith.constant 0 : index
    %c0_53 = arith.constant 0 : index
    %72 = vector.load %arg1[%c0_51, %c7, %c0_52, %c0_53] : memref<1x8x8x8xf32, #tpu.memory_space<vmem>>, vector<1x1x8x8xf32>
    %73 = vector.shape_cast %72 : vector<1x1x8x8xf32> to vector<8x8xf32>
    %cst_54 = arith.constant dense<0.000000e+00> : vector<8x48xf32>
    %74 = tpu.matmul %73, %1, %cst_54 {dimension_numbers = #tpu.dot_dimension_numbers<[1], [0], [0], [1], [0, 0, 1, 1], [], []>} : vector<8x8xf32>, vector<8x48xf32>, vector<8x48xf32> -> vector<8x48xf32>
    %75 = vector.broadcast %9 : vector<1x48xf32> to vector<8x48xf32>
    %76 = arith.addf %74, %75 : vector<8x48xf32>
    %cst_55 = arith.constant dense<0.000000e+00> : vector<8x48xf32>
    %77 = tpu.matmul %73, %5, %cst_55 {dimension_numbers = #tpu.dot_dimension_numbers<[1], [0], [0], [1], [0, 0, 1, 1], [], []>} : vector<8x8xf32>, vector<8x48xf32>, vector<8x48xf32> -> vector<8x48xf32>
    %78 = vector.broadcast %13 : vector<1x48xf32> to vector<8x48xf32>
    %79 = arith.addf %77, %78 : vector<8x48xf32>
    %cst_56 = arith.constant 1.000000e-03 : f32
    %80 = vector.broadcast %cst_56 : f32 to vector<8x16xf32>
    %cst_57 = arith.constant 1.000000e-03 : f32
    %81 = vector.broadcast %cst_57 : f32 to vector<8x16xf32>
    %cst_58 = arith.constant dense<0.000000e+00> : vector<8x48xf32>
    %82 = tpu.matmul %80, %3, %cst_58 {dimension_numbers = #tpu.dot_dimension_numbers<[1], [0], [0], [1], [0, 0, 1, 1], [], []>} : vector<8x16xf32>, vector<16x48xf32>, vector<8x48xf32> -> vector<8x48xf32>
    %83 = vector.broadcast %11 : vector<1x48xf32> to vector<8x48xf32>
    %84 = arith.addf %82, %83 : vector<8x48xf32>
    %cst_59 = arith.constant dense<0.000000e+00> : vector<8x48xf32>
    %85 = tpu.matmul %81, %7, %cst_59 {dimension_numbers = #tpu.dot_dimension_numbers<[1], [0], [0], [1], [0, 0, 1, 1], [], []>} : vector<8x16xf32>, vector<16x48xf32>, vector<8x48xf32> -> vector<8x48xf32>
    %86 = vector.broadcast %15 : vector<1x48xf32> to vector<8x48xf32>
    %87 = arith.addf %85, %86 : vector<8x48xf32>
    %88 = vector.extract_strided_slice %20 {offsets = [0, 0], sizes = [8, 16], strides = [1, 1]} : vector<8x48xf32> to vector<8x16xf32>
    %89 = vector.extract_strided_slice %84 {offsets = [0, 0], sizes = [8, 16], strides = [1, 1]} : vector<8x48xf32> to vector<8x16xf32>
    %90 = arith.addf %88, %89 : vector<8x16xf32>
    %cst_60 = arith.constant 0.000000e+00 : f32
    %91 = vector.broadcast %cst_60 : f32 to vector<8x16xf32>
    %92 = arith.subf %91, %90 : vector<8x16xf32>
    %93 = math.exp %92 : vector<8x16xf32>
    %cst_61 = arith.constant 1.000000e+00 : f32
    %94 = vector.broadcast %cst_61 : f32 to vector<8x16xf32>
    %95 = arith.addf %94, %93 : vector<8x16xf32>
    %cst_62 = arith.constant 1.000000e+00 : f32
    %96 = vector.broadcast %cst_62 : f32 to vector<8x16xf32>
    %97 = arith.divf %96, %95 : vector<8x16xf32>
    %98 = vector.extract_strided_slice %20 {offsets = [0, 16], sizes = [8, 16], strides = [1, 1]} : vector<8x48xf32> to vector<8x16xf32>
    %99 = vector.extract_strided_slice %84 {offsets = [0, 16], sizes = [8, 16], strides = [1, 1]} : vector<8x48xf32> to vector<8x16xf32>
    %100 = arith.addf %98, %99 : vector<8x16xf32>
    %cst_63 = arith.constant 0.000000e+00 : f32
    %101 = vector.broadcast %cst_63 : f32 to vector<8x16xf32>
    %102 = arith.subf %101, %100 : vector<8x16xf32>
    %103 = math.exp %102 : vector<8x16xf32>
    %cst_64 = arith.constant 1.000000e+00 : f32
    %104 = vector.broadcast %cst_64 : f32 to vector<8x16xf32>
    %105 = arith.addf %104, %103 : vector<8x16xf32>
    %cst_65 = arith.constant 1.000000e+00 : f32
    %106 = vector.broadcast %cst_65 : f32 to vector<8x16xf32>
    %107 = arith.divf %106, %105 : vector<8x16xf32>
    %108 = vector.extract_strided_slice %20 {offsets = [0, 32], sizes = [8, 16], strides = [1, 1]} : vector<8x48xf32> to vector<8x16xf32>
    %109 = vector.extract_strided_slice %84 {offsets = [0, 32], sizes = [8, 16], strides = [1, 1]} : vector<8x48xf32> to vector<8x16xf32>
    %110 = arith.mulf %97, %109 : vector<8x16xf32>
    %111 = arith.addf %108, %110 : vector<8x16xf32>
    %112 = math.tanh %111 : vector<8x16xf32>
    %cst_66 = arith.constant 1.000000e+00 : f32
    %113 = vector.broadcast %cst_66 : f32 to vector<8x16xf32>
    %114 = arith.subf %113, %107 : vector<8x16xf32>
    %115 = arith.mulf %114, %112 : vector<8x16xf32>
    %116 = arith.mulf %107, %80 : vector<8x16xf32>
    %117 = arith.addf %115, %116 : vector<8x16xf32>
    %118 = vector.extract_strided_slice %79 {offsets = [0, 0], sizes = [8, 16], strides = [1, 1]} : vector<8x48xf32> to vector<8x16xf32>
    %119 = vector.extract_strided_slice %87 {offsets = [0, 0], sizes = [8, 16], strides = [1, 1]} : vector<8x48xf32> to vector<8x16xf32>
    %120 = arith.addf %118, %119 : vector<8x16xf32>
    %cst_67 = arith.constant 0.000000e+00 : f32
    %121 = vector.broadcast %cst_67 : f32 to vector<8x16xf32>
    %122 = arith.subf %121, %120 : vector<8x16xf32>
    %123 = math.exp %122 : vector<8x16xf32>
    %cst_68 = arith.constant 1.000000e+00 : f32
    %124 = vector.broadcast %cst_68 : f32 to vector<8x16xf32>
    %125 = arith.addf %124, %123 : vector<8x16xf32>
    %cst_69 = arith.constant 1.000000e+00 : f32
    %126 = vector.broadcast %cst_69 : f32 to vector<8x16xf32>
    %127 = arith.divf %126, %125 : vector<8x16xf32>
    %128 = vector.extract_strided_slice %79 {offsets = [0, 16], sizes = [8, 16], strides = [1, 1]} : vector<8x48xf32> to vector<8x16xf32>
    %129 = vector.extract_strided_slice %87 {offsets = [0, 16], sizes = [8, 16], strides = [1, 1]} : vector<8x48xf32> to vector<8x16xf32>
    %130 = arith.addf %128, %129 : vector<8x16xf32>
    %cst_70 = arith.constant 0.000000e+00 : f32
    %131 = vector.broadcast %cst_70 : f32 to vector<8x16xf32>
    %132 = arith.subf %131, %130 : vector<8x16xf32>
    %133 = math.exp %132 : vector<8x16xf32>
    %cst_71 = arith.constant 1.000000e+00 : f32
    %134 = vector.broadcast %cst_71 : f32 to vector<8x16xf32>
    %135 = arith.addf %134, %133 : vector<8x16xf32>
    %cst_72 = arith.constant 1.000000e+00 : f32
    %136 = vector.broadcast %cst_72 : f32 to vector<8x16xf32>
    %137 = arith.divf %136, %135 : vector<8x16xf32>
    %138 = vector.extract_strided_slice %79 {offsets = [0, 32], sizes = [8, 16], strides = [1, 1]} : vector<8x48xf32> to vector<8x16xf32>
    %139 = vector.extract_strided_slice %87 {offsets = [0, 32], sizes = [8, 16], strides = [1, 1]} : vector<8x48xf32> to vector<8x16xf32>
    %140 = arith.mulf %127, %139 : vector<8x16xf32>
    %141 = arith.addf %138, %140 : vector<8x16xf32>
    %142 = math.tanh %141 : vector<8x16xf32>
    %cst_73 = arith.constant 1.000000e+00 : f32
    %143 = vector.broadcast %cst_73 : f32 to vector<8x16xf32>
    %144 = arith.subf %143, %137 : vector<8x16xf32>
    %145 = arith.mulf %144, %142 : vector<8x16xf32>
    %146 = arith.mulf %137, %81 : vector<8x16xf32>
    %147 = arith.addf %145, %146 : vector<8x16xf32>
    %c0_74 = arith.constant 0 : index
    %c0_75 = arith.constant 0 : index
    %c0_76 = arith.constant 0 : index
    %148 = vector.load %arg6[%c0_74, %c0_75, %c0_76] : memref<8x8x16xf32, #tpu.memory_space<vmem>>, vector<1x8x16xf32>
    %149 = vector.shape_cast %148 : vector<1x8x16xf32> to vector<8x16xf32>
    %150 = vector.shape_cast %117 : vector<8x16xf32> to vector<1x8x16xf32>
    tpu.vector_store %arg6[%c0_74, %c0_75, %c0_76], %150 {strides = array<i32>} : memref<8x8x16xf32, #tpu.memory_space<vmem>>, vector<1x8x16xf32>,
    %c7_77 = arith.constant 7 : index
    %c0_78 = arith.constant 0 : index
    %c0_79 = arith.constant 0 : index
    %151 = vector.load %arg7[%c7_77, %c0_78, %c0_79] : memref<8x8x16xf32, #tpu.memory_space<vmem>>, vector<1x8x16xf32>
    %152 = vector.shape_cast %151 : vector<1x8x16xf32> to vector<8x16xf32>
    %153 = vector.shape_cast %147 : vector<8x16xf32> to vector<1x8x16xf32>
    tpu.vector_store %arg7[%c7_77, %c0_78, %c0_79], %153 {strides = array<i32>} : memref<8x8x16xf32, #tpu.memory_space<vmem>>, vector<1x8x16xf32>,
    %cst_80 = arith.constant dense<0.000000e+00> : vector<8x48xf32>
    %154 = tpu.matmul %117, %3, %cst_80 {dimension_numbers = #tpu.dot_dimension_numbers<[1], [0], [0], [1], [0, 0, 1, 1], [], []>} : vector<8x16xf32>, vector<16x48xf32>, vector<8x48xf32> -> vector<8x48xf32>
    %155 = vector.broadcast %11 : vector<1x48xf32> to vector<8x48xf32>
    %156 = arith.addf %154, %155 : vector<8x48xf32>
    %cst_81 = arith.constant dense<0.000000e+00> : vector<8x48xf32>
    %157 = tpu.matmul %147, %7, %cst_81 {dimension_numbers = #tpu.dot_dimension_numbers<[1], [0], [0], [1], [0, 0, 1, 1], [], []>} : vector<8x16xf32>, vector<16x48xf32>, vector<8x48xf32> -> vector<8x48xf32>
    %158 = vector.broadcast %15 : vector<1x48xf32> to vector<8x48xf32>
    %159 = arith.addf %157, %158 : vector<8x48xf32>
    %160 = vector.extract_strided_slice %28 {offsets = [0, 0], sizes = [8, 16], strides = [1, 1]} : vector<8x48xf32> to vector<8x16xf32>
    %161 = vector.extract_strided_slice %156 {offsets = [0, 0], sizes = [8, 16], strides = [1, 1]} : vector<8x48xf32> to vector<8x16xf32>
    %162 = arith.addf %160, %161 : vector<8x16xf32>
    %cst_82 = arith.constant 0.000000e+00 : f32
    %163 = vector.broadcast %cst_82 : f32 to vector<8x16xf32>
    %164 = arith.subf %163, %162 : vector<8x16xf32>
    %165 = math.exp %164 : vector<8x16xf32>
    %cst_83 = arith.constant 1.000000e+00 : f32
    %166 = vector.broadcast %cst_83 : f32 to vector<8x16xf32>
    %167 = arith.addf %166, %165 : vector<8x16xf32>
    %cst_84 = arith.constant 1.000000e+00 : f32
    %168 = vector.broadcast %cst_84 : f32 to vector<8x16xf32>
    %169 = arith.divf %168, %167 : vector<8x16xf32>
    %170 = vector.extract_strided_slice %28 {offsets = [0, 16], sizes = [8, 16], strides = [1, 1]} : vector<8x48xf32> to vector<8x16xf32>
    %171 = vector.extract_strided_slice %156 {offsets = [0, 16], sizes = [8, 16], strides = [1, 1]} : vector<8x48xf32> to vector<8x16xf32>
    %172 = arith.addf %170, %171 : vector<8x16xf32>
    %cst_85 = arith.constant 0.000000e+00 : f32
    %173 = vector.broadcast %cst_85 : f32 to vector<8x16xf32>
    %174 = arith.subf %173, %172 : vector<8x16xf32>
    %175 = math.exp %174 : vector<8x16xf32>
    %cst_86 = arith.constant 1.000000e+00 : f32
    %176 = vector.broadcast %cst_86 : f32 to vector<8x16xf32>
    %177 = arith.addf %176, %175 : vector<8x16xf32>
    %cst_87 = arith.constant 1.000000e+00 : f32
    %178 = vector.broadcast %cst_87 : f32 to vector<8x16xf32>
    %179 = arith.divf %178, %177 : vector<8x16xf32>
    %180 = vector.extract_strided_slice %28 {offsets = [0, 32], sizes = [8, 16], strides = [1, 1]} : vector<8x48xf32> to vector<8x16xf32>
    %181 = vector.extract_strided_slice %156 {offsets = [0, 32], sizes = [8, 16], strides = [1, 1]} : vector<8x48xf32> to vector<8x16xf32>
    %182 = arith.mulf %169, %181 : vector<8x16xf32>
    %183 = arith.addf %180, %182 : vector<8x16xf32>
    %184 = math.tanh %183 : vector<8x16xf32>
    %cst_88 = arith.constant 1.000000e+00 : f32
    %185 = vector.broadcast %cst_88 : f32 to vector<8x16xf32>
    %186 = arith.subf %185, %179 : vector<8x16xf32>
    %187 = arith.mulf %186, %184 : vector<8x16xf32>
    %188 = arith.mulf %179, %117 : vector<8x16xf32>
    %189 = arith.addf %187, %188 : vector<8x16xf32>
    %190 = vector.extract_strided_slice %71 {offsets = [0, 0], sizes = [8, 16], strides = [1, 1]} : vector<8x48xf32> to vector<8x16xf32>
    %191 = vector.extract_strided_slice %159 {offsets = [0, 0], sizes = [8, 16], strides = [1, 1]} : vector<8x48xf32> to vector<8x16xf32>
    %192 = arith.addf %190, %191 : vector<8x16xf32>
    %cst_89 = arith.constant 0.000000e+00 : f32
    %193 = vector.broadcast %cst_89 : f32 to vector<8x16xf32>
    %194 = arith.subf %193, %192 : vector<8x16xf32>
    %195 = math.exp %194 : vector<8x16xf32>
    %cst_90 = arith.constant 1.000000e+00 : f32
    %196 = vector.broadcast %cst_90 : f32 to vector<8x16xf32>
    %197 = arith.addf %196, %195 : vector<8x16xf32>
    %cst_91 = arith.constant 1.000000e+00 : f32
    %198 = vector.broadcast %cst_91 : f32 to vector<8x16xf32>
    %199 = arith.divf %198, %197 : vector<8x16xf32>
    %200 = vector.extract_strided_slice %71 {offsets = [0, 16], sizes = [8, 16], strides = [1, 1]} : vector<8x48xf32> to vector<8x16xf32>
    %201 = vector.extract_strided_slice %159 {offsets = [0, 16], sizes = [8, 16], strides = [1, 1]} : vector<8x48xf32> to vector<8x16xf32>
    %202 = arith.addf %200, %201 : vector<8x16xf32>
    %cst_92 = arith.constant 0.000000e+00 : f32
    %203 = vector.broadcast %cst_92 : f32 to vector<8x16xf32>
    %204 = arith.subf %203, %202 : vector<8x16xf32>
    %205 = math.exp %204 : vector<8x16xf32>
    %cst_93 = arith.constant 1.000000e+00 : f32
    %206 = vector.broadcast %cst_93 : f32 to vector<8x16xf32>
    %207 = arith.addf %206, %205 : vector<8x16xf32>
    %cst_94 = arith.constant 1.000000e+00 : f32
    %208 = vector.broadcast %cst_94 : f32 to vector<8x16xf32>
    %209 = arith.divf %208, %207 : vector<8x16xf32>
    %210 = vector.extract_strided_slice %71 {offsets = [0, 32], sizes = [8, 16], strides = [1, 1]} : vector<8x48xf32> to vector<8x16xf32>
    %211 = vector.extract_strided_slice %159 {offsets = [0, 32], sizes = [8, 16], strides = [1, 1]} : vector<8x48xf32> to vector<8x16xf32>
    %212 = arith.mulf %199, %211 : vector<8x16xf32>
    %213 = arith.addf %210, %212 : vector<8x16xf32>
    %214 = math.tanh %213 : vector<8x16xf32>
    %cst_95 = arith.constant 1.000000e+00 : f32
    %215 = vector.broadcast %cst_95 : f32 to vector<8x16xf32>
    %216 = arith.subf %215, %209 : vector<8x16xf32>
    %217 = arith.mulf %216, %214 : vector<8x16xf32>
    %218 = arith.mulf %209, %147 : vector<8x16xf32>
    %219 = arith.addf %217, %218 : vector<8x16xf32>
    %c1_96 = arith.constant 1 : index
    %c0_97 = arith.constant 0 : index
    %c0_98 = arith.constant 0 : index
    %220 = vector.load %arg6[%c1_96, %c0_97, %c0_98] : memref<8x8x16xf32, #tpu.memory_space<vmem>>, vector<1x8x16xf32>
    %221 = vector.shape_cast %220 : vector<1x8x16xf32> to vector<8x16xf32>
    %222 = vector.shape_cast %189 : vector<8x16xf32> to vector<1x8x16xf32>
    tpu.vector_store %arg6[%c1_96, %c0_97, %c0_98], %222 {strides = array<i32>} : memref<8x8x16xf32, #tpu.memory_space<vmem>>, vector<1x8x16xf32>,
    %c6_99 = arith.constant 6 : index
    %c0_100 = arith.constant 0 : index
    %c0_101 = arith.constant 0 : index
    %223 = vector.load %arg7[%c6_99, %c0_100, %c0_101] : memref<8x8x16xf32, #tpu.memory_space<vmem>>, vector<1x8x16xf32>
    %224 = vector.shape_cast %223 : vector<1x8x16xf32> to vector<8x16xf32>
    %225 = vector.shape_cast %219 : vector<8x16xf32> to vector<1x8x16xf32>
    tpu.vector_store %arg7[%c6_99, %c0_100, %c0_101], %225 {strides = array<i32>} : memref<8x8x16xf32, #tpu.memory_space<vmem>>, vector<1x8x16xf32>,
    %cst_102 = arith.constant dense<0.000000e+00> : vector<8x48xf32>
    %226 = tpu.matmul %189, %3, %cst_102 {dimension_numbers = #tpu.dot_dimension_numbers<[1], [0], [0], [1], [0, 0, 1, 1], [], []>} : vector<8x16xf32>, vector<16x48xf32>, vector<8x48xf32> -> vector<8x48xf32>
    %227 = vector.broadcast %11 : vector<1x48xf32> to vector<8x48xf32>
    %228 = arith.addf %226, %227 : vector<8x48xf32>
    %cst_103 = arith.constant dense<0.000000e+00> : vector<8x48xf32>
    %229 = tpu.matmul %219, %7, %cst_103 {dimension_numbers = #tpu.dot_dimension_numbers<[1], [0], [0], [1], [0, 0, 1, 1], [], []>} : vector<8x16xf32>, vector<16x48xf32>, vector<8x48xf32> -> vector<8x48xf32>
    %230 = vector.broadcast %15 : vector<1x48xf32> to vector<8x48xf32>
    %231 = arith.addf %229, %230 : vector<8x48xf32>
    %232 = vector.extract_strided_slice %36 {offsets = [0, 0], sizes = [8, 16], strides = [1, 1]} : vector<8x48xf32> to vector<8x16xf32>
    %233 = vector.extract_strided_slice %228 {offsets = [0, 0], sizes = [8, 16], strides = [1, 1]} : vector<8x48xf32> to vector<8x16xf32>
    %234 = arith.addf %232, %233 : vector<8x16xf32>
    %cst_104 = arith.constant 0.000000e+00 : f32
    %235 = vector.broadcast %cst_104 : f32 to vector<8x16xf32>
    %236 = arith.subf %235, %234 : vector<8x16xf32>
    %237 = math.exp %236 : vector<8x16xf32>
    %cst_105 = arith.constant 1.000000e+00 : f32
    %238 = vector.broadcast %cst_105 : f32 to vector<8x16xf32>
    %239 = arith.addf %238, %237 : vector<8x16xf32>
    %cst_106 = arith.constant 1.000000e+00 : f32
    %240 = vector.broadcast %cst_106 : f32 to vector<8x16xf32>
    %241 = arith.divf %240, %239 : vector<8x16xf32>
    %242 = vector.extract_strided_slice %36 {offsets = [0, 16], sizes = [8, 16], strides = [1, 1]} : vector<8x48xf32> to vector<8x16xf32>
    %243 = vector.extract_strided_slice %228 {offsets = [0, 16], sizes = [8, 16], strides = [1, 1]} : vector<8x48xf32> to vector<8x16xf32>
    %244 = arith.addf %242, %243 : vector<8x16xf32>
    %cst_107 = arith.constant 0.000000e+00 : f32
    %245 = vector.broadcast %cst_107 : f32 to vector<8x16xf32>
    %246 = arith.subf %245, %244 : vector<8x16xf32>
    %247 = math.exp %246 : vector<8x16xf32>
    %cst_108 = arith.constant 1.000000e+00 : f32
    %248 = vector.broadcast %cst_108 : f32 to vector<8x16xf32>
    %249 = arith.addf %248, %247 : vector<8x16xf32>
    %cst_109 = arith.constant 1.000000e+00 : f32
    %250 = vector.broadcast %cst_109 : f32 to vector<8x16xf32>
    %251 = arith.divf %250, %249 : vector<8x16xf32>
    %252 = vector.extract_strided_slice %36 {offsets = [0, 32], sizes = [8, 16], strides = [1, 1]} : vector<8x48xf32> to vector<8x16xf32>
    %253 = vector.extract_strided_slice %228 {offsets = [0, 32], sizes = [8, 16], strides = [1, 1]} : vector<8x48xf32> to vector<8x16xf32>
    %254 = arith.mulf %241, %253 : vector<8x16xf32>
    %255 = arith.addf %252, %254 : vector<8x16xf32>
    %256 = math.tanh %255 : vector<8x16xf32>
    %cst_110 = arith.constant 1.000000e+00 : f32
    %257 = vector.broadcast %cst_110 : f32 to vector<8x16xf32>
    %258 = arith.subf %257, %251 : vector<8x16xf32>
    %259 = arith.mulf %258, %256 : vector<8x16xf32>
    %260 = arith.mulf %251, %189 : vector<8x16xf32>
    %261 = arith.addf %259, %260 : vector<8x16xf32>
    %262 = vector.extract_strided_slice %63 {offsets = [0, 0], sizes = [8, 16], strides = [1, 1]} : vector<8x48xf32> to vector<8x16xf32>
    %263 = vector.extract_strided_slice %231 {offsets = [0, 0], sizes = [8, 16], strides = [1, 1]} : vector<8x48xf32> to vector<8x16xf32>
    %264 = arith.addf %262, %263 : vector<8x16xf32>
    %cst_111 = arith.constant 0.000000e+00 : f32
    %265 = vector.broadcast %cst_111 : f32 to vector<8x16xf32>
    %266 = arith.subf %265, %264 : vector<8x16xf32>
    %267 = math.exp %266 : vector<8x16xf32>
    %cst_112 = arith.constant 1.000000e+00 : f32
    %268 = vector.broadcast %cst_112 : f32 to vector<8x16xf32>
    %269 = arith.addf %268, %267 : vector<8x16xf32>
    %cst_113 = arith.constant 1.000000e+00 : f32
    %270 = vector.broadcast %cst_113 : f32 to vector<8x16xf32>
    %271 = arith.divf %270, %269 : vector<8x16xf32>
    %272 = vector.extract_strided_slice %63 {offsets = [0, 16], sizes = [8, 16], strides = [1, 1]} : vector<8x48xf32> to vector<8x16xf32>
    %273 = vector.extract_strided_slice %231 {offsets = [0, 16], sizes = [8, 16], strides = [1, 1]} : vector<8x48xf32> to vector<8x16xf32>
    %274 = arith.addf %272, %273 : vector<8x16xf32>
    %cst_114 = arith.constant 0.000000e+00 : f32
    %275 = vector.broadcast %cst_114 : f32 to vector<8x16xf32>
    %276 = arith.subf %275, %274 : vector<8x16xf32>
    %277 = math.exp %276 : vector<8x16xf32>
    %cst_115 = arith.constant 1.000000e+00 : f32
    %278 = vector.broadcast %cst_115 : f32 to vector<8x16xf32>
    %279 = arith.addf %278, %277 : vector<8x16xf32>
    %cst_116 = arith.constant 1.000000e+00 : f32
    %280 = vector.broadcast %cst_116 : f32 to vector<8x16xf32>
    %281 = arith.divf %280, %279 : vector<8x16xf32>
    %282 = vector.extract_strided_slice %63 {offsets = [0, 32], sizes = [8, 16], strides = [1, 1]} : vector<8x48xf32> to vector<8x16xf32>
    %283 = vector.extract_strided_slice %231 {offsets = [0, 32], sizes = [8, 16], strides = [1, 1]} : vector<8x48xf32> to vector<8x16xf32>
    %284 = arith.mulf %271, %283 : vector<8x16xf32>
    %285 = arith.addf %282, %284 : vector<8x16xf32>
    %286 = math.tanh %285 : vector<8x16xf32>
    %cst_117 = arith.constant 1.000000e+00 : f32
    %287 = vector.broadcast %cst_117 : f32 to vector<8x16xf32>
    %288 = arith.subf %287, %281 : vector<8x16xf32>
    %289 = arith.mulf %288, %286 : vector<8x16xf32>
    %290 = arith.mulf %281, %219 : vector<8x16xf32>
    %291 = arith.addf %289, %290 : vector<8x16xf32>
    %c2_118 = arith.constant 2 : index
    %c0_119 = arith.constant 0 : index
    %c0_120 = arith.constant 0 : index
    %292 = vector.load %arg6[%c2_118, %c0_119, %c0_120] : memref<8x8x16xf32, #tpu.memory_space<vmem>>, vector<1x8x16xf32>
    %293 = vector.shape_cast %292 : vector<1x8x16xf32> to vector<8x16xf32>
    %294 = vector.shape_cast %261 : vector<8x16xf32> to vector<1x8x16xf32>
    tpu.vector_store %arg6[%c2_118, %c0_119, %c0_120], %294 {strides = array<i32>} : memref<8x8x16xf32, #tpu.memory_space<vmem>>, vector<1x8x16xf32>,
    %c5_121 = arith.constant 5 : index
    %c0_122 = arith.constant 0 : index
    %c0_123 = arith.constant 0 : index
    %295 = vector.load %arg7[%c5_121, %c0_122, %c0_123] : memref<8x8x16xf32, #tpu.memory_space<vmem>>, vector<1x8x16xf32>
    %296 = vector.shape_cast %295 : vector<1x8x16xf32> to vector<8x16xf32>
    %297 = vector.shape_cast %291 : vector<8x16xf32> to vector<1x8x16xf32>
    tpu.vector_store %arg7[%c5_121, %c0_122, %c0_123], %297 {strides = array<i32>} : memref<8x8x16xf32, #tpu.memory_space<vmem>>, vector<1x8x16xf32>,
    %cst_124 = arith.constant dense<0.000000e+00> : vector<8x48xf32>
    %298 = tpu.matmul %261, %3, %cst_124 {dimension_numbers = #tpu.dot_dimension_numbers<[1], [0], [0], [1], [0, 0, 1, 1], [], []>} : vector<8x16xf32>, vector<16x48xf32>, vector<8x48xf32> -> vector<8x48xf32>
    %299 = vector.broadcast %11 : vector<1x48xf32> to vector<8x48xf32>
    %300 = arith.addf %298, %299 : vector<8x48xf32>
    %cst_125 = arith.constant dense<0.000000e+00> : vector<8x48xf32>
    %301 = tpu.matmul %291, %7, %cst_125 {dimension_numbers = #tpu.dot_dimension_numbers<[1], [0], [0], [1], [0, 0, 1, 1], [], []>} : vector<8x16xf32>, vector<16x48xf32>, vector<8x48xf32> -> vector<8x48xf32>
    %302 = vector.broadcast %15 : vector<1x48xf32> to vector<8x48xf32>
    %303 = arith.addf %301, %302 : vector<8x48xf32>
    %304 = vector.extract_strided_slice %44 {offsets = [0, 0], sizes = [8, 16], strides = [1, 1]} : vector<8x48xf32> to vector<8x16xf32>
    %305 = vector.extract_strided_slice %300 {offsets = [0, 0], sizes = [8, 16], strides = [1, 1]} : vector<8x48xf32> to vector<8x16xf32>
    %306 = arith.addf %304, %305 : vector<8x16xf32>
    %cst_126 = arith.constant 0.000000e+00 : f32
    %307 = vector.broadcast %cst_126 : f32 to vector<8x16xf32>
    %308 = arith.subf %307, %306 : vector<8x16xf32>
    %309 = math.exp %308 : vector<8x16xf32>
    %cst_127 = arith.constant 1.000000e+00 : f32
    %310 = vector.broadcast %cst_127 : f32 to vector<8x16xf32>
    %311 = arith.addf %310, %309 : vector<8x16xf32>
    %cst_128 = arith.constant 1.000000e+00 : f32
    %312 = vector.broadcast %cst_128 : f32 to vector<8x16xf32>
    %313 = arith.divf %312, %311 : vector<8x16xf32>
    %314 = vector.extract_strided_slice %44 {offsets = [0, 16], sizes = [8, 16], strides = [1, 1]} : vector<8x48xf32> to vector<8x16xf32>
    %315 = vector.extract_strided_slice %300 {offsets = [0, 16], sizes = [8, 16], strides = [1, 1]} : vector<8x48xf32> to vector<8x16xf32>
    %316 = arith.addf %314, %315 : vector<8x16xf32>
    %cst_129 = arith.constant 0.000000e+00 : f32
    %317 = vector.broadcast %cst_129 : f32 to vector<8x16xf32>
    %318 = arith.subf %317, %316 : vector<8x16xf32>
    %319 = math.exp %318 : vector<8x16xf32>
    %cst_130 = arith.constant 1.000000e+00 : f32
    %320 = vector.broadcast %cst_130 : f32 to vector<8x16xf32>
    %321 = arith.addf %320, %319 : vector<8x16xf32>
    %cst_131 = arith.constant 1.000000e+00 : f32
    %322 = vector.broadcast %cst_131 : f32 to vector<8x16xf32>
    %323 = arith.divf %322, %321 : vector<8x16xf32>
    %324 = vector.extract_strided_slice %44 {offsets = [0, 32], sizes = [8, 16], strides = [1, 1]} : vector<8x48xf32> to vector<8x16xf32>
    %325 = vector.extract_strided_slice %300 {offsets = [0, 32], sizes = [8, 16], strides = [1, 1]} : vector<8x48xf32> to vector<8x16xf32>
    %326 = arith.mulf %313, %325 : vector<8x16xf32>
    %327 = arith.addf %324, %326 : vector<8x16xf32>
    %328 = math.tanh %327 : vector<8x16xf32>
    %cst_132 = arith.constant 1.000000e+00 : f32
    %329 = vector.broadcast %cst_132 : f32 to vector<8x16xf32>
    %330 = arith.subf %329, %323 : vector<8x16xf32>
    %331 = arith.mulf %330, %328 : vector<8x16xf32>
    %332 = arith.mulf %323, %261 : vector<8x16xf32>
    %333 = arith.addf %331, %332 : vector<8x16xf32>
    %334 = vector.extract_strided_slice %55 {offsets = [0, 0], sizes = [8, 16], strides = [1, 1]} : vector<8x48xf32> to vector<8x16xf32>
    %335 = vector.extract_strided_slice %303 {offsets = [0, 0], sizes = [8, 16], strides = [1, 1]} : vector<8x48xf32> to vector<8x16xf32>
    %336 = arith.addf %334, %335 : vector<8x16xf32>
    %cst_133 = arith.constant 0.000000e+00 : f32
    %337 = vector.broadcast %cst_133 : f32 to vector<8x16xf32>
    %338 = arith.subf %337, %336 : vector<8x16xf32>
    %339 = math.exp %338 : vector<8x16xf32>
    %cst_134 = arith.constant 1.000000e+00 : f32
    %340 = vector.broadcast %cst_134 : f32 to vector<8x16xf32>
    %341 = arith.addf %340, %339 : vector<8x16xf32>
    %cst_135 = arith.constant 1.000000e+00 : f32
    %342 = vector.broadcast %cst_135 : f32 to vector<8x16xf32>
    %343 = arith.divf %342, %341 : vector<8x16xf32>
    %344 = vector.extract_strided_slice %55 {offsets = [0, 16], sizes = [8, 16], strides = [1, 1]} : vector<8x48xf32> to vector<8x16xf32>
    %345 = vector.extract_strided_slice %303 {offsets = [0, 16], sizes = [8, 16], strides = [1, 1]} : vector<8x48xf32> to vector<8x16xf32>
    %346 = arith.addf %344, %345 : vector<8x16xf32>
    %cst_136 = arith.constant 0.000000e+00 : f32
    %347 = vector.broadcast %cst_136 : f32 to vector<8x16xf32>
    %348 = arith.subf %347, %346 : vector<8x16xf32>
    %349 = math.exp %348 : vector<8x16xf32>
    %cst_137 = arith.constant 1.000000e+00 : f32
    %350 = vector.broadcast %cst_137 : f32 to vector<8x16xf32>
    %351 = arith.addf %350, %349 : vector<8x16xf32>
    %cst_138 = arith.constant 1.000000e+00 : f32
    %352 = vector.broadcast %cst_138 : f32 to vector<8x16xf32>
    %353 = arith.divf %352, %351 : vector<8x16xf32>
    %354 = vector.extract_strided_slice %55 {offsets = [0, 32], sizes = [8, 16], strides = [1, 1]} : vector<8x48xf32> to vector<8x16xf32>
    %355 = vector.extract_strided_slice %303 {offsets = [0, 32], sizes = [8, 16], strides = [1, 1]} : vector<8x48xf32> to vector<8x16xf32>
    %356 = arith.mulf %343, %355 : vector<8x16xf32>
    %357 = arith.addf %354, %356 : vector<8x16xf32>
    %358 = math.tanh %357 : vector<8x16xf32>
    %cst_139 = arith.constant 1.000000e+00 : f32
    %359 = vector.broadcast %cst_139 : f32 to vector<8x16xf32>
    %360 = arith.subf %359, %353 : vector<8x16xf32>
    %361 = arith.mulf %360, %358 : vector<8x16xf32>
    %362 = arith.mulf %353, %291 : vector<8x16xf32>
    %363 = arith.addf %361, %362 : vector<8x16xf32>
    %c3_140 = arith.constant 3 : index
    %c0_141 = arith.constant 0 : index
    %c0_142 = arith.constant 0 : index
    %364 = vector.load %arg6[%c3_140, %c0_141, %c0_142] : memref<8x8x16xf32, #tpu.memory_space<vmem>>, vector<1x8x16xf32>
    %365 = vector.shape_cast %364 : vector<1x8x16xf32> to vector<8x16xf32>
    %366 = vector.shape_cast %333 : vector<8x16xf32> to vector<1x8x16xf32>
    tpu.vector_store %arg6[%c3_140, %c0_141, %c0_142], %366 {strides = array<i32>} : memref<8x8x16xf32, #tpu.memory_space<vmem>>, vector<1x8x16xf32>,
    %c4_143 = arith.constant 4 : index
    %c0_144 = arith.constant 0 : index
    %c0_145 = arith.constant 0 : index
    %367 = vector.load %arg7[%c4_143, %c0_144, %c0_145] : memref<8x8x16xf32, #tpu.memory_space<vmem>>, vector<1x8x16xf32>
    %368 = vector.shape_cast %367 : vector<1x8x16xf32> to vector<8x16xf32>
    %369 = vector.shape_cast %363 : vector<8x16xf32> to vector<1x8x16xf32>
    tpu.vector_store %arg7[%c4_143, %c0_144, %c0_145], %369 {strides = array<i32>} : memref<8x8x16xf32, #tpu.memory_space<vmem>>, vector<1x8x16xf32>,
    %cst_146 = arith.constant dense<0.000000e+00> : vector<8x48xf32>
    %370 = tpu.matmul %333, %3, %cst_146 {dimension_numbers = #tpu.dot_dimension_numbers<[1], [0], [0], [1], [0, 0, 1, 1], [], []>} : vector<8x16xf32>, vector<16x48xf32>, vector<8x48xf32> -> vector<8x48xf32>
    %371 = vector.broadcast %11 : vector<1x48xf32> to vector<8x48xf32>
    %372 = arith.addf %370, %371 : vector<8x48xf32>
    %cst_147 = arith.constant dense<0.000000e+00> : vector<8x48xf32>
    %373 = tpu.matmul %363, %7, %cst_147 {dimension_numbers = #tpu.dot_dimension_numbers<[1], [0], [0], [1], [0, 0, 1, 1], [], []>} : vector<8x16xf32>, vector<16x48xf32>, vector<8x48xf32> -> vector<8x48xf32>
    %374 = vector.broadcast %15 : vector<1x48xf32> to vector<8x48xf32>
    %375 = arith.addf %373, %374 : vector<8x48xf32>
    %376 = vector.extract_strided_slice %52 {offsets = [0, 0], sizes = [8, 16], strides = [1, 1]} : vector<8x48xf32> to vector<8x16xf32>
    %377 = vector.extract_strided_slice %372 {offsets = [0, 0], sizes = [8, 16], strides = [1, 1]} : vector<8x48xf32> to vector<8x16xf32>
    %378 = arith.addf %376, %377 : vector<8x16xf32>
    %cst_148 = arith.constant 0.000000e+00 : f32
    %379 = vector.broadcast %cst_148 : f32 to vector<8x16xf32>
    %380 = arith.subf %379, %378 : vector<8x16xf32>
    %381 = math.exp %380 : vector<8x16xf32>
    %cst_149 = arith.constant 1.000000e+00 : f32
    %382 = vector.broadcast %cst_149 : f32 to vector<8x16xf32>
    %383 = arith.addf %382, %381 : vector<8x16xf32>
    %cst_150 = arith.constant 1.000000e+00 : f32
    %384 = vector.broadcast %cst_150 : f32 to vector<8x16xf32>
    %385 = arith.divf %384, %383 : vector<8x16xf32>
    %386 = vector.extract_strided_slice %52 {offsets = [0, 16], sizes = [8, 16], strides = [1, 1]} : vector<8x48xf32> to vector<8x16xf32>
    %387 = vector.extract_strided_slice %372 {offsets = [0, 16], sizes = [8, 16], strides = [1, 1]} : vector<8x48xf32> to vector<8x16xf32>
    %388 = arith.addf %386, %387 : vector<8x16xf32>
    %cst_151 = arith.constant 0.000000e+00 : f32
    %389 = vector.broadcast %cst_151 : f32 to vector<8x16xf32>
    %390 = arith.subf %389, %388 : vector<8x16xf32>
    %391 = math.exp %390 : vector<8x16xf32>
    %cst_152 = arith.constant 1.000000e+00 : f32
    %392 = vector.broadcast %cst_152 : f32 to vector<8x16xf32>
    %393 = arith.addf %392, %391 : vector<8x16xf32>
    %cst_153 = arith.constant 1.000000e+00 : f32
    %394 = vector.broadcast %cst_153 : f32 to vector<8x16xf32>
    %395 = arith.divf %394, %393 : vector<8x16xf32>
    %396 = vector.extract_strided_slice %52 {offsets = [0, 32], sizes = [8, 16], strides = [1, 1]} : vector<8x48xf32> to vector<8x16xf32>
    %397 = vector.extract_strided_slice %372 {offsets = [0, 32], sizes = [8, 16], strides = [1, 1]} : vector<8x48xf32> to vector<8x16xf32>
    %398 = arith.mulf %385, %397 : vector<8x16xf32>
    %399 = arith.addf %396, %398 : vector<8x16xf32>
    %400 = math.tanh %399 : vector<8x16xf32>
    %cst_154 = arith.constant 1.000000e+00 : f32
    %401 = vector.broadcast %cst_154 : f32 to vector<8x16xf32>
    %402 = arith.subf %401, %395 : vector<8x16xf32>
    %403 = arith.mulf %402, %400 : vector<8x16xf32>
    %404 = arith.mulf %395, %333 : vector<8x16xf32>
    %405 = arith.addf %403, %404 : vector<8x16xf32>
    %406 = vector.extract_strided_slice %47 {offsets = [0, 0], sizes = [8, 16], strides = [1, 1]} : vector<8x48xf32> to vector<8x16xf32>
    %407 = vector.extract_strided_slice %375 {offsets = [0, 0], sizes = [8, 16], strides = [1, 1]} : vector<8x48xf32> to vector<8x16xf32>
    %408 = arith.addf %406, %407 : vector<8x16xf32>
    %cst_155 = arith.constant 0.000000e+00 : f32
    %409 = vector.broadcast %cst_155 : f32 to vector<8x16xf32>
    %410 = arith.subf %409, %408 : vector<8x16xf32>
    %411 = math.exp %410 : vector<8x16xf32>
    %cst_156 = arith.constant 1.000000e+00 : f32
    %412 = vector.broadcast %cst_156 : f32 to vector<8x16xf32>
    %413 = arith.addf %412, %411 : vector<8x16xf32>
    %cst_157 = arith.constant 1.000000e+00 : f32
    %414 = vector.broadcast %cst_157 : f32 to vector<8x16xf32>
    %415 = arith.divf %414, %413 : vector<8x16xf32>
    %416 = vector.extract_strided_slice %47 {offsets = [0, 16], sizes = [8, 16], strides = [1, 1]} : vector<8x48xf32> to vector<8x16xf32>
    %417 = vector.extract_strided_slice %375 {offsets = [0, 16], sizes = [8, 16], strides = [1, 1]} : vector<8x48xf32> to vector<8x16xf32>
    %418 = arith.addf %416, %417 : vector<8x16xf32>
    %cst_158 = arith.constant 0.000000e+00 : f32
    %419 = vector.broadcast %cst_158 : f32 to vector<8x16xf32>
    %420 = arith.subf %419, %418 : vector<8x16xf32>
    %421 = math.exp %420 : vector<8x16xf32>
    %cst_159 = arith.constant 1.000000e+00 : f32
    %422 = vector.broadcast %cst_159 : f32 to vector<8x16xf32>
    %423 = arith.addf %422, %421 : vector<8x16xf32>
    %cst_160 = arith.constant 1.000000e+00 : f32
    %424 = vector.broadcast %cst_160 : f32 to vector<8x16xf32>
    %425 = arith.divf %424, %423 : vector<8x16xf32>
    %426 = vector.extract_strided_slice %47 {offsets = [0, 32], sizes = [8, 16], strides = [1, 1]} : vector<8x48xf32> to vector<8x16xf32>
    %427 = vector.extract_strided_slice %375 {offsets = [0, 32], sizes = [8, 16], strides = [1, 1]} : vector<8x48xf32> to vector<8x16xf32>
    %428 = arith.mulf %415, %427 : vector<8x16xf32>
    %429 = arith.addf %426, %428 : vector<8x16xf32>
    %430 = math.tanh %429 : vector<8x16xf32>
    %cst_161 = arith.constant 1.000000e+00 : f32
    %431 = vector.broadcast %cst_161 : f32 to vector<8x16xf32>
    %432 = arith.subf %431, %425 : vector<8x16xf32>
    %433 = arith.mulf %432, %430 : vector<8x16xf32>
    %434 = arith.mulf %425, %363 : vector<8x16xf32>
    %435 = arith.addf %433, %434 : vector<8x16xf32>
    %c4_162 = arith.constant 4 : index
    %c0_163 = arith.constant 0 : index
    %c0_164 = arith.constant 0 : index
    %436 = vector.load %arg6[%c4_162, %c0_163, %c0_164] : memref<8x8x16xf32, #tpu.memory_space<vmem>>, vector<1x8x16xf32>
    %437 = vector.shape_cast %436 : vector<1x8x16xf32> to vector<8x16xf32>
    %438 = vector.shape_cast %405 : vector<8x16xf32> to vector<1x8x16xf32>
    tpu.vector_store %arg6[%c4_162, %c0_163, %c0_164], %438 {strides = array<i32>} : memref<8x8x16xf32, #tpu.memory_space<vmem>>, vector<1x8x16xf32>,
    %c3_165 = arith.constant 3 : index
    %c0_166 = arith.constant 0 : index
    %c0_167 = arith.constant 0 : index
    %439 = vector.load %arg7[%c3_165, %c0_166, %c0_167] : memref<8x8x16xf32, #tpu.memory_space<vmem>>, vector<1x8x16xf32>
    %440 = vector.shape_cast %439 : vector<1x8x16xf32> to vector<8x16xf32>
    %441 = vector.shape_cast %435 : vector<8x16xf32> to vector<1x8x16xf32>
    tpu.vector_store %arg7[%c3_165, %c0_166, %c0_167], %441 {strides = array<i32>} : memref<8x8x16xf32, #tpu.memory_space<vmem>>, vector<1x8x16xf32>,
    %cst_168 = arith.constant dense<0.000000e+00> : vector<8x48xf32>
    %442 = tpu.matmul %405, %3, %cst_168 {dimension_numbers = #tpu.dot_dimension_numbers<[1], [0], [0], [1], [0, 0, 1, 1], [], []>} : vector<8x16xf32>, vector<16x48xf32>, vector<8x48xf32> -> vector<8x48xf32>
    %443 = vector.broadcast %11 : vector<1x48xf32> to vector<8x48xf32>
    %444 = arith.addf %442, %443 : vector<8x48xf32>
    %cst_169 = arith.constant dense<0.000000e+00> : vector<8x48xf32>
    %445 = tpu.matmul %435, %7, %cst_169 {dimension_numbers = #tpu.dot_dimension_numbers<[1], [0], [0], [1], [0, 0, 1, 1], [], []>} : vector<8x16xf32>, vector<16x48xf32>, vector<8x48xf32> -> vector<8x48xf32>
    %446 = vector.broadcast %15 : vector<1x48xf32> to vector<8x48xf32>
    %447 = arith.addf %445, %446 : vector<8x48xf32>
    %448 = vector.extract_strided_slice %60 {offsets = [0, 0], sizes = [8, 16], strides = [1, 1]} : vector<8x48xf32> to vector<8x16xf32>
    %449 = vector.extract_strided_slice %444 {offsets = [0, 0], sizes = [8, 16], strides = [1, 1]} : vector<8x48xf32> to vector<8x16xf32>
    %450 = arith.addf %448, %449 : vector<8x16xf32>
    %cst_170 = arith.constant 0.000000e+00 : f32
    %451 = vector.broadcast %cst_170 : f32 to vector<8x16xf32>
    %452 = arith.subf %451, %450 : vector<8x16xf32>
    %453 = math.exp %452 : vector<8x16xf32>
    %cst_171 = arith.constant 1.000000e+00 : f32
    %454 = vector.broadcast %cst_171 : f32 to vector<8x16xf32>
    %455 = arith.addf %454, %453 : vector<8x16xf32>
    %cst_172 = arith.constant 1.000000e+00 : f32
    %456 = vector.broadcast %cst_172 : f32 to vector<8x16xf32>
    %457 = arith.divf %456, %455 : vector<8x16xf32>
    %458 = vector.extract_strided_slice %60 {offsets = [0, 16], sizes = [8, 16], strides = [1, 1]} : vector<8x48xf32> to vector<8x16xf32>
    %459 = vector.extract_strided_slice %444 {offsets = [0, 16], sizes = [8, 16], strides = [1, 1]} : vector<8x48xf32> to vector<8x16xf32>
    %460 = arith.addf %458, %459 : vector<8x16xf32>
    %cst_173 = arith.constant 0.000000e+00 : f32
    %461 = vector.broadcast %cst_173 : f32 to vector<8x16xf32>
    %462 = arith.subf %461, %460 : vector<8x16xf32>
    %463 = math.exp %462 : vector<8x16xf32>
    %cst_174 = arith.constant 1.000000e+00 : f32
    %464 = vector.broadcast %cst_174 : f32 to vector<8x16xf32>
    %465 = arith.addf %464, %463 : vector<8x16xf32>
    %cst_175 = arith.constant 1.000000e+00 : f32
    %466 = vector.broadcast %cst_175 : f32 to vector<8x16xf32>
    %467 = arith.divf %466, %465 : vector<8x16xf32>
    %468 = vector.extract_strided_slice %60 {offsets = [0, 32], sizes = [8, 16], strides = [1, 1]} : vector<8x48xf32> to vector<8x16xf32>
    %469 = vector.extract_strided_slice %444 {offsets = [0, 32], sizes = [8, 16], strides = [1, 1]} : vector<8x48xf32> to vector<8x16xf32>
    %470 = arith.mulf %457, %469 : vector<8x16xf32>
    %471 = arith.addf %468, %470 : vector<8x16xf32>
    %472 = math.tanh %471 : vector<8x16xf32>
    %cst_176 = arith.constant 1.000000e+00 : f32
    %473 = vector.broadcast %cst_176 : f32 to vector<8x16xf32>
    %474 = arith.subf %473, %467 : vector<8x16xf32>
    %475 = arith.mulf %474, %472 : vector<8x16xf32>
    %476 = arith.mulf %467, %405 : vector<8x16xf32>
    %477 = arith.addf %475, %476 : vector<8x16xf32>
    %478 = vector.extract_strided_slice %39 {offsets = [0, 0], sizes = [8, 16], strides = [1, 1]} : vector<8x48xf32> to vector<8x16xf32>
    %479 = vector.extract_strided_slice %447 {offsets = [0, 0], sizes = [8, 16], strides = [1, 1]} : vector<8x48xf32> to vector<8x16xf32>
    %480 = arith.addf %478, %479 : vector<8x16xf32>
    %cst_177 = arith.constant 0.000000e+00 : f32
    %481 = vector.broadcast %cst_177 : f32 to vector<8x16xf32>
    %482 = arith.subf %481, %480 : vector<8x16xf32>
    %483 = math.exp %482 : vector<8x16xf32>
    %cst_178 = arith.constant 1.000000e+00 : f32
    %484 = vector.broadcast %cst_178 : f32 to vector<8x16xf32>
    %485 = arith.addf %484, %483 : vector<8x16xf32>
    %cst_179 = arith.constant 1.000000e+00 : f32
    %486 = vector.broadcast %cst_179 : f32 to vector<8x16xf32>
    %487 = arith.divf %486, %485 : vector<8x16xf32>
    %488 = vector.extract_strided_slice %39 {offsets = [0, 16], sizes = [8, 16], strides = [1, 1]} : vector<8x48xf32> to vector<8x16xf32>
    %489 = vector.extract_strided_slice %447 {offsets = [0, 16], sizes = [8, 16], strides = [1, 1]} : vector<8x48xf32> to vector<8x16xf32>
    %490 = arith.addf %488, %489 : vector<8x16xf32>
    %cst_180 = arith.constant 0.000000e+00 : f32
    %491 = vector.broadcast %cst_180 : f32 to vector<8x16xf32>
    %492 = arith.subf %491, %490 : vector<8x16xf32>
    %493 = math.exp %492 : vector<8x16xf32>
    %cst_181 = arith.constant 1.000000e+00 : f32
    %494 = vector.broadcast %cst_181 : f32 to vector<8x16xf32>
    %495 = arith.addf %494, %493 : vector<8x16xf32>
    %cst_182 = arith.constant 1.000000e+00 : f32
    %496 = vector.broadcast %cst_182 : f32 to vector<8x16xf32>
    %497 = arith.divf %496, %495 : vector<8x16xf32>
    %498 = vector.extract_strided_slice %39 {offsets = [0, 32], sizes = [8, 16], strides = [1, 1]} : vector<8x48xf32> to vector<8x16xf32>
    %499 = vector.extract_strided_slice %447 {offsets = [0, 32], sizes = [8, 16], strides = [1, 1]} : vector<8x48xf32> to vector<8x16xf32>
    %500 = arith.mulf %487, %499 : vector<8x16xf32>
    %501 = arith.addf %498, %500 : vector<8x16xf32>
    %502 = math.tanh %501 : vector<8x16xf32>
    %cst_183 = arith.constant 1.000000e+00 : f32
    %503 = vector.broadcast %cst_183 : f32 to vector<8x16xf32>
    %504 = arith.subf %503, %497 : vector<8x16xf32>
    %505 = arith.mulf %504, %502 : vector<8x16xf32>
    %506 = arith.mulf %497, %435 : vector<8x16xf32>
    %507 = arith.addf %505, %506 : vector<8x16xf32>
    %c5_184 = arith.constant 5 : index
    %c0_185 = arith.constant 0 : index
    %c0_186 = arith.constant 0 : index
    %508 = vector.load %arg6[%c5_184, %c0_185, %c0_186] : memref<8x8x16xf32, #tpu.memory_space<vmem>>, vector<1x8x16xf32>
    %509 = vector.shape_cast %508 : vector<1x8x16xf32> to vector<8x16xf32>
    %510 = vector.shape_cast %477 : vector<8x16xf32> to vector<1x8x16xf32>
    tpu.vector_store %arg6[%c5_184, %c0_185, %c0_186], %510 {strides = array<i32>} : memref<8x8x16xf32, #tpu.memory_space<vmem>>, vector<1x8x16xf32>,
    %c2_187 = arith.constant 2 : index
    %c0_188 = arith.constant 0 : index
    %c0_189 = arith.constant 0 : index
    %511 = vector.load %arg7[%c2_187, %c0_188, %c0_189] : memref<8x8x16xf32, #tpu.memory_space<vmem>>, vector<1x8x16xf32>
    %512 = vector.shape_cast %511 : vector<1x8x16xf32> to vector<8x16xf32>
    %513 = vector.shape_cast %507 : vector<8x16xf32> to vector<1x8x16xf32>
    tpu.vector_store %arg7[%c2_187, %c0_188, %c0_189], %513 {strides = array<i32>} : memref<8x8x16xf32, #tpu.memory_space<vmem>>, vector<1x8x16xf32>,
    %cst_190 = arith.constant dense<0.000000e+00> : vector<8x48xf32>
    %514 = tpu.matmul %477, %3, %cst_190 {dimension_numbers = #tpu.dot_dimension_numbers<[1], [0], [0], [1], [0, 0, 1, 1], [], []>} : vector<8x16xf32>, vector<16x48xf32>, vector<8x48xf32> -> vector<8x48xf32>
    %515 = vector.broadcast %11 : vector<1x48xf32> to vector<8x48xf32>
    %516 = arith.addf %514, %515 : vector<8x48xf32>
    %cst_191 = arith.constant dense<0.000000e+00> : vector<8x48xf32>
    %517 = tpu.matmul %507, %7, %cst_191 {dimension_numbers = #tpu.dot_dimension_numbers<[1], [0], [0], [1], [0, 0, 1, 1], [], []>} : vector<8x16xf32>, vector<16x48xf32>, vector<8x48xf32> -> vector<8x48xf32>
    %518 = vector.broadcast %15 : vector<1x48xf32> to vector<8x48xf32>
    %519 = arith.addf %517, %518 : vector<8x48xf32>
    %520 = vector.extract_strided_slice %68 {offsets = [0, 0], sizes = [8, 16], strides = [1, 1]} : vector<8x48xf32> to vector<8x16xf32>
    %521 = vector.extract_strided_slice %516 {offsets = [0, 0], sizes = [8, 16], strides = [1, 1]} : vector<8x48xf32> to vector<8x16xf32>
    %522 = arith.addf %520, %521 : vector<8x16xf32>
    %cst_192 = arith.constant 0.000000e+00 : f32
    %523 = vector.broadcast %cst_192 : f32 to vector<8x16xf32>
    %524 = arith.subf %523, %522 : vector<8x16xf32>
    %525 = math.exp %524 : vector<8x16xf32>
    %cst_193 = arith.constant 1.000000e+00 : f32
    %526 = vector.broadcast %cst_193 : f32 to vector<8x16xf32>
    %527 = arith.addf %526, %525 : vector<8x16xf32>
    %cst_194 = arith.constant 1.000000e+00 : f32
    %528 = vector.broadcast %cst_194 : f32 to vector<8x16xf32>
    %529 = arith.divf %528, %527 : vector<8x16xf32>
    %530 = vector.extract_strided_slice %68 {offsets = [0, 16], sizes = [8, 16], strides = [1, 1]} : vector<8x48xf32> to vector<8x16xf32>
    %531 = vector.extract_strided_slice %516 {offsets = [0, 16], sizes = [8, 16], strides = [1, 1]} : vector<8x48xf32> to vector<8x16xf32>
    %532 = arith.addf %530, %531 : vector<8x16xf32>
    %cst_195 = arith.constant 0.000000e+00 : f32
    %533 = vector.broadcast %cst_195 : f32 to vector<8x16xf32>
    %534 = arith.subf %533, %532 : vector<8x16xf32>
    %535 = math.exp %534 : vector<8x16xf32>
    %cst_196 = arith.constant 1.000000e+00 : f32
    %536 = vector.broadcast %cst_196 : f32 to vector<8x16xf32>
    %537 = arith.addf %536, %535 : vector<8x16xf32>
    %cst_197 = arith.constant 1.000000e+00 : f32
    %538 = vector.broadcast %cst_197 : f32 to vector<8x16xf32>
    %539 = arith.divf %538, %537 : vector<8x16xf32>
    %540 = vector.extract_strided_slice %68 {offsets = [0, 32], sizes = [8, 16], strides = [1, 1]} : vector<8x48xf32> to vector<8x16xf32>
    %541 = vector.extract_strided_slice %516 {offsets = [0, 32], sizes = [8, 16], strides = [1, 1]} : vector<8x48xf32> to vector<8x16xf32>
    %542 = arith.mulf %529, %541 : vector<8x16xf32>
    %543 = arith.addf %540, %542 : vector<8x16xf32>
    %544 = math.tanh %543 : vector<8x16xf32>
    %cst_198 = arith.constant 1.000000e+00 : f32
    %545 = vector.broadcast %cst_198 : f32 to vector<8x16xf32>
    %546 = arith.subf %545, %539 : vector<8x16xf32>
    %547 = arith.mulf %546, %544 : vector<8x16xf32>
    %548 = arith.mulf %539, %477 : vector<8x16xf32>
    %549 = arith.addf %547, %548 : vector<8x16xf32>
    %550 = vector.extract_strided_slice %31 {offsets = [0, 0], sizes = [8, 16], strides = [1, 1]} : vector<8x48xf32> to vector<8x16xf32>
    %551 = vector.extract_strided_slice %519 {offsets = [0, 0], sizes = [8, 16], strides = [1, 1]} : vector<8x48xf32> to vector<8x16xf32>
    %552 = arith.addf %550, %551 : vector<8x16xf32>
    %cst_199 = arith.constant 0.000000e+00 : f32
    %553 = vector.broadcast %cst_199 : f32 to vector<8x16xf32>
    %554 = arith.subf %553, %552 : vector<8x16xf32>
    %555 = math.exp %554 : vector<8x16xf32>
    %cst_200 = arith.constant 1.000000e+00 : f32
    %556 = vector.broadcast %cst_200 : f32 to vector<8x16xf32>
    %557 = arith.addf %556, %555 : vector<8x16xf32>
    %cst_201 = arith.constant 1.000000e+00 : f32
    %558 = vector.broadcast %cst_201 : f32 to vector<8x16xf32>
    %559 = arith.divf %558, %557 : vector<8x16xf32>
    %560 = vector.extract_strided_slice %31 {offsets = [0, 16], sizes = [8, 16], strides = [1, 1]} : vector<8x48xf32> to vector<8x16xf32>
    %561 = vector.extract_strided_slice %519 {offsets = [0, 16], sizes = [8, 16], strides = [1, 1]} : vector<8x48xf32> to vector<8x16xf32>
    %562 = arith.addf %560, %561 : vector<8x16xf32>
    %cst_202 = arith.constant 0.000000e+00 : f32
    %563 = vector.broadcast %cst_202 : f32 to vector<8x16xf32>
    %564 = arith.subf %563, %562 : vector<8x16xf32>
    %565 = math.exp %564 : vector<8x16xf32>
    %cst_203 = arith.constant 1.000000e+00 : f32
    %566 = vector.broadcast %cst_203 : f32 to vector<8x16xf32>
    %567 = arith.addf %566, %565 : vector<8x16xf32>
    %cst_204 = arith.constant 1.000000e+00 : f32
    %568 = vector.broadcast %cst_204 : f32 to vector<8x16xf32>
    %569 = arith.divf %568, %567 : vector<8x16xf32>
    %570 = vector.extract_strided_slice %31 {offsets = [0, 32], sizes = [8, 16], strides = [1, 1]} : vector<8x48xf32> to vector<8x16xf32>
    %571 = vector.extract_strided_slice %519 {offsets = [0, 32], sizes = [8, 16], strides = [1, 1]} : vector<8x48xf32> to vector<8x16xf32>
    %572 = arith.mulf %559, %571 : vector<8x16xf32>
    %573 = arith.addf %570, %572 : vector<8x16xf32>
    %574 = math.tanh %573 : vector<8x16xf32>
    %cst_205 = arith.constant 1.000000e+00 : f32
    %575 = vector.broadcast %cst_205 : f32 to vector<8x16xf32>
    %576 = arith.subf %575, %569 : vector<8x16xf32>
    %577 = arith.mulf %576, %574 : vector<8x16xf32>
    %578 = arith.mulf %569, %507 : vector<8x16xf32>
    %579 = arith.addf %577, %578 : vector<8x16xf32>
    %c6_206 = arith.constant 6 : index
    %c0_207 = arith.constant 0 : index
    %c0_208 = arith.constant 0 : index
    %580 = vector.load %arg6[%c6_206, %c0_207, %c0_208] : memref<8x8x16xf32, #tpu.memory_space<vmem>>, vector<1x8x16xf32>
    %581 = vector.shape_cast %580 : vector<1x8x16xf32> to vector<8x16xf32>
    %582 = vector.shape_cast %549 : vector<8x16xf32> to vector<1x8x16xf32>
    tpu.vector_store %arg6[%c6_206, %c0_207, %c0_208], %582 {strides = array<i32>} : memref<8x8x16xf32, #tpu.memory_space<vmem>>, vector<1x8x16xf32>,
    %c1_209 = arith.constant 1 : index
    %c0_210 = arith.constant 0 : index
    %c0_211 = arith.constant 0 : index
    %583 = vector.load %arg7[%c1_209, %c0_210, %c0_211] : memref<8x8x16xf32, #tpu.memory_space<vmem>>, vector<1x8x16xf32>
    %584 = vector.shape_cast %583 : vector<1x8x16xf32> to vector<8x16xf32>
    %585 = vector.shape_cast %579 : vector<8x16xf32> to vector<1x8x16xf32>
    tpu.vector_store %arg7[%c1_209, %c0_210, %c0_211], %585 {strides = array<i32>} : memref<8x8x16xf32, #tpu.memory_space<vmem>>, vector<1x8x16xf32>,
    %cst_212 = arith.constant dense<0.000000e+00> : vector<8x48xf32>
    %586 = tpu.matmul %549, %3, %cst_212 {dimension_numbers = #tpu.dot_dimension_numbers<[1], [0], [0], [1], [0, 0, 1, 1], [], []>} : vector<8x16xf32>, vector<16x48xf32>, vector<8x48xf32> -> vector<8x48xf32>
    %587 = vector.broadcast %11 : vector<1x48xf32> to vector<8x48xf32>
    %588 = arith.addf %586, %587 : vector<8x48xf32>
    %cst_213 = arith.constant dense<0.000000e+00> : vector<8x48xf32>
    %589 = tpu.matmul %579, %7, %cst_213 {dimension_numbers = #tpu.dot_dimension_numbers<[1], [0], [0], [1], [0, 0, 1, 1], [], []>} : vector<8x16xf32>, vector<16x48xf32>, vector<8x48xf32> -> vector<8x48xf32>
    %590 = vector.broadcast %15 : vector<1x48xf32> to vector<8x48xf32>
    %591 = arith.addf %589, %590 : vector<8x48xf32>
    %592 = vector.extract_strided_slice %76 {offsets = [0, 0], sizes = [8, 16], strides = [1, 1]} : vector<8x48xf32> to vector<8x16xf32>
    %593 = vector.extract_strided_slice %588 {offsets = [0, 0], sizes = [8, 16], strides = [1, 1]} : vector<8x48xf32> to vector<8x16xf32>
    %594 = arith.addf %592, %593 : vector<8x16xf32>
    %cst_214 = arith.constant 0.000000e+00 : f32
    %595 = vector.broadcast %cst_214 : f32 to vector<8x16xf32>
    %596 = arith.subf %595, %594 : vector<8x16xf32>
    %597 = math.exp %596 : vector<8x16xf32>
    %cst_215 = arith.constant 1.000000e+00 : f32
    %598 = vector.broadcast %cst_215 : f32 to vector<8x16xf32>
    %599 = arith.addf %598, %597 : vector<8x16xf32>
    %cst_216 = arith.constant 1.000000e+00 : f32
    %600 = vector.broadcast %cst_216 : f32 to vector<8x16xf32>
    %601 = arith.divf %600, %599 : vector<8x16xf32>
    %602 = vector.extract_strided_slice %76 {offsets = [0, 16], sizes = [8, 16], strides = [1, 1]} : vector<8x48xf32> to vector<8x16xf32>
    %603 = vector.extract_strided_slice %588 {offsets = [0, 16], sizes = [8, 16], strides = [1, 1]} : vector<8x48xf32> to vector<8x16xf32>
    %604 = arith.addf %602, %603 : vector<8x16xf32>
    %cst_217 = arith.constant 0.000000e+00 : f32
    %605 = vector.broadcast %cst_217 : f32 to vector<8x16xf32>
    %606 = arith.subf %605, %604 : vector<8x16xf32>
    %607 = math.exp %606 : vector<8x16xf32>
    %cst_218 = arith.constant 1.000000e+00 : f32
    %608 = vector.broadcast %cst_218 : f32 to vector<8x16xf32>
    %609 = arith.addf %608, %607 : vector<8x16xf32>
    %cst_219 = arith.constant 1.000000e+00 : f32
    %610 = vector.broadcast %cst_219 : f32 to vector<8x16xf32>
    %611 = arith.divf %610, %609 : vector<8x16xf32>
    %612 = vector.extract_strided_slice %76 {offsets = [0, 32], sizes = [8, 16], strides = [1, 1]} : vector<8x48xf32> to vector<8x16xf32>
    %613 = vector.extract_strided_slice %588 {offsets = [0, 32], sizes = [8, 16], strides = [1, 1]} : vector<8x48xf32> to vector<8x16xf32>
    %614 = arith.mulf %601, %613 : vector<8x16xf32>
    %615 = arith.addf %612, %614 : vector<8x16xf32>
    %616 = math.tanh %615 : vector<8x16xf32>
    %cst_220 = arith.constant 1.000000e+00 : f32
    %617 = vector.broadcast %cst_220 : f32 to vector<8x16xf32>
    %618 = arith.subf %617, %611 : vector<8x16xf32>
    %619 = arith.mulf %618, %616 : vector<8x16xf32>
    %620 = arith.mulf %611, %549 : vector<8x16xf32>
    %621 = arith.addf %619, %620 : vector<8x16xf32>
    %622 = vector.extract_strided_slice %23 {offsets = [0, 0], sizes = [8, 16], strides = [1, 1]} : vector<8x48xf32> to vector<8x16xf32>
    %623 = vector.extract_strided_slice %591 {offsets = [0, 0], sizes = [8, 16], strides = [1, 1]} : vector<8x48xf32> to vector<8x16xf32>
    %624 = arith.addf %622, %623 : vector<8x16xf32>
    %cst_221 = arith.constant 0.000000e+00 : f32
    %625 = vector.broadcast %cst_221 : f32 to vector<8x16xf32>
    %626 = arith.subf %625, %624 : vector<8x16xf32>
    %627 = math.exp %626 : vector<8x16xf32>
    %cst_222 = arith.constant 1.000000e+00 : f32
    %628 = vector.broadcast %cst_222 : f32 to vector<8x16xf32>
    %629 = arith.addf %628, %627 : vector<8x16xf32>
    %cst_223 = arith.constant 1.000000e+00 : f32
    %630 = vector.broadcast %cst_223 : f32 to vector<8x16xf32>
    %631 = arith.divf %630, %629 : vector<8x16xf32>
    %632 = vector.extract_strided_slice %23 {offsets = [0, 16], sizes = [8, 16], strides = [1, 1]} : vector<8x48xf32> to vector<8x16xf32>
    %633 = vector.extract_strided_slice %591 {offsets = [0, 16], sizes = [8, 16], strides = [1, 1]} : vector<8x48xf32> to vector<8x16xf32>
    %634 = arith.addf %632, %633 : vector<8x16xf32>
    %cst_224 = arith.constant 0.000000e+00 : f32
    %635 = vector.broadcast %cst_224 : f32 to vector<8x16xf32>
    %636 = arith.subf %635, %634 : vector<8x16xf32>
    %637 = math.exp %636 : vector<8x16xf32>
    %cst_225 = arith.constant 1.000000e+00 : f32
    %638 = vector.broadcast %cst_225 : f32 to vector<8x16xf32>
    %639 = arith.addf %638, %637 : vector<8x16xf32>
    %cst_226 = arith.constant 1.000000e+00 : f32
    %640 = vector.broadcast %cst_226 : f32 to vector<8x16xf32>
    %641 = arith.divf %640, %639 : vector<8x16xf32>
    %642 = vector.extract_strided_slice %23 {offsets = [0, 32], sizes = [8, 16], strides = [1, 1]} : vector<8x48xf32> to vector<8x16xf32>
    %643 = vector.extract_strided_slice %591 {offsets = [0, 32], sizes = [8, 16], strides = [1, 1]} : vector<8x48xf32> to vector<8x16xf32>
    %644 = arith.mulf %631, %643 : vector<8x16xf32>
    %645 = arith.addf %642, %644 : vector<8x16xf32>
    %646 = math.tanh %645 : vector<8x16xf32>
    %cst_227 = arith.constant 1.000000e+00 : f32
    %647 = vector.broadcast %cst_227 : f32 to vector<8x16xf32>
    %648 = arith.subf %647, %641 : vector<8x16xf32>
    %649 = arith.mulf %648, %646 : vector<8x16xf32>
    %650 = arith.mulf %641, %579 : vector<8x16xf32>
    %651 = arith.addf %649, %650 : vector<8x16xf32>
    %c7_228 = arith.constant 7 : index
    %c0_229 = arith.constant 0 : index
    %c0_230 = arith.constant 0 : index
    %652 = vector.load %arg6[%c7_228, %c0_229, %c0_230] : memref<8x8x16xf32, #tpu.memory_space<vmem>>, vector<1x8x16xf32>
    %653 = vector.shape_cast %652 : vector<1x8x16xf32> to vector<8x16xf32>
    %654 = vector.shape_cast %621 : vector<8x16xf32> to vector<1x8x16xf32>
    tpu.vector_store %arg6[%c7_228, %c0_229, %c0_230], %654 {strides = array<i32>} : memref<8x8x16xf32, #tpu.memory_space<vmem>>, vector<1x8x16xf32>,
    %c0_231 = arith.constant 0 : index
    %c0_232 = arith.constant 0 : index
    %c0_233 = arith.constant 0 : index
    %655 = vector.load %arg7[%c0_231, %c0_232, %c0_233] : memref<8x8x16xf32, #tpu.memory_space<vmem>>, vector<1x8x16xf32>
    %656 = vector.shape_cast %655 : vector<1x8x16xf32> to vector<8x16xf32>
    %657 = vector.shape_cast %651 : vector<8x16xf32> to vector<1x8x16xf32>
    tpu.vector_store %arg7[%c0_231, %c0_232, %c0_233], %657 {strides = array<i32>} : memref<8x8x16xf32, #tpu.memory_space<vmem>>, vector<1x8x16xf32>,
    %c0_234 = arith.constant 0 : index
    %c0_235 = arith.constant 0 : index
    %c0_236 = arith.constant 0 : index
    %658 = vector.load %arg3[%c0_234, %c0_235, %c0_236] : memref<1x40x16xf32, #tpu.memory_space<vmem>>, vector<1x16x16xf32>
    %659 = vector.shape_cast %658 : vector<1x16x16xf32> to vector<16x16xf32>
    %c0_237 = arith.constant 0 : index
    %c16 = arith.constant 16 : index
    %c0_238 = arith.constant 0 : index
    %660 = vector.load %arg3[%c0_237, %c16, %c0_238] : memref<1x40x16xf32, #tpu.memory_space<vmem>>, vector<1x16x16xf32>
    %661 = vector.shape_cast %660 : vector<1x16x16xf32> to vector<16x16xf32>
    %c0_239 = arith.constant 0 : index
    %c32_240 = arith.constant 32 : index
    %c0_241 = arith.constant 0 : index
    %662 = vector.load %arg3[%c0_239, %c32_240, %c0_241] : memref<1x40x16xf32, #tpu.memory_space<vmem>>, vector<1x1x16xf32>
    %663 = vector.shape_cast %662 : vector<1x1x16xf32> to vector<1x16xf32>
    %c0_242 = arith.constant 0 : index
    %c33 = arith.constant 33 : index
    %c0_243 = arith.constant 0 : index
    %664 = vector.load %arg3[%c0_242, %c33, %c0_243] : memref<1x40x16xf32, #tpu.memory_space<vmem>>, vector<1x1x16xf32>
    %665 = vector.shape_cast %664 : vector<1x1x16xf32> to vector<1x16xf32>
    %c0_244 = arith.constant 0 : index
    %c34 = arith.constant 34 : index
    %c0_245 = arith.constant 0 : index
    %666 = vector.load %arg3[%c0_244, %c34, %c0_245] : memref<1x40x16xf32, #tpu.memory_space<vmem>>, vector<1x1x16xf32>
    %667 = vector.shape_cast %666 : vector<1x1x16xf32> to vector<1x16xf32>
    %c0_246 = arith.constant 0 : index
    %c35 = arith.constant 35 : index
    %c0_247 = arith.constant 0 : index
    %668 = vector.load %arg3[%c0_246, %c35, %c0_247] : memref<1x40x16xf32, #tpu.memory_space<vmem>>, vector<1x1x16xf32>
    %669 = vector.shape_cast %668 : vector<1x1x16xf32> to vector<1x16xf32>
    %c0_248 = arith.constant 0 : index
    %c36 = arith.constant 36 : index
    %c0_249 = arith.constant 0 : index
    %670 = vector.load %arg3[%c0_248, %c36, %c0_249] : memref<1x40x16xf32, #tpu.memory_space<vmem>>, vector<1x1x1xf32>
    %671 = vector.shape_cast %670 : vector<1x1x1xf32> to vector<1x1xf32>
    %c0_250 = arith.constant 0 : index
    %c56 = arith.constant 56 : index
    %c0_251 = arith.constant 0 : index
    %672 = vector.load %arg2[%c0_250, %c56, %c0_251] : memref<1x112x48xf32, #tpu.memory_space<vmem>>, vector<1x16x48xf32>
    %673 = vector.shape_cast %672 : vector<1x16x48xf32> to vector<16x48xf32>
    %c0_252 = arith.constant 0 : index
    %c72 = arith.constant 72 : index
    %c0_253 = arith.constant 0 : index
    %674 = vector.load %arg2[%c0_252, %c72, %c0_253] : memref<1x112x48xf32, #tpu.memory_space<vmem>>, vector<1x16x48xf32>
    %675 = vector.shape_cast %674 : vector<1x16x48xf32> to vector<16x48xf32>
    %c0_254 = arith.constant 0 : index
    %c88 = arith.constant 88 : index
    %c0_255 = arith.constant 0 : index
    %676 = vector.load %arg2[%c0_254, %c88, %c0_255] : memref<1x112x48xf32, #tpu.memory_space<vmem>>, vector<1x16x48xf32>
    %677 = vector.shape_cast %676 : vector<1x16x48xf32> to vector<16x48xf32>
    %c0_256 = arith.constant 0 : index
    %c104 = arith.constant 104 : index
    %c0_257 = arith.constant 0 : index
    %678 = vector.load %arg2[%c0_256, %c104, %c0_257] : memref<1x112x48xf32, #tpu.memory_space<vmem>>, vector<1x1x48xf32>
    %679 = vector.shape_cast %678 : vector<1x1x48xf32> to vector<1x48xf32>
    %c0_258 = arith.constant 0 : index
    %c105 = arith.constant 105 : index
    %c0_259 = arith.constant 0 : index
    %680 = vector.load %arg2[%c0_258, %c105, %c0_259] : memref<1x112x48xf32, #tpu.memory_space<vmem>>, vector<1x1x48xf32>
    %681 = vector.shape_cast %680 : vector<1x1x48xf32> to vector<1x48xf32>
    %c0_260 = arith.constant 0 : index
    %c106 = arith.constant 106 : index
    %c0_261 = arith.constant 0 : index
    %682 = vector.load %arg2[%c0_260, %c106, %c0_261] : memref<1x112x48xf32, #tpu.memory_space<vmem>>, vector<1x1x48xf32>
    %683 = vector.shape_cast %682 : vector<1x1x48xf32> to vector<1x48xf32>
    %c0_262 = arith.constant 0 : index
    %c0_263 = arith.constant 0 : index
    %684 = vector.load %arg4[%c0_262, %c0_263] : memref<8x8xf32, #tpu.memory_space<vmem>>, vector<8x8xf32>
    %c0_264 = arith.constant 0 : index
    %c0_265 = arith.constant 0 : index
    %c0_266 = arith.constant 0 : index
    %685 = vector.load %arg6[%c0_264, %c0_265, %c0_266] : memref<8x8x16xf32, #tpu.memory_space<vmem>>, vector<1x8x16xf32>
    %686 = vector.shape_cast %685 : vector<1x8x16xf32> to vector<8x16xf32>
    %cst_267 = arith.constant dense<0.000000e+00> : vector<8x16xf32>
    %687 = tpu.matmul %686, %659, %cst_267 {dimension_numbers = #tpu.dot_dimension_numbers<[1], [0], [0], [1], [0, 0, 1, 1], [], []>} : vector<8x16xf32>, vector<16x16xf32>, vector<8x16xf32> -> vector<8x16xf32>
    %c0_268 = arith.constant 0 : index
    %c0_269 = arith.constant 0 : index
    %c0_270 = arith.constant 0 : index
    %688 = vector.load %arg7[%c0_268, %c0_269, %c0_270] : memref<8x8x16xf32, #tpu.memory_space<vmem>>, vector<1x8x16xf32>
    %689 = vector.shape_cast %688 : vector<1x8x16xf32> to vector<8x16xf32>
    %cst_271 = arith.constant dense<0.000000e+00> : vector<8x16xf32>
    %690 = tpu.matmul %689, %661, %cst_271 {dimension_numbers = #tpu.dot_dimension_numbers<[1], [0], [0], [1], [0, 0, 1, 1], [], []>} : vector<8x16xf32>, vector<16x16xf32>, vector<8x16xf32> -> vector<8x16xf32>
    %691 = arith.addf %687, %690 : vector<8x16xf32>
    %692 = vector.broadcast %665 : vector<1x16xf32> to vector<8x16xf32>
    %693 = arith.addf %691, %692 : vector<8x16xf32>
    %c0_272 = arith.constant 0 : index
    %c0_273 = arith.constant 0 : index
    %c0_274 = arith.constant 0 : index
    %694 = vector.load %arg8[%c0_272, %c0_273, %c0_274] : memref<8x8x16xf32, #tpu.memory_space<vmem>>, vector<1x8x16xf32>
    %695 = vector.shape_cast %694 : vector<1x8x16xf32> to vector<8x16xf32>
    %696 = vector.shape_cast %693 : vector<8x16xf32> to vector<1x8x16xf32>
    tpu.vector_store %arg8[%c0_272, %c0_273, %c0_274], %696 {strides = array<i32>} : memref<8x8x16xf32, #tpu.memory_space<vmem>>, vector<1x8x16xf32>,
    %c1_275 = arith.constant 1 : index
    %c0_276 = arith.constant 0 : index
    %c0_277 = arith.constant 0 : index
    %697 = vector.load %arg6[%c1_275, %c0_276, %c0_277] : memref<8x8x16xf32, #tpu.memory_space<vmem>>, vector<1x8x16xf32>
    %698 = vector.shape_cast %697 : vector<1x8x16xf32> to vector<8x16xf32>
    %cst_278 = arith.constant dense<0.000000e+00> : vector<8x16xf32>
    %699 = tpu.matmul %698, %659, %cst_278 {dimension_numbers = #tpu.dot_dimension_numbers<[1], [0], [0], [1], [0, 0, 1, 1], [], []>} : vector<8x16xf32>, vector<16x16xf32>, vector<8x16xf32> -> vector<8x16xf32>
    %c1_279 = arith.constant 1 : index
    %c0_280 = arith.constant 0 : index
    %c0_281 = arith.constant 0 : index
    %700 = vector.load %arg7[%c1_279, %c0_280, %c0_281] : memref<8x8x16xf32, #tpu.memory_space<vmem>>, vector<1x8x16xf32>
    %701 = vector.shape_cast %700 : vector<1x8x16xf32> to vector<8x16xf32>
    %cst_282 = arith.constant dense<0.000000e+00> : vector<8x16xf32>
    %702 = tpu.matmul %701, %661, %cst_282 {dimension_numbers = #tpu.dot_dimension_numbers<[1], [0], [0], [1], [0, 0, 1, 1], [], []>} : vector<8x16xf32>, vector<16x16xf32>, vector<8x16xf32> -> vector<8x16xf32>
    %703 = arith.addf %699, %702 : vector<8x16xf32>
    %704 = vector.broadcast %665 : vector<1x16xf32> to vector<8x16xf32>
    %705 = arith.addf %703, %704 : vector<8x16xf32>
    %c1_283 = arith.constant 1 : index
    %c0_284 = arith.constant 0 : index
    %c0_285 = arith.constant 0 : index
    %706 = vector.load %arg8[%c1_283, %c0_284, %c0_285] : memref<8x8x16xf32, #tpu.memory_space<vmem>>, vector<1x8x16xf32>
    %707 = vector.shape_cast %706 : vector<1x8x16xf32> to vector<8x16xf32>
    %708 = vector.shape_cast %705 : vector<8x16xf32> to vector<1x8x16xf32>
    tpu.vector_store %arg8[%c1_283, %c0_284, %c0_285], %708 {strides = array<i32>} : memref<8x8x16xf32, #tpu.memory_space<vmem>>, vector<1x8x16xf32>,
    %c2_286 = arith.constant 2 : index
    %c0_287 = arith.constant 0 : index
    %c0_288 = arith.constant 0 : index
    %709 = vector.load %arg6[%c2_286, %c0_287, %c0_288] : memref<8x8x16xf32, #tpu.memory_space<vmem>>, vector<1x8x16xf32>
    %710 = vector.shape_cast %709 : vector<1x8x16xf32> to vector<8x16xf32>
    %cst_289 = arith.constant dense<0.000000e+00> : vector<8x16xf32>
    %711 = tpu.matmul %710, %659, %cst_289 {dimension_numbers = #tpu.dot_dimension_numbers<[1], [0], [0], [1], [0, 0, 1, 1], [], []>} : vector<8x16xf32>, vector<16x16xf32>, vector<8x16xf32> -> vector<8x16xf32>
    %c2_290 = arith.constant 2 : index
    %c0_291 = arith.constant 0 : index
    %c0_292 = arith.constant 0 : index
    %712 = vector.load %arg7[%c2_290, %c0_291, %c0_292] : memref<8x8x16xf32, #tpu.memory_space<vmem>>, vector<1x8x16xf32>
    %713 = vector.shape_cast %712 : vector<1x8x16xf32> to vector<8x16xf32>
    %cst_293 = arith.constant dense<0.000000e+00> : vector<8x16xf32>
    %714 = tpu.matmul %713, %661, %cst_293 {dimension_numbers = #tpu.dot_dimension_numbers<[1], [0], [0], [1], [0, 0, 1, 1], [], []>} : vector<8x16xf32>, vector<16x16xf32>, vector<8x16xf32> -> vector<8x16xf32>
    %715 = arith.addf %711, %714 : vector<8x16xf32>
    %716 = vector.broadcast %665 : vector<1x16xf32> to vector<8x16xf32>
    %717 = arith.addf %715, %716 : vector<8x16xf32>
    %c2_294 = arith.constant 2 : index
    %c0_295 = arith.constant 0 : index
    %c0_296 = arith.constant 0 : index
    %718 = vector.load %arg8[%c2_294, %c0_295, %c0_296] : memref<8x8x16xf32, #tpu.memory_space<vmem>>, vector<1x8x16xf32>
    %719 = vector.shape_cast %718 : vector<1x8x16xf32> to vector<8x16xf32>
    %720 = vector.shape_cast %717 : vector<8x16xf32> to vector<1x8x16xf32>
    tpu.vector_store %arg8[%c2_294, %c0_295, %c0_296], %720 {strides = array<i32>} : memref<8x8x16xf32, #tpu.memory_space<vmem>>, vector<1x8x16xf32>,
    %c3_297 = arith.constant 3 : index
    %c0_298 = arith.constant 0 : index
    %c0_299 = arith.constant 0 : index
    %721 = vector.load %arg6[%c3_297, %c0_298, %c0_299] : memref<8x8x16xf32, #tpu.memory_space<vmem>>, vector<1x8x16xf32>
    %722 = vector.shape_cast %721 : vector<1x8x16xf32> to vector<8x16xf32>
    %cst_300 = arith.constant dense<0.000000e+00> : vector<8x16xf32>
    %723 = tpu.matmul %722, %659, %cst_300 {dimension_numbers = #tpu.dot_dimension_numbers<[1], [0], [0], [1], [0, 0, 1, 1], [], []>} : vector<8x16xf32>, vector<16x16xf32>, vector<8x16xf32> -> vector<8x16xf32>
    %c3_301 = arith.constant 3 : index
    %c0_302 = arith.constant 0 : index
    %c0_303 = arith.constant 0 : index
    %724 = vector.load %arg7[%c3_301, %c0_302, %c0_303] : memref<8x8x16xf32, #tpu.memory_space<vmem>>, vector<1x8x16xf32>
    %725 = vector.shape_cast %724 : vector<1x8x16xf32> to vector<8x16xf32>
    %cst_304 = arith.constant dense<0.000000e+00> : vector<8x16xf32>
    %726 = tpu.matmul %725, %661, %cst_304 {dimension_numbers = #tpu.dot_dimension_numbers<[1], [0], [0], [1], [0, 0, 1, 1], [], []>} : vector<8x16xf32>, vector<16x16xf32>, vector<8x16xf32> -> vector<8x16xf32>
    %727 = arith.addf %723, %726 : vector<8x16xf32>
    %728 = vector.broadcast %665 : vector<1x16xf32> to vector<8x16xf32>
    %729 = arith.addf %727, %728 : vector<8x16xf32>
    %c3_305 = arith.constant 3 : index
    %c0_306 = arith.constant 0 : index
    %c0_307 = arith.constant 0 : index
    %730 = vector.load %arg8[%c3_305, %c0_306, %c0_307] : memref<8x8x16xf32, #tpu.memory_space<vmem>>, vector<1x8x16xf32>
    %731 = vector.shape_cast %730 : vector<1x8x16xf32> to vector<8x16xf32>
    %732 = vector.shape_cast %729 : vector<8x16xf32> to vector<1x8x16xf32>
    tpu.vector_store %arg8[%c3_305, %c0_306, %c0_307], %732 {strides = array<i32>} : memref<8x8x16xf32, #tpu.memory_space<vmem>>, vector<1x8x16xf32>,
    %c4_308 = arith.constant 4 : index
    %c0_309 = arith.constant 0 : index
    %c0_310 = arith.constant 0 : index
    %733 = vector.load %arg6[%c4_308, %c0_309, %c0_310] : memref<8x8x16xf32, #tpu.memory_space<vmem>>, vector<1x8x16xf32>
    %734 = vector.shape_cast %733 : vector<1x8x16xf32> to vector<8x16xf32>
    %cst_311 = arith.constant dense<0.000000e+00> : vector<8x16xf32>
    %735 = tpu.matmul %734, %659, %cst_311 {dimension_numbers = #tpu.dot_dimension_numbers<[1], [0], [0], [1], [0, 0, 1, 1], [], []>} : vector<8x16xf32>, vector<16x16xf32>, vector<8x16xf32> -> vector<8x16xf32>
    %c4_312 = arith.constant 4 : index
    %c0_313 = arith.constant 0 : index
    %c0_314 = arith.constant 0 : index
    %736 = vector.load %arg7[%c4_312, %c0_313, %c0_314] : memref<8x8x16xf32, #tpu.memory_space<vmem>>, vector<1x8x16xf32>
    %737 = vector.shape_cast %736 : vector<1x8x16xf32> to vector<8x16xf32>
    %cst_315 = arith.constant dense<0.000000e+00> : vector<8x16xf32>
    %738 = tpu.matmul %737, %661, %cst_315 {dimension_numbers = #tpu.dot_dimension_numbers<[1], [0], [0], [1], [0, 0, 1, 1], [], []>} : vector<8x16xf32>, vector<16x16xf32>, vector<8x16xf32> -> vector<8x16xf32>
    %739 = arith.addf %735, %738 : vector<8x16xf32>
    %740 = vector.broadcast %665 : vector<1x16xf32> to vector<8x16xf32>
    %741 = arith.addf %739, %740 : vector<8x16xf32>
    %c4_316 = arith.constant 4 : index
    %c0_317 = arith.constant 0 : index
    %c0_318 = arith.constant 0 : index
    %742 = vector.load %arg8[%c4_316, %c0_317, %c0_318] : memref<8x8x16xf32, #tpu.memory_space<vmem>>, vector<1x8x16xf32>
    %743 = vector.shape_cast %742 : vector<1x8x16xf32> to vector<8x16xf32>
    %744 = vector.shape_cast %741 : vector<8x16xf32> to vector<1x8x16xf32>
    tpu.vector_store %arg8[%c4_316, %c0_317, %c0_318], %744 {strides = array<i32>} : memref<8x8x16xf32, #tpu.memory_space<vmem>>, vector<1x8x16xf32>,
    %c5_319 = arith.constant 5 : index
    %c0_320 = arith.constant 0 : index
    %c0_321 = arith.constant 0 : index
    %745 = vector.load %arg6[%c5_319, %c0_320, %c0_321] : memref<8x8x16xf32, #tpu.memory_space<vmem>>, vector<1x8x16xf32>
    %746 = vector.shape_cast %745 : vector<1x8x16xf32> to vector<8x16xf32>
    %cst_322 = arith.constant dense<0.000000e+00> : vector<8x16xf32>
    %747 = tpu.matmul %746, %659, %cst_322 {dimension_numbers = #tpu.dot_dimension_numbers<[1], [0], [0], [1], [0, 0, 1, 1], [], []>} : vector<8x16xf32>, vector<16x16xf32>, vector<8x16xf32> -> vector<8x16xf32>
    %c5_323 = arith.constant 5 : index
    %c0_324 = arith.constant 0 : index
    %c0_325 = arith.constant 0 : index
    %748 = vector.load %arg7[%c5_323, %c0_324, %c0_325] : memref<8x8x16xf32, #tpu.memory_space<vmem>>, vector<1x8x16xf32>
    %749 = vector.shape_cast %748 : vector<1x8x16xf32> to vector<8x16xf32>
    %cst_326 = arith.constant dense<0.000000e+00> : vector<8x16xf32>
    %750 = tpu.matmul %749, %661, %cst_326 {dimension_numbers = #tpu.dot_dimension_numbers<[1], [0], [0], [1], [0, 0, 1, 1], [], []>} : vector<8x16xf32>, vector<16x16xf32>, vector<8x16xf32> -> vector<8x16xf32>
    %751 = arith.addf %747, %750 : vector<8x16xf32>
    %752 = vector.broadcast %665 : vector<1x16xf32> to vector<8x16xf32>
    %753 = arith.addf %751, %752 : vector<8x16xf32>
    %c5_327 = arith.constant 5 : index
    %c0_328 = arith.constant 0 : index
    %c0_329 = arith.constant 0 : index
    %754 = vector.load %arg8[%c5_327, %c0_328, %c0_329] : memref<8x8x16xf32, #tpu.memory_space<vmem>>, vector<1x8x16xf32>
    %755 = vector.shape_cast %754 : vector<1x8x16xf32> to vector<8x16xf32>
    %756 = vector.shape_cast %753 : vector<8x16xf32> to vector<1x8x16xf32>
    tpu.vector_store %arg8[%c5_327, %c0_328, %c0_329], %756 {strides = array<i32>} : memref<8x8x16xf32, #tpu.memory_space<vmem>>, vector<1x8x16xf32>,
    %c6_330 = arith.constant 6 : index
    %c0_331 = arith.constant 0 : index
    %c0_332 = arith.constant 0 : index
    %757 = vector.load %arg6[%c6_330, %c0_331, %c0_332] : memref<8x8x16xf32, #tpu.memory_space<vmem>>, vector<1x8x16xf32>
    %758 = vector.shape_cast %757 : vector<1x8x16xf32> to vector<8x16xf32>
    %cst_333 = arith.constant dense<0.000000e+00> : vector<8x16xf32>
    %759 = tpu.matmul %758, %659, %cst_333 {dimension_numbers = #tpu.dot_dimension_numbers<[1], [0], [0], [1], [0, 0, 1, 1], [], []>} : vector<8x16xf32>, vector<16x16xf32>, vector<8x16xf32> -> vector<8x16xf32>
    %c6_334 = arith.constant 6 : index
    %c0_335 = arith.constant 0 : index
    %c0_336 = arith.constant 0 : index
    %760 = vector.load %arg7[%c6_334, %c0_335, %c0_336] : memref<8x8x16xf32, #tpu.memory_space<vmem>>, vector<1x8x16xf32>
    %761 = vector.shape_cast %760 : vector<1x8x16xf32> to vector<8x16xf32>
    %cst_337 = arith.constant dense<0.000000e+00> : vector<8x16xf32>
    %762 = tpu.matmul %761, %661, %cst_337 {dimension_numbers = #tpu.dot_dimension_numbers<[1], [0], [0], [1], [0, 0, 1, 1], [], []>} : vector<8x16xf32>, vector<16x16xf32>, vector<8x16xf32> -> vector<8x16xf32>
    %763 = arith.addf %759, %762 : vector<8x16xf32>
    %764 = vector.broadcast %665 : vector<1x16xf32> to vector<8x16xf32>
    %765 = arith.addf %763, %764 : vector<8x16xf32>
    %c6_338 = arith.constant 6 : index
    %c0_339 = arith.constant 0 : index
    %c0_340 = arith.constant 0 : index
    %766 = vector.load %arg8[%c6_338, %c0_339, %c0_340] : memref<8x8x16xf32, #tpu.memory_space<vmem>>, vector<1x8x16xf32>
    %767 = vector.shape_cast %766 : vector<1x8x16xf32> to vector<8x16xf32>
    %768 = vector.shape_cast %765 : vector<8x16xf32> to vector<1x8x16xf32>
    tpu.vector_store %arg8[%c6_338, %c0_339, %c0_340], %768 {strides = array<i32>} : memref<8x8x16xf32, #tpu.memory_space<vmem>>, vector<1x8x16xf32>,
    %c7_341 = arith.constant 7 : index
    %c0_342 = arith.constant 0 : index
    %c0_343 = arith.constant 0 : index
    %769 = vector.load %arg6[%c7_341, %c0_342, %c0_343] : memref<8x8x16xf32, #tpu.memory_space<vmem>>, vector<1x8x16xf32>
    %770 = vector.shape_cast %769 : vector<1x8x16xf32> to vector<8x16xf32>
    %cst_344 = arith.constant dense<0.000000e+00> : vector<8x16xf32>
    %771 = tpu.matmul %770, %659, %cst_344 {dimension_numbers = #tpu.dot_dimension_numbers<[1], [0], [0], [1], [0, 0, 1, 1], [], []>} : vector<8x16xf32>, vector<16x16xf32>, vector<8x16xf32> -> vector<8x16xf32>
    %c7_345 = arith.constant 7 : index
    %c0_346 = arith.constant 0 : index
    %c0_347 = arith.constant 0 : index
    %772 = vector.load %arg7[%c7_345, %c0_346, %c0_347] : memref<8x8x16xf32, #tpu.memory_space<vmem>>, vector<1x8x16xf32>
    %773 = vector.shape_cast %772 : vector<1x8x16xf32> to vector<8x16xf32>
    %cst_348 = arith.constant dense<0.000000e+00> : vector<8x16xf32>
    %774 = tpu.matmul %773, %661, %cst_348 {dimension_numbers = #tpu.dot_dimension_numbers<[1], [0], [0], [1], [0, 0, 1, 1], [], []>} : vector<8x16xf32>, vector<16x16xf32>, vector<8x16xf32> -> vector<8x16xf32>
    %775 = arith.addf %771, %774 : vector<8x16xf32>
    %776 = vector.broadcast %665 : vector<1x16xf32> to vector<8x16xf32>
    %777 = arith.addf %775, %776 : vector<8x16xf32>
    %c7_349 = arith.constant 7 : index
    %c0_350 = arith.constant 0 : index
    %c0_351 = arith.constant 0 : index
    %778 = vector.load %arg8[%c7_349, %c0_350, %c0_351] : memref<8x8x16xf32, #tpu.memory_space<vmem>>, vector<1x8x16xf32>
    %779 = vector.shape_cast %778 : vector<1x8x16xf32> to vector<8x16xf32>
    %780 = vector.shape_cast %777 : vector<8x16xf32> to vector<1x8x16xf32>
    tpu.vector_store %arg8[%c7_349, %c0_350, %c0_351], %780 {strides = array<i32>} : memref<8x8x16xf32, #tpu.memory_space<vmem>>, vector<1x8x16xf32>,
    %cst_352 = arith.constant 1.000000e-03 : f32
    %781 = vector.broadcast %cst_352 : f32 to vector<8x1xf32>
    %cst_353 = arith.constant 1.000000e-03 : f32
    %782 = vector.broadcast %cst_353 : f32 to vector<8x16xf32>
    %cst_354 = arith.constant 0.000000e+00 : f32
    %783 = vector.broadcast %cst_354 : f32 to vector<8x8xf32>
    %784 = vector.broadcast %781 : vector<8x1xf32> to vector<8x16xf32>
    %785 = vector.broadcast %663 : vector<1x16xf32> to vector<8x16xf32>
    %786 = arith.mulf %784, %785 : vector<8x16xf32>
    %c0_355 = arith.constant 0 : index
    %c0_356 = arith.constant 0 : index
    %c0_357 = arith.constant 0 : index
    %787 = vector.load %arg8[%c0_355, %c0_356, %c0_357] : memref<8x8x16xf32, #tpu.memory_space<vmem>>, vector<1x8x16xf32>
    %788 = vector.shape_cast %787 : vector<1x8x16xf32> to vector<8x16xf32>
    %789 = arith.addf %788, %786 : vector<8x16xf32>
    %790 = math.tanh %789 : vector<8x16xf32>
    %791 = vector.broadcast %667 : vector<1x16xf32> to vector<8x16xf32>
    %792 = arith.mulf %790, %791 : vector<8x16xf32>
    %cst_358 = arith.constant dense<0.000000e+00> : vector<8xf32>
    %793 = vector.multi_reduction <add>, %792, %cst_358 [1] : vector<8x16xf32> to vector<8xf32>
    %794 = vector.shape_cast %793 : vector<8xf32> to vector<8x1xf32>
    %c1_359 = arith.constant 1 : index
    %c0_360 = arith.constant 0 : index
    %c0_361 = arith.constant 0 : index
    %795 = vector.load %arg8[%c1_359, %c0_360, %c0_361] : memref<8x8x16xf32, #tpu.memory_space<vmem>>, vector<1x8x16xf32>
    %796 = vector.shape_cast %795 : vector<1x8x16xf32> to vector<8x16xf32>
    %797 = arith.addf %796, %786 : vector<8x16xf32>
    %798 = math.tanh %797 : vector<8x16xf32>
    %799 = vector.broadcast %667 : vector<1x16xf32> to vector<8x16xf32>
    %800 = arith.mulf %798, %799 : vector<8x16xf32>
    %cst_362 = arith.constant dense<0.000000e+00> : vector<8xf32>
    %801 = vector.multi_reduction <add>, %800, %cst_362 [1] : vector<8x16xf32> to vector<8xf32>
    %802 = vector.shape_cast %801 : vector<8xf32> to vector<8x1xf32>
    %c2_363 = arith.constant 2 : index
    %c0_364 = arith.constant 0 : index
    %c0_365 = arith.constant 0 : index
    %803 = vector.load %arg8[%c2_363, %c0_364, %c0_365] : memref<8x8x16xf32, #tpu.memory_space<vmem>>, vector<1x8x16xf32>
    %804 = vector.shape_cast %803 : vector<1x8x16xf32> to vector<8x16xf32>
    %805 = arith.addf %804, %786 : vector<8x16xf32>
    %806 = math.tanh %805 : vector<8x16xf32>
    %807 = vector.broadcast %667 : vector<1x16xf32> to vector<8x16xf32>
    %808 = arith.mulf %806, %807 : vector<8x16xf32>
    %cst_366 = arith.constant dense<0.000000e+00> : vector<8xf32>
    %809 = vector.multi_reduction <add>, %808, %cst_366 [1] : vector<8x16xf32> to vector<8xf32>
    %810 = vector.shape_cast %809 : vector<8xf32> to vector<8x1xf32>
    %c3_367 = arith.constant 3 : index
    %c0_368 = arith.constant 0 : index
    %c0_369 = arith.constant 0 : index
    %811 = vector.load %arg8[%c3_367, %c0_368, %c0_369] : memref<8x8x16xf32, #tpu.memory_space<vmem>>, vector<1x8x16xf32>
    %812 = vector.shape_cast %811 : vector<1x8x16xf32> to vector<8x16xf32>
    %813 = arith.addf %812, %786 : vector<8x16xf32>
    %814 = math.tanh %813 : vector<8x16xf32>
    %815 = vector.broadcast %667 : vector<1x16xf32> to vector<8x16xf32>
    %816 = arith.mulf %814, %815 : vector<8x16xf32>
    %cst_370 = arith.constant dense<0.000000e+00> : vector<8xf32>
    %817 = vector.multi_reduction <add>, %816, %cst_370 [1] : vector<8x16xf32> to vector<8xf32>
    %818 = vector.shape_cast %817 : vector<8xf32> to vector<8x1xf32>
    %c4_371 = arith.constant 4 : index
    %c0_372 = arith.constant 0 : index
    %c0_373 = arith.constant 0 : index
    %819 = vector.load %arg8[%c4_371, %c0_372, %c0_373] : memref<8x8x16xf32, #tpu.memory_space<vmem>>, vector<1x8x16xf32>
    %820 = vector.shape_cast %819 : vector<1x8x16xf32> to vector<8x16xf32>
    %821 = arith.addf %820, %786 : vector<8x16xf32>
    %822 = math.tanh %821 : vector<8x16xf32>
    %823 = vector.broadcast %667 : vector<1x16xf32> to vector<8x16xf32>
    %824 = arith.mulf %822, %823 : vector<8x16xf32>
    %cst_374 = arith.constant dense<0.000000e+00> : vector<8xf32>
    %825 = vector.multi_reduction <add>, %824, %cst_374 [1] : vector<8x16xf32> to vector<8xf32>
    %826 = vector.shape_cast %825 : vector<8xf32> to vector<8x1xf32>
    %c5_375 = arith.constant 5 : index
    %c0_376 = arith.constant 0 : index
    %c0_377 = arith.constant 0 : index
    %827 = vector.load %arg8[%c5_375, %c0_376, %c0_377] : memref<8x8x16xf32, #tpu.memory_space<vmem>>, vector<1x8x16xf32>
    %828 = vector.shape_cast %827 : vector<1x8x16xf32> to vector<8x16xf32>
    %829 = arith.addf %828, %786 : vector<8x16xf32>
    %830 = math.tanh %829 : vector<8x16xf32>
    %831 = vector.broadcast %667 : vector<1x16xf32> to vector<8x16xf32>
    %832 = arith.mulf %830, %831 : vector<8x16xf32>
    %cst_378 = arith.constant dense<0.000000e+00> : vector<8xf32>
    %833 = vector.multi_reduction <add>, %832, %cst_378 [1] : vector<8x16xf32> to vector<8xf32>
    %834 = vector.shape_cast %833 : vector<8xf32> to vector<8x1xf32>
    %c6_379 = arith.constant 6 : index
    %c0_380 = arith.constant 0 : index
    %c0_381 = arith.constant 0 : index
    %835 = vector.load %arg8[%c6_379, %c0_380, %c0_381] : memref<8x8x16xf32, #tpu.memory_space<vmem>>, vector<1x8x16xf32>
    %836 = vector.shape_cast %835 : vector<1x8x16xf32> to vector<8x16xf32>
    %837 = arith.addf %836, %786 : vector<8x16xf32>
    %838 = math.tanh %837 : vector<8x16xf32>
    %839 = vector.broadcast %667 : vector<1x16xf32> to vector<8x16xf32>
    %840 = arith.mulf %838, %839 : vector<8x16xf32>
    %cst_382 = arith.constant dense<0.000000e+00> : vector<8xf32>
    %841 = vector.multi_reduction <add>, %840, %cst_382 [1] : vector<8x16xf32> to vector<8xf32>
    %842 = vector.shape_cast %841 : vector<8xf32> to vector<8x1xf32>
    %c7_383 = arith.constant 7 : index
    %c0_384 = arith.constant 0 : index
    %c0_385 = arith.constant 0 : index
    %843 = vector.load %arg8[%c7_383, %c0_384, %c0_385] : memref<8x8x16xf32, #tpu.memory_space<vmem>>, vector<1x8x16xf32>
    %844 = vector.shape_cast %843 : vector<1x8x16xf32> to vector<8x16xf32>
    %845 = arith.addf %844, %786 : vector<8x16xf32>
    %846 = math.tanh %845 : vector<8x16xf32>
    %847 = vector.broadcast %667 : vector<1x16xf32> to vector<8x16xf32>
    %848 = arith.mulf %846, %847 : vector<8x16xf32>
    %cst_386 = arith.constant dense<0.000000e+00> : vector<8xf32>
    %849 = vector.multi_reduction <add>, %848, %cst_386 [1] : vector<8x16xf32> to vector<8xf32>
    %850 = vector.shape_cast %849 : vector<8xf32> to vector<8x1xf32>
    %851 = arith.maximumf %794, %802 : vector<8x1xf32>
    %852 = arith.maximumf %851, %810 : vector<8x1xf32>
    %853 = arith.maximumf %852, %818 : vector<8x1xf32>
    %854 = arith.maximumf %853, %826 : vector<8x1xf32>
    %855 = arith.maximumf %854, %834 : vector<8x1xf32>
    %856 = arith.maximumf %855, %842 : vector<8x1xf32>
    %857 = arith.maximumf %856, %850 : vector<8x1xf32>
    %858 = arith.subf %794, %857 : vector<8x1xf32>
    %859 = math.exp %858 : vector<8x1xf32>
    %860 = arith.subf %802, %857 : vector<8x1xf32>
    %861 = math.exp %860 : vector<8x1xf32>
    %862 = arith.subf %810, %857 : vector<8x1xf32>
    %863 = math.exp %862 : vector<8x1xf32>
    %864 = arith.subf %818, %857 : vector<8x1xf32>
    %865 = math.exp %864 : vector<8x1xf32>
    %866 = arith.subf %826, %857 : vector<8x1xf32>
    %867 = math.exp %866 : vector<8x1xf32>
    %868 = arith.subf %834, %857 : vector<8x1xf32>
    %869 = math.exp %868 : vector<8x1xf32>
    %870 = arith.subf %842, %857 : vector<8x1xf32>
    %871 = math.exp %870 : vector<8x1xf32>
    %872 = arith.subf %850, %857 : vector<8x1xf32>
    %873 = math.exp %872 : vector<8x1xf32>
    %874 = arith.addf %859, %861 : vector<8x1xf32>
    %875 = arith.addf %874, %863 : vector<8x1xf32>
    %876 = arith.addf %875, %865 : vector<8x1xf32>
    %877 = arith.addf %876, %867 : vector<8x1xf32>
    %878 = arith.addf %877, %869 : vector<8x1xf32>
    %879 = arith.addf %878, %871 : vector<8x1xf32>
    %880 = arith.addf %879, %873 : vector<8x1xf32>
    %cst_387 = arith.constant 1.000000e+00 : f32
    %881 = vector.broadcast %cst_387 : f32 to vector<8x1xf32>
    %882 = arith.divf %881, %880 : vector<8x1xf32>
    %cst_388 = arith.constant 0.000000e+00 : f32
    %883 = vector.broadcast %cst_388 : f32 to vector<8x16xf32>
    %cst_389 = arith.constant 0.000000e+00 : f32
    %884 = vector.broadcast %cst_389 : f32 to vector<8x16xf32>
    %885 = arith.mulf %859, %882 : vector<8x1xf32>
    %c0_390 = arith.constant 0 : index
    %c0_391 = arith.constant 0 : index
    %c0_392 = arith.constant 0 : index
    %886 = vector.load %arg6[%c0_390, %c0_391, %c0_392] : memref<8x8x16xf32, #tpu.memory_space<vmem>>, vector<1x8x16xf32>
    %887 = vector.shape_cast %886 : vector<1x8x16xf32> to vector<8x16xf32>
    %888 = vector.broadcast %885 : vector<8x1xf32> to vector<8x16xf32>
    %889 = arith.mulf %888, %887 : vector<8x16xf32>
    %890 = arith.addf %883, %889 : vector<8x16xf32>
    %c0_393 = arith.constant 0 : index
    %c0_394 = arith.constant 0 : index
    %c0_395 = arith.constant 0 : index
    %891 = vector.load %arg7[%c0_393, %c0_394, %c0_395] : memref<8x8x16xf32, #tpu.memory_space<vmem>>, vector<1x8x16xf32>
    %892 = vector.shape_cast %891 : vector<1x8x16xf32> to vector<8x16xf32>
    %893 = vector.broadcast %885 : vector<8x1xf32> to vector<8x16xf32>
    %894 = arith.mulf %893, %892 : vector<8x16xf32>
    %895 = arith.addf %884, %894 : vector<8x16xf32>
    %896 = arith.mulf %861, %882 : vector<8x1xf32>
    %c1_396 = arith.constant 1 : index
    %c0_397 = arith.constant 0 : index
    %c0_398 = arith.constant 0 : index
    %897 = vector.load %arg6[%c1_396, %c0_397, %c0_398] : memref<8x8x16xf32, #tpu.memory_space<vmem>>, vector<1x8x16xf32>
    %898 = vector.shape_cast %897 : vector<1x8x16xf32> to vector<8x16xf32>
    %899 = vector.broadcast %896 : vector<8x1xf32> to vector<8x16xf32>
    %900 = arith.mulf %899, %898 : vector<8x16xf32>
    %901 = arith.addf %890, %900 : vector<8x16xf32>
    %c1_399 = arith.constant 1 : index
    %c0_400 = arith.constant 0 : index
    %c0_401 = arith.constant 0 : index
    %902 = vector.load %arg7[%c1_399, %c0_400, %c0_401] : memref<8x8x16xf32, #tpu.memory_space<vmem>>, vector<1x8x16xf32>
    %903 = vector.shape_cast %902 : vector<1x8x16xf32> to vector<8x16xf32>
    %904 = vector.broadcast %896 : vector<8x1xf32> to vector<8x16xf32>
    %905 = arith.mulf %904, %903 : vector<8x16xf32>
    %906 = arith.addf %895, %905 : vector<8x16xf32>
    %907 = arith.mulf %863, %882 : vector<8x1xf32>
    %c2_402 = arith.constant 2 : index
    %c0_403 = arith.constant 0 : index
    %c0_404 = arith.constant 0 : index
    %908 = vector.load %arg6[%c2_402, %c0_403, %c0_404] : memref<8x8x16xf32, #tpu.memory_space<vmem>>, vector<1x8x16xf32>
    %909 = vector.shape_cast %908 : vector<1x8x16xf32> to vector<8x16xf32>
    %910 = vector.broadcast %907 : vector<8x1xf32> to vector<8x16xf32>
    %911 = arith.mulf %910, %909 : vector<8x16xf32>
    %912 = arith.addf %901, %911 : vector<8x16xf32>
    %c2_405 = arith.constant 2 : index
    %c0_406 = arith.constant 0 : index
    %c0_407 = arith.constant 0 : index
    %913 = vector.load %arg7[%c2_405, %c0_406, %c0_407] : memref<8x8x16xf32, #tpu.memory_space<vmem>>, vector<1x8x16xf32>
    %914 = vector.shape_cast %913 : vector<1x8x16xf32> to vector<8x16xf32>
    %915 = vector.broadcast %907 : vector<8x1xf32> to vector<8x16xf32>
    %916 = arith.mulf %915, %914 : vector<8x16xf32>
    %917 = arith.addf %906, %916 : vector<8x16xf32>
    %918 = arith.mulf %865, %882 : vector<8x1xf32>
    %c3_408 = arith.constant 3 : index
    %c0_409 = arith.constant 0 : index
    %c0_410 = arith.constant 0 : index
    %919 = vector.load %arg6[%c3_408, %c0_409, %c0_410] : memref<8x8x16xf32, #tpu.memory_space<vmem>>, vector<1x8x16xf32>
    %920 = vector.shape_cast %919 : vector<1x8x16xf32> to vector<8x16xf32>
    %921 = vector.broadcast %918 : vector<8x1xf32> to vector<8x16xf32>
    %922 = arith.mulf %921, %920 : vector<8x16xf32>
    %923 = arith.addf %912, %922 : vector<8x16xf32>
    %c3_411 = arith.constant 3 : index
    %c0_412 = arith.constant 0 : index
    %c0_413 = arith.constant 0 : index
    %924 = vector.load %arg7[%c3_411, %c0_412, %c0_413] : memref<8x8x16xf32, #tpu.memory_space<vmem>>, vector<1x8x16xf32>
    %925 = vector.shape_cast %924 : vector<1x8x16xf32> to vector<8x16xf32>
    %926 = vector.broadcast %918 : vector<8x1xf32> to vector<8x16xf32>
    %927 = arith.mulf %926, %925 : vector<8x16xf32>
    %928 = arith.addf %917, %927 : vector<8x16xf32>
    %929 = arith.mulf %867, %882 : vector<8x1xf32>
    %c4_414 = arith.constant 4 : index
    %c0_415 = arith.constant 0 : index
    %c0_416 = arith.constant 0 : index
    %930 = vector.load %arg6[%c4_414, %c0_415, %c0_416] : memref<8x8x16xf32, #tpu.memory_space<vmem>>, vector<1x8x16xf32>
    %931 = vector.shape_cast %930 : vector<1x8x16xf32> to vector<8x16xf32>
    %932 = vector.broadcast %929 : vector<8x1xf32> to vector<8x16xf32>
    %933 = arith.mulf %932, %931 : vector<8x16xf32>
    %934 = arith.addf %923, %933 : vector<8x16xf32>
    %c4_417 = arith.constant 4 : index
    %c0_418 = arith.constant 0 : index
    %c0_419 = arith.constant 0 : index
    %935 = vector.load %arg7[%c4_417, %c0_418, %c0_419] : memref<8x8x16xf32, #tpu.memory_space<vmem>>, vector<1x8x16xf32>
    %936 = vector.shape_cast %935 : vector<1x8x16xf32> to vector<8x16xf32>
    %937 = vector.broadcast %929 : vector<8x1xf32> to vector<8x16xf32>
    %938 = arith.mulf %937, %936 : vector<8x16xf32>
    %939 = arith.addf %928, %938 : vector<8x16xf32>
    %940 = arith.mulf %869, %882 : vector<8x1xf32>
    %c5_420 = arith.constant 5 : index
    %c0_421 = arith.constant 0 : index
    %c0_422 = arith.constant 0 : index
    %941 = vector.load %arg6[%c5_420, %c0_421, %c0_422] : memref<8x8x16xf32, #tpu.memory_space<vmem>>, vector<1x8x16xf32>
    %942 = vector.shape_cast %941 : vector<1x8x16xf32> to vector<8x16xf32>
    %943 = vector.broadcast %940 : vector<8x1xf32> to vector<8x16xf32>
    %944 = arith.mulf %943, %942 : vector<8x16xf32>
    %945 = arith.addf %934, %944 : vector<8x16xf32>
    %c5_423 = arith.constant 5 : index
    %c0_424 = arith.constant 0 : index
    %c0_425 = arith.constant 0 : index
    %946 = vector.load %arg7[%c5_423, %c0_424, %c0_425] : memref<8x8x16xf32, #tpu.memory_space<vmem>>, vector<1x8x16xf32>
    %947 = vector.shape_cast %946 : vector<1x8x16xf32> to vector<8x16xf32>
    %948 = vector.broadcast %940 : vector<8x1xf32> to vector<8x16xf32>
    %949 = arith.mulf %948, %947 : vector<8x16xf32>
    %950 = arith.addf %939, %949 : vector<8x16xf32>
    %951 = arith.mulf %871, %882 : vector<8x1xf32>
    %c6_426 = arith.constant 6 : index
    %c0_427 = arith.constant 0 : index
    %c0_428 = arith.constant 0 : index
    %952 = vector.load %arg6[%c6_426, %c0_427, %c0_428] : memref<8x8x16xf32, #tpu.memory_space<vmem>>, vector<1x8x16xf32>
    %953 = vector.shape_cast %952 : vector<1x8x16xf32> to vector<8x16xf32>
    %954 = vector.broadcast %951 : vector<8x1xf32> to vector<8x16xf32>
    %955 = arith.mulf %954, %953 : vector<8x16xf32>
    %956 = arith.addf %945, %955 : vector<8x16xf32>
    %c6_429 = arith.constant 6 : index
    %c0_430 = arith.constant 0 : index
    %c0_431 = arith.constant 0 : index
    %957 = vector.load %arg7[%c6_429, %c0_430, %c0_431] : memref<8x8x16xf32, #tpu.memory_space<vmem>>, vector<1x8x16xf32>
    %958 = vector.shape_cast %957 : vector<1x8x16xf32> to vector<8x16xf32>
    %959 = vector.broadcast %951 : vector<8x1xf32> to vector<8x16xf32>
    %960 = arith.mulf %959, %958 : vector<8x16xf32>
    %961 = arith.addf %950, %960 : vector<8x16xf32>
    %962 = arith.mulf %873, %882 : vector<8x1xf32>
    %c7_432 = arith.constant 7 : index
    %c0_433 = arith.constant 0 : index
    %c0_434 = arith.constant 0 : index
    %963 = vector.load %arg6[%c7_432, %c0_433, %c0_434] : memref<8x8x16xf32, #tpu.memory_space<vmem>>, vector<1x8x16xf32>
    %964 = vector.shape_cast %963 : vector<1x8x16xf32> to vector<8x16xf32>
    %965 = vector.broadcast %962 : vector<8x1xf32> to vector<8x16xf32>
    %966 = arith.mulf %965, %964 : vector<8x16xf32>
    %967 = arith.addf %956, %966 : vector<8x16xf32>
    %c7_435 = arith.constant 7 : index
    %c0_436 = arith.constant 0 : index
    %c0_437 = arith.constant 0 : index
    %968 = vector.load %arg7[%c7_435, %c0_436, %c0_437] : memref<8x8x16xf32, #tpu.memory_space<vmem>>, vector<1x8x16xf32>
    %969 = vector.shape_cast %968 : vector<1x8x16xf32> to vector<8x16xf32>
    %970 = vector.broadcast %962 : vector<8x1xf32> to vector<8x16xf32>
    %971 = arith.mulf %970, %969 : vector<8x16xf32>
    %972 = arith.addf %961, %971 : vector<8x16xf32>
    %973 = vector.broadcast %781 : vector<8x1xf32> to vector<8x48xf32>
    %974 = vector.broadcast %679 : vector<1x48xf32> to vector<8x48xf32>
    %975 = arith.mulf %973, %974 : vector<8x48xf32>
    %cst_438 = arith.constant dense<0.000000e+00> : vector<8x48xf32>
    %976 = tpu.matmul %967, %673, %cst_438 {dimension_numbers = #tpu.dot_dimension_numbers<[1], [0], [0], [1], [0, 0, 1, 1], [], []>} : vector<8x16xf32>, vector<16x48xf32>, vector<8x48xf32> -> vector<8x48xf32>
    %977 = arith.addf %975, %976 : vector<8x48xf32>
    %cst_439 = arith.constant dense<0.000000e+00> : vector<8x48xf32>
    %978 = tpu.matmul %972, %675, %cst_439 {dimension_numbers = #tpu.dot_dimension_numbers<[1], [0], [0], [1], [0, 0, 1, 1], [], []>} : vector<8x16xf32>, vector<16x48xf32>, vector<8x48xf32> -> vector<8x48xf32>
    %979 = arith.addf %977, %978 : vector<8x48xf32>
    %980 = vector.broadcast %681 : vector<1x48xf32> to vector<8x48xf32>
    %981 = arith.addf %979, %980 : vector<8x48xf32>
    %cst_440 = arith.constant dense<0.000000e+00> : vector<8x48xf32>
    %982 = tpu.matmul %782, %677, %cst_440 {dimension_numbers = #tpu.dot_dimension_numbers<[1], [0], [0], [1], [0, 0, 1, 1], [], []>} : vector<8x16xf32>, vector<16x48xf32>, vector<8x48xf32> -> vector<8x48xf32>
    %983 = vector.broadcast %683 : vector<1x48xf32> to vector<8x48xf32>
    %984 = arith.addf %982, %983 : vector<8x48xf32>
    %985 = vector.extract_strided_slice %981 {offsets = [0, 0], sizes = [8, 16], strides = [1, 1]} : vector<8x48xf32> to vector<8x16xf32>
    %986 = vector.extract_strided_slice %984 {offsets = [0, 0], sizes = [8, 16], strides = [1, 1]} : vector<8x48xf32> to vector<8x16xf32>
    %987 = arith.addf %985, %986 : vector<8x16xf32>
    %cst_441 = arith.constant 0.000000e+00 : f32
    %988 = vector.broadcast %cst_441 : f32 to vector<8x16xf32>
    %989 = arith.subf %988, %987 : vector<8x16xf32>
    %990 = math.exp %989 : vector<8x16xf32>
    %cst_442 = arith.constant 1.000000e+00 : f32
    %991 = vector.broadcast %cst_442 : f32 to vector<8x16xf32>
    %992 = arith.addf %991, %990 : vector<8x16xf32>
    %cst_443 = arith.constant 1.000000e+00 : f32
    %993 = vector.broadcast %cst_443 : f32 to vector<8x16xf32>
    %994 = arith.divf %993, %992 : vector<8x16xf32>
    %995 = vector.extract_strided_slice %981 {offsets = [0, 16], sizes = [8, 16], strides = [1, 1]} : vector<8x48xf32> to vector<8x16xf32>
    %996 = vector.extract_strided_slice %984 {offsets = [0, 16], sizes = [8, 16], strides = [1, 1]} : vector<8x48xf32> to vector<8x16xf32>
    %997 = arith.addf %995, %996 : vector<8x16xf32>
    %cst_444 = arith.constant 0.000000e+00 : f32
    %998 = vector.broadcast %cst_444 : f32 to vector<8x16xf32>
    %999 = arith.subf %998, %997 : vector<8x16xf32>
    %1000 = math.exp %999 : vector<8x16xf32>
    %cst_445 = arith.constant 1.000000e+00 : f32
    %1001 = vector.broadcast %cst_445 : f32 to vector<8x16xf32>
    %1002 = arith.addf %1001, %1000 : vector<8x16xf32>
    %cst_446 = arith.constant 1.000000e+00 : f32
    %1003 = vector.broadcast %cst_446 : f32 to vector<8x16xf32>
    %1004 = arith.divf %1003, %1002 : vector<8x16xf32>
    %1005 = vector.extract_strided_slice %981 {offsets = [0, 32], sizes = [8, 16], strides = [1, 1]} : vector<8x48xf32> to vector<8x16xf32>
    %1006 = vector.extract_strided_slice %984 {offsets = [0, 32], sizes = [8, 16], strides = [1, 1]} : vector<8x48xf32> to vector<8x16xf32>
    %1007 = arith.mulf %994, %1006 : vector<8x16xf32>
    %1008 = arith.addf %1005, %1007 : vector<8x16xf32>
    %1009 = math.tanh %1008 : vector<8x16xf32>
    %cst_447 = arith.constant 1.000000e+00 : f32
    %1010 = vector.broadcast %cst_447 : f32 to vector<8x16xf32>
    %1011 = arith.subf %1010, %1004 : vector<8x16xf32>
    %1012 = arith.mulf %1011, %1009 : vector<8x16xf32>
    %1013 = arith.mulf %1004, %782 : vector<8x16xf32>
    %1014 = arith.addf %1012, %1013 : vector<8x16xf32>
    %1015 = vector.broadcast %669 : vector<1x16xf32> to vector<8x16xf32>
    %1016 = arith.mulf %1014, %1015 : vector<8x16xf32>
    %cst_448 = arith.constant dense<0.000000e+00> : vector<8xf32>
    %1017 = vector.multi_reduction <add>, %1016, %cst_448 [1] : vector<8x16xf32> to vector<8xf32>
    %1018 = vector.shape_cast %1017 : vector<8xf32> to vector<8x1xf32>
    %1019 = vector.broadcast %671 : vector<1x1xf32> to vector<8x1xf32>
    %1020 = arith.addf %1018, %1019 : vector<8x1xf32>
    %1021 = vector.extract_strided_slice %684 {offsets = [0, 0], sizes = [1, 8], strides = [1, 1]} : vector<8x8xf32> to vector<1x8xf32>
    %1022 = vector.broadcast %1020 : vector<8x1xf32> to vector<8x8xf32>
    %1023 = vector.broadcast %1021 : vector<1x8xf32> to vector<8x8xf32>
    %1024 = arith.mulf %1022, %1023 : vector<8x8xf32>
    %1025 = arith.addf %783, %1024 : vector<8x8xf32>
    %1026 = vector.broadcast %1020 : vector<8x1xf32> to vector<8x16xf32>
    %1027 = vector.broadcast %663 : vector<1x16xf32> to vector<8x16xf32>
    %1028 = arith.mulf %1026, %1027 : vector<8x16xf32>
    %c0_449 = arith.constant 0 : index
    %c0_450 = arith.constant 0 : index
    %c0_451 = arith.constant 0 : index
    %1029 = vector.load %arg8[%c0_449, %c0_450, %c0_451] : memref<8x8x16xf32, #tpu.memory_space<vmem>>, vector<1x8x16xf32>
    %1030 = vector.shape_cast %1029 : vector<1x8x16xf32> to vector<8x16xf32>
    %1031 = arith.addf %1030, %1028 : vector<8x16xf32>
    %1032 = math.tanh %1031 : vector<8x16xf32>
    %1033 = vector.broadcast %667 : vector<1x16xf32> to vector<8x16xf32>
    %1034 = arith.mulf %1032, %1033 : vector<8x16xf32>
    %cst_452 = arith.constant dense<0.000000e+00> : vector<8xf32>
    %1035 = vector.multi_reduction <add>, %1034, %cst_452 [1] : vector<8x16xf32> to vector<8xf32>
    %1036 = vector.shape_cast %1035 : vector<8xf32> to vector<8x1xf32>
    %c1_453 = arith.constant 1 : index
    %c0_454 = arith.constant 0 : index
    %c0_455 = arith.constant 0 : index
    %1037 = vector.load %arg8[%c1_453, %c0_454, %c0_455] : memref<8x8x16xf32, #tpu.memory_space<vmem>>, vector<1x8x16xf32>
    %1038 = vector.shape_cast %1037 : vector<1x8x16xf32> to vector<8x16xf32>
    %1039 = arith.addf %1038, %1028 : vector<8x16xf32>
    %1040 = math.tanh %1039 : vector<8x16xf32>
    %1041 = vector.broadcast %667 : vector<1x16xf32> to vector<8x16xf32>
    %1042 = arith.mulf %1040, %1041 : vector<8x16xf32>
    %cst_456 = arith.constant dense<0.000000e+00> : vector<8xf32>
    %1043 = vector.multi_reduction <add>, %1042, %cst_456 [1] : vector<8x16xf32> to vector<8xf32>
    %1044 = vector.shape_cast %1043 : vector<8xf32> to vector<8x1xf32>
    %c2_457 = arith.constant 2 : index
    %c0_458 = arith.constant 0 : index
    %c0_459 = arith.constant 0 : index
    %1045 = vector.load %arg8[%c2_457, %c0_458, %c0_459] : memref<8x8x16xf32, #tpu.memory_space<vmem>>, vector<1x8x16xf32>
    %1046 = vector.shape_cast %1045 : vector<1x8x16xf32> to vector<8x16xf32>
    %1047 = arith.addf %1046, %1028 : vector<8x16xf32>
    %1048 = math.tanh %1047 : vector<8x16xf32>
    %1049 = vector.broadcast %667 : vector<1x16xf32> to vector<8x16xf32>
    %1050 = arith.mulf %1048, %1049 : vector<8x16xf32>
    %cst_460 = arith.constant dense<0.000000e+00> : vector<8xf32>
    %1051 = vector.multi_reduction <add>, %1050, %cst_460 [1] : vector<8x16xf32> to vector<8xf32>
    %1052 = vector.shape_cast %1051 : vector<8xf32> to vector<8x1xf32>
    %c3_461 = arith.constant 3 : index
    %c0_462 = arith.constant 0 : index
    %c0_463 = arith.constant 0 : index
    %1053 = vector.load %arg8[%c3_461, %c0_462, %c0_463] : memref<8x8x16xf32, #tpu.memory_space<vmem>>, vector<1x8x16xf32>
    %1054 = vector.shape_cast %1053 : vector<1x8x16xf32> to vector<8x16xf32>
    %1055 = arith.addf %1054, %1028 : vector<8x16xf32>
    %1056 = math.tanh %1055 : vector<8x16xf32>
    %1057 = vector.broadcast %667 : vector<1x16xf32> to vector<8x16xf32>
    %1058 = arith.mulf %1056, %1057 : vector<8x16xf32>
    %cst_464 = arith.constant dense<0.000000e+00> : vector<8xf32>
    %1059 = vector.multi_reduction <add>, %1058, %cst_464 [1] : vector<8x16xf32> to vector<8xf32>
    %1060 = vector.shape_cast %1059 : vector<8xf32> to vector<8x1xf32>
    %c4_465 = arith.constant 4 : index
    %c0_466 = arith.constant 0 : index
    %c0_467 = arith.constant 0 : index
    %1061 = vector.load %arg8[%c4_465, %c0_466, %c0_467] : memref<8x8x16xf32, #tpu.memory_space<vmem>>, vector<1x8x16xf32>
    %1062 = vector.shape_cast %1061 : vector<1x8x16xf32> to vector<8x16xf32>
    %1063 = arith.addf %1062, %1028 : vector<8x16xf32>
    %1064 = math.tanh %1063 : vector<8x16xf32>
    %1065 = vector.broadcast %667 : vector<1x16xf32> to vector<8x16xf32>
    %1066 = arith.mulf %1064, %1065 : vector<8x16xf32>
    %cst_468 = arith.constant dense<0.000000e+00> : vector<8xf32>
    %1067 = vector.multi_reduction <add>, %1066, %cst_468 [1] : vector<8x16xf32> to vector<8xf32>
    %1068 = vector.shape_cast %1067 : vector<8xf32> to vector<8x1xf32>
    %c5_469 = arith.constant 5 : index
    %c0_470 = arith.constant 0 : index
    %c0_471 = arith.constant 0 : index
    %1069 = vector.load %arg8[%c5_469, %c0_470, %c0_471] : memref<8x8x16xf32, #tpu.memory_space<vmem>>, vector<1x8x16xf32>
    %1070 = vector.shape_cast %1069 : vector<1x8x16xf32> to vector<8x16xf32>
    %1071 = arith.addf %1070, %1028 : vector<8x16xf32>
    %1072 = math.tanh %1071 : vector<8x16xf32>
    %1073 = vector.broadcast %667 : vector<1x16xf32> to vector<8x16xf32>
    %1074 = arith.mulf %1072, %1073 : vector<8x16xf32>
    %cst_472 = arith.constant dense<0.000000e+00> : vector<8xf32>
    %1075 = vector.multi_reduction <add>, %1074, %cst_472 [1] : vector<8x16xf32> to vector<8xf32>
    %1076 = vector.shape_cast %1075 : vector<8xf32> to vector<8x1xf32>
    %c6_473 = arith.constant 6 : index
    %c0_474 = arith.constant 0 : index
    %c0_475 = arith.constant 0 : index
    %1077 = vector.load %arg8[%c6_473, %c0_474, %c0_475] : memref<8x8x16xf32, #tpu.memory_space<vmem>>, vector<1x8x16xf32>
    %1078 = vector.shape_cast %1077 : vector<1x8x16xf32> to vector<8x16xf32>
    %1079 = arith.addf %1078, %1028 : vector<8x16xf32>
    %1080 = math.tanh %1079 : vector<8x16xf32>
    %1081 = vector.broadcast %667 : vector<1x16xf32> to vector<8x16xf32>
    %1082 = arith.mulf %1080, %1081 : vector<8x16xf32>
    %cst_476 = arith.constant dense<0.000000e+00> : vector<8xf32>
    %1083 = vector.multi_reduction <add>, %1082, %cst_476 [1] : vector<8x16xf32> to vector<8xf32>
    %1084 = vector.shape_cast %1083 : vector<8xf32> to vector<8x1xf32>
    %c7_477 = arith.constant 7 : index
    %c0_478 = arith.constant 0 : index
    %c0_479 = arith.constant 0 : index
    %1085 = vector.load %arg8[%c7_477, %c0_478, %c0_479] : memref<8x8x16xf32, #tpu.memory_space<vmem>>, vector<1x8x16xf32>
    %1086 = vector.shape_cast %1085 : vector<1x8x16xf32> to vector<8x16xf32>
    %1087 = arith.addf %1086, %1028 : vector<8x16xf32>
    %1088 = math.tanh %1087 : vector<8x16xf32>
    %1089 = vector.broadcast %667 : vector<1x16xf32> to vector<8x16xf32>
    %1090 = arith.mulf %1088, %1089 : vector<8x16xf32>
    %cst_480 = arith.constant dense<0.000000e+00> : vector<8xf32>
    %1091 = vector.multi_reduction <add>, %1090, %cst_480 [1] : vector<8x16xf32> to vector<8xf32>
    %1092 = vector.shape_cast %1091 : vector<8xf32> to vector<8x1xf32>
    %1093 = arith.maximumf %1036, %1044 : vector<8x1xf32>
    %1094 = arith.maximumf %1093, %1052 : vector<8x1xf32>
    %1095 = arith.maximumf %1094, %1060 : vector<8x1xf32>
    %1096 = arith.maximumf %1095, %1068 : vector<8x1xf32>
    %1097 = arith.maximumf %1096, %1076 : vector<8x1xf32>
    %1098 = arith.maximumf %1097, %1084 : vector<8x1xf32>
    %1099 = arith.maximumf %1098, %1092 : vector<8x1xf32>
    %1100 = arith.subf %1036, %1099 : vector<8x1xf32>
    %1101 = math.exp %1100 : vector<8x1xf32>
    %1102 = arith.subf %1044, %1099 : vector<8x1xf32>
    %1103 = math.exp %1102 : vector<8x1xf32>
    %1104 = arith.subf %1052, %1099 : vector<8x1xf32>
    %1105 = math.exp %1104 : vector<8x1xf32>
    %1106 = arith.subf %1060, %1099 : vector<8x1xf32>
    %1107 = math.exp %1106 : vector<8x1xf32>
    %1108 = arith.subf %1068, %1099 : vector<8x1xf32>
    %1109 = math.exp %1108 : vector<8x1xf32>
    %1110 = arith.subf %1076, %1099 : vector<8x1xf32>
    %1111 = math.exp %1110 : vector<8x1xf32>
    %1112 = arith.subf %1084, %1099 : vector<8x1xf32>
    %1113 = math.exp %1112 : vector<8x1xf32>
    %1114 = arith.subf %1092, %1099 : vector<8x1xf32>
    %1115 = math.exp %1114 : vector<8x1xf32>
    %1116 = arith.addf %1101, %1103 : vector<8x1xf32>
    %1117 = arith.addf %1116, %1105 : vector<8x1xf32>
    %1118 = arith.addf %1117, %1107 : vector<8x1xf32>
    %1119 = arith.addf %1118, %1109 : vector<8x1xf32>
    %1120 = arith.addf %1119, %1111 : vector<8x1xf32>
    %1121 = arith.addf %1120, %1113 : vector<8x1xf32>
    %1122 = arith.addf %1121, %1115 : vector<8x1xf32>
    %cst_481 = arith.constant 1.000000e+00 : f32
    %1123 = vector.broadcast %cst_481 : f32 to vector<8x1xf32>
    %1124 = arith.divf %1123, %1122 : vector<8x1xf32>
    %cst_482 = arith.constant 0.000000e+00 : f32
    %1125 = vector.broadcast %cst_482 : f32 to vector<8x16xf32>
    %cst_483 = arith.constant 0.000000e+00 : f32
    %1126 = vector.broadcast %cst_483 : f32 to vector<8x16xf32>
    %1127 = arith.mulf %1101, %1124 : vector<8x1xf32>
    %c0_484 = arith.constant 0 : index
    %c0_485 = arith.constant 0 : index
    %c0_486 = arith.constant 0 : index
    %1128 = vector.load %arg6[%c0_484, %c0_485, %c0_486] : memref<8x8x16xf32, #tpu.memory_space<vmem>>, vector<1x8x16xf32>
    %1129 = vector.shape_cast %1128 : vector<1x8x16xf32> to vector<8x16xf32>
    %1130 = vector.broadcast %1127 : vector<8x1xf32> to vector<8x16xf32>
    %1131 = arith.mulf %1130, %1129 : vector<8x16xf32>
    %1132 = arith.addf %1125, %1131 : vector<8x16xf32>
    %c0_487 = arith.constant 0 : index
    %c0_488 = arith.constant 0 : index
    %c0_489 = arith.constant 0 : index
    %1133 = vector.load %arg7[%c0_487, %c0_488, %c0_489] : memref<8x8x16xf32, #tpu.memory_space<vmem>>, vector<1x8x16xf32>
    %1134 = vector.shape_cast %1133 : vector<1x8x16xf32> to vector<8x16xf32>
    %1135 = vector.broadcast %1127 : vector<8x1xf32> to vector<8x16xf32>
    %1136 = arith.mulf %1135, %1134 : vector<8x16xf32>
    %1137 = arith.addf %1126, %1136 : vector<8x16xf32>
    %1138 = arith.mulf %1103, %1124 : vector<8x1xf32>
    %c1_490 = arith.constant 1 : index
    %c0_491 = arith.constant 0 : index
    %c0_492 = arith.constant 0 : index
    %1139 = vector.load %arg6[%c1_490, %c0_491, %c0_492] : memref<8x8x16xf32, #tpu.memory_space<vmem>>, vector<1x8x16xf32>
    %1140 = vector.shape_cast %1139 : vector<1x8x16xf32> to vector<8x16xf32>
    %1141 = vector.broadcast %1138 : vector<8x1xf32> to vector<8x16xf32>
    %1142 = arith.mulf %1141, %1140 : vector<8x16xf32>
    %1143 = arith.addf %1132, %1142 : vector<8x16xf32>
    %c1_493 = arith.constant 1 : index
    %c0_494 = arith.constant 0 : index
    %c0_495 = arith.constant 0 : index
    %1144 = vector.load %arg7[%c1_493, %c0_494, %c0_495] : memref<8x8x16xf32, #tpu.memory_space<vmem>>, vector<1x8x16xf32>
    %1145 = vector.shape_cast %1144 : vector<1x8x16xf32> to vector<8x16xf32>
    %1146 = vector.broadcast %1138 : vector<8x1xf32> to vector<8x16xf32>
    %1147 = arith.mulf %1146, %1145 : vector<8x16xf32>
    %1148 = arith.addf %1137, %1147 : vector<8x16xf32>
    %1149 = arith.mulf %1105, %1124 : vector<8x1xf32>
    %c2_496 = arith.constant 2 : index
    %c0_497 = arith.constant 0 : index
    %c0_498 = arith.constant 0 : index
    %1150 = vector.load %arg6[%c2_496, %c0_497, %c0_498] : memref<8x8x16xf32, #tpu.memory_space<vmem>>, vector<1x8x16xf32>
    %1151 = vector.shape_cast %1150 : vector<1x8x16xf32> to vector<8x16xf32>
    %1152 = vector.broadcast %1149 : vector<8x1xf32> to vector<8x16xf32>
    %1153 = arith.mulf %1152, %1151 : vector<8x16xf32>
    %1154 = arith.addf %1143, %1153 : vector<8x16xf32>
    %c2_499 = arith.constant 2 : index
    %c0_500 = arith.constant 0 : index
    %c0_501 = arith.constant 0 : index
    %1155 = vector.load %arg7[%c2_499, %c0_500, %c0_501] : memref<8x8x16xf32, #tpu.memory_space<vmem>>, vector<1x8x16xf32>
    %1156 = vector.shape_cast %1155 : vector<1x8x16xf32> to vector<8x16xf32>
    %1157 = vector.broadcast %1149 : vector<8x1xf32> to vector<8x16xf32>
    %1158 = arith.mulf %1157, %1156 : vector<8x16xf32>
    %1159 = arith.addf %1148, %1158 : vector<8x16xf32>
    %1160 = arith.mulf %1107, %1124 : vector<8x1xf32>
    %c3_502 = arith.constant 3 : index
    %c0_503 = arith.constant 0 : index
    %c0_504 = arith.constant 0 : index
    %1161 = vector.load %arg6[%c3_502, %c0_503, %c0_504] : memref<8x8x16xf32, #tpu.memory_space<vmem>>, vector<1x8x16xf32>
    %1162 = vector.shape_cast %1161 : vector<1x8x16xf32> to vector<8x16xf32>
    %1163 = vector.broadcast %1160 : vector<8x1xf32> to vector<8x16xf32>
    %1164 = arith.mulf %1163, %1162 : vector<8x16xf32>
    %1165 = arith.addf %1154, %1164 : vector<8x16xf32>
    %c3_505 = arith.constant 3 : index
    %c0_506 = arith.constant 0 : index
    %c0_507 = arith.constant 0 : index
    %1166 = vector.load %arg7[%c3_505, %c0_506, %c0_507] : memref<8x8x16xf32, #tpu.memory_space<vmem>>, vector<1x8x16xf32>
    %1167 = vector.shape_cast %1166 : vector<1x8x16xf32> to vector<8x16xf32>
    %1168 = vector.broadcast %1160 : vector<8x1xf32> to vector<8x16xf32>
    %1169 = arith.mulf %1168, %1167 : vector<8x16xf32>
    %1170 = arith.addf %1159, %1169 : vector<8x16xf32>
    %1171 = arith.mulf %1109, %1124 : vector<8x1xf32>
    %c4_508 = arith.constant 4 : index
    %c0_509 = arith.constant 0 : index
    %c0_510 = arith.constant 0 : index
    %1172 = vector.load %arg6[%c4_508, %c0_509, %c0_510] : memref<8x8x16xf32, #tpu.memory_space<vmem>>, vector<1x8x16xf32>
    %1173 = vector.shape_cast %1172 : vector<1x8x16xf32> to vector<8x16xf32>
    %1174 = vector.broadcast %1171 : vector<8x1xf32> to vector<8x16xf32>
    %1175 = arith.mulf %1174, %1173 : vector<8x16xf32>
    %1176 = arith.addf %1165, %1175 : vector<8x16xf32>
    %c4_511 = arith.constant 4 : index
    %c0_512 = arith.constant 0 : index
    %c0_513 = arith.constant 0 : index
    %1177 = vector.load %arg7[%c4_511, %c0_512, %c0_513] : memref<8x8x16xf32, #tpu.memory_space<vmem>>, vector<1x8x16xf32>
    %1178 = vector.shape_cast %1177 : vector<1x8x16xf32> to vector<8x16xf32>
    %1179 = vector.broadcast %1171 : vector<8x1xf32> to vector<8x16xf32>
    %1180 = arith.mulf %1179, %1178 : vector<8x16xf32>
    %1181 = arith.addf %1170, %1180 : vector<8x16xf32>
    %1182 = arith.mulf %1111, %1124 : vector<8x1xf32>
    %c5_514 = arith.constant 5 : index
    %c0_515 = arith.constant 0 : index
    %c0_516 = arith.constant 0 : index
    %1183 = vector.load %arg6[%c5_514, %c0_515, %c0_516] : memref<8x8x16xf32, #tpu.memory_space<vmem>>, vector<1x8x16xf32>
    %1184 = vector.shape_cast %1183 : vector<1x8x16xf32> to vector<8x16xf32>
    %1185 = vector.broadcast %1182 : vector<8x1xf32> to vector<8x16xf32>
    %1186 = arith.mulf %1185, %1184 : vector<8x16xf32>
    %1187 = arith.addf %1176, %1186 : vector<8x16xf32>
    %c5_517 = arith.constant 5 : index
    %c0_518 = arith.constant 0 : index
    %c0_519 = arith.constant 0 : index
    %1188 = vector.load %arg7[%c5_517, %c0_518, %c0_519] : memref<8x8x16xf32, #tpu.memory_space<vmem>>, vector<1x8x16xf32>
    %1189 = vector.shape_cast %1188 : vector<1x8x16xf32> to vector<8x16xf32>
    %1190 = vector.broadcast %1182 : vector<8x1xf32> to vector<8x16xf32>
    %1191 = arith.mulf %1190, %1189 : vector<8x16xf32>
    %1192 = arith.addf %1181, %1191 : vector<8x16xf32>
    %1193 = arith.mulf %1113, %1124 : vector<8x1xf32>
    %c6_520 = arith.constant 6 : index
    %c0_521 = arith.constant 0 : index
    %c0_522 = arith.constant 0 : index
    %1194 = vector.load %arg6[%c6_520, %c0_521, %c0_522] : memref<8x8x16xf32, #tpu.memory_space<vmem>>, vector<1x8x16xf32>
    %1195 = vector.shape_cast %1194 : vector<1x8x16xf32> to vector<8x16xf32>
    %1196 = vector.broadcast %1193 : vector<8x1xf32> to vector<8x16xf32>
    %1197 = arith.mulf %1196, %1195 : vector<8x16xf32>
    %1198 = arith.addf %1187, %1197 : vector<8x16xf32>
    %c6_523 = arith.constant 6 : index
    %c0_524 = arith.constant 0 : index
    %c0_525 = arith.constant 0 : index
    %1199 = vector.load %arg7[%c6_523, %c0_524, %c0_525] : memref<8x8x16xf32, #tpu.memory_space<vmem>>, vector<1x8x16xf32>
    %1200 = vector.shape_cast %1199 : vector<1x8x16xf32> to vector<8x16xf32>
    %1201 = vector.broadcast %1193 : vector<8x1xf32> to vector<8x16xf32>
    %1202 = arith.mulf %1201, %1200 : vector<8x16xf32>
    %1203 = arith.addf %1192, %1202 : vector<8x16xf32>
    %1204 = arith.mulf %1115, %1124 : vector<8x1xf32>
    %c7_526 = arith.constant 7 : index
    %c0_527 = arith.constant 0 : index
    %c0_528 = arith.constant 0 : index
    %1205 = vector.load %arg6[%c7_526, %c0_527, %c0_528] : memref<8x8x16xf32, #tpu.memory_space<vmem>>, vector<1x8x16xf32>
    %1206 = vector.shape_cast %1205 : vector<1x8x16xf32> to vector<8x16xf32>
    %1207 = vector.broadcast %1204 : vector<8x1xf32> to vector<8x16xf32>
    %1208 = arith.mulf %1207, %1206 : vector<8x16xf32>
    %1209 = arith.addf %1198, %1208 : vector<8x16xf32>
    %c7_529 = arith.constant 7 : index
    %c0_530 = arith.constant 0 : index
    %c0_531 = arith.constant 0 : index
    %1210 = vector.load %arg7[%c7_529, %c0_530, %c0_531] : memref<8x8x16xf32, #tpu.memory_space<vmem>>, vector<1x8x16xf32>
    %1211 = vector.shape_cast %1210 : vector<1x8x16xf32> to vector<8x16xf32>
    %1212 = vector.broadcast %1204 : vector<8x1xf32> to vector<8x16xf32>
    %1213 = arith.mulf %1212, %1211 : vector<8x16xf32>
    %1214 = arith.addf %1203, %1213 : vector<8x16xf32>
    %1215 = vector.broadcast %1020 : vector<8x1xf32> to vector<8x48xf32>
    %1216 = vector.broadcast %679 : vector<1x48xf32> to vector<8x48xf32>
    %1217 = arith.mulf %1215, %1216 : vector<8x48xf32>
    %cst_532 = arith.constant dense<0.000000e+00> : vector<8x48xf32>
    %1218 = tpu.matmul %1209, %673, %cst_532 {dimension_numbers = #tpu.dot_dimension_numbers<[1], [0], [0], [1], [0, 0, 1, 1], [], []>} : vector<8x16xf32>, vector<16x48xf32>, vector<8x48xf32> -> vector<8x48xf32>
    %1219 = arith.addf %1217, %1218 : vector<8x48xf32>
    %cst_533 = arith.constant dense<0.000000e+00> : vector<8x48xf32>
    %1220 = tpu.matmul %1214, %675, %cst_533 {dimension_numbers = #tpu.dot_dimension_numbers<[1], [0], [0], [1], [0, 0, 1, 1], [], []>} : vector<8x16xf32>, vector<16x48xf32>, vector<8x48xf32> -> vector<8x48xf32>
    %1221 = arith.addf %1219, %1220 : vector<8x48xf32>
    %1222 = vector.broadcast %681 : vector<1x48xf32> to vector<8x48xf32>
    %1223 = arith.addf %1221, %1222 : vector<8x48xf32>
    %cst_534 = arith.constant dense<0.000000e+00> : vector<8x48xf32>
    %1224 = tpu.matmul %1014, %677, %cst_534 {dimension_numbers = #tpu.dot_dimension_numbers<[1], [0], [0], [1], [0, 0, 1, 1], [], []>} : vector<8x16xf32>, vector<16x48xf32>, vector<8x48xf32> -> vector<8x48xf32>
    %1225 = vector.broadcast %683 : vector<1x48xf32> to vector<8x48xf32>
    %1226 = arith.addf %1224, %1225 : vector<8x48xf32>
    %1227 = vector.extract_strided_slice %1223 {offsets = [0, 0], sizes = [8, 16], strides = [1, 1]} : vector<8x48xf32> to vector<8x16xf32>
    %1228 = vector.extract_strided_slice %1226 {offsets = [0, 0], sizes = [8, 16], strides = [1, 1]} : vector<8x48xf32> to vector<8x16xf32>
    %1229 = arith.addf %1227, %1228 : vector<8x16xf32>
    %cst_535 = arith.constant 0.000000e+00 : f32
    %1230 = vector.broadcast %cst_535 : f32 to vector<8x16xf32>
    %1231 = arith.subf %1230, %1229 : vector<8x16xf32>
    %1232 = math.exp %1231 : vector<8x16xf32>
    %cst_536 = arith.constant 1.000000e+00 : f32
    %1233 = vector.broadcast %cst_536 : f32 to vector<8x16xf32>
    %1234 = arith.addf %1233, %1232 : vector<8x16xf32>
    %cst_537 = arith.constant 1.000000e+00 : f32
    %1235 = vector.broadcast %cst_537 : f32 to vector<8x16xf32>
    %1236 = arith.divf %1235, %1234 : vector<8x16xf32>
    %1237 = vector.extract_strided_slice %1223 {offsets = [0, 16], sizes = [8, 16], strides = [1, 1]} : vector<8x48xf32> to vector<8x16xf32>
    %1238 = vector.extract_strided_slice %1226 {offsets = [0, 16], sizes = [8, 16], strides = [1, 1]} : vector<8x48xf32> to vector<8x16xf32>
    %1239 = arith.addf %1237, %1238 : vector<8x16xf32>
    %cst_538 = arith.constant 0.000000e+00 : f32
    %1240 = vector.broadcast %cst_538 : f32 to vector<8x16xf32>
    %1241 = arith.subf %1240, %1239 : vector<8x16xf32>
    %1242 = math.exp %1241 : vector<8x16xf32>
    %cst_539 = arith.constant 1.000000e+00 : f32
    %1243 = vector.broadcast %cst_539 : f32 to vector<8x16xf32>
    %1244 = arith.addf %1243, %1242 : vector<8x16xf32>
    %cst_540 = arith.constant 1.000000e+00 : f32
    %1245 = vector.broadcast %cst_540 : f32 to vector<8x16xf32>
    %1246 = arith.divf %1245, %1244 : vector<8x16xf32>
    %1247 = vector.extract_strided_slice %1223 {offsets = [0, 32], sizes = [8, 16], strides = [1, 1]} : vector<8x48xf32> to vector<8x16xf32>
    %1248 = vector.extract_strided_slice %1226 {offsets = [0, 32], sizes = [8, 16], strides = [1, 1]} : vector<8x48xf32> to vector<8x16xf32>
    %1249 = arith.mulf %1236, %1248 : vector<8x16xf32>
    %1250 = arith.addf %1247, %1249 : vector<8x16xf32>
    %1251 = math.tanh %1250 : vector<8x16xf32>
    %cst_541 = arith.constant 1.000000e+00 : f32
    %1252 = vector.broadcast %cst_541 : f32 to vector<8x16xf32>
    %1253 = arith.subf %1252, %1246 : vector<8x16xf32>
    %1254 = arith.mulf %1253, %1251 : vector<8x16xf32>
    %1255 = arith.mulf %1246, %1014 : vector<8x16xf32>
    %1256 = arith.addf %1254, %1255 : vector<8x16xf32>
    %1257 = vector.broadcast %669 : vector<1x16xf32> to vector<8x16xf32>
    %1258 = arith.mulf %1256, %1257 : vector<8x16xf32>
    %cst_542 = arith.constant dense<0.000000e+00> : vector<8xf32>
    %1259 = vector.multi_reduction <add>, %1258, %cst_542 [1] : vector<8x16xf32> to vector<8xf32>
    %1260 = vector.shape_cast %1259 : vector<8xf32> to vector<8x1xf32>
    %1261 = vector.broadcast %671 : vector<1x1xf32> to vector<8x1xf32>
    %1262 = arith.addf %1260, %1261 : vector<8x1xf32>
    %1263 = vector.extract_strided_slice %684 {offsets = [1, 0], sizes = [1, 8], strides = [1, 1]} : vector<8x8xf32> to vector<1x8xf32>
    %1264 = vector.broadcast %1262 : vector<8x1xf32> to vector<8x8xf32>
    %1265 = vector.broadcast %1263 : vector<1x8xf32> to vector<8x8xf32>
    %1266 = arith.mulf %1264, %1265 : vector<8x8xf32>
    %1267 = arith.addf %1025, %1266 : vector<8x8xf32>
    %1268 = vector.broadcast %1262 : vector<8x1xf32> to vector<8x16xf32>
    %1269 = vector.broadcast %663 : vector<1x16xf32> to vector<8x16xf32>
    %1270 = arith.mulf %1268, %1269 : vector<8x16xf32>
    %c0_543 = arith.constant 0 : index
    %c0_544 = arith.constant 0 : index
    %c0_545 = arith.constant 0 : index
    %1271 = vector.load %arg8[%c0_543, %c0_544, %c0_545] : memref<8x8x16xf32, #tpu.memory_space<vmem>>, vector<1x8x16xf32>
    %1272 = vector.shape_cast %1271 : vector<1x8x16xf32> to vector<8x16xf32>
    %1273 = arith.addf %1272, %1270 : vector<8x16xf32>
    %1274 = math.tanh %1273 : vector<8x16xf32>
    %1275 = vector.broadcast %667 : vector<1x16xf32> to vector<8x16xf32>
    %1276 = arith.mulf %1274, %1275 : vector<8x16xf32>
    %cst_546 = arith.constant dense<0.000000e+00> : vector<8xf32>
    %1277 = vector.multi_reduction <add>, %1276, %cst_546 [1] : vector<8x16xf32> to vector<8xf32>
    %1278 = vector.shape_cast %1277 : vector<8xf32> to vector<8x1xf32>
    %c1_547 = arith.constant 1 : index
    %c0_548 = arith.constant 0 : index
    %c0_549 = arith.constant 0 : index
    %1279 = vector.load %arg8[%c1_547, %c0_548, %c0_549] : memref<8x8x16xf32, #tpu.memory_space<vmem>>, vector<1x8x16xf32>
    %1280 = vector.shape_cast %1279 : vector<1x8x16xf32> to vector<8x16xf32>
    %1281 = arith.addf %1280, %1270 : vector<8x16xf32>
    %1282 = math.tanh %1281 : vector<8x16xf32>
    %1283 = vector.broadcast %667 : vector<1x16xf32> to vector<8x16xf32>
    %1284 = arith.mulf %1282, %1283 : vector<8x16xf32>
    %cst_550 = arith.constant dense<0.000000e+00> : vector<8xf32>
    %1285 = vector.multi_reduction <add>, %1284, %cst_550 [1] : vector<8x16xf32> to vector<8xf32>
    %1286 = vector.shape_cast %1285 : vector<8xf32> to vector<8x1xf32>
    %c2_551 = arith.constant 2 : index
    %c0_552 = arith.constant 0 : index
    %c0_553 = arith.constant 0 : index
    %1287 = vector.load %arg8[%c2_551, %c0_552, %c0_553] : memref<8x8x16xf32, #tpu.memory_space<vmem>>, vector<1x8x16xf32>
    %1288 = vector.shape_cast %1287 : vector<1x8x16xf32> to vector<8x16xf32>
    %1289 = arith.addf %1288, %1270 : vector<8x16xf32>
    %1290 = math.tanh %1289 : vector<8x16xf32>
    %1291 = vector.broadcast %667 : vector<1x16xf32> to vector<8x16xf32>
    %1292 = arith.mulf %1290, %1291 : vector<8x16xf32>
    %cst_554 = arith.constant dense<0.000000e+00> : vector<8xf32>
    %1293 = vector.multi_reduction <add>, %1292, %cst_554 [1] : vector<8x16xf32> to vector<8xf32>
    %1294 = vector.shape_cast %1293 : vector<8xf32> to vector<8x1xf32>
    %c3_555 = arith.constant 3 : index
    %c0_556 = arith.constant 0 : index
    %c0_557 = arith.constant 0 : index
    %1295 = vector.load %arg8[%c3_555, %c0_556, %c0_557] : memref<8x8x16xf32, #tpu.memory_space<vmem>>, vector<1x8x16xf32>
    %1296 = vector.shape_cast %1295 : vector<1x8x16xf32> to vector<8x16xf32>
    %1297 = arith.addf %1296, %1270 : vector<8x16xf32>
    %1298 = math.tanh %1297 : vector<8x16xf32>
    %1299 = vector.broadcast %667 : vector<1x16xf32> to vector<8x16xf32>
    %1300 = arith.mulf %1298, %1299 : vector<8x16xf32>
    %cst_558 = arith.constant dense<0.000000e+00> : vector<8xf32>
    %1301 = vector.multi_reduction <add>, %1300, %cst_558 [1] : vector<8x16xf32> to vector<8xf32>
    %1302 = vector.shape_cast %1301 : vector<8xf32> to vector<8x1xf32>
    %c4_559 = arith.constant 4 : index
    %c0_560 = arith.constant 0 : index
    %c0_561 = arith.constant 0 : index
    %1303 = vector.load %arg8[%c4_559, %c0_560, %c0_561] : memref<8x8x16xf32, #tpu.memory_space<vmem>>, vector<1x8x16xf32>
    %1304 = vector.shape_cast %1303 : vector<1x8x16xf32> to vector<8x16xf32>
    %1305 = arith.addf %1304, %1270 : vector<8x16xf32>
    %1306 = math.tanh %1305 : vector<8x16xf32>
    %1307 = vector.broadcast %667 : vector<1x16xf32> to vector<8x16xf32>
    %1308 = arith.mulf %1306, %1307 : vector<8x16xf32>
    %cst_562 = arith.constant dense<0.000000e+00> : vector<8xf32>
    %1309 = vector.multi_reduction <add>, %1308, %cst_562 [1] : vector<8x16xf32> to vector<8xf32>
    %1310 = vector.shape_cast %1309 : vector<8xf32> to vector<8x1xf32>
    %c5_563 = arith.constant 5 : index
    %c0_564 = arith.constant 0 : index
    %c0_565 = arith.constant 0 : index
    %1311 = vector.load %arg8[%c5_563, %c0_564, %c0_565] : memref<8x8x16xf32, #tpu.memory_space<vmem>>, vector<1x8x16xf32>
    %1312 = vector.shape_cast %1311 : vector<1x8x16xf32> to vector<8x16xf32>
    %1313 = arith.addf %1312, %1270 : vector<8x16xf32>
    %1314 = math.tanh %1313 : vector<8x16xf32>
    %1315 = vector.broadcast %667 : vector<1x16xf32> to vector<8x16xf32>
    %1316 = arith.mulf %1314, %1315 : vector<8x16xf32>
    %cst_566 = arith.constant dense<0.000000e+00> : vector<8xf32>
    %1317 = vector.multi_reduction <add>, %1316, %cst_566 [1] : vector<8x16xf32> to vector<8xf32>
    %1318 = vector.shape_cast %1317 : vector<8xf32> to vector<8x1xf32>
    %c6_567 = arith.constant 6 : index
    %c0_568 = arith.constant 0 : index
    %c0_569 = arith.constant 0 : index
    %1319 = vector.load %arg8[%c6_567, %c0_568, %c0_569] : memref<8x8x16xf32, #tpu.memory_space<vmem>>, vector<1x8x16xf32>
    %1320 = vector.shape_cast %1319 : vector<1x8x16xf32> to vector<8x16xf32>
    %1321 = arith.addf %1320, %1270 : vector<8x16xf32>
    %1322 = math.tanh %1321 : vector<8x16xf32>
    %1323 = vector.broadcast %667 : vector<1x16xf32> to vector<8x16xf32>
    %1324 = arith.mulf %1322, %1323 : vector<8x16xf32>
    %cst_570 = arith.constant dense<0.000000e+00> : vector<8xf32>
    %1325 = vector.multi_reduction <add>, %1324, %cst_570 [1] : vector<8x16xf32> to vector<8xf32>
    %1326 = vector.shape_cast %1325 : vector<8xf32> to vector<8x1xf32>
    %c7_571 = arith.constant 7 : index
    %c0_572 = arith.constant 0 : index
    %c0_573 = arith.constant 0 : index
    %1327 = vector.load %arg8[%c7_571, %c0_572, %c0_573] : memref<8x8x16xf32, #tpu.memory_space<vmem>>, vector<1x8x16xf32>
    %1328 = vector.shape_cast %1327 : vector<1x8x16xf32> to vector<8x16xf32>
    %1329 = arith.addf %1328, %1270 : vector<8x16xf32>
    %1330 = math.tanh %1329 : vector<8x16xf32>
    %1331 = vector.broadcast %667 : vector<1x16xf32> to vector<8x16xf32>
    %1332 = arith.mulf %1330, %1331 : vector<8x16xf32>
    %cst_574 = arith.constant dense<0.000000e+00> : vector<8xf32>
    %1333 = vector.multi_reduction <add>, %1332, %cst_574 [1] : vector<8x16xf32> to vector<8xf32>
    %1334 = vector.shape_cast %1333 : vector<8xf32> to vector<8x1xf32>
    %1335 = arith.maximumf %1278, %1286 : vector<8x1xf32>
    %1336 = arith.maximumf %1335, %1294 : vector<8x1xf32>
    %1337 = arith.maximumf %1336, %1302 : vector<8x1xf32>
    %1338 = arith.maximumf %1337, %1310 : vector<8x1xf32>
    %1339 = arith.maximumf %1338, %1318 : vector<8x1xf32>
    %1340 = arith.maximumf %1339, %1326 : vector<8x1xf32>
    %1341 = arith.maximumf %1340, %1334 : vector<8x1xf32>
    %1342 = arith.subf %1278, %1341 : vector<8x1xf32>
    %1343 = math.exp %1342 : vector<8x1xf32>
    %1344 = arith.subf %1286, %1341 : vector<8x1xf32>
    %1345 = math.exp %1344 : vector<8x1xf32>
    %1346 = arith.subf %1294, %1341 : vector<8x1xf32>
    %1347 = math.exp %1346 : vector<8x1xf32>
    %1348 = arith.subf %1302, %1341 : vector<8x1xf32>
    %1349 = math.exp %1348 : vector<8x1xf32>
    %1350 = arith.subf %1310, %1341 : vector<8x1xf32>
    %1351 = math.exp %1350 : vector<8x1xf32>
    %1352 = arith.subf %1318, %1341 : vector<8x1xf32>
    %1353 = math.exp %1352 : vector<8x1xf32>
    %1354 = arith.subf %1326, %1341 : vector<8x1xf32>
    %1355 = math.exp %1354 : vector<8x1xf32>
    %1356 = arith.subf %1334, %1341 : vector<8x1xf32>
    %1357 = math.exp %1356 : vector<8x1xf32>
    %1358 = arith.addf %1343, %1345 : vector<8x1xf32>
    %1359 = arith.addf %1358, %1347 : vector<8x1xf32>
    %1360 = arith.addf %1359, %1349 : vector<8x1xf32>
    %1361 = arith.addf %1360, %1351 : vector<8x1xf32>
    %1362 = arith.addf %1361, %1353 : vector<8x1xf32>
    %1363 = arith.addf %1362, %1355 : vector<8x1xf32>
    %1364 = arith.addf %1363, %1357 : vector<8x1xf32>
    %cst_575 = arith.constant 1.000000e+00 : f32
    %1365 = vector.broadcast %cst_575 : f32 to vector<8x1xf32>
    %1366 = arith.divf %1365, %1364 : vector<8x1xf32>
    %cst_576 = arith.constant 0.000000e+00 : f32
    %1367 = vector.broadcast %cst_576 : f32 to vector<8x16xf32>
    %cst_577 = arith.constant 0.000000e+00 : f32
    %1368 = vector.broadcast %cst_577 : f32 to vector<8x16xf32>
    %1369 = arith.mulf %1343, %1366 : vector<8x1xf32>
    %c0_578 = arith.constant 0 : index
    %c0_579 = arith.constant 0 : index
    %c0_580 = arith.constant 0 : index
    %1370 = vector.load %arg6[%c0_578, %c0_579, %c0_580] : memref<8x8x16xf32, #tpu.memory_space<vmem>>, vector<1x8x16xf32>
    %1371 = vector.shape_cast %1370 : vector<1x8x16xf32> to vector<8x16xf32>
    %1372 = vector.broadcast %1369 : vector<8x1xf32> to vector<8x16xf32>
    %1373 = arith.mulf %1372, %1371 : vector<8x16xf32>
    %1374 = arith.addf %1367, %1373 : vector<8x16xf32>
    %c0_581 = arith.constant 0 : index
    %c0_582 = arith.constant 0 : index
    %c0_583 = arith.constant 0 : index
    %1375 = vector.load %arg7[%c0_581, %c0_582, %c0_583] : memref<8x8x16xf32, #tpu.memory_space<vmem>>, vector<1x8x16xf32>
    %1376 = vector.shape_cast %1375 : vector<1x8x16xf32> to vector<8x16xf32>
    %1377 = vector.broadcast %1369 : vector<8x1xf32> to vector<8x16xf32>
    %1378 = arith.mulf %1377, %1376 : vector<8x16xf32>
    %1379 = arith.addf %1368, %1378 : vector<8x16xf32>
    %1380 = arith.mulf %1345, %1366 : vector<8x1xf32>
    %c1_584 = arith.constant 1 : index
    %c0_585 = arith.constant 0 : index
    %c0_586 = arith.constant 0 : index
    %1381 = vector.load %arg6[%c1_584, %c0_585, %c0_586] : memref<8x8x16xf32, #tpu.memory_space<vmem>>, vector<1x8x16xf32>
    %1382 = vector.shape_cast %1381 : vector<1x8x16xf32> to vector<8x16xf32>
    %1383 = vector.broadcast %1380 : vector<8x1xf32> to vector<8x16xf32>
    %1384 = arith.mulf %1383, %1382 : vector<8x16xf32>
    %1385 = arith.addf %1374, %1384 : vector<8x16xf32>
    %c1_587 = arith.constant 1 : index
    %c0_588 = arith.constant 0 : index
    %c0_589 = arith.constant 0 : index
    %1386 = vector.load %arg7[%c1_587, %c0_588, %c0_589] : memref<8x8x16xf32, #tpu.memory_space<vmem>>, vector<1x8x16xf32>
    %1387 = vector.shape_cast %1386 : vector<1x8x16xf32> to vector<8x16xf32>
    %1388 = vector.broadcast %1380 : vector<8x1xf32> to vector<8x16xf32>
    %1389 = arith.mulf %1388, %1387 : vector<8x16xf32>
    %1390 = arith.addf %1379, %1389 : vector<8x16xf32>
    %1391 = arith.mulf %1347, %1366 : vector<8x1xf32>
    %c2_590 = arith.constant 2 : index
    %c0_591 = arith.constant 0 : index
    %c0_592 = arith.constant 0 : index
    %1392 = vector.load %arg6[%c2_590, %c0_591, %c0_592] : memref<8x8x16xf32, #tpu.memory_space<vmem>>, vector<1x8x16xf32>
    %1393 = vector.shape_cast %1392 : vector<1x8x16xf32> to vector<8x16xf32>
    %1394 = vector.broadcast %1391 : vector<8x1xf32> to vector<8x16xf32>
    %1395 = arith.mulf %1394, %1393 : vector<8x16xf32>
    %1396 = arith.addf %1385, %1395 : vector<8x16xf32>
    %c2_593 = arith.constant 2 : index
    %c0_594 = arith.constant 0 : index
    %c0_595 = arith.constant 0 : index
    %1397 = vector.load %arg7[%c2_593, %c0_594, %c0_595] : memref<8x8x16xf32, #tpu.memory_space<vmem>>, vector<1x8x16xf32>
    %1398 = vector.shape_cast %1397 : vector<1x8x16xf32> to vector<8x16xf32>
    %1399 = vector.broadcast %1391 : vector<8x1xf32> to vector<8x16xf32>
    %1400 = arith.mulf %1399, %1398 : vector<8x16xf32>
    %1401 = arith.addf %1390, %1400 : vector<8x16xf32>
    %1402 = arith.mulf %1349, %1366 : vector<8x1xf32>
    %c3_596 = arith.constant 3 : index
    %c0_597 = arith.constant 0 : index
    %c0_598 = arith.constant 0 : index
    %1403 = vector.load %arg6[%c3_596, %c0_597, %c0_598] : memref<8x8x16xf32, #tpu.memory_space<vmem>>, vector<1x8x16xf32>
    %1404 = vector.shape_cast %1403 : vector<1x8x16xf32> to vector<8x16xf32>
    %1405 = vector.broadcast %1402 : vector<8x1xf32> to vector<8x16xf32>
    %1406 = arith.mulf %1405, %1404 : vector<8x16xf32>
    %1407 = arith.addf %1396, %1406 : vector<8x16xf32>
    %c3_599 = arith.constant 3 : index
    %c0_600 = arith.constant 0 : index
    %c0_601 = arith.constant 0 : index
    %1408 = vector.load %arg7[%c3_599, %c0_600, %c0_601] : memref<8x8x16xf32, #tpu.memory_space<vmem>>, vector<1x8x16xf32>
    %1409 = vector.shape_cast %1408 : vector<1x8x16xf32> to vector<8x16xf32>
    %1410 = vector.broadcast %1402 : vector<8x1xf32> to vector<8x16xf32>
    %1411 = arith.mulf %1410, %1409 : vector<8x16xf32>
    %1412 = arith.addf %1401, %1411 : vector<8x16xf32>
    %1413 = arith.mulf %1351, %1366 : vector<8x1xf32>
    %c4_602 = arith.constant 4 : index
    %c0_603 = arith.constant 0 : index
    %c0_604 = arith.constant 0 : index
    %1414 = vector.load %arg6[%c4_602, %c0_603, %c0_604] : memref<8x8x16xf32, #tpu.memory_space<vmem>>, vector<1x8x16xf32>
    %1415 = vector.shape_cast %1414 : vector<1x8x16xf32> to vector<8x16xf32>
    %1416 = vector.broadcast %1413 : vector<8x1xf32> to vector<8x16xf32>
    %1417 = arith.mulf %1416, %1415 : vector<8x16xf32>
    %1418 = arith.addf %1407, %1417 : vector<8x16xf32>
    %c4_605 = arith.constant 4 : index
    %c0_606 = arith.constant 0 : index
    %c0_607 = arith.constant 0 : index
    %1419 = vector.load %arg7[%c4_605, %c0_606, %c0_607] : memref<8x8x16xf32, #tpu.memory_space<vmem>>, vector<1x8x16xf32>
    %1420 = vector.shape_cast %1419 : vector<1x8x16xf32> to vector<8x16xf32>
    %1421 = vector.broadcast %1413 : vector<8x1xf32> to vector<8x16xf32>
    %1422 = arith.mulf %1421, %1420 : vector<8x16xf32>
    %1423 = arith.addf %1412, %1422 : vector<8x16xf32>
    %1424 = arith.mulf %1353, %1366 : vector<8x1xf32>
    %c5_608 = arith.constant 5 : index
    %c0_609 = arith.constant 0 : index
    %c0_610 = arith.constant 0 : index
    %1425 = vector.load %arg6[%c5_608, %c0_609, %c0_610] : memref<8x8x16xf32, #tpu.memory_space<vmem>>, vector<1x8x16xf32>
    %1426 = vector.shape_cast %1425 : vector<1x8x16xf32> to vector<8x16xf32>
    %1427 = vector.broadcast %1424 : vector<8x1xf32> to vector<8x16xf32>
    %1428 = arith.mulf %1427, %1426 : vector<8x16xf32>
    %1429 = arith.addf %1418, %1428 : vector<8x16xf32>
    %c5_611 = arith.constant 5 : index
    %c0_612 = arith.constant 0 : index
    %c0_613 = arith.constant 0 : index
    %1430 = vector.load %arg7[%c5_611, %c0_612, %c0_613] : memref<8x8x16xf32, #tpu.memory_space<vmem>>, vector<1x8x16xf32>
    %1431 = vector.shape_cast %1430 : vector<1x8x16xf32> to vector<8x16xf32>
    %1432 = vector.broadcast %1424 : vector<8x1xf32> to vector<8x16xf32>
    %1433 = arith.mulf %1432, %1431 : vector<8x16xf32>
    %1434 = arith.addf %1423, %1433 : vector<8x16xf32>
    %1435 = arith.mulf %1355, %1366 : vector<8x1xf32>
    %c6_614 = arith.constant 6 : index
    %c0_615 = arith.constant 0 : index
    %c0_616 = arith.constant 0 : index
    %1436 = vector.load %arg6[%c6_614, %c0_615, %c0_616] : memref<8x8x16xf32, #tpu.memory_space<vmem>>, vector<1x8x16xf32>
    %1437 = vector.shape_cast %1436 : vector<1x8x16xf32> to vector<8x16xf32>
    %1438 = vector.broadcast %1435 : vector<8x1xf32> to vector<8x16xf32>
    %1439 = arith.mulf %1438, %1437 : vector<8x16xf32>
    %1440 = arith.addf %1429, %1439 : vector<8x16xf32>
    %c6_617 = arith.constant 6 : index
    %c0_618 = arith.constant 0 : index
    %c0_619 = arith.constant 0 : index
    %1441 = vector.load %arg7[%c6_617, %c0_618, %c0_619] : memref<8x8x16xf32, #tpu.memory_space<vmem>>, vector<1x8x16xf32>
    %1442 = vector.shape_cast %1441 : vector<1x8x16xf32> to vector<8x16xf32>
    %1443 = vector.broadcast %1435 : vector<8x1xf32> to vector<8x16xf32>
    %1444 = arith.mulf %1443, %1442 : vector<8x16xf32>
    %1445 = arith.addf %1434, %1444 : vector<8x16xf32>
    %1446 = arith.mulf %1357, %1366 : vector<8x1xf32>
    %c7_620 = arith.constant 7 : index
    %c0_621 = arith.constant 0 : index
    %c0_622 = arith.constant 0 : index
    %1447 = vector.load %arg6[%c7_620, %c0_621, %c0_622] : memref<8x8x16xf32, #tpu.memory_space<vmem>>, vector<1x8x16xf32>
    %1448 = vector.shape_cast %1447 : vector<1x8x16xf32> to vector<8x16xf32>
    %1449 = vector.broadcast %1446 : vector<8x1xf32> to vector<8x16xf32>
    %1450 = arith.mulf %1449, %1448 : vector<8x16xf32>
    %1451 = arith.addf %1440, %1450 : vector<8x16xf32>
    %c7_623 = arith.constant 7 : index
    %c0_624 = arith.constant 0 : index
    %c0_625 = arith.constant 0 : index
    %1452 = vector.load %arg7[%c7_623, %c0_624, %c0_625] : memref<8x8x16xf32, #tpu.memory_space<vmem>>, vector<1x8x16xf32>
    %1453 = vector.shape_cast %1452 : vector<1x8x16xf32> to vector<8x16xf32>
    %1454 = vector.broadcast %1446 : vector<8x1xf32> to vector<8x16xf32>
    %1455 = arith.mulf %1454, %1453 : vector<8x16xf32>
    %1456 = arith.addf %1445, %1455 : vector<8x16xf32>
    %1457 = vector.broadcast %1262 : vector<8x1xf32> to vector<8x48xf32>
    %1458 = vector.broadcast %679 : vector<1x48xf32> to vector<8x48xf32>
    %1459 = arith.mulf %1457, %1458 : vector<8x48xf32>
    %cst_626 = arith.constant dense<0.000000e+00> : vector<8x48xf32>
    %1460 = tpu.matmul %1451, %673, %cst_626 {dimension_numbers = #tpu.dot_dimension_numbers<[1], [0], [0], [1], [0, 0, 1, 1], [], []>} : vector<8x16xf32>, vector<16x48xf32>, vector<8x48xf32> -> vector<8x48xf32>
    %1461 = arith.addf %1459, %1460 : vector<8x48xf32>
    %cst_627 = arith.constant dense<0.000000e+00> : vector<8x48xf32>
    %1462 = tpu.matmul %1456, %675, %cst_627 {dimension_numbers = #tpu.dot_dimension_numbers<[1], [0], [0], [1], [0, 0, 1, 1], [], []>} : vector<8x16xf32>, vector<16x48xf32>, vector<8x48xf32> -> vector<8x48xf32>
    %1463 = arith.addf %1461, %1462 : vector<8x48xf32>
    %1464 = vector.broadcast %681 : vector<1x48xf32> to vector<8x48xf32>
    %1465 = arith.addf %1463, %1464 : vector<8x48xf32>
    %cst_628 = arith.constant dense<0.000000e+00> : vector<8x48xf32>
    %1466 = tpu.matmul %1256, %677, %cst_628 {dimension_numbers = #tpu.dot_dimension_numbers<[1], [0], [0], [1], [0, 0, 1, 1], [], []>} : vector<8x16xf32>, vector<16x48xf32>, vector<8x48xf32> -> vector<8x48xf32>
    %1467 = vector.broadcast %683 : vector<1x48xf32> to vector<8x48xf32>
    %1468 = arith.addf %1466, %1467 : vector<8x48xf32>
    %1469 = vector.extract_strided_slice %1465 {offsets = [0, 0], sizes = [8, 16], strides = [1, 1]} : vector<8x48xf32> to vector<8x16xf32>
    %1470 = vector.extract_strided_slice %1468 {offsets = [0, 0], sizes = [8, 16], strides = [1, 1]} : vector<8x48xf32> to vector<8x16xf32>
    %1471 = arith.addf %1469, %1470 : vector<8x16xf32>
    %cst_629 = arith.constant 0.000000e+00 : f32
    %1472 = vector.broadcast %cst_629 : f32 to vector<8x16xf32>
    %1473 = arith.subf %1472, %1471 : vector<8x16xf32>
    %1474 = math.exp %1473 : vector<8x16xf32>
    %cst_630 = arith.constant 1.000000e+00 : f32
    %1475 = vector.broadcast %cst_630 : f32 to vector<8x16xf32>
    %1476 = arith.addf %1475, %1474 : vector<8x16xf32>
    %cst_631 = arith.constant 1.000000e+00 : f32
    %1477 = vector.broadcast %cst_631 : f32 to vector<8x16xf32>
    %1478 = arith.divf %1477, %1476 : vector<8x16xf32>
    %1479 = vector.extract_strided_slice %1465 {offsets = [0, 16], sizes = [8, 16], strides = [1, 1]} : vector<8x48xf32> to vector<8x16xf32>
    %1480 = vector.extract_strided_slice %1468 {offsets = [0, 16], sizes = [8, 16], strides = [1, 1]} : vector<8x48xf32> to vector<8x16xf32>
    %1481 = arith.addf %1479, %1480 : vector<8x16xf32>
    %cst_632 = arith.constant 0.000000e+00 : f32
    %1482 = vector.broadcast %cst_632 : f32 to vector<8x16xf32>
    %1483 = arith.subf %1482, %1481 : vector<8x16xf32>
    %1484 = math.exp %1483 : vector<8x16xf32>
    %cst_633 = arith.constant 1.000000e+00 : f32
    %1485 = vector.broadcast %cst_633 : f32 to vector<8x16xf32>
    %1486 = arith.addf %1485, %1484 : vector<8x16xf32>
    %cst_634 = arith.constant 1.000000e+00 : f32
    %1487 = vector.broadcast %cst_634 : f32 to vector<8x16xf32>
    %1488 = arith.divf %1487, %1486 : vector<8x16xf32>
    %1489 = vector.extract_strided_slice %1465 {offsets = [0, 32], sizes = [8, 16], strides = [1, 1]} : vector<8x48xf32> to vector<8x16xf32>
    %1490 = vector.extract_strided_slice %1468 {offsets = [0, 32], sizes = [8, 16], strides = [1, 1]} : vector<8x48xf32> to vector<8x16xf32>
    %1491 = arith.mulf %1478, %1490 : vector<8x16xf32>
    %1492 = arith.addf %1489, %1491 : vector<8x16xf32>
    %1493 = math.tanh %1492 : vector<8x16xf32>
    %cst_635 = arith.constant 1.000000e+00 : f32
    %1494 = vector.broadcast %cst_635 : f32 to vector<8x16xf32>
    %1495 = arith.subf %1494, %1488 : vector<8x16xf32>
    %1496 = arith.mulf %1495, %1493 : vector<8x16xf32>
    %1497 = arith.mulf %1488, %1256 : vector<8x16xf32>
    %1498 = arith.addf %1496, %1497 : vector<8x16xf32>
    %1499 = vector.broadcast %669 : vector<1x16xf32> to vector<8x16xf32>
    %1500 = arith.mulf %1498, %1499 : vector<8x16xf32>
    %cst_636 = arith.constant dense<0.000000e+00> : vector<8xf32>
    %1501 = vector.multi_reduction <add>, %1500, %cst_636 [1] : vector<8x16xf32> to vector<8xf32>
    %1502 = vector.shape_cast %1501 : vector<8xf32> to vector<8x1xf32>
    %1503 = vector.broadcast %671 : vector<1x1xf32> to vector<8x1xf32>
    %1504 = arith.addf %1502, %1503 : vector<8x1xf32>
    %1505 = vector.extract_strided_slice %684 {offsets = [2, 0], sizes = [1, 8], strides = [1, 1]} : vector<8x8xf32> to vector<1x8xf32>
    %1506 = vector.broadcast %1504 : vector<8x1xf32> to vector<8x8xf32>
    %1507 = vector.broadcast %1505 : vector<1x8xf32> to vector<8x8xf32>
    %1508 = arith.mulf %1506, %1507 : vector<8x8xf32>
    %1509 = arith.addf %1267, %1508 : vector<8x8xf32>
    %1510 = vector.broadcast %1504 : vector<8x1xf32> to vector<8x16xf32>
    %1511 = vector.broadcast %663 : vector<1x16xf32> to vector<8x16xf32>
    %1512 = arith.mulf %1510, %1511 : vector<8x16xf32>
    %c0_637 = arith.constant 0 : index
    %c0_638 = arith.constant 0 : index
    %c0_639 = arith.constant 0 : index
    %1513 = vector.load %arg8[%c0_637, %c0_638, %c0_639] : memref<8x8x16xf32, #tpu.memory_space<vmem>>, vector<1x8x16xf32>
    %1514 = vector.shape_cast %1513 : vector<1x8x16xf32> to vector<8x16xf32>
    %1515 = arith.addf %1514, %1512 : vector<8x16xf32>
    %1516 = math.tanh %1515 : vector<8x16xf32>
    %1517 = vector.broadcast %667 : vector<1x16xf32> to vector<8x16xf32>
    %1518 = arith.mulf %1516, %1517 : vector<8x16xf32>
    %cst_640 = arith.constant dense<0.000000e+00> : vector<8xf32>
    %1519 = vector.multi_reduction <add>, %1518, %cst_640 [1] : vector<8x16xf32> to vector<8xf32>
    %1520 = vector.shape_cast %1519 : vector<8xf32> to vector<8x1xf32>
    %c1_641 = arith.constant 1 : index
    %c0_642 = arith.constant 0 : index
    %c0_643 = arith.constant 0 : index
    %1521 = vector.load %arg8[%c1_641, %c0_642, %c0_643] : memref<8x8x16xf32, #tpu.memory_space<vmem>>, vector<1x8x16xf32>
    %1522 = vector.shape_cast %1521 : vector<1x8x16xf32> to vector<8x16xf32>
    %1523 = arith.addf %1522, %1512 : vector<8x16xf32>
    %1524 = math.tanh %1523 : vector<8x16xf32>
    %1525 = vector.broadcast %667 : vector<1x16xf32> to vector<8x16xf32>
    %1526 = arith.mulf %1524, %1525 : vector<8x16xf32>
    %cst_644 = arith.constant dense<0.000000e+00> : vector<8xf32>
    %1527 = vector.multi_reduction <add>, %1526, %cst_644 [1] : vector<8x16xf32> to vector<8xf32>
    %1528 = vector.shape_cast %1527 : vector<8xf32> to vector<8x1xf32>
    %c2_645 = arith.constant 2 : index
    %c0_646 = arith.constant 0 : index
    %c0_647 = arith.constant 0 : index
    %1529 = vector.load %arg8[%c2_645, %c0_646, %c0_647] : memref<8x8x16xf32, #tpu.memory_space<vmem>>, vector<1x8x16xf32>
    %1530 = vector.shape_cast %1529 : vector<1x8x16xf32> to vector<8x16xf32>
    %1531 = arith.addf %1530, %1512 : vector<8x16xf32>
    %1532 = math.tanh %1531 : vector<8x16xf32>
    %1533 = vector.broadcast %667 : vector<1x16xf32> to vector<8x16xf32>
    %1534 = arith.mulf %1532, %1533 : vector<8x16xf32>
    %cst_648 = arith.constant dense<0.000000e+00> : vector<8xf32>
    %1535 = vector.multi_reduction <add>, %1534, %cst_648 [1] : vector<8x16xf32> to vector<8xf32>
    %1536 = vector.shape_cast %1535 : vector<8xf32> to vector<8x1xf32>
    %c3_649 = arith.constant 3 : index
    %c0_650 = arith.constant 0 : index
    %c0_651 = arith.constant 0 : index
    %1537 = vector.load %arg8[%c3_649, %c0_650, %c0_651] : memref<8x8x16xf32, #tpu.memory_space<vmem>>, vector<1x8x16xf32>
    %1538 = vector.shape_cast %1537 : vector<1x8x16xf32> to vector<8x16xf32>
    %1539 = arith.addf %1538, %1512 : vector<8x16xf32>
    %1540 = math.tanh %1539 : vector<8x16xf32>
    %1541 = vector.broadcast %667 : vector<1x16xf32> to vector<8x16xf32>
    %1542 = arith.mulf %1540, %1541 : vector<8x16xf32>
    %cst_652 = arith.constant dense<0.000000e+00> : vector<8xf32>
    %1543 = vector.multi_reduction <add>, %1542, %cst_652 [1] : vector<8x16xf32> to vector<8xf32>
    %1544 = vector.shape_cast %1543 : vector<8xf32> to vector<8x1xf32>
    %c4_653 = arith.constant 4 : index
    %c0_654 = arith.constant 0 : index
    %c0_655 = arith.constant 0 : index
    %1545 = vector.load %arg8[%c4_653, %c0_654, %c0_655] : memref<8x8x16xf32, #tpu.memory_space<vmem>>, vector<1x8x16xf32>
    %1546 = vector.shape_cast %1545 : vector<1x8x16xf32> to vector<8x16xf32>
    %1547 = arith.addf %1546, %1512 : vector<8x16xf32>
    %1548 = math.tanh %1547 : vector<8x16xf32>
    %1549 = vector.broadcast %667 : vector<1x16xf32> to vector<8x16xf32>
    %1550 = arith.mulf %1548, %1549 : vector<8x16xf32>
    %cst_656 = arith.constant dense<0.000000e+00> : vector<8xf32>
    %1551 = vector.multi_reduction <add>, %1550, %cst_656 [1] : vector<8x16xf32> to vector<8xf32>
    %1552 = vector.shape_cast %1551 : vector<8xf32> to vector<8x1xf32>
    %c5_657 = arith.constant 5 : index
    %c0_658 = arith.constant 0 : index
    %c0_659 = arith.constant 0 : index
    %1553 = vector.load %arg8[%c5_657, %c0_658, %c0_659] : memref<8x8x16xf32, #tpu.memory_space<vmem>>, vector<1x8x16xf32>
    %1554 = vector.shape_cast %1553 : vector<1x8x16xf32> to vector<8x16xf32>
    %1555 = arith.addf %1554, %1512 : vector<8x16xf32>
    %1556 = math.tanh %1555 : vector<8x16xf32>
    %1557 = vector.broadcast %667 : vector<1x16xf32> to vector<8x16xf32>
    %1558 = arith.mulf %1556, %1557 : vector<8x16xf32>
    %cst_660 = arith.constant dense<0.000000e+00> : vector<8xf32>
    %1559 = vector.multi_reduction <add>, %1558, %cst_660 [1] : vector<8x16xf32> to vector<8xf32>
    %1560 = vector.shape_cast %1559 : vector<8xf32> to vector<8x1xf32>
    %c6_661 = arith.constant 6 : index
    %c0_662 = arith.constant 0 : index
    %c0_663 = arith.constant 0 : index
    %1561 = vector.load %arg8[%c6_661, %c0_662, %c0_663] : memref<8x8x16xf32, #tpu.memory_space<vmem>>, vector<1x8x16xf32>
    %1562 = vector.shape_cast %1561 : vector<1x8x16xf32> to vector<8x16xf32>
    %1563 = arith.addf %1562, %1512 : vector<8x16xf32>
    %1564 = math.tanh %1563 : vector<8x16xf32>
    %1565 = vector.broadcast %667 : vector<1x16xf32> to vector<8x16xf32>
    %1566 = arith.mulf %1564, %1565 : vector<8x16xf32>
    %cst_664 = arith.constant dense<0.000000e+00> : vector<8xf32>
    %1567 = vector.multi_reduction <add>, %1566, %cst_664 [1] : vector<8x16xf32> to vector<8xf32>
    %1568 = vector.shape_cast %1567 : vector<8xf32> to vector<8x1xf32>
    %c7_665 = arith.constant 7 : index
    %c0_666 = arith.constant 0 : index
    %c0_667 = arith.constant 0 : index
    %1569 = vector.load %arg8[%c7_665, %c0_666, %c0_667] : memref<8x8x16xf32, #tpu.memory_space<vmem>>, vector<1x8x16xf32>
    %1570 = vector.shape_cast %1569 : vector<1x8x16xf32> to vector<8x16xf32>
    %1571 = arith.addf %1570, %1512 : vector<8x16xf32>
    %1572 = math.tanh %1571 : vector<8x16xf32>
    %1573 = vector.broadcast %667 : vector<1x16xf32> to vector<8x16xf32>
    %1574 = arith.mulf %1572, %1573 : vector<8x16xf32>
    %cst_668 = arith.constant dense<0.000000e+00> : vector<8xf32>
    %1575 = vector.multi_reduction <add>, %1574, %cst_668 [1] : vector<8x16xf32> to vector<8xf32>
    %1576 = vector.shape_cast %1575 : vector<8xf32> to vector<8x1xf32>
    %1577 = arith.maximumf %1520, %1528 : vector<8x1xf32>
    %1578 = arith.maximumf %1577, %1536 : vector<8x1xf32>
    %1579 = arith.maximumf %1578, %1544 : vector<8x1xf32>
    %1580 = arith.maximumf %1579, %1552 : vector<8x1xf32>
    %1581 = arith.maximumf %1580, %1560 : vector<8x1xf32>
    %1582 = arith.maximumf %1581, %1568 : vector<8x1xf32>
    %1583 = arith.maximumf %1582, %1576 : vector<8x1xf32>
    %1584 = arith.subf %1520, %1583 : vector<8x1xf32>
    %1585 = math.exp %1584 : vector<8x1xf32>
    %1586 = arith.subf %1528, %1583 : vector<8x1xf32>
    %1587 = math.exp %1586 : vector<8x1xf32>
    %1588 = arith.subf %1536, %1583 : vector<8x1xf32>
    %1589 = math.exp %1588 : vector<8x1xf32>
    %1590 = arith.subf %1544, %1583 : vector<8x1xf32>
    %1591 = math.exp %1590 : vector<8x1xf32>
    %1592 = arith.subf %1552, %1583 : vector<8x1xf32>
    %1593 = math.exp %1592 : vector<8x1xf32>
    %1594 = arith.subf %1560, %1583 : vector<8x1xf32>
    %1595 = math.exp %1594 : vector<8x1xf32>
    %1596 = arith.subf %1568, %1583 : vector<8x1xf32>
    %1597 = math.exp %1596 : vector<8x1xf32>
    %1598 = arith.subf %1576, %1583 : vector<8x1xf32>
    %1599 = math.exp %1598 : vector<8x1xf32>
    %1600 = arith.addf %1585, %1587 : vector<8x1xf32>
    %1601 = arith.addf %1600, %1589 : vector<8x1xf32>
    %1602 = arith.addf %1601, %1591 : vector<8x1xf32>
    %1603 = arith.addf %1602, %1593 : vector<8x1xf32>
    %1604 = arith.addf %1603, %1595 : vector<8x1xf32>
    %1605 = arith.addf %1604, %1597 : vector<8x1xf32>
    %1606 = arith.addf %1605, %1599 : vector<8x1xf32>
    %cst_669 = arith.constant 1.000000e+00 : f32
    %1607 = vector.broadcast %cst_669 : f32 to vector<8x1xf32>
    %1608 = arith.divf %1607, %1606 : vector<8x1xf32>
    %cst_670 = arith.constant 0.000000e+00 : f32
    %1609 = vector.broadcast %cst_670 : f32 to vector<8x16xf32>
    %cst_671 = arith.constant 0.000000e+00 : f32
    %1610 = vector.broadcast %cst_671 : f32 to vector<8x16xf32>
    %1611 = arith.mulf %1585, %1608 : vector<8x1xf32>
    %c0_672 = arith.constant 0 : index
    %c0_673 = arith.constant 0 : index
    %c0_674 = arith.constant 0 : index
    %1612 = vector.load %arg6[%c0_672, %c0_673, %c0_674] : memref<8x8x16xf32, #tpu.memory_space<vmem>>, vector<1x8x16xf32>
    %1613 = vector.shape_cast %1612 : vector<1x8x16xf32> to vector<8x16xf32>
    %1614 = vector.broadcast %1611 : vector<8x1xf32> to vector<8x16xf32>
    %1615 = arith.mulf %1614, %1613 : vector<8x16xf32>
    %1616 = arith.addf %1609, %1615 : vector<8x16xf32>
    %c0_675 = arith.constant 0 : index
    %c0_676 = arith.constant 0 : index
    %c0_677 = arith.constant 0 : index
    %1617 = vector.load %arg7[%c0_675, %c0_676, %c0_677] : memref<8x8x16xf32, #tpu.memory_space<vmem>>, vector<1x8x16xf32>
    %1618 = vector.shape_cast %1617 : vector<1x8x16xf32> to vector<8x16xf32>
    %1619 = vector.broadcast %1611 : vector<8x1xf32> to vector<8x16xf32>
    %1620 = arith.mulf %1619, %1618 : vector<8x16xf32>
    %1621 = arith.addf %1610, %1620 : vector<8x16xf32>
    %1622 = arith.mulf %1587, %1608 : vector<8x1xf32>
    %c1_678 = arith.constant 1 : index
    %c0_679 = arith.constant 0 : index
    %c0_680 = arith.constant 0 : index
    %1623 = vector.load %arg6[%c1_678, %c0_679, %c0_680] : memref<8x8x16xf32, #tpu.memory_space<vmem>>, vector<1x8x16xf32>
    %1624 = vector.shape_cast %1623 : vector<1x8x16xf32> to vector<8x16xf32>
    %1625 = vector.broadcast %1622 : vector<8x1xf32> to vector<8x16xf32>
    %1626 = arith.mulf %1625, %1624 : vector<8x16xf32>
    %1627 = arith.addf %1616, %1626 : vector<8x16xf32>
    %c1_681 = arith.constant 1 : index
    %c0_682 = arith.constant 0 : index
    %c0_683 = arith.constant 0 : index
    %1628 = vector.load %arg7[%c1_681, %c0_682, %c0_683] : memref<8x8x16xf32, #tpu.memory_space<vmem>>, vector<1x8x16xf32>
    %1629 = vector.shape_cast %1628 : vector<1x8x16xf32> to vector<8x16xf32>
    %1630 = vector.broadcast %1622 : vector<8x1xf32> to vector<8x16xf32>
    %1631 = arith.mulf %1630, %1629 : vector<8x16xf32>
    %1632 = arith.addf %1621, %1631 : vector<8x16xf32>
    %1633 = arith.mulf %1589, %1608 : vector<8x1xf32>
    %c2_684 = arith.constant 2 : index
    %c0_685 = arith.constant 0 : index
    %c0_686 = arith.constant 0 : index
    %1634 = vector.load %arg6[%c2_684, %c0_685, %c0_686] : memref<8x8x16xf32, #tpu.memory_space<vmem>>, vector<1x8x16xf32>
    %1635 = vector.shape_cast %1634 : vector<1x8x16xf32> to vector<8x16xf32>
    %1636 = vector.broadcast %1633 : vector<8x1xf32> to vector<8x16xf32>
    %1637 = arith.mulf %1636, %1635 : vector<8x16xf32>
    %1638 = arith.addf %1627, %1637 : vector<8x16xf32>
    %c2_687 = arith.constant 2 : index
    %c0_688 = arith.constant 0 : index
    %c0_689 = arith.constant 0 : index
    %1639 = vector.load %arg7[%c2_687, %c0_688, %c0_689] : memref<8x8x16xf32, #tpu.memory_space<vmem>>, vector<1x8x16xf32>
    %1640 = vector.shape_cast %1639 : vector<1x8x16xf32> to vector<8x16xf32>
    %1641 = vector.broadcast %1633 : vector<8x1xf32> to vector<8x16xf32>
    %1642 = arith.mulf %1641, %1640 : vector<8x16xf32>
    %1643 = arith.addf %1632, %1642 : vector<8x16xf32>
    %1644 = arith.mulf %1591, %1608 : vector<8x1xf32>
    %c3_690 = arith.constant 3 : index
    %c0_691 = arith.constant 0 : index
    %c0_692 = arith.constant 0 : index
    %1645 = vector.load %arg6[%c3_690, %c0_691, %c0_692] : memref<8x8x16xf32, #tpu.memory_space<vmem>>, vector<1x8x16xf32>
    %1646 = vector.shape_cast %1645 : vector<1x8x16xf32> to vector<8x16xf32>
    %1647 = vector.broadcast %1644 : vector<8x1xf32> to vector<8x16xf32>
    %1648 = arith.mulf %1647, %1646 : vector<8x16xf32>
    %1649 = arith.addf %1638, %1648 : vector<8x16xf32>
    %c3_693 = arith.constant 3 : index
    %c0_694 = arith.constant 0 : index
    %c0_695 = arith.constant 0 : index
    %1650 = vector.load %arg7[%c3_693, %c0_694, %c0_695] : memref<8x8x16xf32, #tpu.memory_space<vmem>>, vector<1x8x16xf32>
    %1651 = vector.shape_cast %1650 : vector<1x8x16xf32> to vector<8x16xf32>
    %1652 = vector.broadcast %1644 : vector<8x1xf32> to vector<8x16xf32>
    %1653 = arith.mulf %1652, %1651 : vector<8x16xf32>
    %1654 = arith.addf %1643, %1653 : vector<8x16xf32>
    %1655 = arith.mulf %1593, %1608 : vector<8x1xf32>
    %c4_696 = arith.constant 4 : index
    %c0_697 = arith.constant 0 : index
    %c0_698 = arith.constant 0 : index
    %1656 = vector.load %arg6[%c4_696, %c0_697, %c0_698] : memref<8x8x16xf32, #tpu.memory_space<vmem>>, vector<1x8x16xf32>
    %1657 = vector.shape_cast %1656 : vector<1x8x16xf32> to vector<8x16xf32>
    %1658 = vector.broadcast %1655 : vector<8x1xf32> to vector<8x16xf32>
    %1659 = arith.mulf %1658, %1657 : vector<8x16xf32>
    %1660 = arith.addf %1649, %1659 : vector<8x16xf32>
    %c4_699 = arith.constant 4 : index
    %c0_700 = arith.constant 0 : index
    %c0_701 = arith.constant 0 : index
    %1661 = vector.load %arg7[%c4_699, %c0_700, %c0_701] : memref<8x8x16xf32, #tpu.memory_space<vmem>>, vector<1x8x16xf32>
    %1662 = vector.shape_cast %1661 : vector<1x8x16xf32> to vector<8x16xf32>
    %1663 = vector.broadcast %1655 : vector<8x1xf32> to vector<8x16xf32>
    %1664 = arith.mulf %1663, %1662 : vector<8x16xf32>
    %1665 = arith.addf %1654, %1664 : vector<8x16xf32>
    %1666 = arith.mulf %1595, %1608 : vector<8x1xf32>
    %c5_702 = arith.constant 5 : index
    %c0_703 = arith.constant 0 : index
    %c0_704 = arith.constant 0 : index
    %1667 = vector.load %arg6[%c5_702, %c0_703, %c0_704] : memref<8x8x16xf32, #tpu.memory_space<vmem>>, vector<1x8x16xf32>
    %1668 = vector.shape_cast %1667 : vector<1x8x16xf32> to vector<8x16xf32>
    %1669 = vector.broadcast %1666 : vector<8x1xf32> to vector<8x16xf32>
    %1670 = arith.mulf %1669, %1668 : vector<8x16xf32>
    %1671 = arith.addf %1660, %1670 : vector<8x16xf32>
    %c5_705 = arith.constant 5 : index
    %c0_706 = arith.constant 0 : index
    %c0_707 = arith.constant 0 : index
    %1672 = vector.load %arg7[%c5_705, %c0_706, %c0_707] : memref<8x8x16xf32, #tpu.memory_space<vmem>>, vector<1x8x16xf32>
    %1673 = vector.shape_cast %1672 : vector<1x8x16xf32> to vector<8x16xf32>
    %1674 = vector.broadcast %1666 : vector<8x1xf32> to vector<8x16xf32>
    %1675 = arith.mulf %1674, %1673 : vector<8x16xf32>
    %1676 = arith.addf %1665, %1675 : vector<8x16xf32>
    %1677 = arith.mulf %1597, %1608 : vector<8x1xf32>
    %c6_708 = arith.constant 6 : index
    %c0_709 = arith.constant 0 : index
    %c0_710 = arith.constant 0 : index
    %1678 = vector.load %arg6[%c6_708, %c0_709, %c0_710] : memref<8x8x16xf32, #tpu.memory_space<vmem>>, vector<1x8x16xf32>
    %1679 = vector.shape_cast %1678 : vector<1x8x16xf32> to vector<8x16xf32>
    %1680 = vector.broadcast %1677 : vector<8x1xf32> to vector<8x16xf32>
    %1681 = arith.mulf %1680, %1679 : vector<8x16xf32>
    %1682 = arith.addf %1671, %1681 : vector<8x16xf32>
    %c6_711 = arith.constant 6 : index
    %c0_712 = arith.constant 0 : index
    %c0_713 = arith.constant 0 : index
    %1683 = vector.load %arg7[%c6_711, %c0_712, %c0_713] : memref<8x8x16xf32, #tpu.memory_space<vmem>>, vector<1x8x16xf32>
    %1684 = vector.shape_cast %1683 : vector<1x8x16xf32> to vector<8x16xf32>
    %1685 = vector.broadcast %1677 : vector<8x1xf32> to vector<8x16xf32>
    %1686 = arith.mulf %1685, %1684 : vector<8x16xf32>
    %1687 = arith.addf %1676, %1686 : vector<8x16xf32>
    %1688 = arith.mulf %1599, %1608 : vector<8x1xf32>
    %c7_714 = arith.constant 7 : index
    %c0_715 = arith.constant 0 : index
    %c0_716 = arith.constant 0 : index
    %1689 = vector.load %arg6[%c7_714, %c0_715, %c0_716] : memref<8x8x16xf32, #tpu.memory_space<vmem>>, vector<1x8x16xf32>
    %1690 = vector.shape_cast %1689 : vector<1x8x16xf32> to vector<8x16xf32>
    %1691 = vector.broadcast %1688 : vector<8x1xf32> to vector<8x16xf32>
    %1692 = arith.mulf %1691, %1690 : vector<8x16xf32>
    %1693 = arith.addf %1682, %1692 : vector<8x16xf32>
    %c7_717 = arith.constant 7 : index
    %c0_718 = arith.constant 0 : index
    %c0_719 = arith.constant 0 : index
    %1694 = vector.load %arg7[%c7_717, %c0_718, %c0_719] : memref<8x8x16xf32, #tpu.memory_space<vmem>>, vector<1x8x16xf32>
    %1695 = vector.shape_cast %1694 : vector<1x8x16xf32> to vector<8x16xf32>
    %1696 = vector.broadcast %1688 : vector<8x1xf32> to vector<8x16xf32>
    %1697 = arith.mulf %1696, %1695 : vector<8x16xf32>
    %1698 = arith.addf %1687, %1697 : vector<8x16xf32>
    %1699 = vector.broadcast %1504 : vector<8x1xf32> to vector<8x48xf32>
    %1700 = vector.broadcast %679 : vector<1x48xf32> to vector<8x48xf32>
    %1701 = arith.mulf %1699, %1700 : vector<8x48xf32>
    %cst_720 = arith.constant dense<0.000000e+00> : vector<8x48xf32>
    %1702 = tpu.matmul %1693, %673, %cst_720 {dimension_numbers = #tpu.dot_dimension_numbers<[1], [0], [0], [1], [0, 0, 1, 1], [], []>} : vector<8x16xf32>, vector<16x48xf32>, vector<8x48xf32> -> vector<8x48xf32>
    %1703 = arith.addf %1701, %1702 : vector<8x48xf32>
    %cst_721 = arith.constant dense<0.000000e+00> : vector<8x48xf32>
    %1704 = tpu.matmul %1698, %675, %cst_721 {dimension_numbers = #tpu.dot_dimension_numbers<[1], [0], [0], [1], [0, 0, 1, 1], [], []>} : vector<8x16xf32>, vector<16x48xf32>, vector<8x48xf32> -> vector<8x48xf32>
    %1705 = arith.addf %1703, %1704 : vector<8x48xf32>
    %1706 = vector.broadcast %681 : vector<1x48xf32> to vector<8x48xf32>
    %1707 = arith.addf %1705, %1706 : vector<8x48xf32>
    %cst_722 = arith.constant dense<0.000000e+00> : vector<8x48xf32>
    %1708 = tpu.matmul %1498, %677, %cst_722 {dimension_numbers = #tpu.dot_dimension_numbers<[1], [0], [0], [1], [0, 0, 1, 1], [], []>} : vector<8x16xf32>, vector<16x48xf32>, vector<8x48xf32> -> vector<8x48xf32>
    %1709 = vector.broadcast %683 : vector<1x48xf32> to vector<8x48xf32>
    %1710 = arith.addf %1708, %1709 : vector<8x48xf32>
    %1711 = vector.extract_strided_slice %1707 {offsets = [0, 0], sizes = [8, 16], strides = [1, 1]} : vector<8x48xf32> to vector<8x16xf32>
    %1712 = vector.extract_strided_slice %1710 {offsets = [0, 0], sizes = [8, 16], strides = [1, 1]} : vector<8x48xf32> to vector<8x16xf32>
    %1713 = arith.addf %1711, %1712 : vector<8x16xf32>
    %cst_723 = arith.constant 0.000000e+00 : f32
    %1714 = vector.broadcast %cst_723 : f32 to vector<8x16xf32>
    %1715 = arith.subf %1714, %1713 : vector<8x16xf32>
    %1716 = math.exp %1715 : vector<8x16xf32>
    %cst_724 = arith.constant 1.000000e+00 : f32
    %1717 = vector.broadcast %cst_724 : f32 to vector<8x16xf32>
    %1718 = arith.addf %1717, %1716 : vector<8x16xf32>
    %cst_725 = arith.constant 1.000000e+00 : f32
    %1719 = vector.broadcast %cst_725 : f32 to vector<8x16xf32>
    %1720 = arith.divf %1719, %1718 : vector<8x16xf32>
    %1721 = vector.extract_strided_slice %1707 {offsets = [0, 16], sizes = [8, 16], strides = [1, 1]} : vector<8x48xf32> to vector<8x16xf32>
    %1722 = vector.extract_strided_slice %1710 {offsets = [0, 16], sizes = [8, 16], strides = [1, 1]} : vector<8x48xf32> to vector<8x16xf32>
    %1723 = arith.addf %1721, %1722 : vector<8x16xf32>
    %cst_726 = arith.constant 0.000000e+00 : f32
    %1724 = vector.broadcast %cst_726 : f32 to vector<8x16xf32>
    %1725 = arith.subf %1724, %1723 : vector<8x16xf32>
    %1726 = math.exp %1725 : vector<8x16xf32>
    %cst_727 = arith.constant 1.000000e+00 : f32
    %1727 = vector.broadcast %cst_727 : f32 to vector<8x16xf32>
    %1728 = arith.addf %1727, %1726 : vector<8x16xf32>
    %cst_728 = arith.constant 1.000000e+00 : f32
    %1729 = vector.broadcast %cst_728 : f32 to vector<8x16xf32>
    %1730 = arith.divf %1729, %1728 : vector<8x16xf32>
    %1731 = vector.extract_strided_slice %1707 {offsets = [0, 32], sizes = [8, 16], strides = [1, 1]} : vector<8x48xf32> to vector<8x16xf32>
    %1732 = vector.extract_strided_slice %1710 {offsets = [0, 32], sizes = [8, 16], strides = [1, 1]} : vector<8x48xf32> to vector<8x16xf32>
    %1733 = arith.mulf %1720, %1732 : vector<8x16xf32>
    %1734 = arith.addf %1731, %1733 : vector<8x16xf32>
    %1735 = math.tanh %1734 : vector<8x16xf32>
    %cst_729 = arith.constant 1.000000e+00 : f32
    %1736 = vector.broadcast %cst_729 : f32 to vector<8x16xf32>
    %1737 = arith.subf %1736, %1730 : vector<8x16xf32>
    %1738 = arith.mulf %1737, %1735 : vector<8x16xf32>
    %1739 = arith.mulf %1730, %1498 : vector<8x16xf32>
    %1740 = arith.addf %1738, %1739 : vector<8x16xf32>
    %1741 = vector.broadcast %669 : vector<1x16xf32> to vector<8x16xf32>
    %1742 = arith.mulf %1740, %1741 : vector<8x16xf32>
    %cst_730 = arith.constant dense<0.000000e+00> : vector<8xf32>
    %1743 = vector.multi_reduction <add>, %1742, %cst_730 [1] : vector<8x16xf32> to vector<8xf32>
    %1744 = vector.shape_cast %1743 : vector<8xf32> to vector<8x1xf32>
    %1745 = vector.broadcast %671 : vector<1x1xf32> to vector<8x1xf32>
    %1746 = arith.addf %1744, %1745 : vector<8x1xf32>
    %1747 = vector.extract_strided_slice %684 {offsets = [3, 0], sizes = [1, 8], strides = [1, 1]} : vector<8x8xf32> to vector<1x8xf32>
    %1748 = vector.broadcast %1746 : vector<8x1xf32> to vector<8x8xf32>
    %1749 = vector.broadcast %1747 : vector<1x8xf32> to vector<8x8xf32>
    %1750 = arith.mulf %1748, %1749 : vector<8x8xf32>
    %1751 = arith.addf %1509, %1750 : vector<8x8xf32>
    %1752 = vector.broadcast %1746 : vector<8x1xf32> to vector<8x16xf32>
    %1753 = vector.broadcast %663 : vector<1x16xf32> to vector<8x16xf32>
    %1754 = arith.mulf %1752, %1753 : vector<8x16xf32>
    %c0_731 = arith.constant 0 : index
    %c0_732 = arith.constant 0 : index
    %c0_733 = arith.constant 0 : index
    %1755 = vector.load %arg8[%c0_731, %c0_732, %c0_733] : memref<8x8x16xf32, #tpu.memory_space<vmem>>, vector<1x8x16xf32>
    %1756 = vector.shape_cast %1755 : vector<1x8x16xf32> to vector<8x16xf32>
    %1757 = arith.addf %1756, %1754 : vector<8x16xf32>
    %1758 = math.tanh %1757 : vector<8x16xf32>
    %1759 = vector.broadcast %667 : vector<1x16xf32> to vector<8x16xf32>
    %1760 = arith.mulf %1758, %1759 : vector<8x16xf32>
    %cst_734 = arith.constant dense<0.000000e+00> : vector<8xf32>
    %1761 = vector.multi_reduction <add>, %1760, %cst_734 [1] : vector<8x16xf32> to vector<8xf32>
    %1762 = vector.shape_cast %1761 : vector<8xf32> to vector<8x1xf32>
    %c1_735 = arith.constant 1 : index
    %c0_736 = arith.constant 0 : index
    %c0_737 = arith.constant 0 : index
    %1763 = vector.load %arg8[%c1_735, %c0_736, %c0_737] : memref<8x8x16xf32, #tpu.memory_space<vmem>>, vector<1x8x16xf32>
    %1764 = vector.shape_cast %1763 : vector<1x8x16xf32> to vector<8x16xf32>
    %1765 = arith.addf %1764, %1754 : vector<8x16xf32>
    %1766 = math.tanh %1765 : vector<8x16xf32>
    %1767 = vector.broadcast %667 : vector<1x16xf32> to vector<8x16xf32>
    %1768 = arith.mulf %1766, %1767 : vector<8x16xf32>
    %cst_738 = arith.constant dense<0.000000e+00> : vector<8xf32>
    %1769 = vector.multi_reduction <add>, %1768, %cst_738 [1] : vector<8x16xf32> to vector<8xf32>
    %1770 = vector.shape_cast %1769 : vector<8xf32> to vector<8x1xf32>
    %c2_739 = arith.constant 2 : index
    %c0_740 = arith.constant 0 : index
    %c0_741 = arith.constant 0 : index
    %1771 = vector.load %arg8[%c2_739, %c0_740, %c0_741] : memref<8x8x16xf32, #tpu.memory_space<vmem>>, vector<1x8x16xf32>
    %1772 = vector.shape_cast %1771 : vector<1x8x16xf32> to vector<8x16xf32>
    %1773 = arith.addf %1772, %1754 : vector<8x16xf32>
    %1774 = math.tanh %1773 : vector<8x16xf32>
    %1775 = vector.broadcast %667 : vector<1x16xf32> to vector<8x16xf32>
    %1776 = arith.mulf %1774, %1775 : vector<8x16xf32>
    %cst_742 = arith.constant dense<0.000000e+00> : vector<8xf32>
    %1777 = vector.multi_reduction <add>, %1776, %cst_742 [1] : vector<8x16xf32> to vector<8xf32>
    %1778 = vector.shape_cast %1777 : vector<8xf32> to vector<8x1xf32>
    %c3_743 = arith.constant 3 : index
    %c0_744 = arith.constant 0 : index
    %c0_745 = arith.constant 0 : index
    %1779 = vector.load %arg8[%c3_743, %c0_744, %c0_745] : memref<8x8x16xf32, #tpu.memory_space<vmem>>, vector<1x8x16xf32>
    %1780 = vector.shape_cast %1779 : vector<1x8x16xf32> to vector<8x16xf32>
    %1781 = arith.addf %1780, %1754 : vector<8x16xf32>
    %1782 = math.tanh %1781 : vector<8x16xf32>
    %1783 = vector.broadcast %667 : vector<1x16xf32> to vector<8x16xf32>
    %1784 = arith.mulf %1782, %1783 : vector<8x16xf32>
    %cst_746 = arith.constant dense<0.000000e+00> : vector<8xf32>
    %1785 = vector.multi_reduction <add>, %1784, %cst_746 [1] : vector<8x16xf32> to vector<8xf32>
    %1786 = vector.shape_cast %1785 : vector<8xf32> to vector<8x1xf32>
    %c4_747 = arith.constant 4 : index
    %c0_748 = arith.constant 0 : index
    %c0_749 = arith.constant 0 : index
    %1787 = vector.load %arg8[%c4_747, %c0_748, %c0_749] : memref<8x8x16xf32, #tpu.memory_space<vmem>>, vector<1x8x16xf32>
    %1788 = vector.shape_cast %1787 : vector<1x8x16xf32> to vector<8x16xf32>
    %1789 = arith.addf %1788, %1754 : vector<8x16xf32>
    %1790 = math.tanh %1789 : vector<8x16xf32>
    %1791 = vector.broadcast %667 : vector<1x16xf32> to vector<8x16xf32>
    %1792 = arith.mulf %1790, %1791 : vector<8x16xf32>
    %cst_750 = arith.constant dense<0.000000e+00> : vector<8xf32>
    %1793 = vector.multi_reduction <add>, %1792, %cst_750 [1] : vector<8x16xf32> to vector<8xf32>
    %1794 = vector.shape_cast %1793 : vector<8xf32> to vector<8x1xf32>
    %c5_751 = arith.constant 5 : index
    %c0_752 = arith.constant 0 : index
    %c0_753 = arith.constant 0 : index
    %1795 = vector.load %arg8[%c5_751, %c0_752, %c0_753] : memref<8x8x16xf32, #tpu.memory_space<vmem>>, vector<1x8x16xf32>
    %1796 = vector.shape_cast %1795 : vector<1x8x16xf32> to vector<8x16xf32>
    %1797 = arith.addf %1796, %1754 : vector<8x16xf32>
    %1798 = math.tanh %1797 : vector<8x16xf32>
    %1799 = vector.broadcast %667 : vector<1x16xf32> to vector<8x16xf32>
    %1800 = arith.mulf %1798, %1799 : vector<8x16xf32>
    %cst_754 = arith.constant dense<0.000000e+00> : vector<8xf32>
    %1801 = vector.multi_reduction <add>, %1800, %cst_754 [1] : vector<8x16xf32> to vector<8xf32>
    %1802 = vector.shape_cast %1801 : vector<8xf32> to vector<8x1xf32>
    %c6_755 = arith.constant 6 : index
    %c0_756 = arith.constant 0 : index
    %c0_757 = arith.constant 0 : index
    %1803 = vector.load %arg8[%c6_755, %c0_756, %c0_757] : memref<8x8x16xf32, #tpu.memory_space<vmem>>, vector<1x8x16xf32>
    %1804 = vector.shape_cast %1803 : vector<1x8x16xf32> to vector<8x16xf32>
    %1805 = arith.addf %1804, %1754 : vector<8x16xf32>
    %1806 = math.tanh %1805 : vector<8x16xf32>
    %1807 = vector.broadcast %667 : vector<1x16xf32> to vector<8x16xf32>
    %1808 = arith.mulf %1806, %1807 : vector<8x16xf32>
    %cst_758 = arith.constant dense<0.000000e+00> : vector<8xf32>
    %1809 = vector.multi_reduction <add>, %1808, %cst_758 [1] : vector<8x16xf32> to vector<8xf32>
    %1810 = vector.shape_cast %1809 : vector<8xf32> to vector<8x1xf32>
    %c7_759 = arith.constant 7 : index
    %c0_760 = arith.constant 0 : index
    %c0_761 = arith.constant 0 : index
    %1811 = vector.load %arg8[%c7_759, %c0_760, %c0_761] : memref<8x8x16xf32, #tpu.memory_space<vmem>>, vector<1x8x16xf32>
    %1812 = vector.shape_cast %1811 : vector<1x8x16xf32> to vector<8x16xf32>
    %1813 = arith.addf %1812, %1754 : vector<8x16xf32>
    %1814 = math.tanh %1813 : vector<8x16xf32>
    %1815 = vector.broadcast %667 : vector<1x16xf32> to vector<8x16xf32>
    %1816 = arith.mulf %1814, %1815 : vector<8x16xf32>
    %cst_762 = arith.constant dense<0.000000e+00> : vector<8xf32>
    %1817 = vector.multi_reduction <add>, %1816, %cst_762 [1] : vector<8x16xf32> to vector<8xf32>
    %1818 = vector.shape_cast %1817 : vector<8xf32> to vector<8x1xf32>
    %1819 = arith.maximumf %1762, %1770 : vector<8x1xf32>
    %1820 = arith.maximumf %1819, %1778 : vector<8x1xf32>
    %1821 = arith.maximumf %1820, %1786 : vector<8x1xf32>
    %1822 = arith.maximumf %1821, %1794 : vector<8x1xf32>
    %1823 = arith.maximumf %1822, %1802 : vector<8x1xf32>
    %1824 = arith.maximumf %1823, %1810 : vector<8x1xf32>
    %1825 = arith.maximumf %1824, %1818 : vector<8x1xf32>
    %1826 = arith.subf %1762, %1825 : vector<8x1xf32>
    %1827 = math.exp %1826 : vector<8x1xf32>
    %1828 = arith.subf %1770, %1825 : vector<8x1xf32>
    %1829 = math.exp %1828 : vector<8x1xf32>
    %1830 = arith.subf %1778, %1825 : vector<8x1xf32>
    %1831 = math.exp %1830 : vector<8x1xf32>
    %1832 = arith.subf %1786, %1825 : vector<8x1xf32>
    %1833 = math.exp %1832 : vector<8x1xf32>
    %1834 = arith.subf %1794, %1825 : vector<8x1xf32>
    %1835 = math.exp %1834 : vector<8x1xf32>
    %1836 = arith.subf %1802, %1825 : vector<8x1xf32>
    %1837 = math.exp %1836 : vector<8x1xf32>
    %1838 = arith.subf %1810, %1825 : vector<8x1xf32>
    %1839 = math.exp %1838 : vector<8x1xf32>
    %1840 = arith.subf %1818, %1825 : vector<8x1xf32>
    %1841 = math.exp %1840 : vector<8x1xf32>
    %1842 = arith.addf %1827, %1829 : vector<8x1xf32>
    %1843 = arith.addf %1842, %1831 : vector<8x1xf32>
    %1844 = arith.addf %1843, %1833 : vector<8x1xf32>
    %1845 = arith.addf %1844, %1835 : vector<8x1xf32>
    %1846 = arith.addf %1845, %1837 : vector<8x1xf32>
    %1847 = arith.addf %1846, %1839 : vector<8x1xf32>
    %1848 = arith.addf %1847, %1841 : vector<8x1xf32>
    %cst_763 = arith.constant 1.000000e+00 : f32
    %1849 = vector.broadcast %cst_763 : f32 to vector<8x1xf32>
    %1850 = arith.divf %1849, %1848 : vector<8x1xf32>
    %cst_764 = arith.constant 0.000000e+00 : f32
    %1851 = vector.broadcast %cst_764 : f32 to vector<8x16xf32>
    %cst_765 = arith.constant 0.000000e+00 : f32
    %1852 = vector.broadcast %cst_765 : f32 to vector<8x16xf32>
    %1853 = arith.mulf %1827, %1850 : vector<8x1xf32>
    %c0_766 = arith.constant 0 : index
    %c0_767 = arith.constant 0 : index
    %c0_768 = arith.constant 0 : index
    %1854 = vector.load %arg6[%c0_766, %c0_767, %c0_768] : memref<8x8x16xf32, #tpu.memory_space<vmem>>, vector<1x8x16xf32>
    %1855 = vector.shape_cast %1854 : vector<1x8x16xf32> to vector<8x16xf32>
    %1856 = vector.broadcast %1853 : vector<8x1xf32> to vector<8x16xf32>
    %1857 = arith.mulf %1856, %1855 : vector<8x16xf32>
    %1858 = arith.addf %1851, %1857 : vector<8x16xf32>
    %c0_769 = arith.constant 0 : index
    %c0_770 = arith.constant 0 : index
    %c0_771 = arith.constant 0 : index
    %1859 = vector.load %arg7[%c0_769, %c0_770, %c0_771] : memref<8x8x16xf32, #tpu.memory_space<vmem>>, vector<1x8x16xf32>
    %1860 = vector.shape_cast %1859 : vector<1x8x16xf32> to vector<8x16xf32>
    %1861 = vector.broadcast %1853 : vector<8x1xf32> to vector<8x16xf32>
    %1862 = arith.mulf %1861, %1860 : vector<8x16xf32>
    %1863 = arith.addf %1852, %1862 : vector<8x16xf32>
    %1864 = arith.mulf %1829, %1850 : vector<8x1xf32>
    %c1_772 = arith.constant 1 : index
    %c0_773 = arith.constant 0 : index
    %c0_774 = arith.constant 0 : index
    %1865 = vector.load %arg6[%c1_772, %c0_773, %c0_774] : memref<8x8x16xf32, #tpu.memory_space<vmem>>, vector<1x8x16xf32>
    %1866 = vector.shape_cast %1865 : vector<1x8x16xf32> to vector<8x16xf32>
    %1867 = vector.broadcast %1864 : vector<8x1xf32> to vector<8x16xf32>
    %1868 = arith.mulf %1867, %1866 : vector<8x16xf32>
    %1869 = arith.addf %1858, %1868 : vector<8x16xf32>
    %c1_775 = arith.constant 1 : index
    %c0_776 = arith.constant 0 : index
    %c0_777 = arith.constant 0 : index
    %1870 = vector.load %arg7[%c1_775, %c0_776, %c0_777] : memref<8x8x16xf32, #tpu.memory_space<vmem>>, vector<1x8x16xf32>
    %1871 = vector.shape_cast %1870 : vector<1x8x16xf32> to vector<8x16xf32>
    %1872 = vector.broadcast %1864 : vector<8x1xf32> to vector<8x16xf32>
    %1873 = arith.mulf %1872, %1871 : vector<8x16xf32>
    %1874 = arith.addf %1863, %1873 : vector<8x16xf32>
    %1875 = arith.mulf %1831, %1850 : vector<8x1xf32>
    %c2_778 = arith.constant 2 : index
    %c0_779 = arith.constant 0 : index
    %c0_780 = arith.constant 0 : index
    %1876 = vector.load %arg6[%c2_778, %c0_779, %c0_780] : memref<8x8x16xf32, #tpu.memory_space<vmem>>, vector<1x8x16xf32>
    %1877 = vector.shape_cast %1876 : vector<1x8x16xf32> to vector<8x16xf32>
    %1878 = vector.broadcast %1875 : vector<8x1xf32> to vector<8x16xf32>
    %1879 = arith.mulf %1878, %1877 : vector<8x16xf32>
    %1880 = arith.addf %1869, %1879 : vector<8x16xf32>
    %c2_781 = arith.constant 2 : index
    %c0_782 = arith.constant 0 : index
    %c0_783 = arith.constant 0 : index
    %1881 = vector.load %arg7[%c2_781, %c0_782, %c0_783] : memref<8x8x16xf32, #tpu.memory_space<vmem>>, vector<1x8x16xf32>
    %1882 = vector.shape_cast %1881 : vector<1x8x16xf32> to vector<8x16xf32>
    %1883 = vector.broadcast %1875 : vector<8x1xf32> to vector<8x16xf32>
    %1884 = arith.mulf %1883, %1882 : vector<8x16xf32>
    %1885 = arith.addf %1874, %1884 : vector<8x16xf32>
    %1886 = arith.mulf %1833, %1850 : vector<8x1xf32>
    %c3_784 = arith.constant 3 : index
    %c0_785 = arith.constant 0 : index
    %c0_786 = arith.constant 0 : index
    %1887 = vector.load %arg6[%c3_784, %c0_785, %c0_786] : memref<8x8x16xf32, #tpu.memory_space<vmem>>, vector<1x8x16xf32>
    %1888 = vector.shape_cast %1887 : vector<1x8x16xf32> to vector<8x16xf32>
    %1889 = vector.broadcast %1886 : vector<8x1xf32> to vector<8x16xf32>
    %1890 = arith.mulf %1889, %1888 : vector<8x16xf32>
    %1891 = arith.addf %1880, %1890 : vector<8x16xf32>
    %c3_787 = arith.constant 3 : index
    %c0_788 = arith.constant 0 : index
    %c0_789 = arith.constant 0 : index
    %1892 = vector.load %arg7[%c3_787, %c0_788, %c0_789] : memref<8x8x16xf32, #tpu.memory_space<vmem>>, vector<1x8x16xf32>
    %1893 = vector.shape_cast %1892 : vector<1x8x16xf32> to vector<8x16xf32>
    %1894 = vector.broadcast %1886 : vector<8x1xf32> to vector<8x16xf32>
    %1895 = arith.mulf %1894, %1893 : vector<8x16xf32>
    %1896 = arith.addf %1885, %1895 : vector<8x16xf32>
    %1897 = arith.mulf %1835, %1850 : vector<8x1xf32>
    %c4_790 = arith.constant 4 : index
    %c0_791 = arith.constant 0 : index
    %c0_792 = arith.constant 0 : index
    %1898 = vector.load %arg6[%c4_790, %c0_791, %c0_792] : memref<8x8x16xf32, #tpu.memory_space<vmem>>, vector<1x8x16xf32>
    %1899 = vector.shape_cast %1898 : vector<1x8x16xf32> to vector<8x16xf32>
    %1900 = vector.broadcast %1897 : vector<8x1xf32> to vector<8x16xf32>
    %1901 = arith.mulf %1900, %1899 : vector<8x16xf32>
    %1902 = arith.addf %1891, %1901 : vector<8x16xf32>
    %c4_793 = arith.constant 4 : index
    %c0_794 = arith.constant 0 : index
    %c0_795 = arith.constant 0 : index
    %1903 = vector.load %arg7[%c4_793, %c0_794, %c0_795] : memref<8x8x16xf32, #tpu.memory_space<vmem>>, vector<1x8x16xf32>
    %1904 = vector.shape_cast %1903 : vector<1x8x16xf32> to vector<8x16xf32>
    %1905 = vector.broadcast %1897 : vector<8x1xf32> to vector<8x16xf32>
    %1906 = arith.mulf %1905, %1904 : vector<8x16xf32>
    %1907 = arith.addf %1896, %1906 : vector<8x16xf32>
    %1908 = arith.mulf %1837, %1850 : vector<8x1xf32>
    %c5_796 = arith.constant 5 : index
    %c0_797 = arith.constant 0 : index
    %c0_798 = arith.constant 0 : index
    %1909 = vector.load %arg6[%c5_796, %c0_797, %c0_798] : memref<8x8x16xf32, #tpu.memory_space<vmem>>, vector<1x8x16xf32>
    %1910 = vector.shape_cast %1909 : vector<1x8x16xf32> to vector<8x16xf32>
    %1911 = vector.broadcast %1908 : vector<8x1xf32> to vector<8x16xf32>
    %1912 = arith.mulf %1911, %1910 : vector<8x16xf32>
    %1913 = arith.addf %1902, %1912 : vector<8x16xf32>
    %c5_799 = arith.constant 5 : index
    %c0_800 = arith.constant 0 : index
    %c0_801 = arith.constant 0 : index
    %1914 = vector.load %arg7[%c5_799, %c0_800, %c0_801] : memref<8x8x16xf32, #tpu.memory_space<vmem>>, vector<1x8x16xf32>
    %1915 = vector.shape_cast %1914 : vector<1x8x16xf32> to vector<8x16xf32>
    %1916 = vector.broadcast %1908 : vector<8x1xf32> to vector<8x16xf32>
    %1917 = arith.mulf %1916, %1915 : vector<8x16xf32>
    %1918 = arith.addf %1907, %1917 : vector<8x16xf32>
    %1919 = arith.mulf %1839, %1850 : vector<8x1xf32>
    %c6_802 = arith.constant 6 : index
    %c0_803 = arith.constant 0 : index
    %c0_804 = arith.constant 0 : index
    %1920 = vector.load %arg6[%c6_802, %c0_803, %c0_804] : memref<8x8x16xf32, #tpu.memory_space<vmem>>, vector<1x8x16xf32>
    %1921 = vector.shape_cast %1920 : vector<1x8x16xf32> to vector<8x16xf32>
    %1922 = vector.broadcast %1919 : vector<8x1xf32> to vector<8x16xf32>
    %1923 = arith.mulf %1922, %1921 : vector<8x16xf32>
    %1924 = arith.addf %1913, %1923 : vector<8x16xf32>
    %c6_805 = arith.constant 6 : index
    %c0_806 = arith.constant 0 : index
    %c0_807 = arith.constant 0 : index
    %1925 = vector.load %arg7[%c6_805, %c0_806, %c0_807] : memref<8x8x16xf32, #tpu.memory_space<vmem>>, vector<1x8x16xf32>
    %1926 = vector.shape_cast %1925 : vector<1x8x16xf32> to vector<8x16xf32>
    %1927 = vector.broadcast %1919 : vector<8x1xf32> to vector<8x16xf32>
    %1928 = arith.mulf %1927, %1926 : vector<8x16xf32>
    %1929 = arith.addf %1918, %1928 : vector<8x16xf32>
    %1930 = arith.mulf %1841, %1850 : vector<8x1xf32>
    %c7_808 = arith.constant 7 : index
    %c0_809 = arith.constant 0 : index
    %c0_810 = arith.constant 0 : index
    %1931 = vector.load %arg6[%c7_808, %c0_809, %c0_810] : memref<8x8x16xf32, #tpu.memory_space<vmem>>, vector<1x8x16xf32>
    %1932 = vector.shape_cast %1931 : vector<1x8x16xf32> to vector<8x16xf32>
    %1933 = vector.broadcast %1930 : vector<8x1xf32> to vector<8x16xf32>
    %1934 = arith.mulf %1933, %1932 : vector<8x16xf32>
    %1935 = arith.addf %1924, %1934 : vector<8x16xf32>
    %c7_811 = arith.constant 7 : index
    %c0_812 = arith.constant 0 : index
    %c0_813 = arith.constant 0 : index
    %1936 = vector.load %arg7[%c7_811, %c0_812, %c0_813] : memref<8x8x16xf32, #tpu.memory_space<vmem>>, vector<1x8x16xf32>
    %1937 = vector.shape_cast %1936 : vector<1x8x16xf32> to vector<8x16xf32>
    %1938 = vector.broadcast %1930 : vector<8x1xf32> to vector<8x16xf32>
    %1939 = arith.mulf %1938, %1937 : vector<8x16xf32>
    %1940 = arith.addf %1929, %1939 : vector<8x16xf32>
    %1941 = vector.broadcast %1746 : vector<8x1xf32> to vector<8x48xf32>
    %1942 = vector.broadcast %679 : vector<1x48xf32> to vector<8x48xf32>
    %1943 = arith.mulf %1941, %1942 : vector<8x48xf32>
    %cst_814 = arith.constant dense<0.000000e+00> : vector<8x48xf32>
    %1944 = tpu.matmul %1935, %673, %cst_814 {dimension_numbers = #tpu.dot_dimension_numbers<[1], [0], [0], [1], [0, 0, 1, 1], [], []>} : vector<8x16xf32>, vector<16x48xf32>, vector<8x48xf32> -> vector<8x48xf32>
    %1945 = arith.addf %1943, %1944 : vector<8x48xf32>
    %cst_815 = arith.constant dense<0.000000e+00> : vector<8x48xf32>
    %1946 = tpu.matmul %1940, %675, %cst_815 {dimension_numbers = #tpu.dot_dimension_numbers<[1], [0], [0], [1], [0, 0, 1, 1], [], []>} : vector<8x16xf32>, vector<16x48xf32>, vector<8x48xf32> -> vector<8x48xf32>
    %1947 = arith.addf %1945, %1946 : vector<8x48xf32>
    %1948 = vector.broadcast %681 : vector<1x48xf32> to vector<8x48xf32>
    %1949 = arith.addf %1947, %1948 : vector<8x48xf32>
    %cst_816 = arith.constant dense<0.000000e+00> : vector<8x48xf32>
    %1950 = tpu.matmul %1740, %677, %cst_816 {dimension_numbers = #tpu.dot_dimension_numbers<[1], [0], [0], [1], [0, 0, 1, 1], [], []>} : vector<8x16xf32>, vector<16x48xf32>, vector<8x48xf32> -> vector<8x48xf32>
    %1951 = vector.broadcast %683 : vector<1x48xf32> to vector<8x48xf32>
    %1952 = arith.addf %1950, %1951 : vector<8x48xf32>
    %1953 = vector.extract_strided_slice %1949 {offsets = [0, 0], sizes = [8, 16], strides = [1, 1]} : vector<8x48xf32> to vector<8x16xf32>
    %1954 = vector.extract_strided_slice %1952 {offsets = [0, 0], sizes = [8, 16], strides = [1, 1]} : vector<8x48xf32> to vector<8x16xf32>
    %1955 = arith.addf %1953, %1954 : vector<8x16xf32>
    %cst_817 = arith.constant 0.000000e+00 : f32
    %1956 = vector.broadcast %cst_817 : f32 to vector<8x16xf32>
    %1957 = arith.subf %1956, %1955 : vector<8x16xf32>
    %1958 = math.exp %1957 : vector<8x16xf32>
    %cst_818 = arith.constant 1.000000e+00 : f32
    %1959 = vector.broadcast %cst_818 : f32 to vector<8x16xf32>
    %1960 = arith.addf %1959, %1958 : vector<8x16xf32>
    %cst_819 = arith.constant 1.000000e+00 : f32
    %1961 = vector.broadcast %cst_819 : f32 to vector<8x16xf32>
    %1962 = arith.divf %1961, %1960 : vector<8x16xf32>
    %1963 = vector.extract_strided_slice %1949 {offsets = [0, 16], sizes = [8, 16], strides = [1, 1]} : vector<8x48xf32> to vector<8x16xf32>
    %1964 = vector.extract_strided_slice %1952 {offsets = [0, 16], sizes = [8, 16], strides = [1, 1]} : vector<8x48xf32> to vector<8x16xf32>
    %1965 = arith.addf %1963, %1964 : vector<8x16xf32>
    %cst_820 = arith.constant 0.000000e+00 : f32
    %1966 = vector.broadcast %cst_820 : f32 to vector<8x16xf32>
    %1967 = arith.subf %1966, %1965 : vector<8x16xf32>
    %1968 = math.exp %1967 : vector<8x16xf32>
    %cst_821 = arith.constant 1.000000e+00 : f32
    %1969 = vector.broadcast %cst_821 : f32 to vector<8x16xf32>
    %1970 = arith.addf %1969, %1968 : vector<8x16xf32>
    %cst_822 = arith.constant 1.000000e+00 : f32
    %1971 = vector.broadcast %cst_822 : f32 to vector<8x16xf32>
    %1972 = arith.divf %1971, %1970 : vector<8x16xf32>
    %1973 = vector.extract_strided_slice %1949 {offsets = [0, 32], sizes = [8, 16], strides = [1, 1]} : vector<8x48xf32> to vector<8x16xf32>
    %1974 = vector.extract_strided_slice %1952 {offsets = [0, 32], sizes = [8, 16], strides = [1, 1]} : vector<8x48xf32> to vector<8x16xf32>
    %1975 = arith.mulf %1962, %1974 : vector<8x16xf32>
    %1976 = arith.addf %1973, %1975 : vector<8x16xf32>
    %1977 = math.tanh %1976 : vector<8x16xf32>
    %cst_823 = arith.constant 1.000000e+00 : f32
    %1978 = vector.broadcast %cst_823 : f32 to vector<8x16xf32>
    %1979 = arith.subf %1978, %1972 : vector<8x16xf32>
    %1980 = arith.mulf %1979, %1977 : vector<8x16xf32>
    %1981 = arith.mulf %1972, %1740 : vector<8x16xf32>
    %1982 = arith.addf %1980, %1981 : vector<8x16xf32>
    %1983 = vector.broadcast %669 : vector<1x16xf32> to vector<8x16xf32>
    %1984 = arith.mulf %1982, %1983 : vector<8x16xf32>
    %cst_824 = arith.constant dense<0.000000e+00> : vector<8xf32>
    %1985 = vector.multi_reduction <add>, %1984, %cst_824 [1] : vector<8x16xf32> to vector<8xf32>
    %1986 = vector.shape_cast %1985 : vector<8xf32> to vector<8x1xf32>
    %1987 = vector.broadcast %671 : vector<1x1xf32> to vector<8x1xf32>
    %1988 = arith.addf %1986, %1987 : vector<8x1xf32>
    %1989 = vector.extract_strided_slice %684 {offsets = [4, 0], sizes = [1, 8], strides = [1, 1]} : vector<8x8xf32> to vector<1x8xf32>
    %1990 = vector.broadcast %1988 : vector<8x1xf32> to vector<8x8xf32>
    %1991 = vector.broadcast %1989 : vector<1x8xf32> to vector<8x8xf32>
    %1992 = arith.mulf %1990, %1991 : vector<8x8xf32>
    %1993 = arith.addf %1751, %1992 : vector<8x8xf32>
    %1994 = vector.broadcast %1988 : vector<8x1xf32> to vector<8x16xf32>
    %1995 = vector.broadcast %663 : vector<1x16xf32> to vector<8x16xf32>
    %1996 = arith.mulf %1994, %1995 : vector<8x16xf32>
    %c0_825 = arith.constant 0 : index
    %c0_826 = arith.constant 0 : index
    %c0_827 = arith.constant 0 : index
    %1997 = vector.load %arg8[%c0_825, %c0_826, %c0_827] : memref<8x8x16xf32, #tpu.memory_space<vmem>>, vector<1x8x16xf32>
    %1998 = vector.shape_cast %1997 : vector<1x8x16xf32> to vector<8x16xf32>
    %1999 = arith.addf %1998, %1996 : vector<8x16xf32>
    %2000 = math.tanh %1999 : vector<8x16xf32>
    %2001 = vector.broadcast %667 : vector<1x16xf32> to vector<8x16xf32>
    %2002 = arith.mulf %2000, %2001 : vector<8x16xf32>
    %cst_828 = arith.constant dense<0.000000e+00> : vector<8xf32>
    %2003 = vector.multi_reduction <add>, %2002, %cst_828 [1] : vector<8x16xf32> to vector<8xf32>
    %2004 = vector.shape_cast %2003 : vector<8xf32> to vector<8x1xf32>
    %c1_829 = arith.constant 1 : index
    %c0_830 = arith.constant 0 : index
    %c0_831 = arith.constant 0 : index
    %2005 = vector.load %arg8[%c1_829, %c0_830, %c0_831] : memref<8x8x16xf32, #tpu.memory_space<vmem>>, vector<1x8x16xf32>
    %2006 = vector.shape_cast %2005 : vector<1x8x16xf32> to vector<8x16xf32>
    %2007 = arith.addf %2006, %1996 : vector<8x16xf32>
    %2008 = math.tanh %2007 : vector<8x16xf32>
    %2009 = vector.broadcast %667 : vector<1x16xf32> to vector<8x16xf32>
    %2010 = arith.mulf %2008, %2009 : vector<8x16xf32>
    %cst_832 = arith.constant dense<0.000000e+00> : vector<8xf32>
    %2011 = vector.multi_reduction <add>, %2010, %cst_832 [1] : vector<8x16xf32> to vector<8xf32>
    %2012 = vector.shape_cast %2011 : vector<8xf32> to vector<8x1xf32>
    %c2_833 = arith.constant 2 : index
    %c0_834 = arith.constant 0 : index
    %c0_835 = arith.constant 0 : index
    %2013 = vector.load %arg8[%c2_833, %c0_834, %c0_835] : memref<8x8x16xf32, #tpu.memory_space<vmem>>, vector<1x8x16xf32>
    %2014 = vector.shape_cast %2013 : vector<1x8x16xf32> to vector<8x16xf32>
    %2015 = arith.addf %2014, %1996 : vector<8x16xf32>
    %2016 = math.tanh %2015 : vector<8x16xf32>
    %2017 = vector.broadcast %667 : vector<1x16xf32> to vector<8x16xf32>
    %2018 = arith.mulf %2016, %2017 : vector<8x16xf32>
    %cst_836 = arith.constant dense<0.000000e+00> : vector<8xf32>
    %2019 = vector.multi_reduction <add>, %2018, %cst_836 [1] : vector<8x16xf32> to vector<8xf32>
    %2020 = vector.shape_cast %2019 : vector<8xf32> to vector<8x1xf32>
    %c3_837 = arith.constant 3 : index
    %c0_838 = arith.constant 0 : index
    %c0_839 = arith.constant 0 : index
    %2021 = vector.load %arg8[%c3_837, %c0_838, %c0_839] : memref<8x8x16xf32, #tpu.memory_space<vmem>>, vector<1x8x16xf32>
    %2022 = vector.shape_cast %2021 : vector<1x8x16xf32> to vector<8x16xf32>
    %2023 = arith.addf %2022, %1996 : vector<8x16xf32>
    %2024 = math.tanh %2023 : vector<8x16xf32>
    %2025 = vector.broadcast %667 : vector<1x16xf32> to vector<8x16xf32>
    %2026 = arith.mulf %2024, %2025 : vector<8x16xf32>
    %cst_840 = arith.constant dense<0.000000e+00> : vector<8xf32>
    %2027 = vector.multi_reduction <add>, %2026, %cst_840 [1] : vector<8x16xf32> to vector<8xf32>
    %2028 = vector.shape_cast %2027 : vector<8xf32> to vector<8x1xf32>
    %c4_841 = arith.constant 4 : index
    %c0_842 = arith.constant 0 : index
    %c0_843 = arith.constant 0 : index
    %2029 = vector.load %arg8[%c4_841, %c0_842, %c0_843] : memref<8x8x16xf32, #tpu.memory_space<vmem>>, vector<1x8x16xf32>
    %2030 = vector.shape_cast %2029 : vector<1x8x16xf32> to vector<8x16xf32>
    %2031 = arith.addf %2030, %1996 : vector<8x16xf32>
    %2032 = math.tanh %2031 : vector<8x16xf32>
    %2033 = vector.broadcast %667 : vector<1x16xf32> to vector<8x16xf32>
    %2034 = arith.mulf %2032, %2033 : vector<8x16xf32>
    %cst_844 = arith.constant dense<0.000000e+00> : vector<8xf32>
    %2035 = vector.multi_reduction <add>, %2034, %cst_844 [1] : vector<8x16xf32> to vector<8xf32>
    %2036 = vector.shape_cast %2035 : vector<8xf32> to vector<8x1xf32>
    %c5_845 = arith.constant 5 : index
    %c0_846 = arith.constant 0 : index
    %c0_847 = arith.constant 0 : index
    %2037 = vector.load %arg8[%c5_845, %c0_846, %c0_847] : memref<8x8x16xf32, #tpu.memory_space<vmem>>, vector<1x8x16xf32>
    %2038 = vector.shape_cast %2037 : vector<1x8x16xf32> to vector<8x16xf32>
    %2039 = arith.addf %2038, %1996 : vector<8x16xf32>
    %2040 = math.tanh %2039 : vector<8x16xf32>
    %2041 = vector.broadcast %667 : vector<1x16xf32> to vector<8x16xf32>
    %2042 = arith.mulf %2040, %2041 : vector<8x16xf32>
    %cst_848 = arith.constant dense<0.000000e+00> : vector<8xf32>
    %2043 = vector.multi_reduction <add>, %2042, %cst_848 [1] : vector<8x16xf32> to vector<8xf32>
    %2044 = vector.shape_cast %2043 : vector<8xf32> to vector<8x1xf32>
    %c6_849 = arith.constant 6 : index
    %c0_850 = arith.constant 0 : index
    %c0_851 = arith.constant 0 : index
    %2045 = vector.load %arg8[%c6_849, %c0_850, %c0_851] : memref<8x8x16xf32, #tpu.memory_space<vmem>>, vector<1x8x16xf32>
    %2046 = vector.shape_cast %2045 : vector<1x8x16xf32> to vector<8x16xf32>
    %2047 = arith.addf %2046, %1996 : vector<8x16xf32>
    %2048 = math.tanh %2047 : vector<8x16xf32>
    %2049 = vector.broadcast %667 : vector<1x16xf32> to vector<8x16xf32>
    %2050 = arith.mulf %2048, %2049 : vector<8x16xf32>
    %cst_852 = arith.constant dense<0.000000e+00> : vector<8xf32>
    %2051 = vector.multi_reduction <add>, %2050, %cst_852 [1] : vector<8x16xf32> to vector<8xf32>
    %2052 = vector.shape_cast %2051 : vector<8xf32> to vector<8x1xf32>
    %c7_853 = arith.constant 7 : index
    %c0_854 = arith.constant 0 : index
    %c0_855 = arith.constant 0 : index
    %2053 = vector.load %arg8[%c7_853, %c0_854, %c0_855] : memref<8x8x16xf32, #tpu.memory_space<vmem>>, vector<1x8x16xf32>
    %2054 = vector.shape_cast %2053 : vector<1x8x16xf32> to vector<8x16xf32>
    %2055 = arith.addf %2054, %1996 : vector<8x16xf32>
    %2056 = math.tanh %2055 : vector<8x16xf32>
    %2057 = vector.broadcast %667 : vector<1x16xf32> to vector<8x16xf32>
    %2058 = arith.mulf %2056, %2057 : vector<8x16xf32>
    %cst_856 = arith.constant dense<0.000000e+00> : vector<8xf32>
    %2059 = vector.multi_reduction <add>, %2058, %cst_856 [1] : vector<8x16xf32> to vector<8xf32>
    %2060 = vector.shape_cast %2059 : vector<8xf32> to vector<8x1xf32>
    %2061 = arith.maximumf %2004, %2012 : vector<8x1xf32>
    %2062 = arith.maximumf %2061, %2020 : vector<8x1xf32>
    %2063 = arith.maximumf %2062, %2028 : vector<8x1xf32>
    %2064 = arith.maximumf %2063, %2036 : vector<8x1xf32>
    %2065 = arith.maximumf %2064, %2044 : vector<8x1xf32>
    %2066 = arith.maximumf %2065, %2052 : vector<8x1xf32>
    %2067 = arith.maximumf %2066, %2060 : vector<8x1xf32>
    %2068 = arith.subf %2004, %2067 : vector<8x1xf32>
    %2069 = math.exp %2068 : vector<8x1xf32>
    %2070 = arith.subf %2012, %2067 : vector<8x1xf32>
    %2071 = math.exp %2070 : vector<8x1xf32>
    %2072 = arith.subf %2020, %2067 : vector<8x1xf32>
    %2073 = math.exp %2072 : vector<8x1xf32>
    %2074 = arith.subf %2028, %2067 : vector<8x1xf32>
    %2075 = math.exp %2074 : vector<8x1xf32>
    %2076 = arith.subf %2036, %2067 : vector<8x1xf32>
    %2077 = math.exp %2076 : vector<8x1xf32>
    %2078 = arith.subf %2044, %2067 : vector<8x1xf32>
    %2079 = math.exp %2078 : vector<8x1xf32>
    %2080 = arith.subf %2052, %2067 : vector<8x1xf32>
    %2081 = math.exp %2080 : vector<8x1xf32>
    %2082 = arith.subf %2060, %2067 : vector<8x1xf32>
    %2083 = math.exp %2082 : vector<8x1xf32>
    %2084 = arith.addf %2069, %2071 : vector<8x1xf32>
    %2085 = arith.addf %2084, %2073 : vector<8x1xf32>
    %2086 = arith.addf %2085, %2075 : vector<8x1xf32>
    %2087 = arith.addf %2086, %2077 : vector<8x1xf32>
    %2088 = arith.addf %2087, %2079 : vector<8x1xf32>
    %2089 = arith.addf %2088, %2081 : vector<8x1xf32>
    %2090 = arith.addf %2089, %2083 : vector<8x1xf32>
    %cst_857 = arith.constant 1.000000e+00 : f32
    %2091 = vector.broadcast %cst_857 : f32 to vector<8x1xf32>
    %2092 = arith.divf %2091, %2090 : vector<8x1xf32>
    %cst_858 = arith.constant 0.000000e+00 : f32
    %2093 = vector.broadcast %cst_858 : f32 to vector<8x16xf32>
    %cst_859 = arith.constant 0.000000e+00 : f32
    %2094 = vector.broadcast %cst_859 : f32 to vector<8x16xf32>
    %2095 = arith.mulf %2069, %2092 : vector<8x1xf32>
    %c0_860 = arith.constant 0 : index
    %c0_861 = arith.constant 0 : index
    %c0_862 = arith.constant 0 : index
    %2096 = vector.load %arg6[%c0_860, %c0_861, %c0_862] : memref<8x8x16xf32, #tpu.memory_space<vmem>>, vector<1x8x16xf32>
    %2097 = vector.shape_cast %2096 : vector<1x8x16xf32> to vector<8x16xf32>
    %2098 = vector.broadcast %2095 : vector<8x1xf32> to vector<8x16xf32>
    %2099 = arith.mulf %2098, %2097 : vector<8x16xf32>
    %2100 = arith.addf %2093, %2099 : vector<8x16xf32>
    %c0_863 = arith.constant 0 : index
    %c0_864 = arith.constant 0 : index
    %c0_865 = arith.constant 0 : index
    %2101 = vector.load %arg7[%c0_863, %c0_864, %c0_865] : memref<8x8x16xf32, #tpu.memory_space<vmem>>, vector<1x8x16xf32>
    %2102 = vector.shape_cast %2101 : vector<1x8x16xf32> to vector<8x16xf32>
    %2103 = vector.broadcast %2095 : vector<8x1xf32> to vector<8x16xf32>
    %2104 = arith.mulf %2103, %2102 : vector<8x16xf32>
    %2105 = arith.addf %2094, %2104 : vector<8x16xf32>
    %2106 = arith.mulf %2071, %2092 : vector<8x1xf32>
    %c1_866 = arith.constant 1 : index
    %c0_867 = arith.constant 0 : index
    %c0_868 = arith.constant 0 : index
    %2107 = vector.load %arg6[%c1_866, %c0_867, %c0_868] : memref<8x8x16xf32, #tpu.memory_space<vmem>>, vector<1x8x16xf32>
    %2108 = vector.shape_cast %2107 : vector<1x8x16xf32> to vector<8x16xf32>
    %2109 = vector.broadcast %2106 : vector<8x1xf32> to vector<8x16xf32>
    %2110 = arith.mulf %2109, %2108 : vector<8x16xf32>
    %2111 = arith.addf %2100, %2110 : vector<8x16xf32>
    %c1_869 = arith.constant 1 : index
    %c0_870 = arith.constant 0 : index
    %c0_871 = arith.constant 0 : index
    %2112 = vector.load %arg7[%c1_869, %c0_870, %c0_871] : memref<8x8x16xf32, #tpu.memory_space<vmem>>, vector<1x8x16xf32>
    %2113 = vector.shape_cast %2112 : vector<1x8x16xf32> to vector<8x16xf32>
    %2114 = vector.broadcast %2106 : vector<8x1xf32> to vector<8x16xf32>
    %2115 = arith.mulf %2114, %2113 : vector<8x16xf32>
    %2116 = arith.addf %2105, %2115 : vector<8x16xf32>
    %2117 = arith.mulf %2073, %2092 : vector<8x1xf32>
    %c2_872 = arith.constant 2 : index
    %c0_873 = arith.constant 0 : index
    %c0_874 = arith.constant 0 : index
    %2118 = vector.load %arg6[%c2_872, %c0_873, %c0_874] : memref<8x8x16xf32, #tpu.memory_space<vmem>>, vector<1x8x16xf32>
    %2119 = vector.shape_cast %2118 : vector<1x8x16xf32> to vector<8x16xf32>
    %2120 = vector.broadcast %2117 : vector<8x1xf32> to vector<8x16xf32>
    %2121 = arith.mulf %2120, %2119 : vector<8x16xf32>
    %2122 = arith.addf %2111, %2121 : vector<8x16xf32>
    %c2_875 = arith.constant 2 : index
    %c0_876 = arith.constant 0 : index
    %c0_877 = arith.constant 0 : index
    %2123 = vector.load %arg7[%c2_875, %c0_876, %c0_877] : memref<8x8x16xf32, #tpu.memory_space<vmem>>, vector<1x8x16xf32>
    %2124 = vector.shape_cast %2123 : vector<1x8x16xf32> to vector<8x16xf32>
    %2125 = vector.broadcast %2117 : vector<8x1xf32> to vector<8x16xf32>
    %2126 = arith.mulf %2125, %2124 : vector<8x16xf32>
    %2127 = arith.addf %2116, %2126 : vector<8x16xf32>
    %2128 = arith.mulf %2075, %2092 : vector<8x1xf32>
    %c3_878 = arith.constant 3 : index
    %c0_879 = arith.constant 0 : index
    %c0_880 = arith.constant 0 : index
    %2129 = vector.load %arg6[%c3_878, %c0_879, %c0_880] : memref<8x8x16xf32, #tpu.memory_space<vmem>>, vector<1x8x16xf32>
    %2130 = vector.shape_cast %2129 : vector<1x8x16xf32> to vector<8x16xf32>
    %2131 = vector.broadcast %2128 : vector<8x1xf32> to vector<8x16xf32>
    %2132 = arith.mulf %2131, %2130 : vector<8x16xf32>
    %2133 = arith.addf %2122, %2132 : vector<8x16xf32>
    %c3_881 = arith.constant 3 : index
    %c0_882 = arith.constant 0 : index
    %c0_883 = arith.constant 0 : index
    %2134 = vector.load %arg7[%c3_881, %c0_882, %c0_883] : memref<8x8x16xf32, #tpu.memory_space<vmem>>, vector<1x8x16xf32>
    %2135 = vector.shape_cast %2134 : vector<1x8x16xf32> to vector<8x16xf32>
    %2136 = vector.broadcast %2128 : vector<8x1xf32> to vector<8x16xf32>
    %2137 = arith.mulf %2136, %2135 : vector<8x16xf32>
    %2138 = arith.addf %2127, %2137 : vector<8x16xf32>
    %2139 = arith.mulf %2077, %2092 : vector<8x1xf32>
    %c4_884 = arith.constant 4 : index
    %c0_885 = arith.constant 0 : index
    %c0_886 = arith.constant 0 : index
    %2140 = vector.load %arg6[%c4_884, %c0_885, %c0_886] : memref<8x8x16xf32, #tpu.memory_space<vmem>>, vector<1x8x16xf32>
    %2141 = vector.shape_cast %2140 : vector<1x8x16xf32> to vector<8x16xf32>
    %2142 = vector.broadcast %2139 : vector<8x1xf32> to vector<8x16xf32>
    %2143 = arith.mulf %2142, %2141 : vector<8x16xf32>
    %2144 = arith.addf %2133, %2143 : vector<8x16xf32>
    %c4_887 = arith.constant 4 : index
    %c0_888 = arith.constant 0 : index
    %c0_889 = arith.constant 0 : index
    %2145 = vector.load %arg7[%c4_887, %c0_888, %c0_889] : memref<8x8x16xf32, #tpu.memory_space<vmem>>, vector<1x8x16xf32>
    %2146 = vector.shape_cast %2145 : vector<1x8x16xf32> to vector<8x16xf32>
    %2147 = vector.broadcast %2139 : vector<8x1xf32> to vector<8x16xf32>
    %2148 = arith.mulf %2147, %2146 : vector<8x16xf32>
    %2149 = arith.addf %2138, %2148 : vector<8x16xf32>
    %2150 = arith.mulf %2079, %2092 : vector<8x1xf32>
    %c5_890 = arith.constant 5 : index
    %c0_891 = arith.constant 0 : index
    %c0_892 = arith.constant 0 : index
    %2151 = vector.load %arg6[%c5_890, %c0_891, %c0_892] : memref<8x8x16xf32, #tpu.memory_space<vmem>>, vector<1x8x16xf32>
    %2152 = vector.shape_cast %2151 : vector<1x8x16xf32> to vector<8x16xf32>
    %2153 = vector.broadcast %2150 : vector<8x1xf32> to vector<8x16xf32>
    %2154 = arith.mulf %2153, %2152 : vector<8x16xf32>
    %2155 = arith.addf %2144, %2154 : vector<8x16xf32>
    %c5_893 = arith.constant 5 : index
    %c0_894 = arith.constant 0 : index
    %c0_895 = arith.constant 0 : index
    %2156 = vector.load %arg7[%c5_893, %c0_894, %c0_895] : memref<8x8x16xf32, #tpu.memory_space<vmem>>, vector<1x8x16xf32>
    %2157 = vector.shape_cast %2156 : vector<1x8x16xf32> to vector<8x16xf32>
    %2158 = vector.broadcast %2150 : vector<8x1xf32> to vector<8x16xf32>
    %2159 = arith.mulf %2158, %2157 : vector<8x16xf32>
    %2160 = arith.addf %2149, %2159 : vector<8x16xf32>
    %2161 = arith.mulf %2081, %2092 : vector<8x1xf32>
    %c6_896 = arith.constant 6 : index
    %c0_897 = arith.constant 0 : index
    %c0_898 = arith.constant 0 : index
    %2162 = vector.load %arg6[%c6_896, %c0_897, %c0_898] : memref<8x8x16xf32, #tpu.memory_space<vmem>>, vector<1x8x16xf32>
    %2163 = vector.shape_cast %2162 : vector<1x8x16xf32> to vector<8x16xf32>
    %2164 = vector.broadcast %2161 : vector<8x1xf32> to vector<8x16xf32>
    %2165 = arith.mulf %2164, %2163 : vector<8x16xf32>
    %2166 = arith.addf %2155, %2165 : vector<8x16xf32>
    %c6_899 = arith.constant 6 : index
    %c0_900 = arith.constant 0 : index
    %c0_901 = arith.constant 0 : index
    %2167 = vector.load %arg7[%c6_899, %c0_900, %c0_901] : memref<8x8x16xf32, #tpu.memory_space<vmem>>, vector<1x8x16xf32>
    %2168 = vector.shape_cast %2167 : vector<1x8x16xf32> to vector<8x16xf32>
    %2169 = vector.broadcast %2161 : vector<8x1xf32> to vector<8x16xf32>
    %2170 = arith.mulf %2169, %2168 : vector<8x16xf32>
    %2171 = arith.addf %2160, %2170 : vector<8x16xf32>
    %2172 = arith.mulf %2083, %2092 : vector<8x1xf32>
    %c7_902 = arith.constant 7 : index
    %c0_903 = arith.constant 0 : index
    %c0_904 = arith.constant 0 : index
    %2173 = vector.load %arg6[%c7_902, %c0_903, %c0_904] : memref<8x8x16xf32, #tpu.memory_space<vmem>>, vector<1x8x16xf32>
    %2174 = vector.shape_cast %2173 : vector<1x8x16xf32> to vector<8x16xf32>
    %2175 = vector.broadcast %2172 : vector<8x1xf32> to vector<8x16xf32>
    %2176 = arith.mulf %2175, %2174 : vector<8x16xf32>
    %2177 = arith.addf %2166, %2176 : vector<8x16xf32>
    %c7_905 = arith.constant 7 : index
    %c0_906 = arith.constant 0 : index
    %c0_907 = arith.constant 0 : index
    %2178 = vector.load %arg7[%c7_905, %c0_906, %c0_907] : memref<8x8x16xf32, #tpu.memory_space<vmem>>, vector<1x8x16xf32>
    %2179 = vector.shape_cast %2178 : vector<1x8x16xf32> to vector<8x16xf32>
    %2180 = vector.broadcast %2172 : vector<8x1xf32> to vector<8x16xf32>
    %2181 = arith.mulf %2180, %2179 : vector<8x16xf32>
    %2182 = arith.addf %2171, %2181 : vector<8x16xf32>
    %2183 = vector.broadcast %1988 : vector<8x1xf32> to vector<8x48xf32>
    %2184 = vector.broadcast %679 : vector<1x48xf32> to vector<8x48xf32>
    %2185 = arith.mulf %2183, %2184 : vector<8x48xf32>
    %cst_908 = arith.constant dense<0.000000e+00> : vector<8x48xf32>
    %2186 = tpu.matmul %2177, %673, %cst_908 {dimension_numbers = #tpu.dot_dimension_numbers<[1], [0], [0], [1], [0, 0, 1, 1], [], []>} : vector<8x16xf32>, vector<16x48xf32>, vector<8x48xf32> -> vector<8x48xf32>
    %2187 = arith.addf %2185, %2186 : vector<8x48xf32>
    %cst_909 = arith.constant dense<0.000000e+00> : vector<8x48xf32>
    %2188 = tpu.matmul %2182, %675, %cst_909 {dimension_numbers = #tpu.dot_dimension_numbers<[1], [0], [0], [1], [0, 0, 1, 1], [], []>} : vector<8x16xf32>, vector<16x48xf32>, vector<8x48xf32> -> vector<8x48xf32>
    %2189 = arith.addf %2187, %2188 : vector<8x48xf32>
    %2190 = vector.broadcast %681 : vector<1x48xf32> to vector<8x48xf32>
    %2191 = arith.addf %2189, %2190 : vector<8x48xf32>
    %cst_910 = arith.constant dense<0.000000e+00> : vector<8x48xf32>
    %2192 = tpu.matmul %1982, %677, %cst_910 {dimension_numbers = #tpu.dot_dimension_numbers<[1], [0], [0], [1], [0, 0, 1, 1], [], []>} : vector<8x16xf32>, vector<16x48xf32>, vector<8x48xf32> -> vector<8x48xf32>
    %2193 = vector.broadcast %683 : vector<1x48xf32> to vector<8x48xf32>
    %2194 = arith.addf %2192, %2193 : vector<8x48xf32>
    %2195 = vector.extract_strided_slice %2191 {offsets = [0, 0], sizes = [8, 16], strides = [1, 1]} : vector<8x48xf32> to vector<8x16xf32>
    %2196 = vector.extract_strided_slice %2194 {offsets = [0, 0], sizes = [8, 16], strides = [1, 1]} : vector<8x48xf32> to vector<8x16xf32>
    %2197 = arith.addf %2195, %2196 : vector<8x16xf32>
    %cst_911 = arith.constant 0.000000e+00 : f32
    %2198 = vector.broadcast %cst_911 : f32 to vector<8x16xf32>
    %2199 = arith.subf %2198, %2197 : vector<8x16xf32>
    %2200 = math.exp %2199 : vector<8x16xf32>
    %cst_912 = arith.constant 1.000000e+00 : f32
    %2201 = vector.broadcast %cst_912 : f32 to vector<8x16xf32>
    %2202 = arith.addf %2201, %2200 : vector<8x16xf32>
    %cst_913 = arith.constant 1.000000e+00 : f32
    %2203 = vector.broadcast %cst_913 : f32 to vector<8x16xf32>
    %2204 = arith.divf %2203, %2202 : vector<8x16xf32>
    %2205 = vector.extract_strided_slice %2191 {offsets = [0, 16], sizes = [8, 16], strides = [1, 1]} : vector<8x48xf32> to vector<8x16xf32>
    %2206 = vector.extract_strided_slice %2194 {offsets = [0, 16], sizes = [8, 16], strides = [1, 1]} : vector<8x48xf32> to vector<8x16xf32>
    %2207 = arith.addf %2205, %2206 : vector<8x16xf32>
    %cst_914 = arith.constant 0.000000e+00 : f32
    %2208 = vector.broadcast %cst_914 : f32 to vector<8x16xf32>
    %2209 = arith.subf %2208, %2207 : vector<8x16xf32>
    %2210 = math.exp %2209 : vector<8x16xf32>
    %cst_915 = arith.constant 1.000000e+00 : f32
    %2211 = vector.broadcast %cst_915 : f32 to vector<8x16xf32>
    %2212 = arith.addf %2211, %2210 : vector<8x16xf32>
    %cst_916 = arith.constant 1.000000e+00 : f32
    %2213 = vector.broadcast %cst_916 : f32 to vector<8x16xf32>
    %2214 = arith.divf %2213, %2212 : vector<8x16xf32>
    %2215 = vector.extract_strided_slice %2191 {offsets = [0, 32], sizes = [8, 16], strides = [1, 1]} : vector<8x48xf32> to vector<8x16xf32>
    %2216 = vector.extract_strided_slice %2194 {offsets = [0, 32], sizes = [8, 16], strides = [1, 1]} : vector<8x48xf32> to vector<8x16xf32>
    %2217 = arith.mulf %2204, %2216 : vector<8x16xf32>
    %2218 = arith.addf %2215, %2217 : vector<8x16xf32>
    %2219 = math.tanh %2218 : vector<8x16xf32>
    %cst_917 = arith.constant 1.000000e+00 : f32
    %2220 = vector.broadcast %cst_917 : f32 to vector<8x16xf32>
    %2221 = arith.subf %2220, %2214 : vector<8x16xf32>
    %2222 = arith.mulf %2221, %2219 : vector<8x16xf32>
    %2223 = arith.mulf %2214, %1982 : vector<8x16xf32>
    %2224 = arith.addf %2222, %2223 : vector<8x16xf32>
    %2225 = vector.broadcast %669 : vector<1x16xf32> to vector<8x16xf32>
    %2226 = arith.mulf %2224, %2225 : vector<8x16xf32>
    %cst_918 = arith.constant dense<0.000000e+00> : vector<8xf32>
    %2227 = vector.multi_reduction <add>, %2226, %cst_918 [1] : vector<8x16xf32> to vector<8xf32>
    %2228 = vector.shape_cast %2227 : vector<8xf32> to vector<8x1xf32>
    %2229 = vector.broadcast %671 : vector<1x1xf32> to vector<8x1xf32>
    %2230 = arith.addf %2228, %2229 : vector<8x1xf32>
    %2231 = vector.extract_strided_slice %684 {offsets = [5, 0], sizes = [1, 8], strides = [1, 1]} : vector<8x8xf32> to vector<1x8xf32>
    %2232 = vector.broadcast %2230 : vector<8x1xf32> to vector<8x8xf32>
    %2233 = vector.broadcast %2231 : vector<1x8xf32> to vector<8x8xf32>
    %2234 = arith.mulf %2232, %2233 : vector<8x8xf32>
    %2235 = arith.addf %1993, %2234 : vector<8x8xf32>
    %2236 = vector.broadcast %2230 : vector<8x1xf32> to vector<8x16xf32>
    %2237 = vector.broadcast %663 : vector<1x16xf32> to vector<8x16xf32>
    %2238 = arith.mulf %2236, %2237 : vector<8x16xf32>
    %c0_919 = arith.constant 0 : index
    %c0_920 = arith.constant 0 : index
    %c0_921 = arith.constant 0 : index
    %2239 = vector.load %arg8[%c0_919, %c0_920, %c0_921] : memref<8x8x16xf32, #tpu.memory_space<vmem>>, vector<1x8x16xf32>
    %2240 = vector.shape_cast %2239 : vector<1x8x16xf32> to vector<8x16xf32>
    %2241 = arith.addf %2240, %2238 : vector<8x16xf32>
    %2242 = math.tanh %2241 : vector<8x16xf32>
    %2243 = vector.broadcast %667 : vector<1x16xf32> to vector<8x16xf32>
    %2244 = arith.mulf %2242, %2243 : vector<8x16xf32>
    %cst_922 = arith.constant dense<0.000000e+00> : vector<8xf32>
    %2245 = vector.multi_reduction <add>, %2244, %cst_922 [1] : vector<8x16xf32> to vector<8xf32>
    %2246 = vector.shape_cast %2245 : vector<8xf32> to vector<8x1xf32>
    %c1_923 = arith.constant 1 : index
    %c0_924 = arith.constant 0 : index
    %c0_925 = arith.constant 0 : index
    %2247 = vector.load %arg8[%c1_923, %c0_924, %c0_925] : memref<8x8x16xf32, #tpu.memory_space<vmem>>, vector<1x8x16xf32>
    %2248 = vector.shape_cast %2247 : vector<1x8x16xf32> to vector<8x16xf32>
    %2249 = arith.addf %2248, %2238 : vector<8x16xf32>
    %2250 = math.tanh %2249 : vector<8x16xf32>
    %2251 = vector.broadcast %667 : vector<1x16xf32> to vector<8x16xf32>
    %2252 = arith.mulf %2250, %2251 : vector<8x16xf32>
    %cst_926 = arith.constant dense<0.000000e+00> : vector<8xf32>
    %2253 = vector.multi_reduction <add>, %2252, %cst_926 [1] : vector<8x16xf32> to vector<8xf32>
    %2254 = vector.shape_cast %2253 : vector<8xf32> to vector<8x1xf32>
    %c2_927 = arith.constant 2 : index
    %c0_928 = arith.constant 0 : index
    %c0_929 = arith.constant 0 : index
    %2255 = vector.load %arg8[%c2_927, %c0_928, %c0_929] : memref<8x8x16xf32, #tpu.memory_space<vmem>>, vector<1x8x16xf32>
    %2256 = vector.shape_cast %2255 : vector<1x8x16xf32> to vector<8x16xf32>
    %2257 = arith.addf %2256, %2238 : vector<8x16xf32>
    %2258 = math.tanh %2257 : vector<8x16xf32>
    %2259 = vector.broadcast %667 : vector<1x16xf32> to vector<8x16xf32>
    %2260 = arith.mulf %2258, %2259 : vector<8x16xf32>
    %cst_930 = arith.constant dense<0.000000e+00> : vector<8xf32>
    %2261 = vector.multi_reduction <add>, %2260, %cst_930 [1] : vector<8x16xf32> to vector<8xf32>
    %2262 = vector.shape_cast %2261 : vector<8xf32> to vector<8x1xf32>
    %c3_931 = arith.constant 3 : index
    %c0_932 = arith.constant 0 : index
    %c0_933 = arith.constant 0 : index
    %2263 = vector.load %arg8[%c3_931, %c0_932, %c0_933] : memref<8x8x16xf32, #tpu.memory_space<vmem>>, vector<1x8x16xf32>
    %2264 = vector.shape_cast %2263 : vector<1x8x16xf32> to vector<8x16xf32>
    %2265 = arith.addf %2264, %2238 : vector<8x16xf32>
    %2266 = math.tanh %2265 : vector<8x16xf32>
    %2267 = vector.broadcast %667 : vector<1x16xf32> to vector<8x16xf32>
    %2268 = arith.mulf %2266, %2267 : vector<8x16xf32>
    %cst_934 = arith.constant dense<0.000000e+00> : vector<8xf32>
    %2269 = vector.multi_reduction <add>, %2268, %cst_934 [1] : vector<8x16xf32> to vector<8xf32>
    %2270 = vector.shape_cast %2269 : vector<8xf32> to vector<8x1xf32>
    %c4_935 = arith.constant 4 : index
    %c0_936 = arith.constant 0 : index
    %c0_937 = arith.constant 0 : index
    %2271 = vector.load %arg8[%c4_935, %c0_936, %c0_937] : memref<8x8x16xf32, #tpu.memory_space<vmem>>, vector<1x8x16xf32>
    %2272 = vector.shape_cast %2271 : vector<1x8x16xf32> to vector<8x16xf32>
    %2273 = arith.addf %2272, %2238 : vector<8x16xf32>
    %2274 = math.tanh %2273 : vector<8x16xf32>
    %2275 = vector.broadcast %667 : vector<1x16xf32> to vector<8x16xf32>
    %2276 = arith.mulf %2274, %2275 : vector<8x16xf32>
    %cst_938 = arith.constant dense<0.000000e+00> : vector<8xf32>
    %2277 = vector.multi_reduction <add>, %2276, %cst_938 [1] : vector<8x16xf32> to vector<8xf32>
    %2278 = vector.shape_cast %2277 : vector<8xf32> to vector<8x1xf32>
    %c5_939 = arith.constant 5 : index
    %c0_940 = arith.constant 0 : index
    %c0_941 = arith.constant 0 : index
    %2279 = vector.load %arg8[%c5_939, %c0_940, %c0_941] : memref<8x8x16xf32, #tpu.memory_space<vmem>>, vector<1x8x16xf32>
    %2280 = vector.shape_cast %2279 : vector<1x8x16xf32> to vector<8x16xf32>
    %2281 = arith.addf %2280, %2238 : vector<8x16xf32>
    %2282 = math.tanh %2281 : vector<8x16xf32>
    %2283 = vector.broadcast %667 : vector<1x16xf32> to vector<8x16xf32>
    %2284 = arith.mulf %2282, %2283 : vector<8x16xf32>
    %cst_942 = arith.constant dense<0.000000e+00> : vector<8xf32>
    %2285 = vector.multi_reduction <add>, %2284, %cst_942 [1] : vector<8x16xf32> to vector<8xf32>
    %2286 = vector.shape_cast %2285 : vector<8xf32> to vector<8x1xf32>
    %c6_943 = arith.constant 6 : index
    %c0_944 = arith.constant 0 : index
    %c0_945 = arith.constant 0 : index
    %2287 = vector.load %arg8[%c6_943, %c0_944, %c0_945] : memref<8x8x16xf32, #tpu.memory_space<vmem>>, vector<1x8x16xf32>
    %2288 = vector.shape_cast %2287 : vector<1x8x16xf32> to vector<8x16xf32>
    %2289 = arith.addf %2288, %2238 : vector<8x16xf32>
    %2290 = math.tanh %2289 : vector<8x16xf32>
    %2291 = vector.broadcast %667 : vector<1x16xf32> to vector<8x16xf32>
    %2292 = arith.mulf %2290, %2291 : vector<8x16xf32>
    %cst_946 = arith.constant dense<0.000000e+00> : vector<8xf32>
    %2293 = vector.multi_reduction <add>, %2292, %cst_946 [1] : vector<8x16xf32> to vector<8xf32>
    %2294 = vector.shape_cast %2293 : vector<8xf32> to vector<8x1xf32>
    %c7_947 = arith.constant 7 : index
    %c0_948 = arith.constant 0 : index
    %c0_949 = arith.constant 0 : index
    %2295 = vector.load %arg8[%c7_947, %c0_948, %c0_949] : memref<8x8x16xf32, #tpu.memory_space<vmem>>, vector<1x8x16xf32>
    %2296 = vector.shape_cast %2295 : vector<1x8x16xf32> to vector<8x16xf32>
    %2297 = arith.addf %2296, %2238 : vector<8x16xf32>
    %2298 = math.tanh %2297 : vector<8x16xf32>
    %2299 = vector.broadcast %667 : vector<1x16xf32> to vector<8x16xf32>
    %2300 = arith.mulf %2298, %2299 : vector<8x16xf32>
    %cst_950 = arith.constant dense<0.000000e+00> : vector<8xf32>
    %2301 = vector.multi_reduction <add>, %2300, %cst_950 [1] : vector<8x16xf32> to vector<8xf32>
    %2302 = vector.shape_cast %2301 : vector<8xf32> to vector<8x1xf32>
    %2303 = arith.maximumf %2246, %2254 : vector<8x1xf32>
    %2304 = arith.maximumf %2303, %2262 : vector<8x1xf32>
    %2305 = arith.maximumf %2304, %2270 : vector<8x1xf32>
    %2306 = arith.maximumf %2305, %2278 : vector<8x1xf32>
    %2307 = arith.maximumf %2306, %2286 : vector<8x1xf32>
    %2308 = arith.maximumf %2307, %2294 : vector<8x1xf32>
    %2309 = arith.maximumf %2308, %2302 : vector<8x1xf32>
    %2310 = arith.subf %2246, %2309 : vector<8x1xf32>
    %2311 = math.exp %2310 : vector<8x1xf32>
    %2312 = arith.subf %2254, %2309 : vector<8x1xf32>
    %2313 = math.exp %2312 : vector<8x1xf32>
    %2314 = arith.subf %2262, %2309 : vector<8x1xf32>
    %2315 = math.exp %2314 : vector<8x1xf32>
    %2316 = arith.subf %2270, %2309 : vector<8x1xf32>
    %2317 = math.exp %2316 : vector<8x1xf32>
    %2318 = arith.subf %2278, %2309 : vector<8x1xf32>
    %2319 = math.exp %2318 : vector<8x1xf32>
    %2320 = arith.subf %2286, %2309 : vector<8x1xf32>
    %2321 = math.exp %2320 : vector<8x1xf32>
    %2322 = arith.subf %2294, %2309 : vector<8x1xf32>
    %2323 = math.exp %2322 : vector<8x1xf32>
    %2324 = arith.subf %2302, %2309 : vector<8x1xf32>
    %2325 = math.exp %2324 : vector<8x1xf32>
    %2326 = arith.addf %2311, %2313 : vector<8x1xf32>
    %2327 = arith.addf %2326, %2315 : vector<8x1xf32>
    %2328 = arith.addf %2327, %2317 : vector<8x1xf32>
    %2329 = arith.addf %2328, %2319 : vector<8x1xf32>
    %2330 = arith.addf %2329, %2321 : vector<8x1xf32>
    %2331 = arith.addf %2330, %2323 : vector<8x1xf32>
    %2332 = arith.addf %2331, %2325 : vector<8x1xf32>
    %cst_951 = arith.constant 1.000000e+00 : f32
    %2333 = vector.broadcast %cst_951 : f32 to vector<8x1xf32>
    %2334 = arith.divf %2333, %2332 : vector<8x1xf32>
    %cst_952 = arith.constant 0.000000e+00 : f32
    %2335 = vector.broadcast %cst_952 : f32 to vector<8x16xf32>
    %cst_953 = arith.constant 0.000000e+00 : f32
    %2336 = vector.broadcast %cst_953 : f32 to vector<8x16xf32>
    %2337 = arith.mulf %2311, %2334 : vector<8x1xf32>
    %c0_954 = arith.constant 0 : index
    %c0_955 = arith.constant 0 : index
    %c0_956 = arith.constant 0 : index
    %2338 = vector.load %arg6[%c0_954, %c0_955, %c0_956] : memref<8x8x16xf32, #tpu.memory_space<vmem>>, vector<1x8x16xf32>
    %2339 = vector.shape_cast %2338 : vector<1x8x16xf32> to vector<8x16xf32>
    %2340 = vector.broadcast %2337 : vector<8x1xf32> to vector<8x16xf32>
    %2341 = arith.mulf %2340, %2339 : vector<8x16xf32>
    %2342 = arith.addf %2335, %2341 : vector<8x16xf32>
    %c0_957 = arith.constant 0 : index
    %c0_958 = arith.constant 0 : index
    %c0_959 = arith.constant 0 : index
    %2343 = vector.load %arg7[%c0_957, %c0_958, %c0_959] : memref<8x8x16xf32, #tpu.memory_space<vmem>>, vector<1x8x16xf32>
    %2344 = vector.shape_cast %2343 : vector<1x8x16xf32> to vector<8x16xf32>
    %2345 = vector.broadcast %2337 : vector<8x1xf32> to vector<8x16xf32>
    %2346 = arith.mulf %2345, %2344 : vector<8x16xf32>
    %2347 = arith.addf %2336, %2346 : vector<8x16xf32>
    %2348 = arith.mulf %2313, %2334 : vector<8x1xf32>
    %c1_960 = arith.constant 1 : index
    %c0_961 = arith.constant 0 : index
    %c0_962 = arith.constant 0 : index
    %2349 = vector.load %arg6[%c1_960, %c0_961, %c0_962] : memref<8x8x16xf32, #tpu.memory_space<vmem>>, vector<1x8x16xf32>
    %2350 = vector.shape_cast %2349 : vector<1x8x16xf32> to vector<8x16xf32>
    %2351 = vector.broadcast %2348 : vector<8x1xf32> to vector<8x16xf32>
    %2352 = arith.mulf %2351, %2350 : vector<8x16xf32>
    %2353 = arith.addf %2342, %2352 : vector<8x16xf32>
    %c1_963 = arith.constant 1 : index
    %c0_964 = arith.constant 0 : index
    %c0_965 = arith.constant 0 : index
    %2354 = vector.load %arg7[%c1_963, %c0_964, %c0_965] : memref<8x8x16xf32, #tpu.memory_space<vmem>>, vector<1x8x16xf32>
    %2355 = vector.shape_cast %2354 : vector<1x8x16xf32> to vector<8x16xf32>
    %2356 = vector.broadcast %2348 : vector<8x1xf32> to vector<8x16xf32>
    %2357 = arith.mulf %2356, %2355 : vector<8x16xf32>
    %2358 = arith.addf %2347, %2357 : vector<8x16xf32>
    %2359 = arith.mulf %2315, %2334 : vector<8x1xf32>
    %c2_966 = arith.constant 2 : index
    %c0_967 = arith.constant 0 : index
    %c0_968 = arith.constant 0 : index
    %2360 = vector.load %arg6[%c2_966, %c0_967, %c0_968] : memref<8x8x16xf32, #tpu.memory_space<vmem>>, vector<1x8x16xf32>
    %2361 = vector.shape_cast %2360 : vector<1x8x16xf32> to vector<8x16xf32>
    %2362 = vector.broadcast %2359 : vector<8x1xf32> to vector<8x16xf32>
    %2363 = arith.mulf %2362, %2361 : vector<8x16xf32>
    %2364 = arith.addf %2353, %2363 : vector<8x16xf32>
    %c2_969 = arith.constant 2 : index
    %c0_970 = arith.constant 0 : index
    %c0_971 = arith.constant 0 : index
    %2365 = vector.load %arg7[%c2_969, %c0_970, %c0_971] : memref<8x8x16xf32, #tpu.memory_space<vmem>>, vector<1x8x16xf32>
    %2366 = vector.shape_cast %2365 : vector<1x8x16xf32> to vector<8x16xf32>
    %2367 = vector.broadcast %2359 : vector<8x1xf32> to vector<8x16xf32>
    %2368 = arith.mulf %2367, %2366 : vector<8x16xf32>
    %2369 = arith.addf %2358, %2368 : vector<8x16xf32>
    %2370 = arith.mulf %2317, %2334 : vector<8x1xf32>
    %c3_972 = arith.constant 3 : index
    %c0_973 = arith.constant 0 : index
    %c0_974 = arith.constant 0 : index
    %2371 = vector.load %arg6[%c3_972, %c0_973, %c0_974] : memref<8x8x16xf32, #tpu.memory_space<vmem>>, vector<1x8x16xf32>
    %2372 = vector.shape_cast %2371 : vector<1x8x16xf32> to vector<8x16xf32>
    %2373 = vector.broadcast %2370 : vector<8x1xf32> to vector<8x16xf32>
    %2374 = arith.mulf %2373, %2372 : vector<8x16xf32>
    %2375 = arith.addf %2364, %2374 : vector<8x16xf32>
    %c3_975 = arith.constant 3 : index
    %c0_976 = arith.constant 0 : index
    %c0_977 = arith.constant 0 : index
    %2376 = vector.load %arg7[%c3_975, %c0_976, %c0_977] : memref<8x8x16xf32, #tpu.memory_space<vmem>>, vector<1x8x16xf32>
    %2377 = vector.shape_cast %2376 : vector<1x8x16xf32> to vector<8x16xf32>
    %2378 = vector.broadcast %2370 : vector<8x1xf32> to vector<8x16xf32>
    %2379 = arith.mulf %2378, %2377 : vector<8x16xf32>
    %2380 = arith.addf %2369, %2379 : vector<8x16xf32>
    %2381 = arith.mulf %2319, %2334 : vector<8x1xf32>
    %c4_978 = arith.constant 4 : index
    %c0_979 = arith.constant 0 : index
    %c0_980 = arith.constant 0 : index
    %2382 = vector.load %arg6[%c4_978, %c0_979, %c0_980] : memref<8x8x16xf32, #tpu.memory_space<vmem>>, vector<1x8x16xf32>
    %2383 = vector.shape_cast %2382 : vector<1x8x16xf32> to vector<8x16xf32>
    %2384 = vector.broadcast %2381 : vector<8x1xf32> to vector<8x16xf32>
    %2385 = arith.mulf %2384, %2383 : vector<8x16xf32>
    %2386 = arith.addf %2375, %2385 : vector<8x16xf32>
    %c4_981 = arith.constant 4 : index
    %c0_982 = arith.constant 0 : index
    %c0_983 = arith.constant 0 : index
    %2387 = vector.load %arg7[%c4_981, %c0_982, %c0_983] : memref<8x8x16xf32, #tpu.memory_space<vmem>>, vector<1x8x16xf32>
    %2388 = vector.shape_cast %2387 : vector<1x8x16xf32> to vector<8x16xf32>
    %2389 = vector.broadcast %2381 : vector<8x1xf32> to vector<8x16xf32>
    %2390 = arith.mulf %2389, %2388 : vector<8x16xf32>
    %2391 = arith.addf %2380, %2390 : vector<8x16xf32>
    %2392 = arith.mulf %2321, %2334 : vector<8x1xf32>
    %c5_984 = arith.constant 5 : index
    %c0_985 = arith.constant 0 : index
    %c0_986 = arith.constant 0 : index
    %2393 = vector.load %arg6[%c5_984, %c0_985, %c0_986] : memref<8x8x16xf32, #tpu.memory_space<vmem>>, vector<1x8x16xf32>
    %2394 = vector.shape_cast %2393 : vector<1x8x16xf32> to vector<8x16xf32>
    %2395 = vector.broadcast %2392 : vector<8x1xf32> to vector<8x16xf32>
    %2396 = arith.mulf %2395, %2394 : vector<8x16xf32>
    %2397 = arith.addf %2386, %2396 : vector<8x16xf32>
    %c5_987 = arith.constant 5 : index
    %c0_988 = arith.constant 0 : index
    %c0_989 = arith.constant 0 : index
    %2398 = vector.load %arg7[%c5_987, %c0_988, %c0_989] : memref<8x8x16xf32, #tpu.memory_space<vmem>>, vector<1x8x16xf32>
    %2399 = vector.shape_cast %2398 : vector<1x8x16xf32> to vector<8x16xf32>
    %2400 = vector.broadcast %2392 : vector<8x1xf32> to vector<8x16xf32>
    %2401 = arith.mulf %2400, %2399 : vector<8x16xf32>
    %2402 = arith.addf %2391, %2401 : vector<8x16xf32>
    %2403 = arith.mulf %2323, %2334 : vector<8x1xf32>
    %c6_990 = arith.constant 6 : index
    %c0_991 = arith.constant 0 : index
    %c0_992 = arith.constant 0 : index
    %2404 = vector.load %arg6[%c6_990, %c0_991, %c0_992] : memref<8x8x16xf32, #tpu.memory_space<vmem>>, vector<1x8x16xf32>
    %2405 = vector.shape_cast %2404 : vector<1x8x16xf32> to vector<8x16xf32>
    %2406 = vector.broadcast %2403 : vector<8x1xf32> to vector<8x16xf32>
    %2407 = arith.mulf %2406, %2405 : vector<8x16xf32>
    %2408 = arith.addf %2397, %2407 : vector<8x16xf32>
    %c6_993 = arith.constant 6 : index
    %c0_994 = arith.constant 0 : index
    %c0_995 = arith.constant 0 : index
    %2409 = vector.load %arg7[%c6_993, %c0_994, %c0_995] : memref<8x8x16xf32, #tpu.memory_space<vmem>>, vector<1x8x16xf32>
    %2410 = vector.shape_cast %2409 : vector<1x8x16xf32> to vector<8x16xf32>
    %2411 = vector.broadcast %2403 : vector<8x1xf32> to vector<8x16xf32>
    %2412 = arith.mulf %2411, %2410 : vector<8x16xf32>
    %2413 = arith.addf %2402, %2412 : vector<8x16xf32>
    %2414 = arith.mulf %2325, %2334 : vector<8x1xf32>
    %c7_996 = arith.constant 7 : index
    %c0_997 = arith.constant 0 : index
    %c0_998 = arith.constant 0 : index
    %2415 = vector.load %arg6[%c7_996, %c0_997, %c0_998] : memref<8x8x16xf32, #tpu.memory_space<vmem>>, vector<1x8x16xf32>
    %2416 = vector.shape_cast %2415 : vector<1x8x16xf32> to vector<8x16xf32>
    %2417 = vector.broadcast %2414 : vector<8x1xf32> to vector<8x16xf32>
    %2418 = arith.mulf %2417, %2416 : vector<8x16xf32>
    %2419 = arith.addf %2408, %2418 : vector<8x16xf32>
    %c7_999 = arith.constant 7 : index
    %c0_1000 = arith.constant 0 : index
    %c0_1001 = arith.constant 0 : index
    %2420 = vector.load %arg7[%c7_999, %c0_1000, %c0_1001] : memref<8x8x16xf32, #tpu.memory_space<vmem>>, vector<1x8x16xf32>
    %2421 = vector.shape_cast %2420 : vector<1x8x16xf32> to vector<8x16xf32>
    %2422 = vector.broadcast %2414 : vector<8x1xf32> to vector<8x16xf32>
    %2423 = arith.mulf %2422, %2421 : vector<8x16xf32>
    %2424 = arith.addf %2413, %2423 : vector<8x16xf32>
    %2425 = vector.broadcast %2230 : vector<8x1xf32> to vector<8x48xf32>
    %2426 = vector.broadcast %679 : vector<1x48xf32> to vector<8x48xf32>
    %2427 = arith.mulf %2425, %2426 : vector<8x48xf32>
    %cst_1002 = arith.constant dense<0.000000e+00> : vector<8x48xf32>
    %2428 = tpu.matmul %2419, %673, %cst_1002 {dimension_numbers = #tpu.dot_dimension_numbers<[1], [0], [0], [1], [0, 0, 1, 1], [], []>} : vector<8x16xf32>, vector<16x48xf32>, vector<8x48xf32> -> vector<8x48xf32>
    %2429 = arith.addf %2427, %2428 : vector<8x48xf32>
    %cst_1003 = arith.constant dense<0.000000e+00> : vector<8x48xf32>
    %2430 = tpu.matmul %2424, %675, %cst_1003 {dimension_numbers = #tpu.dot_dimension_numbers<[1], [0], [0], [1], [0, 0, 1, 1], [], []>} : vector<8x16xf32>, vector<16x48xf32>, vector<8x48xf32> -> vector<8x48xf32>
    %2431 = arith.addf %2429, %2430 : vector<8x48xf32>
    %2432 = vector.broadcast %681 : vector<1x48xf32> to vector<8x48xf32>
    %2433 = arith.addf %2431, %2432 : vector<8x48xf32>
    %cst_1004 = arith.constant dense<0.000000e+00> : vector<8x48xf32>
    %2434 = tpu.matmul %2224, %677, %cst_1004 {dimension_numbers = #tpu.dot_dimension_numbers<[1], [0], [0], [1], [0, 0, 1, 1], [], []>} : vector<8x16xf32>, vector<16x48xf32>, vector<8x48xf32> -> vector<8x48xf32>
    %2435 = vector.broadcast %683 : vector<1x48xf32> to vector<8x48xf32>
    %2436 = arith.addf %2434, %2435 : vector<8x48xf32>
    %2437 = vector.extract_strided_slice %2433 {offsets = [0, 0], sizes = [8, 16], strides = [1, 1]} : vector<8x48xf32> to vector<8x16xf32>
    %2438 = vector.extract_strided_slice %2436 {offsets = [0, 0], sizes = [8, 16], strides = [1, 1]} : vector<8x48xf32> to vector<8x16xf32>
    %2439 = arith.addf %2437, %2438 : vector<8x16xf32>
    %cst_1005 = arith.constant 0.000000e+00 : f32
    %2440 = vector.broadcast %cst_1005 : f32 to vector<8x16xf32>
    %2441 = arith.subf %2440, %2439 : vector<8x16xf32>
    %2442 = math.exp %2441 : vector<8x16xf32>
    %cst_1006 = arith.constant 1.000000e+00 : f32
    %2443 = vector.broadcast %cst_1006 : f32 to vector<8x16xf32>
    %2444 = arith.addf %2443, %2442 : vector<8x16xf32>
    %cst_1007 = arith.constant 1.000000e+00 : f32
    %2445 = vector.broadcast %cst_1007 : f32 to vector<8x16xf32>
    %2446 = arith.divf %2445, %2444 : vector<8x16xf32>
    %2447 = vector.extract_strided_slice %2433 {offsets = [0, 16], sizes = [8, 16], strides = [1, 1]} : vector<8x48xf32> to vector<8x16xf32>
    %2448 = vector.extract_strided_slice %2436 {offsets = [0, 16], sizes = [8, 16], strides = [1, 1]} : vector<8x48xf32> to vector<8x16xf32>
    %2449 = arith.addf %2447, %2448 : vector<8x16xf32>
    %cst_1008 = arith.constant 0.000000e+00 : f32
    %2450 = vector.broadcast %cst_1008 : f32 to vector<8x16xf32>
    %2451 = arith.subf %2450, %2449 : vector<8x16xf32>
    %2452 = math.exp %2451 : vector<8x16xf32>
    %cst_1009 = arith.constant 1.000000e+00 : f32
    %2453 = vector.broadcast %cst_1009 : f32 to vector<8x16xf32>
    %2454 = arith.addf %2453, %2452 : vector<8x16xf32>
    %cst_1010 = arith.constant 1.000000e+00 : f32
    %2455 = vector.broadcast %cst_1010 : f32 to vector<8x16xf32>
    %2456 = arith.divf %2455, %2454 : vector<8x16xf32>
    %2457 = vector.extract_strided_slice %2433 {offsets = [0, 32], sizes = [8, 16], strides = [1, 1]} : vector<8x48xf32> to vector<8x16xf32>
    %2458 = vector.extract_strided_slice %2436 {offsets = [0, 32], sizes = [8, 16], strides = [1, 1]} : vector<8x48xf32> to vector<8x16xf32>
    %2459 = arith.mulf %2446, %2458 : vector<8x16xf32>
    %2460 = arith.addf %2457, %2459 : vector<8x16xf32>
    %2461 = math.tanh %2460 : vector<8x16xf32>
    %cst_1011 = arith.constant 1.000000e+00 : f32
    %2462 = vector.broadcast %cst_1011 : f32 to vector<8x16xf32>
    %2463 = arith.subf %2462, %2456 : vector<8x16xf32>
    %2464 = arith.mulf %2463, %2461 : vector<8x16xf32>
    %2465 = arith.mulf %2456, %2224 : vector<8x16xf32>
    %2466 = arith.addf %2464, %2465 : vector<8x16xf32>
    %2467 = vector.broadcast %669 : vector<1x16xf32> to vector<8x16xf32>
    %2468 = arith.mulf %2466, %2467 : vector<8x16xf32>
    %cst_1012 = arith.constant dense<0.000000e+00> : vector<8xf32>
    %2469 = vector.multi_reduction <add>, %2468, %cst_1012 [1] : vector<8x16xf32> to vector<8xf32>
    %2470 = vector.shape_cast %2469 : vector<8xf32> to vector<8x1xf32>
    %2471 = vector.broadcast %671 : vector<1x1xf32> to vector<8x1xf32>
    %2472 = arith.addf %2470, %2471 : vector<8x1xf32>
    %2473 = vector.extract_strided_slice %684 {offsets = [6, 0], sizes = [1, 8], strides = [1, 1]} : vector<8x8xf32> to vector<1x8xf32>
    %2474 = vector.broadcast %2472 : vector<8x1xf32> to vector<8x8xf32>
    %2475 = vector.broadcast %2473 : vector<1x8xf32> to vector<8x8xf32>
    %2476 = arith.mulf %2474, %2475 : vector<8x8xf32>
    %2477 = arith.addf %2235, %2476 : vector<8x8xf32>
    %2478 = vector.broadcast %2472 : vector<8x1xf32> to vector<8x16xf32>
    %2479 = vector.broadcast %663 : vector<1x16xf32> to vector<8x16xf32>
    %2480 = arith.mulf %2478, %2479 : vector<8x16xf32>
    %c0_1013 = arith.constant 0 : index
    %c0_1014 = arith.constant 0 : index
    %c0_1015 = arith.constant 0 : index
    %2481 = vector.load %arg8[%c0_1013, %c0_1014, %c0_1015] : memref<8x8x16xf32, #tpu.memory_space<vmem>>, vector<1x8x16xf32>
    %2482 = vector.shape_cast %2481 : vector<1x8x16xf32> to vector<8x16xf32>
    %2483 = arith.addf %2482, %2480 : vector<8x16xf32>
    %2484 = math.tanh %2483 : vector<8x16xf32>
    %2485 = vector.broadcast %667 : vector<1x16xf32> to vector<8x16xf32>
    %2486 = arith.mulf %2484, %2485 : vector<8x16xf32>
    %cst_1016 = arith.constant dense<0.000000e+00> : vector<8xf32>
    %2487 = vector.multi_reduction <add>, %2486, %cst_1016 [1] : vector<8x16xf32> to vector<8xf32>
    %2488 = vector.shape_cast %2487 : vector<8xf32> to vector<8x1xf32>
    %c1_1017 = arith.constant 1 : index
    %c0_1018 = arith.constant 0 : index
    %c0_1019 = arith.constant 0 : index
    %2489 = vector.load %arg8[%c1_1017, %c0_1018, %c0_1019] : memref<8x8x16xf32, #tpu.memory_space<vmem>>, vector<1x8x16xf32>
    %2490 = vector.shape_cast %2489 : vector<1x8x16xf32> to vector<8x16xf32>
    %2491 = arith.addf %2490, %2480 : vector<8x16xf32>
    %2492 = math.tanh %2491 : vector<8x16xf32>
    %2493 = vector.broadcast %667 : vector<1x16xf32> to vector<8x16xf32>
    %2494 = arith.mulf %2492, %2493 : vector<8x16xf32>
    %cst_1020 = arith.constant dense<0.000000e+00> : vector<8xf32>
    %2495 = vector.multi_reduction <add>, %2494, %cst_1020 [1] : vector<8x16xf32> to vector<8xf32>
    %2496 = vector.shape_cast %2495 : vector<8xf32> to vector<8x1xf32>
    %c2_1021 = arith.constant 2 : index
    %c0_1022 = arith.constant 0 : index
    %c0_1023 = arith.constant 0 : index
    %2497 = vector.load %arg8[%c2_1021, %c0_1022, %c0_1023] : memref<8x8x16xf32, #tpu.memory_space<vmem>>, vector<1x8x16xf32>
    %2498 = vector.shape_cast %2497 : vector<1x8x16xf32> to vector<8x16xf32>
    %2499 = arith.addf %2498, %2480 : vector<8x16xf32>
    %2500 = math.tanh %2499 : vector<8x16xf32>
    %2501 = vector.broadcast %667 : vector<1x16xf32> to vector<8x16xf32>
    %2502 = arith.mulf %2500, %2501 : vector<8x16xf32>
    %cst_1024 = arith.constant dense<0.000000e+00> : vector<8xf32>
    %2503 = vector.multi_reduction <add>, %2502, %cst_1024 [1] : vector<8x16xf32> to vector<8xf32>
    %2504 = vector.shape_cast %2503 : vector<8xf32> to vector<8x1xf32>
    %c3_1025 = arith.constant 3 : index
    %c0_1026 = arith.constant 0 : index
    %c0_1027 = arith.constant 0 : index
    %2505 = vector.load %arg8[%c3_1025, %c0_1026, %c0_1027] : memref<8x8x16xf32, #tpu.memory_space<vmem>>, vector<1x8x16xf32>
    %2506 = vector.shape_cast %2505 : vector<1x8x16xf32> to vector<8x16xf32>
    %2507 = arith.addf %2506, %2480 : vector<8x16xf32>
    %2508 = math.tanh %2507 : vector<8x16xf32>
    %2509 = vector.broadcast %667 : vector<1x16xf32> to vector<8x16xf32>
    %2510 = arith.mulf %2508, %2509 : vector<8x16xf32>
    %cst_1028 = arith.constant dense<0.000000e+00> : vector<8xf32>
    %2511 = vector.multi_reduction <add>, %2510, %cst_1028 [1] : vector<8x16xf32> to vector<8xf32>
    %2512 = vector.shape_cast %2511 : vector<8xf32> to vector<8x1xf32>
    %c4_1029 = arith.constant 4 : index
    %c0_1030 = arith.constant 0 : index
    %c0_1031 = arith.constant 0 : index
    %2513 = vector.load %arg8[%c4_1029, %c0_1030, %c0_1031] : memref<8x8x16xf32, #tpu.memory_space<vmem>>, vector<1x8x16xf32>
    %2514 = vector.shape_cast %2513 : vector<1x8x16xf32> to vector<8x16xf32>
    %2515 = arith.addf %2514, %2480 : vector<8x16xf32>
    %2516 = math.tanh %2515 : vector<8x16xf32>
    %2517 = vector.broadcast %667 : vector<1x16xf32> to vector<8x16xf32>
    %2518 = arith.mulf %2516, %2517 : vector<8x16xf32>
    %cst_1032 = arith.constant dense<0.000000e+00> : vector<8xf32>
    %2519 = vector.multi_reduction <add>, %2518, %cst_1032 [1] : vector<8x16xf32> to vector<8xf32>
    %2520 = vector.shape_cast %2519 : vector<8xf32> to vector<8x1xf32>
    %c5_1033 = arith.constant 5 : index
    %c0_1034 = arith.constant 0 : index
    %c0_1035 = arith.constant 0 : index
    %2521 = vector.load %arg8[%c5_1033, %c0_1034, %c0_1035] : memref<8x8x16xf32, #tpu.memory_space<vmem>>, vector<1x8x16xf32>
    %2522 = vector.shape_cast %2521 : vector<1x8x16xf32> to vector<8x16xf32>
    %2523 = arith.addf %2522, %2480 : vector<8x16xf32>
    %2524 = math.tanh %2523 : vector<8x16xf32>
    %2525 = vector.broadcast %667 : vector<1x16xf32> to vector<8x16xf32>
    %2526 = arith.mulf %2524, %2525 : vector<8x16xf32>
    %cst_1036 = arith.constant dense<0.000000e+00> : vector<8xf32>
    %2527 = vector.multi_reduction <add>, %2526, %cst_1036 [1] : vector<8x16xf32> to vector<8xf32>
    %2528 = vector.shape_cast %2527 : vector<8xf32> to vector<8x1xf32>
    %c6_1037 = arith.constant 6 : index
    %c0_1038 = arith.constant 0 : index
    %c0_1039 = arith.constant 0 : index
    %2529 = vector.load %arg8[%c6_1037, %c0_1038, %c0_1039] : memref<8x8x16xf32, #tpu.memory_space<vmem>>, vector<1x8x16xf32>
    %2530 = vector.shape_cast %2529 : vector<1x8x16xf32> to vector<8x16xf32>
    %2531 = arith.addf %2530, %2480 : vector<8x16xf32>
    %2532 = math.tanh %2531 : vector<8x16xf32>
    %2533 = vector.broadcast %667 : vector<1x16xf32> to vector<8x16xf32>
    %2534 = arith.mulf %2532, %2533 : vector<8x16xf32>
    %cst_1040 = arith.constant dense<0.000000e+00> : vector<8xf32>
    %2535 = vector.multi_reduction <add>, %2534, %cst_1040 [1] : vector<8x16xf32> to vector<8xf32>
    %2536 = vector.shape_cast %2535 : vector<8xf32> to vector<8x1xf32>
    %c7_1041 = arith.constant 7 : index
    %c0_1042 = arith.constant 0 : index
    %c0_1043 = arith.constant 0 : index
    %2537 = vector.load %arg8[%c7_1041, %c0_1042, %c0_1043] : memref<8x8x16xf32, #tpu.memory_space<vmem>>, vector<1x8x16xf32>
    %2538 = vector.shape_cast %2537 : vector<1x8x16xf32> to vector<8x16xf32>
    %2539 = arith.addf %2538, %2480 : vector<8x16xf32>
    %2540 = math.tanh %2539 : vector<8x16xf32>
    %2541 = vector.broadcast %667 : vector<1x16xf32> to vector<8x16xf32>
    %2542 = arith.mulf %2540, %2541 : vector<8x16xf32>
    %cst_1044 = arith.constant dense<0.000000e+00> : vector<8xf32>
    %2543 = vector.multi_reduction <add>, %2542, %cst_1044 [1] : vector<8x16xf32> to vector<8xf32>
    %2544 = vector.shape_cast %2543 : vector<8xf32> to vector<8x1xf32>
    %2545 = arith.maximumf %2488, %2496 : vector<8x1xf32>
    %2546 = arith.maximumf %2545, %2504 : vector<8x1xf32>
    %2547 = arith.maximumf %2546, %2512 : vector<8x1xf32>
    %2548 = arith.maximumf %2547, %2520 : vector<8x1xf32>
    %2549 = arith.maximumf %2548, %2528 : vector<8x1xf32>
    %2550 = arith.maximumf %2549, %2536 : vector<8x1xf32>
    %2551 = arith.maximumf %2550, %2544 : vector<8x1xf32>
    %2552 = arith.subf %2488, %2551 : vector<8x1xf32>
    %2553 = math.exp %2552 : vector<8x1xf32>
    %2554 = arith.subf %2496, %2551 : vector<8x1xf32>
    %2555 = math.exp %2554 : vector<8x1xf32>
    %2556 = arith.subf %2504, %2551 : vector<8x1xf32>
    %2557 = math.exp %2556 : vector<8x1xf32>
    %2558 = arith.subf %2512, %2551 : vector<8x1xf32>
    %2559 = math.exp %2558 : vector<8x1xf32>
    %2560 = arith.subf %2520, %2551 : vector<8x1xf32>
    %2561 = math.exp %2560 : vector<8x1xf32>
    %2562 = arith.subf %2528, %2551 : vector<8x1xf32>
    %2563 = math.exp %2562 : vector<8x1xf32>
    %2564 = arith.subf %2536, %2551 : vector<8x1xf32>
    %2565 = math.exp %2564 : vector<8x1xf32>
    %2566 = arith.subf %2544, %2551 : vector<8x1xf32>
    %2567 = math.exp %2566 : vector<8x1xf32>
    %2568 = arith.addf %2553, %2555 : vector<8x1xf32>
    %2569 = arith.addf %2568, %2557 : vector<8x1xf32>
    %2570 = arith.addf %2569, %2559 : vector<8x1xf32>
    %2571 = arith.addf %2570, %2561 : vector<8x1xf32>
    %2572 = arith.addf %2571, %2563 : vector<8x1xf32>
    %2573 = arith.addf %2572, %2565 : vector<8x1xf32>
    %2574 = arith.addf %2573, %2567 : vector<8x1xf32>
    %cst_1045 = arith.constant 1.000000e+00 : f32
    %2575 = vector.broadcast %cst_1045 : f32 to vector<8x1xf32>
    %2576 = arith.divf %2575, %2574 : vector<8x1xf32>
    %cst_1046 = arith.constant 0.000000e+00 : f32
    %2577 = vector.broadcast %cst_1046 : f32 to vector<8x16xf32>
    %cst_1047 = arith.constant 0.000000e+00 : f32
    %2578 = vector.broadcast %cst_1047 : f32 to vector<8x16xf32>
    %2579 = arith.mulf %2553, %2576 : vector<8x1xf32>
    %c0_1048 = arith.constant 0 : index
    %c0_1049 = arith.constant 0 : index
    %c0_1050 = arith.constant 0 : index
    %2580 = vector.load %arg6[%c0_1048, %c0_1049, %c0_1050] : memref<8x8x16xf32, #tpu.memory_space<vmem>>, vector<1x8x16xf32>
    %2581 = vector.shape_cast %2580 : vector<1x8x16xf32> to vector<8x16xf32>
    %2582 = vector.broadcast %2579 : vector<8x1xf32> to vector<8x16xf32>
    %2583 = arith.mulf %2582, %2581 : vector<8x16xf32>
    %2584 = arith.addf %2577, %2583 : vector<8x16xf32>
    %c0_1051 = arith.constant 0 : index
    %c0_1052 = arith.constant 0 : index
    %c0_1053 = arith.constant 0 : index
    %2585 = vector.load %arg7[%c0_1051, %c0_1052, %c0_1053] : memref<8x8x16xf32, #tpu.memory_space<vmem>>, vector<1x8x16xf32>
    %2586 = vector.shape_cast %2585 : vector<1x8x16xf32> to vector<8x16xf32>
    %2587 = vector.broadcast %2579 : vector<8x1xf32> to vector<8x16xf32>
    %2588 = arith.mulf %2587, %2586 : vector<8x16xf32>
    %2589 = arith.addf %2578, %2588 : vector<8x16xf32>
    %2590 = arith.mulf %2555, %2576 : vector<8x1xf32>
    %c1_1054 = arith.constant 1 : index
    %c0_1055 = arith.constant 0 : index
    %c0_1056 = arith.constant 0 : index
    %2591 = vector.load %arg6[%c1_1054, %c0_1055, %c0_1056] : memref<8x8x16xf32, #tpu.memory_space<vmem>>, vector<1x8x16xf32>
    %2592 = vector.shape_cast %2591 : vector<1x8x16xf32> to vector<8x16xf32>
    %2593 = vector.broadcast %2590 : vector<8x1xf32> to vector<8x16xf32>
    %2594 = arith.mulf %2593, %2592 : vector<8x16xf32>
    %2595 = arith.addf %2584, %2594 : vector<8x16xf32>
    %c1_1057 = arith.constant 1 : index
    %c0_1058 = arith.constant 0 : index
    %c0_1059 = arith.constant 0 : index
    %2596 = vector.load %arg7[%c1_1057, %c0_1058, %c0_1059] : memref<8x8x16xf32, #tpu.memory_space<vmem>>, vector<1x8x16xf32>
    %2597 = vector.shape_cast %2596 : vector<1x8x16xf32> to vector<8x16xf32>
    %2598 = vector.broadcast %2590 : vector<8x1xf32> to vector<8x16xf32>
    %2599 = arith.mulf %2598, %2597 : vector<8x16xf32>
    %2600 = arith.addf %2589, %2599 : vector<8x16xf32>
    %2601 = arith.mulf %2557, %2576 : vector<8x1xf32>
    %c2_1060 = arith.constant 2 : index
    %c0_1061 = arith.constant 0 : index
    %c0_1062 = arith.constant 0 : index
    %2602 = vector.load %arg6[%c2_1060, %c0_1061, %c0_1062] : memref<8x8x16xf32, #tpu.memory_space<vmem>>, vector<1x8x16xf32>
    %2603 = vector.shape_cast %2602 : vector<1x8x16xf32> to vector<8x16xf32>
    %2604 = vector.broadcast %2601 : vector<8x1xf32> to vector<8x16xf32>
    %2605 = arith.mulf %2604, %2603 : vector<8x16xf32>
    %2606 = arith.addf %2595, %2605 : vector<8x16xf32>
    %c2_1063 = arith.constant 2 : index
    %c0_1064 = arith.constant 0 : index
    %c0_1065 = arith.constant 0 : index
    %2607 = vector.load %arg7[%c2_1063, %c0_1064, %c0_1065] : memref<8x8x16xf32, #tpu.memory_space<vmem>>, vector<1x8x16xf32>
    %2608 = vector.shape_cast %2607 : vector<1x8x16xf32> to vector<8x16xf32>
    %2609 = vector.broadcast %2601 : vector<8x1xf32> to vector<8x16xf32>
    %2610 = arith.mulf %2609, %2608 : vector<8x16xf32>
    %2611 = arith.addf %2600, %2610 : vector<8x16xf32>
    %2612 = arith.mulf %2559, %2576 : vector<8x1xf32>
    %c3_1066 = arith.constant 3 : index
    %c0_1067 = arith.constant 0 : index
    %c0_1068 = arith.constant 0 : index
    %2613 = vector.load %arg6[%c3_1066, %c0_1067, %c0_1068] : memref<8x8x16xf32, #tpu.memory_space<vmem>>, vector<1x8x16xf32>
    %2614 = vector.shape_cast %2613 : vector<1x8x16xf32> to vector<8x16xf32>
    %2615 = vector.broadcast %2612 : vector<8x1xf32> to vector<8x16xf32>
    %2616 = arith.mulf %2615, %2614 : vector<8x16xf32>
    %2617 = arith.addf %2606, %2616 : vector<8x16xf32>
    %c3_1069 = arith.constant 3 : index
    %c0_1070 = arith.constant 0 : index
    %c0_1071 = arith.constant 0 : index
    %2618 = vector.load %arg7[%c3_1069, %c0_1070, %c0_1071] : memref<8x8x16xf32, #tpu.memory_space<vmem>>, vector<1x8x16xf32>
    %2619 = vector.shape_cast %2618 : vector<1x8x16xf32> to vector<8x16xf32>
    %2620 = vector.broadcast %2612 : vector<8x1xf32> to vector<8x16xf32>
    %2621 = arith.mulf %2620, %2619 : vector<8x16xf32>
    %2622 = arith.addf %2611, %2621 : vector<8x16xf32>
    %2623 = arith.mulf %2561, %2576 : vector<8x1xf32>
    %c4_1072 = arith.constant 4 : index
    %c0_1073 = arith.constant 0 : index
    %c0_1074 = arith.constant 0 : index
    %2624 = vector.load %arg6[%c4_1072, %c0_1073, %c0_1074] : memref<8x8x16xf32, #tpu.memory_space<vmem>>, vector<1x8x16xf32>
    %2625 = vector.shape_cast %2624 : vector<1x8x16xf32> to vector<8x16xf32>
    %2626 = vector.broadcast %2623 : vector<8x1xf32> to vector<8x16xf32>
    %2627 = arith.mulf %2626, %2625 : vector<8x16xf32>
    %2628 = arith.addf %2617, %2627 : vector<8x16xf32>
    %c4_1075 = arith.constant 4 : index
    %c0_1076 = arith.constant 0 : index
    %c0_1077 = arith.constant 0 : index
    %2629 = vector.load %arg7[%c4_1075, %c0_1076, %c0_1077] : memref<8x8x16xf32, #tpu.memory_space<vmem>>, vector<1x8x16xf32>
    %2630 = vector.shape_cast %2629 : vector<1x8x16xf32> to vector<8x16xf32>
    %2631 = vector.broadcast %2623 : vector<8x1xf32> to vector<8x16xf32>
    %2632 = arith.mulf %2631, %2630 : vector<8x16xf32>
    %2633 = arith.addf %2622, %2632 : vector<8x16xf32>
    %2634 = arith.mulf %2563, %2576 : vector<8x1xf32>
    %c5_1078 = arith.constant 5 : index
    %c0_1079 = arith.constant 0 : index
    %c0_1080 = arith.constant 0 : index
    %2635 = vector.load %arg6[%c5_1078, %c0_1079, %c0_1080] : memref<8x8x16xf32, #tpu.memory_space<vmem>>, vector<1x8x16xf32>
    %2636 = vector.shape_cast %2635 : vector<1x8x16xf32> to vector<8x16xf32>
    %2637 = vector.broadcast %2634 : vector<8x1xf32> to vector<8x16xf32>
    %2638 = arith.mulf %2637, %2636 : vector<8x16xf32>
    %2639 = arith.addf %2628, %2638 : vector<8x16xf32>
    %c5_1081 = arith.constant 5 : index
    %c0_1082 = arith.constant 0 : index
    %c0_1083 = arith.constant 0 : index
    %2640 = vector.load %arg7[%c5_1081, %c0_1082, %c0_1083] : memref<8x8x16xf32, #tpu.memory_space<vmem>>, vector<1x8x16xf32>
    %2641 = vector.shape_cast %2640 : vector<1x8x16xf32> to vector<8x16xf32>
    %2642 = vector.broadcast %2634 : vector<8x1xf32> to vector<8x16xf32>
    %2643 = arith.mulf %2642, %2641 : vector<8x16xf32>
    %2644 = arith.addf %2633, %2643 : vector<8x16xf32>
    %2645 = arith.mulf %2565, %2576 : vector<8x1xf32>
    %c6_1084 = arith.constant 6 : index
    %c0_1085 = arith.constant 0 : index
    %c0_1086 = arith.constant 0 : index
    %2646 = vector.load %arg6[%c6_1084, %c0_1085, %c0_1086] : memref<8x8x16xf32, #tpu.memory_space<vmem>>, vector<1x8x16xf32>
    %2647 = vector.shape_cast %2646 : vector<1x8x16xf32> to vector<8x16xf32>
    %2648 = vector.broadcast %2645 : vector<8x1xf32> to vector<8x16xf32>
    %2649 = arith.mulf %2648, %2647 : vector<8x16xf32>
    %2650 = arith.addf %2639, %2649 : vector<8x16xf32>
    %c6_1087 = arith.constant 6 : index
    %c0_1088 = arith.constant 0 : index
    %c0_1089 = arith.constant 0 : index
    %2651 = vector.load %arg7[%c6_1087, %c0_1088, %c0_1089] : memref<8x8x16xf32, #tpu.memory_space<vmem>>, vector<1x8x16xf32>
    %2652 = vector.shape_cast %2651 : vector<1x8x16xf32> to vector<8x16xf32>
    %2653 = vector.broadcast %2645 : vector<8x1xf32> to vector<8x16xf32>
    %2654 = arith.mulf %2653, %2652 : vector<8x16xf32>
    %2655 = arith.addf %2644, %2654 : vector<8x16xf32>
    %2656 = arith.mulf %2567, %2576 : vector<8x1xf32>
    %c7_1090 = arith.constant 7 : index
    %c0_1091 = arith.constant 0 : index
    %c0_1092 = arith.constant 0 : index
    %2657 = vector.load %arg6[%c7_1090, %c0_1091, %c0_1092] : memref<8x8x16xf32, #tpu.memory_space<vmem>>, vector<1x8x16xf32>
    %2658 = vector.shape_cast %2657 : vector<1x8x16xf32> to vector<8x16xf32>
    %2659 = vector.broadcast %2656 : vector<8x1xf32> to vector<8x16xf32>
    %2660 = arith.mulf %2659, %2658 : vector<8x16xf32>
    %2661 = arith.addf %2650, %2660 : vector<8x16xf32>
    %c7_1093 = arith.constant 7 : index
    %c0_1094 = arith.constant 0 : index
    %c0_1095 = arith.constant 0 : index
    %2662 = vector.load %arg7[%c7_1093, %c0_1094, %c0_1095] : memref<8x8x16xf32, #tpu.memory_space<vmem>>, vector<1x8x16xf32>
    %2663 = vector.shape_cast %2662 : vector<1x8x16xf32> to vector<8x16xf32>
    %2664 = vector.broadcast %2656 : vector<8x1xf32> to vector<8x16xf32>
    %2665 = arith.mulf %2664, %2663 : vector<8x16xf32>
    %2666 = arith.addf %2655, %2665 : vector<8x16xf32>
    %2667 = vector.broadcast %2472 : vector<8x1xf32> to vector<8x48xf32>
    %2668 = vector.broadcast %679 : vector<1x48xf32> to vector<8x48xf32>
    %2669 = arith.mulf %2667, %2668 : vector<8x48xf32>
    %cst_1096 = arith.constant dense<0.000000e+00> : vector<8x48xf32>
    %2670 = tpu.matmul %2661, %673, %cst_1096 {dimension_numbers = #tpu.dot_dimension_numbers<[1], [0], [0], [1], [0, 0, 1, 1], [], []>} : vector<8x16xf32>, vector<16x48xf32>, vector<8x48xf32> -> vector<8x48xf32>
    %2671 = arith.addf %2669, %2670 : vector<8x48xf32>
    %cst_1097 = arith.constant dense<0.000000e+00> : vector<8x48xf32>
    %2672 = tpu.matmul %2666, %675, %cst_1097 {dimension_numbers = #tpu.dot_dimension_numbers<[1], [0], [0], [1], [0, 0, 1, 1], [], []>} : vector<8x16xf32>, vector<16x48xf32>, vector<8x48xf32> -> vector<8x48xf32>
    %2673 = arith.addf %2671, %2672 : vector<8x48xf32>
    %2674 = vector.broadcast %681 : vector<1x48xf32> to vector<8x48xf32>
    %2675 = arith.addf %2673, %2674 : vector<8x48xf32>
    %cst_1098 = arith.constant dense<0.000000e+00> : vector<8x48xf32>
    %2676 = tpu.matmul %2466, %677, %cst_1098 {dimension_numbers = #tpu.dot_dimension_numbers<[1], [0], [0], [1], [0, 0, 1, 1], [], []>} : vector<8x16xf32>, vector<16x48xf32>, vector<8x48xf32> -> vector<8x48xf32>
    %2677 = vector.broadcast %683 : vector<1x48xf32> to vector<8x48xf32>
    %2678 = arith.addf %2676, %2677 : vector<8x48xf32>
    %2679 = vector.extract_strided_slice %2675 {offsets = [0, 0], sizes = [8, 16], strides = [1, 1]} : vector<8x48xf32> to vector<8x16xf32>
    %2680 = vector.extract_strided_slice %2678 {offsets = [0, 0], sizes = [8, 16], strides = [1, 1]} : vector<8x48xf32> to vector<8x16xf32>
    %2681 = arith.addf %2679, %2680 : vector<8x16xf32>
    %cst_1099 = arith.constant 0.000000e+00 : f32
    %2682 = vector.broadcast %cst_1099 : f32 to vector<8x16xf32>
    %2683 = arith.subf %2682, %2681 : vector<8x16xf32>
    %2684 = math.exp %2683 : vector<8x16xf32>
    %cst_1100 = arith.constant 1.000000e+00 : f32
    %2685 = vector.broadcast %cst_1100 : f32 to vector<8x16xf32>
    %2686 = arith.addf %2685, %2684 : vector<8x16xf32>
    %cst_1101 = arith.constant 1.000000e+00 : f32
    %2687 = vector.broadcast %cst_1101 : f32 to vector<8x16xf32>
    %2688 = arith.divf %2687, %2686 : vector<8x16xf32>
    %2689 = vector.extract_strided_slice %2675 {offsets = [0, 16], sizes = [8, 16], strides = [1, 1]} : vector<8x48xf32> to vector<8x16xf32>
    %2690 = vector.extract_strided_slice %2678 {offsets = [0, 16], sizes = [8, 16], strides = [1, 1]} : vector<8x48xf32> to vector<8x16xf32>
    %2691 = arith.addf %2689, %2690 : vector<8x16xf32>
    %cst_1102 = arith.constant 0.000000e+00 : f32
    %2692 = vector.broadcast %cst_1102 : f32 to vector<8x16xf32>
    %2693 = arith.subf %2692, %2691 : vector<8x16xf32>
    %2694 = math.exp %2693 : vector<8x16xf32>
    %cst_1103 = arith.constant 1.000000e+00 : f32
    %2695 = vector.broadcast %cst_1103 : f32 to vector<8x16xf32>
    %2696 = arith.addf %2695, %2694 : vector<8x16xf32>
    %cst_1104 = arith.constant 1.000000e+00 : f32
    %2697 = vector.broadcast %cst_1104 : f32 to vector<8x16xf32>
    %2698 = arith.divf %2697, %2696 : vector<8x16xf32>
    %2699 = vector.extract_strided_slice %2675 {offsets = [0, 32], sizes = [8, 16], strides = [1, 1]} : vector<8x48xf32> to vector<8x16xf32>
    %2700 = vector.extract_strided_slice %2678 {offsets = [0, 32], sizes = [8, 16], strides = [1, 1]} : vector<8x48xf32> to vector<8x16xf32>
    %2701 = arith.mulf %2688, %2700 : vector<8x16xf32>
    %2702 = arith.addf %2699, %2701 : vector<8x16xf32>
    %2703 = math.tanh %2702 : vector<8x16xf32>
    %cst_1105 = arith.constant 1.000000e+00 : f32
    %2704 = vector.broadcast %cst_1105 : f32 to vector<8x16xf32>
    %2705 = arith.subf %2704, %2698 : vector<8x16xf32>
    %2706 = arith.mulf %2705, %2703 : vector<8x16xf32>
    %2707 = arith.mulf %2698, %2466 : vector<8x16xf32>
    %2708 = arith.addf %2706, %2707 : vector<8x16xf32>
    %2709 = vector.broadcast %669 : vector<1x16xf32> to vector<8x16xf32>
    %2710 = arith.mulf %2708, %2709 : vector<8x16xf32>
    %cst_1106 = arith.constant dense<0.000000e+00> : vector<8xf32>
    %2711 = vector.multi_reduction <add>, %2710, %cst_1106 [1] : vector<8x16xf32> to vector<8xf32>
    %2712 = vector.shape_cast %2711 : vector<8xf32> to vector<8x1xf32>
    %2713 = vector.broadcast %671 : vector<1x1xf32> to vector<8x1xf32>
    %2714 = arith.addf %2712, %2713 : vector<8x1xf32>
    %2715 = vector.extract_strided_slice %684 {offsets = [7, 0], sizes = [1, 8], strides = [1, 1]} : vector<8x8xf32> to vector<1x8xf32>
    %2716 = vector.broadcast %2714 : vector<8x1xf32> to vector<8x8xf32>
    %2717 = vector.broadcast %2715 : vector<1x8xf32> to vector<8x8xf32>
    %2718 = arith.mulf %2716, %2717 : vector<8x8xf32>
    %2719 = arith.addf %2477, %2718 : vector<8x8xf32>
    %c0_1107 = arith.constant 0 : index
    %c0_1108 = arith.constant 0 : index
    %c0_1109 = arith.constant 0 : index
    %2720 = vector.load %arg5[%c0_1107, %c0_1108, %c0_1109] : memref<1x8x8xf32, #tpu.memory_space<vmem>>, vector<1x8x8xf32>
    %2721 = vector.shape_cast %2720 : vector<1x8x8xf32> to vector<8x8xf32>
    %2722 = vector.shape_cast %2719 : vector<8x8xf32> to vector<1x8x8xf32>
    tpu.vector_store %arg5[%c0_1107, %c0_1108, %c0_1109], %2722 {strides = array<i32>} : memref<1x8x8xf32, #tpu.memory_space<vmem>>, vector<1x8x8xf32>,
    return
  }
  func.func @transform_0(%arg0: i32) -> (i32, i32, i32, i32) {
    %c0_i32 = arith.constant 0 : i32
    %c0_i32_0 = arith.constant 0 : i32
    %c0_i32_1 = arith.constant 0 : i32
    %c0_i32_2 = arith.constant 0 : i32
    return %arg0, %c0_i32, %c0_i32_0, %c0_i32_1 : i32, i32, i32, i32
  }
  func.func @transform_1(%arg0: i32) -> (i32, i32, i32) {
    %c0_i32 = arith.constant 0 : i32
    %c0_i32_0 = arith.constant 0 : i32
    %c0_i32_1 = arith.constant 0 : i32
    return %arg0, %c0_i32, %c0_i32_0 : i32, i32, i32
  }
  func.func @transform_2(%arg0: i32) -> (i32, i32, i32) {
    %c0_i32 = arith.constant 0 : i32
    %c0_i32_0 = arith.constant 0 : i32
    %c0_i32_1 = arith.constant 0 : i32
    return %arg0, %c0_i32, %c0_i32_0 : i32, i32, i32
  }
  func.func @transform_3(%arg0: i32) -> (i32, i32) {
    %c0_i32 = arith.constant 0 : i32
    %c0_i32_0 = arith.constant 0 : i32
    return %arg0, %c0_i32 : i32, i32
  }
  func.func @transform_4(%arg0: i32) -> (i32, i32, i32) {
    %c0_i32 = arith.constant 0 : i32
    %c0_i32_0 = arith.constant 0 : i32
    %c0_i32_1 = arith.constant 0 : i32
    return %arg0, %c0_i32, %c0_i32_0 : i32, i32, i32
  }
}

</mosaic_0001>

<bundles_post_ra>
// kernel: seq2graph_forward.1
= control target key start
LH: loop header
LB: loop body
LE: loop exit
PB: predicated region body
PF: predicated region fallthrough
CT: control target
= control target key end

     0   :  { %s9163_s15 = smov 0   ;;  %s10504_s0 = inlined_call_operand.vmem [shape: f32[2,8,8,8], index: 0, kind: input, shape index: {}]   ;;  %s10505_s1 = inlined_call_operand.vmem [shape: f32[2,112,48], index: 1, kind: input, shape index: {}]   ;;  %s10506_s2 = inlined_call_operand.vmem [shape: f32[2,40,16], index: 2, kind: input, shape index: {}]   ;;  %s10507_s3 = inlined_call_operand.vmem [shape: f32[16,8], index: 3, kind: input, shape index: {}]   ;;  %s10508_s4 = inlined_call_operand.vmem [shape: f32[2,8,8], index: 4, kind: output, shape index: {}]  }
   0x1 LB: > { %s7672_s16 = sadd.s32 4294967295, %s9127_s15   ;;  %p7676_p0 = scmp.ge.s32.totalorder %s9127_s15, 1  ;;  %s9127_s15 = sphi %s9163_s15, %s14_s15  }
   0x2   : > { %p191_p1 = scmp.lt.s32.totalorder %s9127_s15, 3 }
   0x4   : > { %p192_p2 = pnand %p7676_p0, %p191_p1 }
   0x5   : > { %p230_p3 = scmp.lt.s32.totalorder (!%p192_p2), %s7672_s16, 1  ;;  %v9129_v0 = vmov (!%p192_p2), 0.0   ;;  %vm9130_vm0 = vmmov (!%p192_p2), 0   ;;  %vm268_vm1 = vcmask (!%p192_p2), 64512   ;;  %v9131_v17 = vmov (!%p192_p2), 0.0|0.0   ;;  %s9133_s25 = smov (!%p192_p2), 96  }
   0x6   : > { %195 = sbr.rel (%p192_p2) target bundleno = 15510 (0x3c96), region = 36  ;;  %7977 = vmatprep.subr.mxu0 (!%p192_p2), %v9129_v0  ;;  %7982 = vmatprep.subr.mxu1 (!%p192_p2), %v9129_v0  ;;  %vm1435_vm2 = vcmask (!%p192_p2), 130048   ;;  %v9132_v18 = vmov (!%p192_p2), 0.001   ;;  %s9134_s26 = smov (!%p192_p2), 32  }
   0x7   : > { %7979 = vmatprep.mubr.msk.f32.mxu0 (!%p192_p2), %vm9130_vm0, %v9129_v0  ;;  %7984 = vmatprep.mubr.msk.f32.mxu1 (!%p192_p2), %vm9130_vm0, %v9129_v0  ;;  %s9135_s27 = smov (!%p192_p2), 112   ;;  %s9136_s6 = smov (!%p192_p2), 16  }
   0xd   : > { %s10510_s16 = smov (!%p230_p3, %s7672_s16), 1 }
   0xe   : > { %s8617_s17 = smul.u32 112, %s10510_s16  ;;  %s7776_s18 = sshll.u32 %s10510_s16, 6 }
   0xf   : > { %s9184_s21 = scalar_lea.vmem %s10504_s0, %s7776_s18  ;;  %s8618_s28 = smul.u32 40, %s10510_s16 }
  0x10   : > { %s9189_s24 = scalar_lea.vmem %s10505_s1, %s8617_s17  ;;  %v263_v1 = vld [vmem:[%s9184_s21] sm:$0xff]  ;;  %v7687_v4 = vld [vmem:[%s9184_s21 + $0x8] sm:$0xff]  ;;  %v7690_v5 = vld [vmem:[%s9184_s21 + $0x10] sm:$0xff]  ;;  %s7681_s7 = sshll.u32 %s10510_s16, 3 }
  0x11   : > { %v9193_v2 = vld [vmem:[%s9189_s24] sm:$0xff]  ;;  %v9196_v3 = vld [vmem:[%s9189_s24 + $0x18] sm:$0xff]  ;;  %v7699_v8 = vld [vmem:[%s9184_s21 + $0x28] sm:$0xff]  ;;  %s9521_s5 = scalar_lea.vmem %s10506_s2, %s8618_s28  ;;  %s248_s10 = scalar_lea.vmem %s10507_s3, %s7681_s7 }
  0x12   : > { %7978 = vmatpush3.msra.mxu0 %v9193_v2  ;;  %7983 = vmatpush3.msra.mxu1 %v9196_v3  ;;  %v7693_v6 = vld [vmem:[%s9184_s21 + $0x18] sm:$0xff]  ;;  %v7696_v7 = vld [vmem:[%s9184_s21 + $0x20] sm:$0xff]  ;;  %v7702_v9 = vld [vmem:[%s9184_s21 + $0x30] sm:$0xff]  ;;  %s252_s13 = scalar_lea.vmem %s10508_s4, %s7681_s7 }
  0x13   : > { %7980 = vmatmul.mubr.msk.f32.vlgmr.msra.gmra.mrb[0].mxu0 %vm268_vm1, %v263_v1  ;;  %7985 = vmatmul.mubr.msk.f32.vlgmr.msra.gmra.mrb[0].mxu1 %vm268_vm1, %v263_v1  ;;  %v254_v10 = vld [vmem:[%s9189_s24 + $0x8] sm:$0xff]  ;;  %v255_v11 = vld [vmem:[%s9189_s24 + $0x10] sm:$0xff]  ;;  %v257_v12 = vld [vmem:[%s9189_s24 + $0x20] sm:$0xff] }
  0x14   : > { %7992 = vmatprep.subr.mxu1 %v9129_v0  ;;  %7987 = vmatprep.subr.mxu0 %v9129_v0  ;;  %v258_v13 = vld [vmem:[%s9189_s24 + $0x28] sm:$0xff]  ;;  %v7705_v14 = vld [vmem:[%s9184_s21 + $0x38] sm:$0xff]  ;;  %v9277_v15 = vpack.c.bf16 %v255_v11, %v254_v10  ;;  %v7685_v19 = vld [vmem:[%s9189_s24 + $0x32] ss:$0 sm:$0xff] }
  0x15   : > { %7993 = vmatpush3.msra.mxu1 %v9196_v3  ;;  %7988 = vmatpush3.msra.mxu0 %v9193_v2  ;;  %v9279_v16 = vpack.c.bf16 %v258_v13, %v257_v12  ;;  %v7683_v26 = vld [vmem:[%s9189_s24 + $0x30] ss:$0 sm:$0xff]  ;;  %v9344_v10 = vld [vmem:[%s9189_s24 + $0x31] ss:$0 sm:$0xff] }
  0x16   : > { %7989 = vmatprep.mubr.msk.f32.mxu0 %vm9130_vm0, %v9129_v0  ;;  %7994 = vmatprep.mubr.msk.f32.mxu1 %vm9130_vm0, %v9129_v0 }
  0x17   : > { %7990 = vmatmul.mubr.msk.f32.vlgmr.msra.gmra.mrb[2].mxu0 %vm268_vm1, %v7687_v4  ;;  %7995 = vmatmul.mubr.msk.f32.vlgmr.msra.gmra.mrb[2].mxu1 %vm268_vm1, %v7687_v4  ;;  %v9340_v4 = vld [vmem:[%s9189_s24 + $0x33] ss:$0 sm:$0xff] }
  0x18   : > { %8002 = vmatprep.subr.mxu1 %v9129_v0  ;;  %7997 = vmatprep.subr.mxu0 %v9129_v0 }
  0x19   : > { %8003 = vmatpush3.msra.mxu1 %v9196_v3  ;;  %7998 = vmatpush3.msra.mxu0 %v9193_v2 }
  0x1a   : > { %7999 = vmatprep.mubr.msk.f32.mxu0 %vm9130_vm0, %v9129_v0  ;;  %8004 = vmatprep.mubr.msk.f32.mxu1 %vm9130_vm0, %v9129_v0 }
  0x1b   : > { %8000 = vmatmul.mubr.msk.f32.vlgmr.msra.gmra.mrb[4].mxu0 %vm268_vm1, %v7690_v5  ;;  %8005 = vmatmul.mubr.msk.f32.vlgmr.msra.gmra.mrb[4].mxu1 %vm268_vm1, %v7690_v5 }
  0x1c   : > { %8012 = vmatprep.subr.mxu1 %v9129_v0  ;;  %8007 = vmatprep.subr.mxu0 %v9129_v0 }
  0x1d   : > { %8013 = vmatpush3.msra.mxu1 %v9196_v3  ;;  %8008 = vmatpush3.msra.mxu0 %v9193_v2 }
  0x1e   : > { %8009 = vmatprep.mubr.msk.f32.mxu0 %vm9130_vm0, %v9129_v0  ;;  %8014 = vmatprep.mubr.msk.f32.mxu1 %vm9130_vm0, %v9129_v0 }
  0x1f   : > { %8010 = vmatmul.mubr.msk.f32.vlgmr.msra.gmra.mrb[6].mxu0 %vm268_vm1, %v7693_v6  ;;  %8015 = vmatmul.mubr.msk.f32.vlgmr.msra.gmra.mrb[6].mxu1 %vm268_vm1, %v7693_v6 }
  0x20   : > { %8022 = vmatprep.subr.mxu1 %v9129_v0  ;;  %8017 = vmatprep.subr.mxu0 %v9129_v0 }
  0x21   : > { %8023 = vmatpush3.msra.mxu1 %v9196_v3  ;;  %8018 = vmatpush3.msra.mxu0 %v9193_v2 }
  0x22   : > { %8019 = vmatprep.mubr.msk.f32.mxu0 %vm9130_vm0, %v9129_v0  ;;  %8024 = vmatprep.mubr.msk.f32.mxu1 %vm9130_vm0, %v9129_v0 }
  0x23   : > { %8020 = vmatmul.mubr.msk.f32.vlgmr.msra.gmra.mrb[8].mxu0 %vm268_vm1, %v7696_v7  ;;  %8025 = vmatmul.mubr.msk.f32.vlgmr.msra.gmra.mrb[8].mxu1 %vm268_vm1, %v7696_v7 }
  0x24   : > { %8032 = vmatprep.subr.mxu1 %v9129_v0  ;;  %8027 = vmatprep.subr.mxu0 %v9129_v0 }
  0x25   : > { %8033 = vmatpush3.msra.mxu1 %v9196_v3  ;;  %8028 = vmatpush3.msra.mxu0 %v9193_v2 }
  0x26   : > { %8029 = vmatprep.mubr.msk.f32.mxu0 %vm9130_vm0, %v9129_v0  ;;  %8034 = vmatprep.mubr.msk.f32.mxu1 %vm9130_vm0, %v9129_v0 }
  0x27   : > { %8030 = vmatmul.mubr.msk.f32.vlgmr.msra.gmra.mrb[10].mxu0 %vm268_vm1, %v7699_v8  ;;  %8035 = vmatmul.mubr.msk.f32.vlgmr.msra.gmra.mrb[10].mxu1 %vm268_vm1, %v7699_v8 }
  0x28   : > { %8042 = vmatprep.subr.mxu1 %v9129_v0  ;;  %8037 = vmatprep.subr.mxu0 %v9129_v0 }
  0x29   : > { %8043 = vmatpush3.msra.mxu1 %v9196_v3  ;;  %8038 = vmatpush3.msra.mxu0 %v9193_v2 }
  0x2a   : > { %8039 = vmatprep.mubr.msk.f32.mxu0 %vm9130_vm0, %v9129_v0  ;;  %8044 = vmatprep.mubr.msk.f32.mxu1 %vm9130_vm0, %v9129_v0 }
  0x2b   : > { %8040 = vmatmul.mubr.msk.f32.vlgmr.msra.gmra.mrb[12].mxu0 %vm268_vm1, %v7702_v9  ;;  %8045 = vmatmul.mubr.msk.f32.vlgmr.msra.gmra.mrb[12].mxu1 %vm268_vm1, %v7702_v9 }
  0x2c   : > { %8052 = vmatprep.subr.mxu1 %v9129_v0  ;;  %8047 = vmatprep.subr.mxu0 %v9129_v0 }
  0x2d   : > { %8053 = vmatpush3.msra.mxu1 %v9196_v3  ;;  %8048 = vmatpush3.msra.mxu0 %v9193_v2 }
  0x2e   : > { %8049 = vmatprep.mubr.msk.f32.mxu0 %vm9130_vm0, %v9129_v0  ;;  %8054 = vmatprep.mubr.msk.f32.mxu1 %vm9130_vm0, %v9129_v0 }
  0x2f   : > { %8050 = vmatmul.mubr.msk.f32.vlgmr.msra.gmra.mrb[14].mxu0 %vm268_vm1, %v7705_v14  ;;  %8055 = vmatmul.mubr.msk.f32.vlgmr.msra.gmra.mrb[14].mxu1 %vm268_vm1, %v7705_v14 }
  0x30   : > { %8449 = vmatprep.subr.bf16.mxu0 %v9131_v17  ;;  %8452 = vmatprep.subr.bf16.mxu1 %v9131_v17 }
  0x31   : > { %8451 = vmatpush3.bf16.msra.mxu0 %v9277_v15  ;;  %8454 = vmatpush3.bf16.msra.mxu1 %v9279_v16 }
  0x32   : > { %8061 = vmatprep.mubr.msk.f32.mxu0 %vm9130_vm0, %v9129_v0  ;;  %8068 = vmatprep.mubr.msk.f32.mxu1 %vm9130_vm0, %v9129_v0 }
  0x33   : > { %8458 = vmatprep.subr.bf16.mxu1 %v9131_v17  ;;  %8455 = vmatprep.subr.bf16.mxu0 %v9131_v17 }
  0x34   : > { %8062 = vmatmul.mubr.msk.f32.vlgmr.msra.gmra.mrb[16].mxu0 %vm1435_vm2, %v9132_v18  ;;  %8069 = vmatmul.mubr.msk.f32.vlgmr.msra.gmra.mrb[16].mxu1 %vm1435_vm2, %v9132_v18 }
  0x35   : > { %8460 = vmatpush3.bf16.msra.mxu1 %v9279_v16  ;;  %8082 = vmatprep.mubr.msk.f32.mxu1 %vm9130_vm0, %v9129_v0 }
  0x36   : > { %8457 = vmatpush3.bf16.msra.mxu0 %v9277_v15  ;;  %8075 = vmatprep.mubr.msk.f32.mxu0 %vm9130_vm0, %v9129_v0 }
  0x37   : > { %8464 = vmatprep.subr.bf16.mxu1 %v9131_v17  ;;  %8461 = vmatprep.subr.bf16.mxu0 %v9131_v17 }
  0xe6   : > { %v412_v20 = vpop.f32.mrb[0].mxu1  ;;  %v338_v21 = vpop.f32.mrb[0].mxu0 }
  0xe7   : > { %v9310_v22 = vadd.f32 %v7685_v19, %v412_v20  ;;  %v7986_v23 = vpop.f32.mrb[1].mxu1  ;;  %v7981_v24 = vpop.f32.mrb[1].mxu0  ;;  %v339_v14 = vadd.f32 %v7683_v26, %v338_v21 }
  0xea   : > { %v557_v25 = vpop.f32.mrb[2].mxu1  ;;  %v487_v27 = vpop.f32.mrb[2].mxu0 }
  0xeb   : > { %v9313_v28 = vadd.f32 %v7685_v19, %v557_v25  ;;  %v7996_v29 = vpop.f32.mrb[3].mxu1  ;;  %v9315_v30 = vadd.f32 %v7683_v26, %v487_v27  ;;  %v7991_v31 = vpop.f32.mrb[3].mxu0 }
  0xee   : > { %v702_v32 = vpop.f32.mrb[4].mxu1  ;;  %v632_v33 = vpop.f32.mrb[4].mxu0 }
  0xef   : > { %v9317_v34 = vadd.f32 %v7685_v19, %v702_v32  ;;  %v8006_v35 = vpop.f32.mrb[5].mxu1  ;;  %v9319_v36 = vadd.f32 %v7683_v26, %v632_v33  ;;  %v8001_v37 = vpop.f32.mrb[5].mxu0 }
  0xf2   : > { %v847_v38 = vpop.f32.mrb[6].mxu1  ;;  %v777_v39 = vpop.f32.mrb[6].mxu0 }
  0xf3   : > { %v9321_v40 = vadd.f32 %v7685_v19, %v847_v38  ;;  %v8016_v41 = vpop.f32.mrb[7].mxu1  ;;  %v9323_v42 = vadd.f32 %v7683_v26, %v777_v39  ;;  %v8011_v43 = vpop.f32.mrb[7].mxu0 }
  0xf6   : > { %v992_v44 = vpop.f32.mrb[8].mxu1  ;;  %v922_v45 = vpop.f32.mrb[8].mxu0 }
  0xf7   : > { %v9325_v46 = vadd.f32 %v7685_v19, %v992_v44  ;;  %v8026_v47 = vpop.f32.mrb[9].mxu1  ;;  %v9327_v48 = vadd.f32 %v7683_v26, %v922_v45  ;;  %v8021_v49 = vpop.f32.mrb[9].mxu0 }
  0xfa   : > { %v1137_v50 = vpop.f32.mrb[10].mxu1  ;;  %v1067_v51 = vpop.f32.mrb[10].mxu0 }
  0xfb   : > { %v9329_v52 = vadd.f32 %v7685_v19, %v1137_v50  ;;  %v8036_v53 = vpop.f32.mrb[11].mxu1  ;;  %v9331_v54 = vadd.f32 %v7683_v26, %v1067_v51  ;;  %v8031_v55 = vpop.f32.mrb[11].mxu0 }
  0xfe   : > { %v1282_v56 = vpop.f32.mrb[12].mxu1  ;;  %v1212_v57 = vpop.f32.mrb[12].mxu0 }
  0xff   : > { %v9333_v58 = vadd.f32 %v7685_v19, %v1282_v56  ;;  %v8046_v59 = vpop.f32.mrb[13].mxu1  ;;  %v9335_v60 = vadd.f32 %v7683_v26, %v1212_v57  ;;  %v8041_v61 = vpop.f32.mrb[13].mxu0 }
 0x102   : > { %v1427_v62 = vpop.f32.mrb[14].mxu1  ;;  %v1357_v63 = vpop.f32.mrb[14].mxu0 }
 0x103   : > { %v8056_v1 = vpop.f32.mrb[15].mxu1  ;;  %v9337_v2 = vadd.f32 %v7683_v26, %v1357_v63  ;;  %v8051_v3 = vpop.f32.mrb[15].mxu0  ;;  %v1428_v12 = vadd.f32 %v7685_v19, %v1427_v62 }
 0x107   : > { %v1505_v5 = vpop.f32.mrb[16].mxu0  ;;  %v1579_v6 = vpop.f32.mrb[16].mxu1 }
 0x108   : > { %v1580_v7 = vadd.f32 %v9340_v4, %v1579_v6  ;;  %v8070_v8 = vpop.f32.mrb[17].mxu1  ;;  %v8063_v9 = vpop.f32.mrb[17].mxu0  ;;  %v1506_v11 = vadd.f32 %v9344_v10, %v1505_v5 }
 0x10a   : > { %1617 = vrot.lane.b32.xlu0 %v1580_v7, %s9133_s25  ;;  %v1609_v13 = vadd.f32 %v1580_v7, %v1428_v12  ;;  %v1583_v20 = vadd.f32 %v1506_v11, %v339_v14 }
 0x10c   : > { %v1610_v23 = vsub.f32 0.0, %v1609_v13  ;;  %v1584_v24 = vsub.f32 0.0, %v1583_v20 }
 0x10e   : > { %1591 = vrot.lane.b32.xlu0 %v1506_v11, %s9133_s25  ;;  %v1611_v25 = vmul.f32 1.442695, %v1610_v23  ;;  %v1585_v27 = vmul.f32 1.442695, %v1584_v24 }
 0x110   : > { %8638 = vpow2.f32 %v1611_v25 }
 0x111   : > { %8640 = vpow2.f32 %v1585_v27 }
 0x11a   : > { %v8639_v29 = vpop.eup %8638 }
 0x11b   : > { %v1613_v31 = vadd.f32 1.0, %v8639_v29  ;;  %v8641_v32 = vpop.eup %8640 }
 0x11c   : > { %v1587_v33 = vadd.f32 1.0, %v8641_v32 }
 0x11d   : > { %8642 = vrcp.f32 %v1613_v31 }
 0x11e   : > { %8644 = vrcp.f32 %v1587_v33 }
 0x127   : > { %v8643_v35 = vpop.eup %8642 }
 0x128   : > { %v8645_v19 = vpop.eup %8644  ;;  %v1627_v49 = vsub.f32 1.0, %v8643_v35  ;;  %v1633_v51 = vmul.f32 0.001, %v8643_v35 }
 0x129   : > { %v1601_v56 = vsub.f32 1.0, %v8645_v19  ;;  %v1607_v59 = vmul.f32 0.001, %v8645_v19 }
 0x17c   : > { %v1618_v37 = vpop.permute.xlu0 %1617 }
 0x17d   : > { %v1620_v38 = vmul.f32 %v8643_v35, %v1618_v37 }
 0x17f   : > { %1622 = vrot.lane.b32.xlu1 %v1620_v38, %s9134_s26 }
 0x180   : > { %v1592_v21 = vpop.permute.xlu0 %1591 }
 0x181   : > { %v1594_v26 = vmul.f32 %v8645_v19, %v1592_v21 }
 0x183   : > { %1596 = vrot.lane.b32.xlu1 %v1594_v26, %s9134_s26 }
 0x1f1   : > { %v1623_v39 = vpop.permute.xlu1 %1622 }
 0x1f2   : > { %v1625_v41 = vadd.f32 %v1623_v39, %v1428_v12 }
 0x1f4   : > { %8646 = vtanh.f32 %v1625_v41 }
 0x1f5   : > { %v1597_v43 = vpop.permute.xlu1 %1596 }
 0x1f6   : > { %v1599_v44 = vadd.f32 %v1597_v43, %v339_v14 }
 0x1f8   : > { %8648 = vtanh.f32 %v1599_v44 }
 0x1fe   : > { %v8647_v45 = vpop.eup %8646 }
 0x1ff   : > { %1629 = vrot.lane.b32.xlu0 %v8647_v45, %s9135_s27 }
 0x202   : > { %v8649_v47 = vpop.eup %8648 }
 0x203   : > { %1603 = vrot.lane.b32.xlu1 %v8649_v47, %s9135_s27 }
 0x271   : > { %v1630_v50 = vpop.permute.xlu0 %1629 }
 0x272   : > { %v1632_v53 = vmul.f32 %v1630_v50, %v1627_v49 }
 0x274   : > { %v1634_v55 = vadd.f32 %v1633_v51, %v1632_v53 }
 0x275   : > { %v1604_v57 = vpop.permute.xlu1 %1603 }
 0x276   : > { %v1606_v61 = vmul.f32 %v1604_v57, %v1601_v56  ;;  %1641 = vrot.lane.b32.xlu0 %v1634_v55, %s9135_s27 }
 0x278   : > { %v1608_v62 = vadd.f32 %v1607_v59, %v1606_v61 }
 0x27a   : > { %1636 = vrot.lane.b32.xlu1 %v1608_v62, %s9135_s27 }
 0x2e8   : > { %v1642_v63 = vpop.permute.xlu0 %1641 }
 0x2e9   : > { %1645 = vst.msk [vmem:[#allocation3 + $0x38] sm:$0xff] %vm1435_vm2, %v1642_v63  ;;  %8083 = vmatmul.mubr.msk.f32.vlgmr.msra.gmra.mrb[18].mxu1 %vm1435_vm2, %v1642_v63 }
 0x2ea   : > { %8466 = vmatpush3.bf16.msra.mxu1 %v9279_v16  ;;  %8096 = vmatprep.mubr.msk.f32.mxu1 %vm9130_vm0, %v9129_v0 }
 0x2eb   : > { %8470 = vmatprep.subr.bf16.mxu1 %v9131_v17 }
 0x2ec   : > { %v1637_v1 = vpop.permute.xlu1 %1636 }
 0x2ed   : > { %1639 = vst.msk [vmem:[#allocation2] sm:$0xff] %vm1435_vm2, %v1637_v1  ;;  %8076 = vmatmul.mubr.msk.f32.vlgmr.msra.gmra.mrb[18].mxu0 %vm1435_vm2, %v1637_v1 }
 0x2ee   : > { %8463 = vmatpush3.bf16.msra.mxu0 %v9277_v15  ;;  %8089 = vmatprep.mubr.msk.f32.mxu0 %vm9130_vm0, %v9129_v0 }
 0x2ef   : > { %8467 = vmatprep.subr.bf16.mxu0 %v9131_v17 }
 0x3bc   : > { %v1786_v3 = vpop.f32.mrb[18].mxu1 }
 0x3bd   : > { %v1787_v5 = vadd.f32 %v9340_v4, %v1786_v3  ;;  %v8084_v6 = vpop.f32.mrb[19].mxu1 }
 0x3bf   : > { %1824 = vrot.lane.b32.xlu0 %v1787_v5, %s9133_s25  ;;  %v1816_v11 = vadd.f32 %v1787_v5, %v9333_v58 }
 0x3c0   : > { %v1714_v7 = vpop.f32.mrb[18].mxu0 }
 0x3c1   : > { %v1715_v8 = vadd.f32 %v9344_v10, %v1714_v7  ;;  %v8077_v9 = vpop.f32.mrb[19].mxu0  ;;  %v1817_v12 = vsub.f32 0.0, %v1816_v11 }
 0x3c3   : > { %1798 = vrot.lane.b32.xlu1 %v1715_v8, %s9133_s25  ;;  %v1790_v13 = vadd.f32 %v1715_v8, %v9315_v30  ;;  %v1818_v14 = vmul.f32 1.442695, %v1817_v12 }
 0x3c5   : > { %v1791_v20 = vsub.f32 0.0, %v1790_v13  ;;  %8650 = vpow2.f32 %v1818_v14 }
 0x3c7   : > { %v1792_v23 = vmul.f32 1.442695, %v1791_v20 }
 0x3c9   : > { %8652 = vpow2.f32 %v1792_v23 }
 0x3cf   : > { %v8651_v24 = vpop.eup %8650 }
 0x3d0   : > { %v1820_v25 = vadd.f32 1.0, %v8651_v24 }
 0x3d2   : > { %8654 = vrcp.f32 %v1820_v25 }
 0x3d3   : > { %v8653_v27 = vpop.eup %8652 }
 0x3d4   : > { %v1794_v29 = vadd.f32 1.0, %v8653_v27 }
 0x3d6   : > { %8656 = vrcp.f32 %v1794_v29 }
 0x3dc   : > { %v8655_v31 = vpop.eup %8654 }
 0x3dd   : > { %v1834_v44 = vsub.f32 1.0, %v8655_v31  ;;  %v1840_v47 = vmul.f32 %v8655_v31, %v1634_v55 }
 0x3e0   : > { %v8657_v35 = vpop.eup %8656 }
 0x3e1   : > { %v1808_v51 = vsub.f32 1.0, %v8657_v35  ;;  %v1814_v56 = vmul.f32 %v8657_v35, %v1608_v62 }
 0x431   : > { %v1825_v32 = vpop.permute.xlu0 %1824 }
 0x432   : > { %v1827_v33 = vmul.f32 %v8655_v31, %v1825_v32 }
 0x434   : > { %1829 = vrot.lane.b32.xlu0 %v1827_v33, %s9134_s26 }
 0x435   : > { %v1799_v37 = vpop.permute.xlu1 %1798 }
 0x436   : > { %v1801_v38 = vmul.f32 %v8657_v35, %v1799_v37 }
 0x438   : > { %1803 = vrot.lane.b32.xlu1 %v1801_v38, %s9134_s26 }
 0x4a6   : > { %v1830_v19 = vpop.permute.xlu0 %1829 }
 0x4a7   : > { %v1832_v21 = vadd.f32 %v1830_v19, %v9333_v58 }
 0x4a9   : > { %8658 = vtanh.f32 %v1832_v21 }
 0x4aa   : > { %v1804_v26 = vpop.permute.xlu1 %1803 }
 0x4ab   : > { %v1806_v39 = vadd.f32 %v1804_v26, %v9315_v30 }
 0x4ad   : > { %8660 = vtanh.f32 %v1806_v39 }
 0x4b3   : > { %v8659_v41 = vpop.eup %8658 }
 0x4b4   : > { %1836 = vrot.lane.b32.xlu0 %v8659_v41, %s9135_s27 }
 0x4b7   : > { %v8661_v43 = vpop.eup %8660 }
 0x4b8   : > { %1810 = vrot.lane.b32.xlu1 %v8661_v43, %s9135_s27 }
 0x526   : > { %v1837_v45 = vpop.permute.xlu0 %1836 }
 0x527   : > { %v1839_v49 = vmul.f32 %v1837_v45, %v1834_v44 }
 0x529   : > { %v1841_v50 = vadd.f32 %v1840_v47, %v1839_v49 }
 0x52a   : > { %v1811_v53 = vpop.permute.xlu1 %1810 }
 0x52b   : > { %v1813_v58 = vmul.f32 %v1811_v53, %v1808_v51  ;;  %1849 = vrot.lane.b32.xlu0 %v1841_v50, %s9135_s27 }
 0x52d   : > { %v1815_v57 = vadd.f32 %v1814_v56, %v1813_v58 }
 0x52f   : > { %1843 = vrot.lane.b32.xlu1 %v1815_v57, %s9135_s27 }
 0x59d   : > { %v1850_v30 = vpop.permute.xlu0 %1849 }
 0x59e   : > { %1853 = vst.msk [vmem:[#allocation3 + $0x30] sm:$0xff] %vm1435_vm2, %v1850_v30  ;;  %8097 = vmatmul.mubr.msk.f32.vlgmr.msra.gmra.mrb[20].mxu1 %vm1435_vm2, %v1850_v30 }
 0x59f   : > { %8472 = vmatpush3.bf16.msra.mxu1 %v9279_v16  ;;  %8110 = vmatprep.mubr.msk.f32.mxu1 %vm9130_vm0, %v9129_v0 }
 0x5a0   : > { %8476 = vmatprep.subr.bf16.mxu1 %v9131_v17 }
 0x5a1   : > { %v1844_v55 = vpop.permute.xlu1 %1843 }
 0x5a2   : > { %1847 = vst.msk [vmem:[#allocation2 + $0x8] sm:$0xff] %vm1435_vm2, %v1844_v55  ;;  %8090 = vmatmul.mubr.msk.f32.vlgmr.msra.gmra.mrb[20].mxu0 %vm1435_vm2, %v1844_v55 }
 0x5a3   : > { %8469 = vmatpush3.bf16.msra.mxu0 %v9277_v15  ;;  %8103 = vmatprep.mubr.msk.f32.mxu0 %vm9130_vm0, %v9129_v0 }
 0x5a4   : > { %8473 = vmatprep.subr.bf16.mxu0 %v9131_v17 }
 0x671   : > { %v1994_v59 = vpop.f32.mrb[20].mxu1 }
 0x672   : > { %v1995_v61 = vadd.f32 %v9340_v4, %v1994_v59  ;;  %v8098_v62 = vpop.f32.mrb[21].mxu1 }
 0x674   : > { %2032 = vrot.lane.b32.xlu0 %v1995_v61, %s9133_s25  ;;  %v2024_v5 = vadd.f32 %v1995_v61, %v9329_v52 }
 0x675   : > { %v1922_v63 = vpop.f32.mrb[20].mxu0 }
 0x676   : > { %v1923_v1 = vadd.f32 %v9344_v10, %v1922_v63  ;;  %v8091_v3 = vpop.f32.mrb[21].mxu0  ;;  %v2025_v6 = vsub.f32 0.0, %v2024_v5 }
 0x678   : > { %2006 = vrot.lane.b32.xlu1 %v1923_v1, %s9133_s25  ;;  %v1998_v7 = vadd.f32 %v1923_v1, %v9319_v36  ;;  %v2026_v8 = vmul.f32 1.442695, %v2025_v6 }
 0x67a   : > { %v1999_v9 = vsub.f32 0.0, %v1998_v7  ;;  %8662 = vpow2.f32 %v2026_v8 }
 0x67c   : > { %v2000_v11 = vmul.f32 1.442695, %v1999_v9 }
 0x67e   : > { %8664 = vpow2.f32 %v2000_v11 }
 0x684   : > { %v8663_v12 = vpop.eup %8662 }
 0x685   : > { %v2028_v13 = vadd.f32 1.0, %v8663_v12 }
 0x687   : > { %8666 = vrcp.f32 %v2028_v13 }
 0x688   : > { %v8665_v14 = vpop.eup %8664 }
 0x689   : > { %v2002_v20 = vadd.f32 1.0, %v8665_v14 }
 0x68b   : > { %8668 = vrcp.f32 %v2002_v20 }
 0x691   : > { %v8667_v23 = vpop.eup %8666 }
 0x692   : > { %v2042_v21 = vsub.f32 1.0, %v8667_v23  ;;  %v2048_v39 = vmul.f32 %v8667_v23, %v1841_v50 }
 0x695   : > { %v8669_v27 = vpop.eup %8668 }
 0x696   : > { %v2016_v44 = vsub.f32 1.0, %v8669_v27  ;;  %v2022_v47 = vmul.f32 %v8669_v27, %v1815_v57 }
 0x6e6   : > { %v2033_v24 = vpop.permute.xlu0 %2032 }
 0x6e7   : > { %v2035_v25 = vmul.f32 %v8667_v23, %v2033_v24 }
 0x6e9   : > { %2037 = vrot.lane.b32.xlu0 %v2035_v25, %s9134_s26 }
 0x6ea   : > { %v2007_v29 = vpop.permute.xlu1 %2006 }
 0x6eb   : > { %v2009_v31 = vmul.f32 %v8669_v27, %v2007_v29 }
 0x6ed   : > { %2011 = vrot.lane.b32.xlu1 %v2009_v31, %s9134_s26 }
 0x75b   : > { %v2038_v32 = vpop.permute.xlu0 %2037 }
 0x75c   : > { %v2040_v33 = vadd.f32 %v2038_v32, %v9329_v52 }
 0x75e   : > { %8670 = vtanh.f32 %v2040_v33 }
 0x75f   : > { %v2012_v35 = vpop.permute.xlu1 %2011 }
 0x760   : > { %v2014_v37 = vadd.f32 %v2012_v35, %v9319_v36 }
 0x762   : > { %8672 = vtanh.f32 %v2014_v37 }
 0x768   : > { %v8671_v38 = vpop.eup %8670 }
 0x769   : > { %2044 = vrot.lane.b32.xlu0 %v8671_v38, %s9135_s27 }
 0x76c   : > { %v8673_v19 = vpop.eup %8672 }
 0x76d   : > { %2018 = vrot.lane.b32.xlu1 %v8673_v19, %s9135_s27 }
 0x7db   : > { %v2045_v26 = vpop.permute.xlu0 %2044 }
 0x7dc   : > { %v2047_v41 = vmul.f32 %v2045_v26, %v2042_v21 }
 0x7de   : > { %v2049_v43 = vadd.f32 %v2048_v39, %v2047_v41 }
 0x7df   : > { %v2019_v45 = vpop.permute.xlu1 %2018 }
 0x7e0   : > { %v2021_v52 = vmul.f32 %v2019_v45, %v2016_v44  ;;  %2057 = vrot.lane.b32.xlu0 %v2049_v43, %s9135_s27 }
 0x7e2   : > { %v2023_v49 = vadd.f32 %v2022_v47, %v2021_v52 }
 0x7e4   : > { %2051 = vrot.lane.b32.xlu1 %v2023_v49, %s9135_s27 }
 0x852   : > { %v2058_v36 = vpop.permute.xlu0 %2057 }
 0x853   : > { %2061 = vst.msk [vmem:[#allocation3 + $0x28] sm:$0xff] %vm1435_vm2, %v2058_v36  ;;  %8111 = vmatmul.mubr.msk.f32.vlgmr.msra.gmra.mrb[22].mxu1 %vm1435_vm2, %v2058_v36 }
 0x854   : > { %8478 = vmatpush3.bf16.msra.mxu1 %v9279_v16  ;;  %8124 = vmatprep.mubr.msk.f32.mxu1 %vm9130_vm0, %v9129_v0 }
 0x855   : > { %8482 = vmatprep.subr.bf16.mxu1 %v9131_v17 }
 0x856   : > { %v2052_v50 = vpop.permute.xlu1 %2051 }
 0x857   : > { %2055 = vst.msk [vmem:[#allocation2 + $0x10] sm:$0xff] %vm1435_vm2, %v2052_v50  ;;  %8104 = vmatmul.mubr.msk.f32.vlgmr.msra.gmra.mrb[22].mxu0 %vm1435_vm2, %v2052_v50 }
 0x858   : > { %8475 = vmatpush3.bf16.msra.mxu0 %v9277_v15  ;;  %8117 = vmatprep.mubr.msk.f32.mxu0 %vm9130_vm0, %v9129_v0 }
 0x859   : > { %8479 = vmatprep.subr.bf16.mxu0 %v9131_v17 }
 0x926   : > { %v2202_v51 = vpop.f32.mrb[22].mxu1 }
 0x927   : > { %v2203_v53 = vadd.f32 %v9340_v4, %v2202_v51  ;;  %v8112_v56 = vpop.f32.mrb[23].mxu1 }
 0x929   : > { %2240 = vrot.lane.b32.xlu0 %v2203_v53, %s9133_s25  ;;  %v2232_v55 = vadd.f32 %v2203_v53, %v9325_v46 }
 0x92a   : > { %v2130_v58 = vpop.f32.mrb[22].mxu0 }
 0x92b   : > { %v2131_v57 = vadd.f32 %v9344_v10, %v2130_v58  ;;  %v8105_v30 = vpop.f32.mrb[23].mxu0  ;;  %v2233_v59 = vsub.f32 0.0, %v2232_v55 }
 0x92d   : > { %2214 = vrot.lane.b32.xlu1 %v2131_v57, %s9133_s25  ;;  %v2206_v61 = vadd.f32 %v2131_v57, %v9323_v42  ;;  %v2234_v62 = vmul.f32 1.442695, %v2233_v59 }
 0x92f   : > { %v2207_v63 = vsub.f32 0.0, %v2206_v61  ;;  %8674 = vpow2.f32 %v2234_v62 }
 0x931   : > { %v2208_v1 = vmul.f32 1.442695, %v2207_v63 }
 0x933   : > { %8676 = vpow2.f32 %v2208_v1 }
 0x939   : > { %v8675_v3 = vpop.eup %8674 }
 0x93a   : > { %v2236_v5 = vadd.f32 1.0, %v8675_v3 }
 0x93c   : > { %8678 = vrcp.f32 %v2236_v5 }
 0x93d   : > { %v8677_v6 = vpop.eup %8676 }
 0x93e   : > { %v2210_v7 = vadd.f32 1.0, %v8677_v6 }
 0x940   : > { %8680 = vrcp.f32 %v2210_v7 }
 0x946   : > { %v8679_v8 = vpop.eup %8678 }
 0x947   : > { %v2250_v31 = vsub.f32 1.0, %v8679_v8  ;;  %v2256_v33 = vmul.f32 %v8679_v8, %v2049_v43 }
 0x94a   : > { %v8681_v12 = vpop.eup %8680 }
 0x94b   : > { %v2224_v38 = vsub.f32 1.0, %v8681_v12  ;;  %v2230_v21 = vmul.f32 %v8681_v12, %v2023_v49 }
 0x99b   : > { %v2241_v9 = vpop.permute.xlu0 %2240 }
 0x99c   : > { %v2243_v11 = vmul.f32 %v8679_v8, %v2241_v9 }
 0x99e   : > { %2245 = vrot.lane.b32.xlu0 %v2243_v11, %s9134_s26 }
 0x99f   : > { %v2215_v13 = vpop.permute.xlu1 %2214 }
 0x9a0   : > { %v2217_v14 = vmul.f32 %v8681_v12, %v2215_v13 }
 0x9a2   : > { %2219 = vrot.lane.b32.xlu1 %v2217_v14, %s9134_s26 }
 0xa10   : > { %v2246_v20 = vpop.permute.xlu0 %2245 }
 0xa11   : > { %v2248_v23 = vadd.f32 %v2246_v20, %v9325_v46 }
 0xa13   : > { %8682 = vtanh.f32 %v2248_v23 }
 0xa14   : > { %v2220_v24 = vpop.permute.xlu1 %2219 }
 0xa15   : > { %v2222_v25 = vadd.f32 %v2220_v24, %v9323_v42 }
 0xa17   : > { %8684 = vtanh.f32 %v2222_v25 }
 0xa1d   : > { %v8683_v27 = vpop.eup %8682 }
 0xa1e   : > { %2252 = vrot.lane.b32.xlu0 %v8683_v27, %s9135_s27 }
 0xa21   : > { %v8685_v29 = vpop.eup %8684 }
 0xa22   : > { %2226 = vrot.lane.b32.xlu1 %v8685_v29, %s9135_s27 }
 0xa90   : > { %v2253_v32 = vpop.permute.xlu0 %2252 }
 0xa91   : > { %v2255_v35 = vmul.f32 %v2253_v32, %v2250_v31 }
 0xa93   : > { %v2257_v37 = vadd.f32 %v2256_v33, %v2255_v35 }
 0xa94   : > { %v2227_v19 = vpop.permute.xlu1 %2226 }
 0xa95   : > { %v2229_v46 = vmul.f32 %v2227_v19, %v2224_v38  ;;  %2265 = vrot.lane.b32.xlu0 %v2257_v37, %s9135_s27 }
 0xa97   : > { %v2231_v26 = vadd.f32 %v2230_v21, %v2229_v46 }
 0xa99   : > { %2259 = vrot.lane.b32.xlu1 %v2231_v26, %s9135_s27 }
 0xb07   : > { %v2266_v42 = vpop.permute.xlu0 %2265 }
 0xb08   : > { %2269 = vst.msk [vmem:[#allocation3 + $0x20] sm:$0xff] %vm1435_vm2, %v2266_v42  ;;  %8125 = vmatmul.mubr.msk.f32.vlgmr.msra.gmra.mrb[24].mxu1 %vm1435_vm2, %v2266_v42 }
 0xb09   : > { %8484 = vmatpush3.bf16.msra.mxu1 %v9279_v16  ;;  %8138 = vmatprep.mubr.msk.f32.mxu1 %vm9130_vm0, %v9129_v0 }
 0xb0a   : > { %8488 = vmatprep.subr.bf16.mxu1 %v9131_v17 }
 0xb0b   : > { %v2260_v39 = vpop.permute.xlu1 %2259 }
 0xb0c   : > { %2263 = vst.msk [vmem:[#allocation2 + $0x18] sm:$0xff] %vm1435_vm2, %v2260_v39  ;;  %8118 = vmatmul.mubr.msk.f32.vlgmr.msra.gmra.mrb[24].mxu0 %vm1435_vm2, %v2260_v39 }
 0xb0d   : > { %8481 = vmatpush3.bf16.msra.mxu0 %v9277_v15  ;;  %8131 = vmatprep.mubr.msk.f32.mxu0 %vm9130_vm0, %v9129_v0 }
 0xb0e   : > { %8485 = vmatprep.subr.bf16.mxu0 %v9131_v17 }
 0xbdb   : > { %v2410_v41 = vpop.f32.mrb[24].mxu1 }
 0xbdc   : > { %v2411_v43 = vadd.f32 %v9340_v4, %v2410_v41  ;;  %v8126_v44 = vpop.f32.mrb[25].mxu1 }
 0xbde   : > { %2448 = vrot.lane.b32.xlu0 %v2411_v43, %s9133_s25  ;;  %v2440_v49 = vadd.f32 %v2411_v43, %v9321_v40 }
 0xbdf   : > { %v2338_v45 = vpop.f32.mrb[24].mxu0 }
 0xbe0   : > { %v2339_v47 = vadd.f32 %v9344_v10, %v2338_v45  ;;  %v8119_v52 = vpop.f32.mrb[25].mxu0  ;;  %v2441_v36 = vsub.f32 0.0, %v2440_v49 }
 0xbe2   : > { %2422 = vrot.lane.b32.xlu1 %v2339_v47, %s9133_s25  ;;  %v2414_v50 = vadd.f32 %v2339_v47, %v9327_v48  ;;  %v2442_v51 = vmul.f32 1.442695, %v2441_v36 }
 0xbe4   : > { %v2415_v53 = vsub.f32 0.0, %v2414_v50  ;;  %8686 = vpow2.f32 %v2442_v51 }
 0xbe6   : > { %v2416_v56 = vmul.f32 1.442695, %v2415_v53 }
 0xbe8   : > { %8688 = vpow2.f32 %v2416_v56 }
 0xbee   : > { %v8687_v58 = vpop.eup %8686 }
 0xbef   : > { %v2444_v57 = vadd.f32 1.0, %v8687_v58 }
 0xbf1   : > { %8690 = vrcp.f32 %v2444_v57 }
 0xbf2   : > { %v8689_v30 = vpop.eup %8688 }
 0xbf3   : > { %v2418_v55 = vadd.f32 1.0, %v8689_v30 }
 0xbf5   : > { %8692 = vrcp.f32 %v2418_v55 }
 0xbfb   : > { %v8691_v59 = vpop.eup %8690 }
 0xbfc   : > { %v2458_v12 = vsub.f32 1.0, %v8691_v59  ;;  %v2464_v14 = vmul.f32 %v8691_v59, %v2257_v37 }
 0xbff   : > { %v8693_v63 = vpop.eup %8692 }
 0xc00   : > { %v2432_v24 = vsub.f32 1.0, %v8693_v63  ;;  %v2438_v27 = vmul.f32 %v8693_v63, %v2231_v26 }
 0xc50   : > { %v2449_v61 = vpop.permute.xlu0 %2448 }
 0xc51   : > { %v2451_v62 = vmul.f32 %v8691_v59, %v2449_v61 }
 0xc53   : > { %2453 = vrot.lane.b32.xlu0 %v2451_v62, %s9134_s26 }
 0xc54   : > { %v2423_v1 = vpop.permute.xlu1 %2422 }
 0xc55   : > { %v2425_v3 = vmul.f32 %v8693_v63, %v2423_v1 }
 0xc57   : > { %2427 = vrot.lane.b32.xlu1 %v2425_v3, %s9134_s26 }
 0xcc5   : > { %v2454_v5 = vpop.permute.xlu0 %2453 }
 0xcc6   : > { %v2456_v6 = vadd.f32 %v2454_v5, %v9321_v40 }
 0xcc8   : > { %8694 = vtanh.f32 %v2456_v6 }
 0xcc9   : > { %v2428_v7 = vpop.permute.xlu1 %2427 }
 0xcca   : > { %v2430_v8 = vadd.f32 %v2428_v7, %v9327_v48 }
 0xccc   : > { %8696 = vtanh.f32 %v2430_v8 }
 0xcd2   : > { %v8695_v9 = vpop.eup %8694 }
 0xcd3   : > { %2460 = vrot.lane.b32.xlu0 %v8695_v9, %s9135_s27 }
 0xcd6   : > { %v8697_v11 = vpop.eup %8696 }
 0xcd7   : > { %2434 = vrot.lane.b32.xlu1 %v8697_v11, %s9135_s27 }
 0xd45   : > { %v2461_v13 = vpop.permute.xlu0 %2460 }
 0xd46   : > { %v2463_v20 = vmul.f32 %v2461_v13, %v2458_v12 }
 0xd48   : > { %v2465_v23 = vadd.f32 %v2464_v14, %v2463_v20 }
 0xd49   : > { %v2435_v25 = vpop.permute.xlu1 %2434 }
 0xd4a   : > { %v2437_v40 = vmul.f32 %v2435_v25, %v2432_v24  ;;  %2473 = vrot.lane.b32.xlu0 %v2465_v23, %s9135_s27 }
 0xd4c   : > { %v2439_v29 = vadd.f32 %v2438_v27, %v2437_v40 }
 0xd4e   : > { %2467 = vrot.lane.b32.xlu1 %v2439_v29, %s9135_s27 }
 0xdbc   : > { %v2474_v48 = vpop.permute.xlu0 %2473 }
 0xdbd   : > { %2477 = vst.msk [vmem:[#allocation3 + $0x18] sm:$0xff] %vm1435_vm2, %v2474_v48  ;;  %8139 = vmatmul.mubr.msk.f32.vlgmr.msra.gmra.mrb[26].mxu1 %vm1435_vm2, %v2474_v48 }
 0xdbe   : > { %8490 = vmatpush3.bf16.msra.mxu1 %v9279_v16  ;;  %8152 = vmatprep.mubr.msk.f32.mxu1 %vm9130_vm0, %v9129_v0 }
 0xdbf   : > { %8494 = vmatprep.subr.bf16.mxu1 %v9131_v17 }
 0xdc0   : > { %v2468_v31 = vpop.permute.xlu1 %2467 }
 0xdc1   : > { %2471 = vst.msk [vmem:[#allocation2 + $0x20] sm:$0xff] %vm1435_vm2, %v2468_v31  ;;  %8132 = vmatmul.mubr.msk.f32.vlgmr.msra.gmra.mrb[26].mxu0 %vm1435_vm2, %v2468_v31 }
 0xdc2   : > { %8487 = vmatpush3.bf16.msra.mxu0 %v9277_v15  ;;  %8145 = vmatprep.mubr.msk.f32.mxu0 %vm9130_vm0, %v9129_v0 }
 0xdc3   : > { %8491 = vmatprep.subr.bf16.mxu0 %v9131_v17 }
 0xe90   : > { %v2618_v32 = vpop.f32.mrb[26].mxu1 }
 0xe91   : > { %v2619_v33 = vadd.f32 %v9340_v4, %v2618_v32  ;;  %v8140_v35 = vpop.f32.mrb[27].mxu1 }
 0xe93   : > { %2656 = vrot.lane.b32.xlu0 %v2619_v33, %s9133_s25  ;;  %v2648_v21 = vadd.f32 %v2619_v33, %v9317_v34 }
 0xe94   : > { %v2546_v37 = vpop.f32.mrb[26].mxu0 }
 0xe95   : > { %v2547_v38 = vadd.f32 %v9344_v10, %v2546_v37  ;;  %v8133_v19 = vpop.f32.mrb[27].mxu0  ;;  %v2649_v46 = vsub.f32 0.0, %v2648_v21 }
 0xe97   : > { %2630 = vrot.lane.b32.xlu1 %v2547_v38, %s9133_s25  ;;  %v2622_v26 = vadd.f32 %v2547_v38, %v9331_v54  ;;  %v2650_v42 = vmul.f32 1.442695, %v2649_v46 }
 0xe99   : > { %v2623_v39 = vsub.f32 0.0, %v2622_v26  ;;  %8698 = vpow2.f32 %v2650_v42 }
 0xe9b   : > { %v2624_v41 = vmul.f32 1.442695, %v2623_v39 }
 0xe9d   : > { %8700 = vpow2.f32 %v2624_v41 }
 0xea3   : > { %v8699_v43 = vpop.eup %8698 }
 0xea4   : > { %v2652_v44 = vadd.f32 1.0, %v8699_v43 }
 0xea6   : > { %8702 = vrcp.f32 %v2652_v44 }
 0xea7   : > { %v8701_v45 = vpop.eup %8700 }
 0xea8   : > { %v2626_v47 = vadd.f32 1.0, %v8701_v45 }
 0xeaa   : > { %8704 = vrcp.f32 %v2626_v47 }
 0xeb0   : > { %v8703_v52 = vpop.eup %8702 }
 0xeb1   : > { %v2666_v61 = vsub.f32 1.0, %v8703_v52  ;;  %v2672_v63 = vmul.f32 %v8703_v52, %v2465_v23 }
 0xeb4   : > { %v8705_v50 = vpop.eup %8704 }
 0xeb5   : > { %v2640_v5 = vsub.f32 1.0, %v8705_v50  ;;  %v2646_v7 = vmul.f32 %v8705_v50, %v2439_v29 }
 0xf05   : > { %v2657_v49 = vpop.permute.xlu0 %2656 }
 0xf06   : > { %v2659_v36 = vmul.f32 %v8703_v52, %v2657_v49 }
 0xf08   : > { %2661 = vrot.lane.b32.xlu0 %v2659_v36, %s9134_s26 }
 0xf09   : > { %v2631_v51 = vpop.permute.xlu1 %2630 }
 0xf0a   : > { %v2633_v53 = vmul.f32 %v8705_v50, %v2631_v51 }
 0xf0c   : > { %2635 = vrot.lane.b32.xlu1 %v2633_v53, %s9134_s26  ;;  %v3101_v53 = vld [vmem:[%s9521_s5] sm:$0xff] }
 0xf7a   : > { %v2662_v56 = vpop.permute.xlu0 %2661 }
 0xf7b   : > { %v2664_v58 = vadd.f32 %v2662_v56, %v9317_v34  ;;  %v3102_v56 = vld [vmem:[%s9521_s5 + $0x8] sm:$0xff] }
 0xf7d   : > { %8706 = vtanh.f32 %v2664_v58  ;;  %v8501_v58 = vpack.c.bf16 %v3102_v56, %v3101_v53 }
 0xf7e   : > { %v2636_v57 = vpop.permute.xlu1 %2635 }
 0xf7f   : > { %v2638_v30 = vadd.f32 %v2636_v57, %v9331_v54 }
 0xf81   : > { %8708 = vtanh.f32 %v2638_v30  ;;  %v9530_v30 = vld [vmem:[#allocation2] sm:$0xff] }
 0xf87   : > { %v8707_v55 = vpop.eup %8706 }
 0xf88   : > { %2668 = vrot.lane.b32.xlu0 %v8707_v55, %s9135_s27 }
 0xf8b   : > { %v8709_v59 = vpop.eup %8708 }
 0xf8c   : > { %2642 = vrot.lane.b32.xlu1 %v8709_v59, %s9135_s27  ;;  %v9541_v59 = vld [vmem:[#allocation2 + $0x8] sm:$0xff] }
 0xffa   : > { %v2669_v62 = vpop.permute.xlu0 %2668 }
 0xffb   : > { %v2671_v1 = vmul.f32 %v2669_v62, %v2666_v61  ;;  %v9548_v61 = vld [vmem:[#allocation2 + $0x10] sm:$0xff]  ;;  %v9555_v62 = vld [vmem:[#allocation2 + $0x18] sm:$0xff] }
 0xffd   : > { %v2673_v3 = vadd.f32 %v2672_v63, %v2671_v1  ;;  %v9562_v63 = vld [vmem:[#allocation2 + $0x20] sm:$0xff] }
 0xffe   : > { %v2643_v6 = vpop.permute.xlu1 %2642 }
 0xfff   : > { %v2645_v34 = vmul.f32 %v2643_v6, %v2640_v5  ;;  %2681 = vrot.lane.b32.xlu0 %v2673_v3, %s9135_s27 }
0x1001   : > { %v2647_v8 = vadd.f32 %v2646_v7, %v2645_v34 }
0x1003   : > { %2675 = vrot.lane.b32.xlu1 %v2647_v8, %s9135_s27 }
0x1071   : > { %v2682_v54 = vpop.permute.xlu0 %2681 }
0x1072   : > { %2685 = vst.msk [vmem:[#allocation3 + $0x10] sm:$0xff] %vm1435_vm2, %v2682_v54  ;;  %8153 = vmatmul.mubr.msk.f32.vlgmr.msra.gmra.mrb[28].mxu1 %vm1435_vm2, %v2682_v54 }
0x1073   : > { %8496 = vmatpush3.bf16.msra.mxu1 %v9279_v16  ;;  %8166 = vmatprep.mubr.msk.f32.mxu1 %vm9130_vm0, %v9129_v0 }
0x1074   : > { %8500 = vmatprep.subr.bf16.mxu1 %v9131_v17 }
0x1075   : > { %v2676_v9 = vpop.permute.xlu1 %2675 }
0x1076   : > { %2679 = vst.msk [vmem:[#allocation2 + $0x28] sm:$0xff] %vm1435_vm2, %v2676_v9  ;;  %8146 = vmatmul.mubr.msk.f32.vlgmr.msra.gmra.mrb[28].mxu0 %vm1435_vm2, %v2676_v9 }
0x1077   : > { %8493 = vmatpush3.bf16.msra.mxu0 %v9277_v15  ;;  %8159 = vmatprep.mubr.msk.f32.mxu0 %vm9130_vm0, %v9129_v0 }
0x1078   : > { %8497 = vmatprep.subr.bf16.mxu0 %v9131_v17 }
0x107d   : > { %v9569_v1 = vld [vmem:[#allocation2 + $0x28] sm:$0xff] }
0x1145   : > { %v2826_v11 = vpop.f32.mrb[28].mxu1 }
0x1146   : > { %v2827_v16 = vadd.f32 %v9340_v4, %v2826_v11  ;;  %v8154_v12 = vpop.f32.mrb[29].mxu1 }
0x1148   : > { %2864 = vrot.lane.b32.xlu0 %v2827_v16, %s9133_s25  ;;  %v2856_v23 = vadd.f32 %v2827_v16, %v9313_v28 }
0x1149   : > { %v2754_v13 = vpop.f32.mrb[28].mxu0 }
0x114a   : > { %v2755_v14 = vadd.f32 %v9344_v10, %v2754_v13  ;;  %v8147_v20 = vpop.f32.mrb[29].mxu0  ;;  %v2857_v15 = vsub.f32 0.0, %v2856_v23 }
0x114c   : > { %2838 = vrot.lane.b32.xlu1 %v2755_v14, %s9133_s25  ;;  %v2830_v24 = vadd.f32 %v2755_v14, %v9335_v60  ;;  %v2858_v25 = vmul.f32 1.442695, %v2857_v15 }
0x114e   : > { %v2831_v27 = vsub.f32 0.0, %v2830_v24  ;;  %8710 = vpow2.f32 %v2858_v25 }
0x1150   : > { %v2832_v40 = vmul.f32 1.442695, %v2831_v27 }
0x1152   : > { %8712 = vpow2.f32 %v2832_v40 }
0x1158   : > { %v8711_v29 = vpop.eup %8710 }
0x1159   : > { %v2860_v48 = vadd.f32 1.0, %v8711_v29 }
0x115b   : > { %8714 = vrcp.f32 %v2860_v48 }
0x115c   : > { %v8713_v31 = vpop.eup %8712 }
0x115d   : > { %v2834_v32 = vadd.f32 1.0, %v8713_v31 }
0x115f   : > { %8716 = vrcp.f32 %v2834_v32 }
0x1165   : > { %v8715_v33 = vpop.eup %8714 }
0x1166   : > { %v2874_v44 = vsub.f32 1.0, %v8715_v33  ;;  %v2880_v47 = vmul.f32 %v8715_v33, %v2673_v3 }
0x1169   : > { %v8717_v38 = vpop.eup %8716 }
0x116a   : > { %v2848_v36 = vsub.f32 1.0, %v8717_v38  ;;  %v2854_v50 = vmul.f32 %v8717_v38, %v2647_v8 }
0x11ba   : > { %v2865_v35 = vpop.permute.xlu0 %2864 }
0x11bb   : > { %v2867_v37 = vmul.f32 %v8715_v33, %v2865_v35 }
0x11bd   : > { %2869 = vrot.lane.b32.xlu0 %v2867_v37, %s9134_s26 }
0x11be   : > { %v2839_v19 = vpop.permute.xlu1 %2838 }
0x11bf   : > { %v2841_v21 = vmul.f32 %v8717_v38, %v2839_v19 }
0x11c1   : > { %2843 = vrot.lane.b32.xlu1 %v2841_v21, %s9134_s26 }
0x122f   : > { %v2870_v46 = vpop.permute.xlu0 %2869 }
0x1230   : > { %v2872_v26 = vadd.f32 %v2870_v46, %v9313_v28 }
0x1232   : > { %8718 = vtanh.f32 %v2872_v26 }
0x1233   : > { %v2844_v42 = vpop.permute.xlu1 %2843 }
0x1234   : > { %v2846_v39 = vadd.f32 %v2844_v42, %v9335_v60 }
0x1236   : > { %8720 = vtanh.f32 %v2846_v39 }
0x123c   : > { %v8719_v41 = vpop.eup %8718 }
0x123d   : > { %2876 = vrot.lane.b32.xlu0 %v8719_v41, %s9135_s27 }
0x1240   : > { %v8721_v43 = vpop.eup %8720 }
0x1241   : > { %2850 = vrot.lane.b32.xlu1 %v8721_v43, %s9135_s27 }
0x12af   : > { %v2877_v45 = vpop.permute.xlu0 %2876 }
0x12b0   : > { %v2879_v52 = vmul.f32 %v2877_v45, %v2874_v44 }
0x12b2   : > { %v9509_v49 = vadd.f32 %v2880_v47, %v2879_v52 }
0x12b3   : > { %v2851_v28 = vpop.permute.xlu1 %2850 }
0x12b4   : > { %v2853_v51 = vmul.f32 %v2851_v28, %v2848_v36  ;;  %2889 = vrot.lane.b32.xlu0 %v9509_v49, %s9135_s27  ;;  %v3103_v28 = vld [vmem:[%s9521_s5 + $0x10] sm:$0xff] }
0x12b6   : > { %v9513_v60 = vadd.f32 %v2854_v50, %v2853_v51  ;;  %v3104_v50 = vld [vmem:[%s9521_s5 + $0x18] sm:$0xff] }
0x12b7   : > { %v8498_v51 = vpack.c.bf16 %v3104_v50, %v3103_v28 }
0x12b8   : > { %2883 = vrot.lane.b32.xlu1 %v9513_v60, %s9135_s27 }
0x1326   : > { %v2890_v57 = vpop.permute.xlu0 %2889 }
0x1327   : > { %2893 = vst.msk [vmem:[#allocation3 + $0x8] sm:$0xff] %vm1435_vm2, %v2890_v57  ;;  %8167 = vmatmul.mubr.msk.f32.vlgmr.msra.gmra.mrb[30].mxu1 %vm1435_vm2, %v2890_v57 }
0x1328   : > { %8502 = vmatpush3.bf16.msra.mxu1 %v8501_v58  ;;  %8180 = vmatprep.mubr.msk.f32.mxu1 %vm9130_vm0, %v9129_v0 }
0x1329   : > { %8506 = vmatprep.subr.bf16.mxu1 %v9131_v17 }
0x132a   : > { %v2884_v55 = vpop.permute.xlu1 %2883 }
0x132b   : > { %2887 = vst.msk [vmem:[#allocation2 + $0x30] sm:$0xff] %vm1435_vm2, %v2884_v55  ;;  %8160 = vmatmul.mubr.msk.f32.vlgmr.msra.gmra.mrb[30].mxu0 %vm1435_vm2, %v2884_v55  ;;  %8181 = vmatmul.mubr.msk.f32.vlgmr.msra.gmra.mrb[32].mxu1 %vm1435_vm2, %v9530_v30 }
0x132c   : > { %8508 = vmatpush3.bf16.msra.mxu1 %v8501_v58  ;;  %8194 = vmatprep.mubr.msk.f32.mxu1 %vm9130_vm0, %v9129_v0 }
0x132d   : > { %8512 = vmatprep.subr.bf16.mxu1 %v9131_v17  ;;  %8173 = vmatprep.mubr.msk.f32.mxu0 %vm9130_vm0, %v9129_v0 }
0x132e   : > { %8499 = vmatpush3.bf16.msra.mxu0 %v8498_v51 }
0x132f   : > { %8195 = vmatmul.mubr.msk.f32.vlgmr.msra.gmra.mrb[34].mxu1 %vm1435_vm2, %v9541_v59  ;;  %8503 = vmatprep.subr.bf16.mxu0 %v9131_v17 }
0x1330   : > { %8514 = vmatpush3.bf16.msra.mxu1 %v8501_v58  ;;  %8208 = vmatprep.mubr.msk.f32.mxu1 %vm9130_vm0, %v9129_v0 }
0x1331   : > { %8518 = vmatprep.subr.bf16.mxu1 %v9131_v17 }
0x1332   : > { %v9576_v3 = vld [vmem:[#allocation2 + $0x30] sm:$0xff] }
0x1333   : > { %8209 = vmatmul.mubr.msk.f32.vlgmr.msra.gmra.mrb[36].mxu1 %vm1435_vm2, %v9548_v61 }
0x1334   : > { %8520 = vmatpush3.bf16.msra.mxu1 %v8501_v58  ;;  %8222 = vmatprep.mubr.msk.f32.mxu1 %vm9130_vm0, %v9129_v0 }
0x1335   : > { %8524 = vmatprep.subr.bf16.mxu1 %v9131_v17 }
0x1337   : > { %8223 = vmatmul.mubr.msk.f32.vlgmr.msra.gmra.mrb[38].mxu1 %vm1435_vm2, %v9555_v62 }
0x1338   : > { %8526 = vmatpush3.bf16.msra.mxu1 %v8501_v58  ;;  %8236 = vmatprep.mubr.msk.f32.mxu1 %vm9130_vm0, %v9129_v0 }
0x1339   : > { %8530 = vmatprep.subr.bf16.mxu1 %v9131_v17 }
0x133b   : > { %8237 = vmatmul.mubr.msk.f32.vlgmr.msra.gmra.mrb[40].mxu1 %vm1435_vm2, %v9562_v63 }
0x133c   : > { %8532 = vmatpush3.bf16.msra.mxu1 %v8501_v58  ;;  %8250 = vmatprep.mubr.msk.f32.mxu1 %vm9130_vm0, %v9129_v0 }
0x133d   : > { %8536 = vmatprep.subr.bf16.mxu1 %v9131_v17 }
0x133f   : > { %8251 = vmatmul.mubr.msk.f32.vlgmr.msra.gmra.mrb[42].mxu1 %vm1435_vm2, %v9569_v1 }
0x1340   : > { %8538 = vmatpush3.bf16.msra.mxu1 %v8501_v58  ;;  %8264 = vmatprep.mubr.msk.f32.mxu1 %vm9130_vm0, %v9129_v0 }
0x1341   : > { %8542 = vmatprep.subr.bf16.mxu1 %v9131_v17 }
0x1343   : > { %8265 = vmatmul.mubr.msk.f32.vlgmr.msra.gmra.mrb[44].mxu1 %vm1435_vm2, %v9576_v3 }
0x1344   : > { %8544 = vmatpush3.bf16.msra.mxu1 %v8501_v58  ;;  %8278 = vmatprep.mubr.msk.f32.mxu1 %vm9130_vm0, %v9129_v0 }
0x1345   : > { %8548 = vmatprep.subr.bf16.mxu1 %v9131_v17 }
0x13fa   : > { %v3034_v5 = vpop.f32.mrb[30].mxu1 }
0x13fb   : > { %v3035_v6 = vadd.f32 %v9340_v4, %v3034_v5  ;;  %v8168_v7 = vpop.f32.mrb[31].mxu1 }
0x13fd   : > { %3072 = vrot.lane.b32.xlu0 %v3035_v6, %s9133_s25  ;;  %v3064_v40 = vadd.f32 %v3035_v6, %v9310_v22 }
0x13fe   : > { %v2962_v34 = vpop.f32.mrb[30].mxu0  ;;  %v9585_v8 = vpop.f32.mrb[32].mxu1 }
0x13ff   : > { %v2963_v54 = vadd.f32 %v9344_v10, %v2962_v34  ;;  %v8161_v9 = vpop.f32.mrb[31].mxu0  ;;  %v8182_v11 = vpop.f32.mrb[33].mxu1  ;;  %v3065_v29 = vsub.f32 0.0, %v3064_v40 }
0x1400   : > { %v9638_v11 = vld [vmem:[#allocation3 + $0x10] sm:$0xff] }
0x1401   : > { %3046 = vrot.lane.b32.xlu1 %v2963_v54, %s9133_s25  ;;  %v3038_v48 = vadd.f32 %v2963_v54, %v9337_v2  ;;  %v3066_v31 = vmul.f32 1.442695, %v3065_v29 }
0x1402   : > { %v9589_v16 = vpop.f32.mrb[34].mxu1 }
0x1403   : > { %v8196_v12 = vpop.f32.mrb[35].mxu1  ;;  %v3039_v32 = vsub.f32 0.0, %v3038_v48  ;;  %8722 = vpow2.f32 %v3066_v31 }
0x1404   : > { %v9645_v12 = vld [vmem:[#allocation3 + $0x18] sm:$0xff] }
0x1405   : > { %v3040_v33 = vmul.f32 1.442695, %v3039_v32 }
0x1406   : > { %v9591_v13 = vpop.f32.mrb[36].mxu1 }
0x1407   : > { %v8210_v14 = vpop.f32.mrb[37].mxu1  ;;  %8724 = vpow2.f32 %v3040_v33 }
0x1408   : > { %v9652_v14 = vld [vmem:[#allocation3 + $0x20] sm:$0xff] }
0x140a   : > { %v9593_v20 = vpop.f32.mrb[38].mxu1 }
0x140b   : > { %v8224_v4 = vpop.f32.mrb[39].mxu1 }
0x140c   : > { %v9659_v4 = vld [vmem:[#allocation3 + $0x28] sm:$0xff] }
0x140d   : > { %v8723_v35 = vpop.eup %8722 }
0x140e   : > { %v9595_v23 = vpop.f32.mrb[40].mxu1  ;;  %v3068_v37 = vadd.f32 1.0, %v8723_v35 }
0x140f   : > { %v8238_v15 = vpop.f32.mrb[41].mxu1 }
0x1410   : > { %8726 = vrcp.f32 %v3068_v37  ;;  %v9666_v15 = vld [vmem:[#allocation3 + $0x30] sm:$0xff] }
0x1411   : > { %v8725_v38 = vpop.eup %8724 }
0x1412   : > { %v9597_v24 = vpop.f32.mrb[42].mxu1  ;;  %v3042_v19 = vadd.f32 1.0, %v8725_v38 }
0x1413   : > { %v8252_v25 = vpop.f32.mrb[43].mxu1 }
0x1414   : > { %8728 = vrcp.f32 %v3042_v19  ;;  %v9673_v25 = vld [vmem:[#allocation3 + $0x38] sm:$0xff]  ;;  %v9687_v19 = vld [vmem:[%s9521_s5 + $0x20] ss:$0 sm:$0xff] }
0x1416   : > { %v9599_v10 = vpop.f32.mrb[44].mxu1 }
0x1417   : > { %v8266_v27 = vpop.f32.mrb[45].mxu1 }
0x1418   : > { %v9680_v27 = vld [vmem:[%s9521_s5 + $0x21] ss:$0 sm:$0xff] }
0x141a   : > { %v8727_v21 = vpop.eup %8726 }
0x141b   : > { %v3082_v53 = vsub.f32 1.0, %v8727_v21 }
0x141e   : > { %v8729_v42 = vpop.eup %8728 }
0x141f   : > { %v3062_v5 = vmul.f32 %v8729_v42, %v9513_v60 }
0x146f   : > { %v3073_v46 = vpop.permute.xlu0 %3072 }
0x1470   : > { %v3075_v26 = vmul.f32 %v8727_v21, %v3073_v46 }
0x1472   : > { %3077 = vrot.lane.b32.xlu0 %v3075_v26, %s9134_s26 }
0x1473   : > { %v3047_v39 = vpop.permute.xlu1 %3046 }
0x1474   : > { %v3049_v41 = vmul.f32 %v8729_v42, %v3047_v39 }
0x1476   : > { %3051 = vrot.lane.b32.xlu1 %v3049_v41, %s9134_s26 }
0x14e4   : > { %v3078_v43 = vpop.permute.xlu0 %3077 }
0x14e5   : > { %v3080_v44 = vadd.f32 %v3078_v43, %v9310_v22  ;;  %v3088_v22 = vmul.f32 %v8727_v21, %v9509_v49  ;;  %v9625_v49 = vld [vmem:[#allocation3 + $0x8] sm:$0xff] }
0x14e7   : > { %8730 = vtanh.f32 %v3080_v44 }
0x14e8   : > { %v3052_v45 = vpop.permute.xlu1 %3051 }
0x14e9   : > { %v3054_v47 = vadd.f32 %v3052_v45, %v9337_v2  ;;  %v3056_v2 = vsub.f32 1.0, %v8729_v42  ;;  %v9693_v42 = vmul.f32 0.001, %v9687_v19 }
0x14eb   : > { %8732 = vtanh.f32 %v3054_v47 }
0x14f1   : > { %v8731_v52 = vpop.eup %8730 }
0x14f2   : > { %3084 = vrot.lane.b32.xlu0 %v8731_v52, %s9135_s27 }
0x14f5   : > { %v8733_v36 = vpop.eup %8732 }
0x14f6   : > { %3058 = vrot.lane.b32.xlu1 %v8733_v36, %s9135_s27 }
0x1564   : > { %v3085_v56 = vpop.permute.xlu0 %3084 }
0x1565   : > { %v3087_v58 = vmul.f32 %v3085_v56, %v3082_v53 }
0x1567   : > { %v3089_v57 = vadd.f32 %v3088_v22, %v3087_v58 }
0x1568   : > { %v3059_v55 = vpop.permute.xlu1 %3058 }
0x1569   : > { %v3061_v6 = vmul.f32 %v3059_v55, %v3056_v2  ;;  %3097 = vrot.lane.b32.xlu0 %v3089_v57, %s9135_s27  ;;  %v9717_v57 = vld [vmem:[%s9521_s5 + $0x22] ss:$0 sm:$0xff] }
0x156b   : > { %v3063_v7 = vadd.f32 %v3062_v5, %v3061_v6 }
0x156d   : > { %3091 = vrot.lane.b32.xlu1 %v3063_v7, %s9135_s27 }
0x15db   : > { %v3098_v34 = vpop.permute.xlu0 %3097 }
0x15dc   : > { %3100 = vst.msk [vmem:[#allocation3] sm:$0xff] %vm1435_vm2, %v3098_v34 }
0x15df   : > { %v3092_v54 = vpop.permute.xlu1 %3091 }
0x15e0   : > { %3095 = vst.msk [vmem:[#allocation2 + $0x38] sm:$0xff] %vm1435_vm2, %v3092_v54 }
0x15e3   : > { %v9618_v9 = vld [vmem:[#allocation3] sm:$0xff] }
0x15e4   : > { %8174 = vmatmul.mubr.msk.f32.vlgmr.msra.gmra.mrb[32].mxu0 %vm1435_vm2, %v9618_v9 }
0x15e5   : > { %8505 = vmatpush3.bf16.msra.mxu0 %v8498_v51  ;;  %8187 = vmatprep.mubr.msk.f32.mxu0 %vm9130_vm0, %v9129_v0 }
0x15e6   : > { %8509 = vmatprep.subr.bf16.mxu0 %v9131_v17 }
0x15e7   : > { %v9627_v60 = vld [vmem:[#allocation2 + $0x38] sm:$0xff] }
0x15e8   : > { %8188 = vmatmul.mubr.msk.f32.vlgmr.msra.gmra.mrb[34].mxu0 %vm1435_vm2, %v9625_v49  ;;  %8279 = vmatmul.mubr.msk.f32.vlgmr.msra.gmra.mrb[46].mxu1 %vm1435_vm2, %v9627_v60 }
0x15e9   : > { %8511 = vmatpush3.bf16.msra.mxu0 %v8498_v51  ;;  %8201 = vmatprep.mubr.msk.f32.mxu0 %vm9130_vm0, %v9129_v0 }
0x15ea   : > { %8515 = vmatprep.subr.bf16.mxu0 %v9131_v17  ;;  %8292 = vmatprep.mubr.msk.f32.mxu1 %vm9130_vm0, %v9129_v0 }
0x15ec   : > { %8202 = vmatmul.mubr.msk.f32.vlgmr.msra.gmra.mrb[36].mxu0 %vm1435_vm2, %v9638_v11 }
0x15ed   : > { %8517 = vmatpush3.bf16.msra.mxu0 %v8498_v51  ;;  %8215 = vmatprep.mubr.msk.f32.mxu0 %vm9130_vm0, %v9129_v0 }
0x15ee   : > { %8521 = vmatprep.subr.bf16.mxu0 %v9131_v17 }
0x15f0   : > { %8216 = vmatmul.mubr.msk.f32.vlgmr.msra.gmra.mrb[38].mxu0 %vm1435_vm2, %v9645_v12 }
0x15f1   : > { %8523 = vmatpush3.bf16.msra.mxu0 %v8498_v51  ;;  %8229 = vmatprep.mubr.msk.f32.mxu0 %vm9130_vm0, %v9129_v0 }
0x15f2   : > { %8527 = vmatprep.subr.bf16.mxu0 %v9131_v17 }
0x15f4   : > { %8230 = vmatmul.mubr.msk.f32.vlgmr.msra.gmra.mrb[40].mxu0 %vm1435_vm2, %v9652_v14 }
0x15f5   : > { %8529 = vmatpush3.bf16.msra.mxu0 %v8498_v51  ;;  %8243 = vmatprep.mubr.msk.f32.mxu0 %vm9130_vm0, %v9129_v0 }
0x15f6   : > { %8533 = vmatprep.subr.bf16.mxu0 %v9131_v17 }
0x15f8   : > { %8244 = vmatmul.mubr.msk.f32.vlgmr.msra.gmra.mrb[42].mxu0 %vm1435_vm2, %v9659_v4 }
0x15f9   : > { %8535 = vmatpush3.bf16.msra.mxu0 %v8498_v51  ;;  %8257 = vmatprep.mubr.msk.f32.mxu0 %vm9130_vm0, %v9129_v0 }
0x15fa   : > { %8539 = vmatprep.subr.bf16.mxu0 %v9131_v17 }
0x15fc   : > { %8258 = vmatmul.mubr.msk.f32.vlgmr.msra.gmra.mrb[44].mxu0 %vm1435_vm2, %v9666_v15 }
0x15fd   : > { %8541 = vmatpush3.bf16.msra.mxu0 %v8498_v51  ;;  %8271 = vmatprep.mubr.msk.f32.mxu0 %vm9130_vm0, %v9129_v0 }
0x15fe   : > { %8545 = vmatprep.subr.bf16.mxu0 %v9131_v17 }
0x1600   : > { %8272 = vmatmul.mubr.msk.f32.vlgmr.msra.gmra.mrb[46].mxu0 %vm1435_vm2, %v9673_v25 }
0x1601   : > { %8285 = vmatprep.mubr.msk.f32.mxu0 %vm9130_vm0, %v9129_v0 }
0x16b7   : > { %v3191_v40 = vpop.f32.mrb[32].mxu0 }
0x16b8   : > { %v3265_v29 = vadd.f32 %v9585_v8, %v3191_v40  ;;  %v8175_v48 = vpop.f32.mrb[33].mxu0 }
0x16ba   : > { %v3272_v31 = vadd.f32 %v9680_v27, %v3265_v29 }
0x16bb   : > { %v3345_v32 = vpop.f32.mrb[34].mxu0  ;;  %v4324_v33 = vpop.f32.mrb[46].mxu1 }
0x16bc   : > { %3273 = vst.msk [vmem:[#allocation4] sm:$0xff] %vm1435_vm2, %v3272_v31  ;;  %v3419_v35 = vadd.f32 %v9589_v16, %v3345_v32  ;;  %v8189_v37 = vpop.f32.mrb[35].mxu0  ;;  %v8280_v38 = vpop.f32.mrb[47].mxu1 }
0x16be   : > { %v3422_v21 = vadd.f32 %v9680_v27, %v3419_v35 }
0x16bf   : > { %v3496_v46 = vpop.f32.mrb[36].mxu0 }
0x16c0   : > { %3424 = vst.msk [vmem:[#allocation4 + $0x8] sm:$0xff] %vm1435_vm2, %v3422_v21  ;;  %v3570_v8 = vadd.f32 %v9591_v13, %v3496_v46  ;;  %v8203_v26 = vpop.f32.mrb[37].mxu0 }
0x16c2   : > { %v3573_v39 = vadd.f32 %v9680_v27, %v3570_v8 }
0x16c3   : > { %v3647_v41 = vpop.f32.mrb[38].mxu0  ;;  %v9696_v43 = vld [vmem:[#allocation4] sm:$0xff] }
0x16c4   : > { %3575 = vst.msk [vmem:[#allocation4 + $0x10] sm:$0xff] %vm1435_vm2, %v3573_v39  ;;  %v3721_v16 = vadd.f32 %v9593_v20, %v3647_v41  ;;  %v8217_v44 = vpop.f32.mrb[39].mxu0  ;;  %v4337_v45 = vadd.f32 %v9696_v43, %v9693_v42 }
0x16c6   : > { %v3724_v47 = vadd.f32 %v9680_v27, %v3721_v16  ;;  %8734 = vtanh.f32 %v4337_v45 }
0x16c7   : > { %v3798_v13 = vpop.f32.mrb[40].mxu0  ;;  %v9703_v52 = vld [vmem:[#allocation4 + $0x8] sm:$0xff] }
0x16c8   : > { %3726 = vst.msk [vmem:[#allocation4 + $0x18] sm:$0xff] %vm1435_vm2, %v3724_v47  ;;  %v3872_v36 = vadd.f32 %v9595_v23, %v3798_v13  ;;  %v8231_v28 = vpop.f32.mrb[41].mxu0  ;;  %v4348_v50 = vadd.f32 %v9703_v52, %v9693_v42 }
0x16ca   : > { %v3875_v20 = vadd.f32 %v9680_v27, %v3872_v36  ;;  %8736 = vtanh.f32 %v4348_v50 }
0x16cb   : > { %v3949_v51 = vpop.f32.mrb[42].mxu0  ;;  %v9710_v53 = vld [vmem:[#allocation4 + $0x10] sm:$0xff] }
0x16cc   : > { %3877 = vst.msk [vmem:[#allocation4 + $0x20] sm:$0xff] %vm1435_vm2, %v3875_v20  ;;  %v4023_v56 = vadd.f32 %v9597_v24, %v3949_v51  ;;  %v8245_v22 = vpop.f32.mrb[43].mxu0  ;;  %v4355_v58 = vadd.f32 %v9710_v53, %v9693_v42 }
0x16ce   : > { %v4026_v23 = vadd.f32 %v9680_v27, %v4023_v56  ;;  %8738 = vtanh.f32 %v4355_v58 }
0x16cf   : > { %v4100_v2 = vpop.f32.mrb[44].mxu0  ;;  %v9720_v55 = vld [vmem:[#allocation4 + $0x18] sm:$0xff] }
0x16d0   : > { %v8735_v5 = vpop.eup %8734  ;;  %4028 = vst.msk [vmem:[#allocation4 + $0x28] sm:$0xff] %vm1435_vm2, %v4026_v23  ;;  %v4174_v6 = vadd.f32 %v9599_v10, %v4100_v2  ;;  %v8259_v7 = vpop.f32.mrb[45].mxu0  ;;  %v4362_v24 = vadd.f32 %v9720_v55, %v9693_v42 }
0x16d1   : > { %v4343_v34 = vmul.f32 %v8735_v5, %v9717_v57  ;;  %v3111_v7 = vld [vmem:[%s9189_s24 + $0x40] sm:$0xff] }
0x16d2   : > { %v4177_v54 = vadd.f32 %v9680_v27, %v4174_v6  ;;  %8740 = vtanh.f32 %v4362_v24  ;;  %v3110_v6 = vld [vmem:[%s9189_s24 + $0x38] sm:$0xff]  ;;  %v3112_v24 = vld [vmem:[%s9189_s24 + $0x48] sm:$0xff] }
0x16d3   : > { %v4251_v40 = vpop.f32.mrb[46].mxu0  ;;  %v4344_v29 = vsel %vm1435_vm2, %v4343_v34, 0.0  ;;  %v9729_v48 = vld [vmem:[#allocation4 + $0x20] sm:$0xff]  ;;  %v9765_v34 = vpack.c.bf16 %v3111_v7, %v3110_v6 }
0x16d4   : > { %v8737_v31 = vpop.eup %8736  ;;  %4179 = vst.msk [vmem:[#allocation4 + $0x30] sm:$0xff] %vm1435_vm2, %v4177_v54  ;;  %v4325_v32 = vadd.f32 %v4324_v33, %v4251_v40  ;;  %4345 = vadd.xlane.f32.xlu0 %v4344_v29  ;;  %v8273_v10 = vpop.f32.mrb[47].mxu0  ;;  %v4369_v35 = vadd.f32 %v9729_v48, %v9693_v42  ;;  %v3113_v54 = vld [vmem:[%s9189_s24 + $0x50] sm:$0xff] }
0x16d5   : > { %v4350_v37 = vmul.f32 %v8737_v31, %v9717_v57  ;;  %v9768_v40 = vpack.c.bf16 %v3113_v54, %v3112_v24  ;;  %8547 = vmatpush3.bf16.msra.mxu0 %v9765_v34 }
0x16d6   : > { %v4328_v38 = vadd.f32 %v9680_v27, %v4325_v32  ;;  %8742 = vtanh.f32 %v4369_v35  ;;  %8551 = vmatprep.subr.bf16.mxu0 %v9131_v17 }
0x16d7   : > { %v4351_v21 = vsel %vm1435_vm2, %v4350_v37, 0.0  ;;  %v9737_v46 = vld [vmem:[#allocation4 + $0x28] sm:$0xff]  ;;  %8550 = vmatpush3.bf16.msra.mxu1 %v9768_v40 }
0x16d8   : > { %v8739_v8 = vpop.eup %8738  ;;  %4330 = vst.msk [vmem:[#allocation4 + $0x38] sm:$0xff] %vm1435_vm2, %v4328_v38  ;;  %4352 = vadd.xlane.f32.xlu1 %v4351_v21  ;;  %v4376_v33 = vadd.f32 %v9737_v46, %v9693_v42  ;;  %8554 = vmatprep.subr.bf16.mxu1 %v9131_v17 }
0x16d9   : > { %v4357_v26 = vmul.f32 %v8739_v8, %v9717_v57 }
0x16da   : > { %8744 = vtanh.f32 %v4376_v33 }
0x16db   : > { %v4358_v39 = vsel %vm1435_vm2, %v4357_v26, 0.0  ;;  %v9744_v41 = vld [vmem:[#allocation4 + $0x30] sm:$0xff] }
0x16dc   : > { %v8741_v27 = vpop.eup %8740  ;;  %4359 = vadd.xlane.f32.xlu0 %v4358_v39  ;;  %v4383_v16 = vadd.f32 %v9744_v41, %v9693_v42 }
0x16dd   : > { %v4364_v44 = vmul.f32 %v8741_v27, %v9717_v57 }
0x16de   : > { %8746 = vtanh.f32 %v4383_v16 }
0x16df   : > { %v4365_v45 = vsel %vm1435_vm2, %v4364_v44, 0.0  ;;  %v9750_v47 = vld [vmem:[#allocation4 + $0x38] sm:$0xff] }
0x16e0   : > { %v8743_v13 = vpop.eup %8742  ;;  %4366 = vadd.xlane.f32.xlu0 %v4365_v45  ;;  %v4390_v36 = vadd.f32 %v9750_v47, %v9693_v42 }
0x16e1   : > { %v4371_v28 = vmul.f32 %v8743_v13, %v9717_v57 }
0x16e2   : > { %8748 = vtanh.f32 %v4390_v36 }
0x16e3   : > { %v4372_v50 = vsel %vm1435_vm2, %v4371_v28, 0.0 }
0x16e4   : > { %v8745_v20 = vpop.eup %8744  ;;  %4373 = vadd.xlane.f32.xlu1 %v4372_v50 }
0x16e5   : > { %v4378_v51 = vmul.f32 %v8745_v20, %v9717_v57 }
0x16e7   : > { %v4379_v56 = vsel %vm1435_vm2, %v4378_v51, 0.0 }
0x16e8   : > { %v8747_v22 = vpop.eup %8746  ;;  %4380 = vadd.xlane.f32.xlu0 %v4379_v56 }
0x16e9   : > { %v4385_v58 = vmul.f32 %v8747_v22, %v9717_v57 }
0x16eb   : > { %v4386_v42 = vsel %vm1435_vm2, %v4385_v58, 0.0 }
0x16ec   : > { %v8749_v23 = vpop.eup %8748  ;;  %4387 = vadd.xlane.f32.xlu1 %v4386_v42 }
0x16ed   : > { %v4392_v2 = vmul.f32 %v8749_v23, %v9717_v57 }
0x16ef   : > { %v4393_v5 = vsel %vm1435_vm2, %v4392_v2, 0.0 }
0x16f0   : > { %4394 = vadd.xlane.f32.xlu0 %v4393_v5 }
0x1761   : > { %v4346_v29 = vpop.xlane.xlu0 %4345 }
0x1765   : > { %v4353_v32 = vpop.xlane.xlu1 %4352 }
0x1766   : > { %v4396_v10 = vmax.f32 %v4346_v29, %v4353_v32 }
0x1769   : > { %v4360_v31 = vpop.xlane.xlu0 %4359 }
0x176a   : > { %v4397_v37 = vmax.f32 %v4396_v10, %v4360_v31 }
0x176d   : > { %v4367_v35 = vpop.xlane.xlu0 %4366 }
0x176e   : > { %v4398_v21 = vmax.f32 %v4397_v37, %v4367_v35 }
0x1771   : > { %v4374_v38 = vpop.xlane.xlu1 %4373 }
0x1772   : > { %v4399_v33 = vmax.f32 %v4398_v21, %v4374_v38 }
0x1775   : > { %v4381_v8 = vpop.xlane.xlu0 %4380 }
0x1776   : > { %v4400_v39 = vmax.f32 %v4399_v33, %v4381_v8 }
0x1779   : > { %v4388_v26 = vpop.xlane.xlu1 %4387 }
0x177a   : > { %v4401_v27 = vmax.f32 %v4400_v39, %v4388_v26 }
0x177d   : > { %v4395_v16 = vpop.xlane.xlu0 %4394 }
0x177e   : > { %v4402_v44 = vmax.f32 %v4401_v27, %v4395_v16 }
0x1780   : > { %v4403_v45 = vsub.f32 %v4346_v29, %v4402_v44  ;;  %v4406_v13 = vsub.f32 %v4353_v32, %v4402_v44  ;;  %v4409_v36 = vsub.f32 %v4360_v31, %v4402_v44  ;;  %v4412_v28 = vsub.f32 %v4367_v35, %v4402_v44 }
0x1781   : > { %v4415_v56 = vsub.f32 %v4374_v38, %v4402_v44  ;;  %v4418_v58 = vsub.f32 %v4381_v8, %v4402_v44  ;;  %v4421_v23 = vsub.f32 %v4388_v26, %v4402_v44  ;;  %v4424_v5 = vsub.f32 %v4395_v16, %v4402_v44 }
0x1782   : > { %v4404_v50 = vmul.f32 1.442695, %v4403_v45  ;;  %v4407_v20 = vmul.f32 1.442695, %v4406_v13  ;;  %v4410_v51 = vmul.f32 1.442695, %v4409_v36 }
0x1783   : > { %v4413_v22 = vmul.f32 1.442695, %v4412_v28  ;;  %v4416_v42 = vmul.f32 1.442695, %v4415_v56  ;;  %v4419_v2 = vmul.f32 1.442695, %v4418_v58 }
0x1784   : > { %8750 = vpow2.f32 %v4404_v50  ;;  %v4422_v6 = vmul.f32 1.442695, %v4421_v23  ;;  %v4425_v7 = vmul.f32 1.442695, %v4424_v5 }
0x1785   : > { %8752 = vpow2.f32 %v4407_v20 }
0x1786   : > { %8754 = vpow2.f32 %v4410_v51 }
0x1787   : > { %8756 = vpow2.f32 %v4413_v22 }
0x1788   : > { %8758 = vpow2.f32 %v4416_v42 }
0x1789   : > { %8760 = vpow2.f32 %v4419_v2 }
0x178a   : > { %8762 = vpow2.f32 %v4422_v6 }
0x178b   : > { %8764 = vpow2.f32 %v4425_v7 }
0x178e   : > { %v8751_v24 = vpop.eup %8750 }
0x178f   : > { %v8753_v54 = vpop.eup %8752 }
0x1790   : > { %v4427_v29 = vadd.f32 %v8753_v54, %v8751_v24  ;;  %v8755_v31 = vpop.eup %8754 }
0x1791   : > { %v8757_v10 = vpop.eup %8756 }
0x1792   : > { %v4428_v32 = vadd.f32 %v8755_v31, %v4427_v29  ;;  %v8759_v37 = vpop.eup %8758 }
0x1793   : > { %v8761_v21 = vpop.eup %8760 }
0x1794   : > { %v4429_v35 = vadd.f32 %v8757_v10, %v4428_v32  ;;  %v8763_v33 = vpop.eup %8762 }
0x1795   : > { %v8765_v39 = vpop.eup %8764 }
0x1796   : > { %v4430_v38 = vadd.f32 %v8759_v37, %v4429_v35 }
0x1798   : > { %v4431_v8 = vadd.f32 %v8761_v21, %v4430_v38 }
0x179a   : > { %v4432_v26 = vadd.f32 %v8763_v33, %v4431_v8  ;;  %v3115_v8 = vld [vmem:[%s9189_s24 + $0x60] sm:$0xff] }
0x179c   : > { %v4433_v27 = vadd.f32 %v8765_v39, %v4432_v26 }
0x179e   : > { %8766 = vrcp.f32 %v4433_v27 }
0x17a8   : > { %v8767_v16 = vpop.eup %8766 }
0x17a9   : > { %v4436_v44 = vmul.f32 %v8767_v16, %v8751_v24  ;;  %v4443_v45 = vmul.f32 %v8767_v16, %v8753_v54  ;;  %v4450_v13 = vmul.f32 %v8767_v16, %v8755_v31  ;;  %v4457_v50 = vmul.f32 %v8767_v16, %v8757_v10 }
0x17aa   : > { %v4464_v20 = vmul.f32 %v8767_v16, %v8759_v37  ;;  %v4471_v42 = vmul.f32 %v8767_v16, %v8761_v21  ;;  %v4485_v54 = vmul.f32 %v8767_v16, %v8765_v39  ;;  %v3114_v21 = vld [vmem:[%s9189_s24 + $0x58] sm:$0xff] }
0x17ab   : > { %v4438_v36 = vmul.f32 %v9530_v30, %v4436_v44  ;;  %v4445_v28 = vmul.f32 %v9541_v59, %v4443_v45  ;;  %v4452_v56 = vmul.f32 %v9548_v61, %v4450_v13  ;;  %v4441_v22 = vmul.f32 %v9618_v9, %v4436_v44 }
0x17ac   : > { %v4448_v58 = vmul.f32 %v9625_v49, %v4443_v45  ;;  %v4459_v2 = vmul.f32 %v9555_v62, %v4457_v50  ;;  %v4455_v6 = vmul.f32 %v9638_v11, %v4450_v13  ;;  %v4478_v30 = vmul.f32 %v8767_v16, %v8763_v33  ;;  %v9811_v45 = vld [vmem:[%s9189_s24 + $0x68] ss:$0 sm:$0xff] }
0x17ad   : > { %v4446_v51 = vadd.f32 %v4445_v28, %v4438_v36  ;;  %v4466_v7 = vmul.f32 %v9562_v63, %v4464_v20  ;;  %v4462_v61 = vmul.f32 %v9645_v12, %v4457_v50  ;;  %v4473_v31 = vmul.f32 %v4471_v42, %v9569_v1 }
0x17ae   : > { %v4449_v5 = vadd.f32 %v4448_v58, %v4441_v22  ;;  %v4469_v10 = vmul.f32 %v9652_v14, %v4464_v20  ;;  %v4480_v35 = vmul.f32 %v4478_v30, %v9576_v3  ;;  %v4476_v38 = vmul.f32 %v4471_v42, %v9659_v4 }
0x17af   : > { %v4453_v23 = vadd.f32 %v4452_v56, %v4446_v51  ;;  %v4487_v63 = vmul.f32 %v4485_v54, %v9627_v60  ;;  %v4483_v39 = vmul.f32 %v4478_v30, %v9666_v15  ;;  %v9791_v27 = vpack.c.bf16 %v3115_v8, %v3114_v21  ;;  %v9815_v51 = vld [vmem:[%s9189_s24 + $0x6a] ss:$0 sm:$0xff] }
0x17b0   : > { %v4456_v24 = vadd.f32 %v4455_v6, %v4449_v5  ;;  %v4490_v44 = vmul.f32 %v4485_v54, %v9673_v25  ;;  %v4496_v13 = vmul.f32 0.001, %v9811_v45 }
0x17b1   : > { %v4460_v59 = vadd.f32 %v4459_v2, %v4453_v23  ;;  %v9820_v23 = vld [vmem:[%s9189_s24 + $0x69] ss:$0 sm:$0xff] }
0x17b2   : > { %v4463_v32 = vadd.f32 %v4462_v61, %v4456_v24 }
0x17b3   : > { %v4467_v29 = vadd.f32 %v4466_v7, %v4460_v59 }
0x17b4   : > { %v4470_v37 = vadd.f32 %v4469_v10, %v4463_v32  ;;  %v7751_v10 = vld [vmem:[%s9521_s5 + $0x23] ss:$0 sm:$0xff] }
0x17b5   : > { %v4474_v62 = vadd.f32 %v4473_v31, %v4467_v29 }
0x17b6   : > { %v4477_v26 = vadd.f32 %v4476_v38, %v4470_v37 }
0x17b7   : > { %v4481_v33 = vadd.f32 %v4480_v35, %v4474_v62 }
0x17b8   : > { %v4484_v16 = vadd.f32 %v4483_v39, %v4477_v26  ;;  %v9137_v39 = vmov 0  }
0x17b9   : > { %v4488_v1 = vadd.f32 %v4487_v63, %v4481_v33  ;;  %8636 = vset.pattern.permute.xlu0 %v9137_v39  ;;  %8637 = vset.pattern.permute.xlu1 %v9137_v39 }
0x17ba   : > { %v4491_v3 = vadd.f32 %v4490_v44, %v4484_v16 }
0x17bb   : > { %8286 = vmatmul.mubr.msk.f32.vlgmr.msra.gmra.mrb[48].mxu0 %vm1435_vm2, %v4488_v1  ;;  %v9835_v1 = vld [vmem:[%s9521_s5 + $0x24] ss:$0 sm:$0xff] }
0x17bc   : > { %8553 = vmatpush3.bf16.msra.mxu0 %v9791_v27  ;;  %8299 = vmatprep.mubr.msk.f32.mxu0 %vm9130_vm0, %v9129_v0 }
0x17bd   : > { %8293 = vmatmul.mubr.msk.f32.vlgmr.msra.gmra.mrb[48].mxu1 %vm1435_vm2, %v4491_v3  ;;  %8557 = vmatprep.subr.bf16.mxu0 %v9131_v17 }
0x17be   : > { %8556 = vmatpush3.bf16.msra.mxu1 %v9765_v34  ;;  %8306 = vmatprep.mubr.msk.f32.mxu1 %vm9130_vm0, %v9129_v0 }
0x17bf   : > { %8300 = vmatmul.mubr.msk.f32.vlgmr.msra.gmra.mrb[50].mxu0 %vm1435_vm2, %v9132_v18  ;;  %8560 = vmatprep.subr.bf16.mxu1 %v9131_v17 }
0x17c0   : > { %8559 = vmatpush3.bf16.msra.mxu0 %v9768_v40  ;;  %8313 = vmatprep.mubr.msk.f32.mxu0 %vm9130_vm0, %v9129_v0 }
0x17c1   : > { %8563 = vmatprep.subr.bf16.mxu0 %v9131_v17 }
0x188e   : > { %v4566_v36 = vpop.f32.mrb[48].mxu0 }
0x188f   : > { %v4570_v28 = vadd.f32 %v4566_v36, %v4496_v13  ;;  %v8287_v50 = vpop.f32.mrb[49].mxu0 }
0x1890   : > { %v4640_v20 = vpop.f32.mrb[48].mxu1 }
0x1891   : > { %v4644_v18 = vadd.f32 %v4640_v20, %v4570_v28  ;;  %v8294_v56 = vpop.f32.mrb[49].mxu1 }
0x1892   : > { %v4720_v22 = vpop.f32.mrb[50].mxu0 }
0x1893   : > { %v4721_v58 = vadd.f32 %v9815_v51, %v4720_v22  ;;  %v8301_v42 = vpop.f32.mrb[51].mxu0  ;;  %v4649_v2 = vadd.f32 %v9820_v23, %v4644_v18 }
0x1895   : > { %4732 = vrot.lane.b32.xlu1 %v4721_v58, %s9133_s25  ;;  %v4724_v5 = vadd.f32 %v4721_v58, %v4649_v2 }
0x1897   : > { %v4725_v6 = vsub.f32 0.0, %v4724_v5 }
0x1899   : > { %v4726_v30 = vmul.f32 1.442695, %v4725_v6 }
0x189b   : > { %8768 = vpow2.f32 %v4726_v30 }
0x18a5   : > { %v8769_v59 = vpop.eup %8768 }
0x18a6   : > { %v4728_v7 = vadd.f32 1.0, %v8769_v59 }
0x18a8   : > { %8770 = vrcp.f32 %v4728_v7 }
0x18b2   : > { %v8771_v24 = vpop.eup %8770 }
0x18b3   : > { %v4742_v62 = vsub.f32 1.0, %v8771_v24  ;;  %v4748_v37 = vmul.f32 0.001, %v8771_v24 }
0x1907   : > { %v4733_v61 = vpop.permute.xlu1 %4732 }
0x1908   : > { %v4735_v54 = vmul.f32 %v8771_v24, %v4733_v61 }
0x190a   : > { %4737 = vrot.lane.b32.xlu0 %v4735_v54, %s9134_s26 }
0x197c   : > { %v4738_v29 = vpop.permute.xlu0 %4737 }
0x197d   : > { %v4740_v31 = vadd.f32 %v4738_v29, %v4649_v2 }
0x197f   : > { %8772 = vtanh.f32 %v4740_v31 }
0x1989   : > { %v8773_v32 = vpop.eup %8772 }
0x198a   : > { %4744 = vrot.lane.b32.xlu1 %v8773_v32, %s9135_s27 }
0x198e   : > { %4755 = vrot.lane.b32.xlu1 %v7751_v10, %s9136_s6 }
0x19fc   : > { %v4745_v35 = vpop.permute.xlu1 %4744 }
0x19fd   : > { %v4747_v38 = vmul.f32 %v4745_v35, %v4742_v62 }
0x19ff   : > { %v9826_v21 = vadd.f32 %v4748_v37, %v4747_v38 }
0x1a00   : > { %v9828_v8 = vpop.permute.xlu1 %4755 }
0x1a01   : > { %v4758_v33 = vmul.f32 %v9828_v8, %v9826_v21 }
0x1a03   : > { %4760 = vrot.lane.b32.xlu0 %v4758_v33, %s9135_s27 }
0x1a75   : > { %v4761_v63 = vpop.permute.xlu0 %4760 }
0x1a76   : > { %v4763_v26 = vsel %vm1435_vm2, %v4761_v63, 0.0 }
0x1a77   : > { %4764 = vadd.xlane.f32.xlu1 %v4763_v26 }
0x1b04   : > { %v4765_v16 = vpop.xlane.xlu1 %4764 }
0x1b05   : > { %v4770_v44 = vadd.f32 %v9835_v1, %v4765_v16 }
0x1b07   : > { %4773 = vperm.xlu0 %8636, %v4770_v44  }
0x1b86   : > { %v9838_v3 = vpop.permute.xlu0 %4773 }
0x1b87   : > { %v4782_v13 = vmul.f32 %v9687_v19, %v9838_v3 }
0x1b89   : > { %v4789_v36 = vadd.f32 %v4782_v13, %v9703_v52  ;;  %v4783_v28 = vadd.f32 %v4782_v13, %v9696_v43  ;;  %v4795_v50 = vadd.f32 %v4782_v13, %v9710_v53  ;;  %v4801_v20 = vadd.f32 %v4782_v13, %v9720_v55 }
0x1b8a   : > { %v4807_v18 = vadd.f32 %v4782_v13, %v9729_v48  ;;  %v4813_v56 = vadd.f32 %v4782_v13, %v9737_v46  ;;  %v4819_v22 = vadd.f32 %v4782_v13, %v9744_v41  ;;  %v4825_v58 = vadd.f32 %v4782_v13, %v9750_v47 }
0x1b8b   : > { %8774 = vtanh.f32 %v4789_v36 }
0x1b8c   : > { %8776 = vtanh.f32 %v4783_v28 }
0x1b8d   : > { %8778 = vtanh.f32 %v4795_v50 }
0x1b8e   : > { %8780 = vtanh.f32 %v4801_v20 }
0x1b8f   : > { %8782 = vtanh.f32 %v4807_v18 }
0x1b90   : > { %8784 = vtanh.f32 %v4813_v56 }
0x1b91   : > { %8786 = vtanh.f32 %v4819_v22 }
0x1b92   : > { %8788 = vtanh.f32 %v4825_v58 }
0x1b95   : > { %v8775_v42 = vpop.eup %8774 }
0x1b96   : > { %v8777_v2 = vpop.eup %8776  ;;  %v4791_v5 = vmul.f32 %v8775_v42, %v9717_v57 }
0x1b97   : > { %v8779_v6 = vpop.eup %8778  ;;  %v4785_v30 = vmul.f32 %v8777_v2, %v9717_v57 }
0x1b98   : > { %v8781_v59 = vpop.eup %8780  ;;  %v4792_v7 = vsel %vm1435_vm2, %v4791_v5, 0.0  ;;  %v4797_v24 = vmul.f32 %v8779_v6, %v9717_v57 }
0x1b99   : > { %v8783_v61 = vpop.eup %8782  ;;  %4793 = vadd.xlane.f32.xlu1 %v4792_v7  ;;  %v4786_v54 = vsel %vm1435_vm2, %v4785_v30, 0.0  ;;  %v4803_v29 = vmul.f32 %v8781_v59, %v9717_v57 }
0x1b9a   : > { %v8785_v31 = vpop.eup %8784  ;;  %4787 = vadd.xlane.f32.xlu0 %v4786_v54  ;;  %v4798_v32 = vsel %vm1435_vm2, %v4797_v24, 0.0  ;;  %v4809_v10 = vmul.f32 %v8783_v61, %v9717_v57 }
0x1b9b   : > { %v8787_v62 = vpop.eup %8786  ;;  %v4804_v35 = vsel %vm1435_vm2, %v4803_v29, 0.0  ;;  %v4815_v37 = vmul.f32 %v8785_v31, %v9717_v57 }
0x1b9c   : > { %v8789_v38 = vpop.eup %8788  ;;  %v4810_v33 = vsel %vm1435_vm2, %v4809_v10, 0.0  ;;  %v4821_v63 = vmul.f32 %v8787_v62, %v9717_v57 }
0x1b9d   : > { %4799 = vadd.xlane.f32.xlu1 %v4798_v32  ;;  %v4816_v26 = vsel %vm1435_vm2, %v4815_v37, 0.0  ;;  %v4827_v39 = vmul.f32 %v8789_v38, %v9717_v57 }
0x1b9e   : > { %4805 = vadd.xlane.f32.xlu0 %v4804_v35  ;;  %v4822_v16 = vsel %vm1435_vm2, %v4821_v63, 0.0 }
0x1b9f   : > { %v4828_v44 = vsel %vm1435_vm2, %v4827_v39, 0.0 }
0x1ba1   : > { %4811 = vadd.xlane.f32.xlu1 %v4810_v33 }
0x1ba2   : > { %4817 = vadd.xlane.f32.xlu0 %v4816_v26 }
0x1ba5   : > { %4823 = vadd.xlane.f32.xlu1 %v4822_v16 }
0x1ba6   : > { %4829 = vadd.xlane.f32.xlu0 %v4828_v44 }
0x1bb6   : > { %5062 = vrot.lane.b32.xlu1 %v9826_v21, %s9135_s27 }
0x1c26   : > { %v4794_v13 = vpop.xlane.xlu1 %4793 }
0x1c27   : > { %v4788_v36 = vpop.xlane.xlu0 %4787 }
0x1c28   : > { %v4831_v28 = vmax.f32 %v4788_v36, %v4794_v13 }
0x1c2a   : > { %v4800_v50 = vpop.xlane.xlu1 %4799 }
0x1c2b   : > { %v4832_v20 = vmax.f32 %v4831_v28, %v4800_v50  ;;  %v4806_v18 = vpop.xlane.xlu0 %4805 }
0x1c2d   : > { %v4833_v56 = vmax.f32 %v4832_v20, %v4806_v18 }
0x1c2e   : > { %v4812_v22 = vpop.xlane.xlu1 %4811 }
0x1c2f   : > { %v4834_v58 = vmax.f32 %v4833_v56, %v4812_v22  ;;  %v4818_v42 = vpop.xlane.xlu0 %4817 }
0x1c31   : > { %v4835_v2 = vmax.f32 %v4834_v58, %v4818_v42 }
0x1c32   : > { %v4824_v5 = vpop.xlane.xlu1 %4823 }
0x1c33   : > { %v4836_v6 = vmax.f32 %v4835_v2, %v4824_v5  ;;  %v4830_v30 = vpop.xlane.xlu0 %4829 }
0x1c35   : > { %v4837_v59 = vmax.f32 %v4836_v6, %v4830_v30 }
0x1c37   : > { %v4838_v7 = vsub.f32 %v4788_v36, %v4837_v59  ;;  %v4841_v24 = vsub.f32 %v4794_v13, %v4837_v59  ;;  %v4844_v61 = vsub.f32 %v4800_v50, %v4837_v59  ;;  %v4847_v54 = vsub.f32 %v4806_v18, %v4837_v59 }
0x1c38   : > { %v4850_v10 = vsub.f32 %v4812_v22, %v4837_v59  ;;  %v4853_v35 = vsub.f32 %v4818_v42, %v4837_v59  ;;  %v4856_v38 = vsub.f32 %v4824_v5, %v4837_v59  ;;  %v4859_v63 = vsub.f32 %v4830_v30, %v4837_v59 }
0x1c39   : > { %v4839_v29 = vmul.f32 1.442695, %v4838_v7  ;;  %v4842_v31 = vmul.f32 1.442695, %v4841_v24  ;;  %v4845_v32 = vmul.f32 1.442695, %v4844_v61 }
0x1c3a   : > { %v4848_v62 = vmul.f32 1.442695, %v4847_v54  ;;  %v4851_v37 = vmul.f32 1.442695, %v4850_v10  ;;  %v4854_v33 = vmul.f32 1.442695, %v4853_v35 }
0x1c3b   : > { %8790 = vpow2.f32 %v4839_v29  ;;  %v4857_v26 = vmul.f32 1.442695, %v4856_v38  ;;  %v4860_v39 = vmul.f32 1.442695, %v4859_v63  ;;  %v9868_v61 = vld [vmem:[#allocation2] sm:$0xff]  ;;  %v9871_v29 = vld [vmem:[#allocation2 + $0x8] sm:$0xff] }
0x1c3c   : > { %8792 = vpow2.f32 %v4842_v31  ;;  %v9874_v35 = vld [vmem:[#allocation2 + $0x10] sm:$0xff] }
0x1c3d   : > { %8794 = vpow2.f32 %v4845_v32 }
0x1c3e   : > { %8796 = vpow2.f32 %v4848_v62 }
0x1c3f   : > { %8798 = vpow2.f32 %v4851_v37 }
0x1c40   : > { %8800 = vpow2.f32 %v4854_v33 }
0x1c41   : > { %8802 = vpow2.f32 %v4857_v26 }
0x1c42   : > { %8804 = vpow2.f32 %v4860_v39  ;;  %v9879_v39 = vld [vmem:[#allocation2 + $0x18] sm:$0xff] }
0x1c45   : > { %v8791_v16 = vpop.eup %8790 }
0x1c46   : > { %v8793_v44 = vpop.eup %8792 }
0x1c47   : > { %v4862_v13 = vadd.f32 %v8793_v44, %v8791_v16  ;;  %v8795_v36 = vpop.eup %8794 }
0x1c48   : > { %v8797_v50 = vpop.eup %8796 }
0x1c49   : > { %v4863_v28 = vadd.f32 %v8795_v36, %v4862_v13  ;;  %v8799_v18 = vpop.eup %8798 }
0x1c4a   : > { %v8801_v22 = vpop.eup %8800 }
0x1c4b   : > { %v4864_v20 = vadd.f32 %v8797_v50, %v4863_v28  ;;  %v8803_v42 = vpop.eup %8802 }
0x1c4c   : > { %v8805_v5 = vpop.eup %8804 }
0x1c4d   : > { %v4865_v56 = vadd.f32 %v8799_v18, %v4864_v20 }
0x1c4f   : > { %v4866_v58 = vadd.f32 %v8801_v22, %v4865_v56 }
0x1c51   : > { %v4867_v2 = vadd.f32 %v8803_v42, %v4866_v58 }
0x1c53   : > { %v4868_v6 = vadd.f32 %v8805_v5, %v4867_v2 }
0x1c55   : > { %8806 = vrcp.f32 %v4868_v6 }
0x1c5f   : > { %v8807_v30 = vpop.eup %8806 }
0x1c60   : > { %v4871_v59 = vmul.f32 %v8807_v30, %v8791_v16  ;;  %v4876_v7 = vmul.f32 %v8807_v30, %v8793_v44  ;;  %v4881_v24 = vmul.f32 %v8807_v30, %v8795_v36  ;;  %v4886_v32 = vmul.f32 %v8807_v30, %v8797_v50  ;;  %v9883_v50 = vld [vmem:[#allocation2 + $0x20] sm:$0xff] }
0x1c61   : > { %v4891_v10 = vmul.f32 %v8807_v30, %v8799_v18  ;;  %v4896_v63 = vmul.f32 %v8807_v30, %v8801_v22  ;;  %v4901_v36 = vmul.f32 %v8807_v30, %v8803_v42  ;;  %v4906_v56 = vmul.f32 %v8807_v30, %v8805_v5  ;;  %v9887_v22 = vld [vmem:[#allocation2 + $0x28] sm:$0xff] }
0x1c62   : > { %v4872_v54 = vmul.f32 %v9868_v61, %v4871_v59  ;;  %v4877_v31 = vmul.f32 %v9871_v29, %v4876_v7  ;;  %v4882_v37 = vmul.f32 %v9874_v35, %v4881_v24  ;;  %v4874_v38 = vmul.f32 %v4871_v59, %v9618_v9 }
0x1c63   : > { %v4879_v33 = vmul.f32 %v4876_v7, %v9625_v49  ;;  %v4887_v16 = vmul.f32 %v9879_v39, %v4886_v32  ;;  %v4884_v13 = vmul.f32 %v4881_v24, %v9638_v11  ;;  %v4892_v20 = vmul.f32 %v9883_v50, %v4891_v10  ;;  %v9891_v11 = vld [vmem:[#allocation2 + $0x30] sm:$0xff] }
0x1c64   : > { %v4878_v62 = vadd.f32 %v4877_v31, %v4872_v54  ;;  %v4889_v9 = vmul.f32 %v4886_v32, %v9645_v12  ;;  %v4897_v58 = vmul.f32 %v9887_v22, %v4896_v63  ;;  %v4894_v6 = vmul.f32 %v4891_v10, %v9652_v14 }
0x1c65   : > { %v4880_v44 = vadd.f32 %v4879_v33, %v4874_v38  ;;  %v4902_v42 = vmul.f32 %v9891_v11, %v4901_v36  ;;  %v4899_v24 = vmul.f32 %v4896_v63, %v9659_v4  ;;  %v4907_v12 = vmul.f32 %v4906_v56, %v9627_v60  ;;  %v5063_v60 = vpop.permute.xlu1 %5062 }
0x1c66   : > { %v4883_v26 = vadd.f32 %v4882_v37, %v4878_v62  ;;  %v4904_v30 = vmul.f32 %v4901_v36, %v9666_v15  ;;  %v4909_v62 = vmul.f32 %v4906_v56, %v9673_v25  ;;  %v4911_v4 = vmul.f32 %v9811_v45, %v9838_v3 }
0x1c67   : > { %v4885_v18 = vadd.f32 %v4884_v13, %v4880_v44 }
0x1c68   : > { %v4888_v28 = vadd.f32 %v4887_v16, %v4883_v26 }
0x1c69   : > { %v4890_v2 = vadd.f32 %v4889_v9, %v4885_v18 }
0x1c6a   : > { %v4893_v49 = vadd.f32 %v4892_v20, %v4888_v28 }
0x1c6b   : > { %v4895_v7 = vadd.f32 %v4894_v6, %v4890_v2 }
0x1c6c   : > { %v4898_v59 = vadd.f32 %v4897_v58, %v4893_v49 }
0x1c6d   : > { %v4900_v5 = vadd.f32 %v4899_v24, %v4895_v7 }
0x1c6e   : > { %v4903_v54 = vadd.f32 %v4902_v42, %v4898_v59 }
0x1c6f   : > { %v4905_v32 = vadd.f32 %v4904_v30, %v4900_v5 }
0x1c70   : > { %v4908_v31 = vadd.f32 %v4907_v12, %v4903_v54 }
0x1c71   : > { %v4910_v14 = vadd.f32 %v4909_v62, %v4905_v32 }
0x1c72   : > { %8307 = vmatmul.mubr.msk.f32.vlgmr.msra.gmra.mrb[50].mxu1 %vm1435_vm2, %v4908_v31 }
0x1c73   : > { %8562 = vmatpush3.bf16.msra.mxu1 %v9791_v27  ;;  %8320 = vmatprep.mubr.msk.f32.mxu1 %vm9130_vm0, %v9129_v0 }
0x1c74   : > { %8314 = vmatmul.mubr.msk.f32.vlgmr.msra.gmra.mrb[52].mxu0 %vm1435_vm2, %v4910_v14  ;;  %8566 = vmatprep.subr.bf16.mxu1 %v9131_v17 }
0x1c75   : > { %8565 = vmatpush3.bf16.msra.mxu0 %v9765_v34  ;;  %8327 = vmatprep.mubr.msk.f32.mxu0 %vm9130_vm0, %v9129_v0 }
0x1c76   : > { %8321 = vmatmul.mubr.msk.f32.vlgmr.msra.gmra.mrb[52].mxu1 %vm1435_vm2, %v5063_v60  ;;  %8569 = vmatprep.subr.bf16.mxu0 %v9131_v17 }
0x1c77   : > { %8568 = vmatpush3.bf16.msra.mxu1 %v9768_v40  ;;  %8334 = vmatprep.mubr.msk.f32.mxu1 %vm9130_vm0, %v9129_v0 }
0x1c78   : > { %8572 = vmatprep.subr.bf16.mxu1 %v9131_v17 }
0x1d45   : > { %v4981_v15 = vpop.f32.mrb[50].mxu1 }
0x1d46   : > { %v4985_v25 = vadd.f32 %v4981_v15, %v4911_v4  ;;  %v8308_v10 = vpop.f32.mrb[51].mxu1 }
0x1d47   : > { %v5055_v37 = vpop.f32.mrb[52].mxu0 }
0x1d48   : > { %v5059_v38 = vadd.f32 %v5055_v37, %v4985_v25  ;;  %v8315_v33 = vpop.f32.mrb[53].mxu0 }
0x1d49   : > { %v5132_v63 = vpop.f32.mrb[52].mxu1 }
0x1d4a   : > { %v5133_v26 = vadd.f32 %v9815_v51, %v5132_v63  ;;  %v8322_v16 = vpop.f32.mrb[53].mxu1  ;;  %v5060_v44 = vadd.f32 %v9820_v23, %v5059_v38 }
0x1d4c   : > { %5144 = vrot.lane.b32.xlu0 %v5133_v26, %s9133_s25  ;;  %v5136_v13 = vadd.f32 %v5133_v26, %v5060_v44 }
0x1d4e   : > { %v5137_v36 = vsub.f32 0.0, %v5136_v13 }
0x1d50   : > { %v5138_v28 = vmul.f32 1.442695, %v5137_v36 }
0x1d52   : > { %8808 = vpow2.f32 %v5138_v28 }
0x1d5c   : > { %v8809_v20 = vpop.eup %8808 }
0x1d5d   : > { %v5140_v18 = vadd.f32 1.0, %v8809_v20 }
0x1d5f   : > { %8810 = vrcp.f32 %v5140_v18 }
0x1d69   : > { %v8811_v9 = vpop.eup %8810 }
0x1d6a   : > { %v5154_v59 = vsub.f32 1.0, %v8811_v9  ;;  %v5160_v7 = vmul.f32 %v8811_v9, %v9826_v21 }
0x1dbe   : > { %v5145_v56 = vpop.permute.xlu0 %5144 }
0x1dbf   : > { %v5147_v49 = vmul.f32 %v8811_v9, %v5145_v56 }
0x1dc1   : > { %5149 = vrot.lane.b32.xlu1 %v5147_v49, %s9134_s26 }
0x1e33   : > { %v5150_v58 = vpop.permute.xlu1 %5149 }
0x1e34   : > { %v5152_v2 = vadd.f32 %v5150_v58, %v5060_v44 }
0x1e36   : > { %8812 = vtanh.f32 %v5152_v2 }
0x1e40   : > { %v8813_v6 = vpop.eup %8812 }
0x1e41   : > { %5156 = vrot.lane.b32.xlu1 %v8813_v6, %s9135_s27 }
0x1eb3   : > { %v5157_v42 = vpop.permute.xlu1 %5156 }
0x1eb4   : > { %v5159_v24 = vmul.f32 %v5157_v42, %v5154_v59 }
0x1eb6   : > { %v9921_v54 = vadd.f32 %v5160_v7, %v5159_v24 }
0x1eb8   : > { %v5162_v12 = vmul.f32 %v9921_v54, %v9828_v8 }
0x1eba   : > { %5164 = vrot.lane.b32.xlu0 %v5162_v12, %s9135_s27 }
0x1f2c   : > { %v5165_v5 = vpop.permute.xlu0 %5164 }
0x1f2d   : > { %v5167_v30 = vsel %vm1435_vm2, %v5165_v5, 0.0 }
0x1f2e   : > { %5168 = vadd.xlane.f32.xlu1 %v5167_v30 }
0x1fbb   : > { %v5169_v31 = vpop.xlane.xlu1 %5168 }
0x1fbc   : > { %v5170_v32 = vadd.f32 %v9835_v1, %v5169_v31 }
0x1fbe   : > { %5173 = vperm.xlu0 %8636, %v5170_v32  }
0x203d   : > { %v9928_v62 = vpop.permute.xlu0 %5173 }
0x203e   : > { %v5182_v21 = vmul.f32 %v9687_v19, %v9928_v62 }
0x2040   : > { %v5189_v14 = vadd.f32 %v5182_v21, %v9703_v52  ;;  %v5183_v60 = vadd.f32 %v5182_v21, %v9696_v43  ;;  %v5201_v4 = vadd.f32 %v5182_v21, %v9720_v55  ;;  %v5195_v15 = vadd.f32 %v5182_v21, %v9710_v53 }
0x2041   : > { %v5213_v25 = vadd.f32 %v5182_v21, %v9737_v46  ;;  %v5207_v10 = vadd.f32 %v5182_v21, %v9729_v48  ;;  %v5225_v37 = vadd.f32 %v5182_v21, %v9750_v47  ;;  %v5219_v19 = vadd.f32 %v5182_v21, %v9744_v41 }
0x2042   : > { %8814 = vtanh.f32 %v5189_v14 }
0x2043   : > { %8816 = vtanh.f32 %v5183_v60 }
0x2044   : > { %8818 = vtanh.f32 %v5201_v4 }
0x2045   : > { %8820 = vtanh.f32 %v5195_v15 }
0x2046   : > { %8822 = vtanh.f32 %v5213_v25 }
0x2047   : > { %8824 = vtanh.f32 %v5207_v10 }
0x2048   : > { %8826 = vtanh.f32 %v5225_v37 }
0x2049   : > { %8828 = vtanh.f32 %v5219_v19 }
0x204c   : > { %v8815_v43 = vpop.eup %8814 }
0x204d   : > { %v8817_v52 = vpop.eup %8816  ;;  %v5191_v53 = vmul.f32 %v8815_v43, %v9717_v57 }
0x204e   : > { %v8819_v55 = vpop.eup %8818  ;;  %v5185_v46 = vmul.f32 %v8817_v52, %v9717_v57 }
0x204f   : > { %v8821_v38 = vpop.eup %8820  ;;  %v5192_v48 = vsel %vm1435_vm2, %v5191_v53, 0.0  ;;  %v5203_v33 = vmul.f32 %v8819_v55, %v9717_v57 }
0x2050   : > { %v8823_v63 = vpop.eup %8822  ;;  %5193 = vadd.xlane.f32.xlu1 %v5192_v48  ;;  %v5186_v47 = vsel %vm1435_vm2, %v5185_v46, 0.0  ;;  %v5197_v41 = vmul.f32 %v8821_v38, %v9717_v57 }
0x2051   : > { %v8825_v26 = vpop.eup %8824  ;;  %5187 = vadd.xlane.f32.xlu0 %v5186_v47  ;;  %v5204_v16 = vsel %vm1435_vm2, %v5203_v33, 0.0  ;;  %v5215_v44 = vmul.f32 %v8823_v63, %v9717_v57 }
0x2052   : > { %v8827_v13 = vpop.eup %8826  ;;  %v5198_v36 = vsel %vm1435_vm2, %v5197_v41, 0.0  ;;  %v5209_v28 = vmul.f32 %v8825_v26, %v9717_v57 }
0x2053   : > { %v8829_v20 = vpop.eup %8828  ;;  %v5216_v18 = vsel %vm1435_vm2, %v5215_v44, 0.0  ;;  %v5227_v9 = vmul.f32 %v8827_v13, %v9717_v57 }
0x2054   : > { %5205 = vadd.xlane.f32.xlu1 %v5204_v16  ;;  %v5210_v56 = vsel %vm1435_vm2, %v5209_v28, 0.0  ;;  %v5221_v49 = vmul.f32 %v8829_v20, %v9717_v57 }
0x2055   : > { %5199 = vadd.xlane.f32.xlu0 %v5198_v36  ;;  %v5228_v58 = vsel %vm1435_vm2, %v5227_v9, 0.0 }
0x2056   : > { %v5222_v2 = vsel %vm1435_vm2, %v5221_v49, 0.0 }
0x2058   : > { %5217 = vadd.xlane.f32.xlu1 %v5216_v18 }
0x2059   : > { %5211 = vadd.xlane.f32.xlu0 %v5210_v56 }
0x205c   : > { %5229 = vadd.xlane.f32.xlu1 %v5228_v58 }
0x205d   : > { %5223 = vadd.xlane.f32.xlu0 %v5222_v2 }
0x2073   : > { %5462 = vrot.lane.b32.xlu0 %v9921_v54, %s9135_s27 }
0x20dd   : > { %v5194_v6 = vpop.xlane.xlu1 %5193 }
0x20de   : > { %v5188_v59 = vpop.xlane.xlu0 %5187 }
0x20df   : > { %v5231_v42 = vmax.f32 %v5188_v59, %v5194_v6 }
0x20e1   : > { %v5206_v7 = vpop.xlane.xlu1 %5205 }
0x20e2   : > { %v5200_v24 = vpop.xlane.xlu0 %5199 }
0x20e3   : > { %v5232_v12 = vmax.f32 %v5231_v42, %v5200_v24 }
0x20e5   : > { %v5233_v5 = vmax.f32 %v5232_v12, %v5206_v7  ;;  %v5218_v30 = vpop.xlane.xlu1 %5217 }
0x20e6   : > { %v5212_v31 = vpop.xlane.xlu0 %5211 }
0x20e7   : > { %v5234_v57 = vmax.f32 %v5233_v5, %v5212_v31 }
0x20e9   : > { %v5235_v32 = vmax.f32 %v5234_v57, %v5218_v30  ;;  %v5230_v60 = vpop.xlane.xlu1 %5229 }
0x20ea   : > { %v5224_v21 = vpop.xlane.xlu0 %5223 }
0x20eb   : > { %v5236_v14 = vmax.f32 %v5235_v32, %v5224_v21 }
0x20ed   : > { %v5237_v4 = vmax.f32 %v5236_v14, %v5230_v60  ;;  %v9961_v14 = vld [vmem:[#allocation3] sm:$0xff] }
0x20ef   : > { %v5238_v15 = vsub.f32 %v5188_v59, %v5237_v4  ;;  %v5241_v25 = vsub.f32 %v5194_v6, %v5237_v4  ;;  %v5244_v10 = vsub.f32 %v5200_v24, %v5237_v4  ;;  %v5247_v37 = vsub.f32 %v5206_v7, %v5237_v4 }
0x20f0   : > { %v5250_v53 = vsub.f32 %v5212_v31, %v5237_v4  ;;  %v5253_v46 = vsub.f32 %v5218_v30, %v5237_v4  ;;  %v5256_v48 = vsub.f32 %v5224_v21, %v5237_v4  ;;  %v5259_v63 = vsub.f32 %v5230_v60, %v5237_v4  ;;  %v9964_v4 = vld [vmem:[#allocation3 + $0x8] sm:$0xff] }
0x20f1   : > { %v5239_v19 = vmul.f32 1.442695, %v5238_v15  ;;  %v5242_v43 = vmul.f32 1.442695, %v5241_v25  ;;  %v5245_v52 = vmul.f32 1.442695, %v5244_v10 }
0x20f2   : > { %v5248_v55 = vmul.f32 1.442695, %v5247_v37  ;;  %v5251_v38 = vmul.f32 1.442695, %v5250_v53  ;;  %v5254_v33 = vmul.f32 1.442695, %v5253_v46 }
0x20f3   : > { %8830 = vpow2.f32 %v5239_v19  ;;  %v5257_v47 = vmul.f32 1.442695, %v5256_v48  ;;  %v5260_v41 = vmul.f32 1.442695, %v5259_v63  ;;  %v9972_v48 = vld [vmem:[#allocation3 + $0x18] sm:$0xff] }
0x20f4   : > { %8832 = vpow2.f32 %v5242_v43  ;;  %v9968_v43 = vld [vmem:[#allocation3 + $0x10] sm:$0xff] }
0x20f5   : > { %8834 = vpow2.f32 %v5245_v52 }
0x20f6   : > { %8836 = vpow2.f32 %v5248_v55 }
0x20f7   : > { %8838 = vpow2.f32 %v5251_v38 }
0x20f8   : > { %8840 = vpow2.f32 %v5254_v33 }
0x20f9   : > { %8842 = vpow2.f32 %v5257_v47 }
0x20fa   : > { %8844 = vpow2.f32 %v5260_v41 }
0x20fd   : > { %v8831_v26 = vpop.eup %8830 }
0x20fe   : > { %v8833_v16 = vpop.eup %8832 }
0x20ff   : > { %v5262_v44 = vadd.f32 %v8833_v16, %v8831_v26  ;;  %v8835_v13 = vpop.eup %8834 }
0x2100   : > { %v8837_v28 = vpop.eup %8836 }
0x2101   : > { %v5263_v36 = vadd.f32 %v8835_v13, %v5262_v44  ;;  %v8839_v18 = vpop.eup %8838 }
0x2102   : > { %v8841_v56 = vpop.eup %8840 }
0x2103   : > { %v5264_v20 = vadd.f32 %v8837_v28, %v5263_v36  ;;  %v8843_v58 = vpop.eup %8842 }
0x2104   : > { %v8845_v6 = vpop.eup %8844 }
0x2105   : > { %v5265_v9 = vadd.f32 %v8839_v18, %v5264_v20  ;;  %v9980_v20 = vld [vmem:[#allocation3 + $0x28] sm:$0xff] }
0x2107   : > { %v5266_v49 = vadd.f32 %v8841_v56, %v5265_v9  ;;  %v9983_v9 = vld [vmem:[#allocation3 + $0x30] sm:$0xff] }
0x2109   : > { %v5267_v2 = vadd.f32 %v8843_v58, %v5266_v49 }
0x210b   : > { %v5268_v59 = vadd.f32 %v8845_v6, %v5267_v2 }
0x210d   : > { %8846 = vrcp.f32 %v5268_v59 }
0x2117   : > { %v8847_v42 = vpop.eup %8846 }
0x2118   : > { %v5271_v7 = vmul.f32 %v8847_v42, %v8831_v26  ;;  %v5276_v24 = vmul.f32 %v8847_v42, %v8833_v16  ;;  %v5281_v12 = vmul.f32 %v8847_v42, %v8835_v13  ;;  %v5286_v31 = vmul.f32 %v8847_v42, %v8837_v28  ;;  %v9976_v16 = vld [vmem:[#allocation3 + $0x20] sm:$0xff] }
0x2119   : > { %v5291_v57 = vmul.f32 %v8847_v42, %v8839_v18  ;;  %v5296_v25 = vmul.f32 %v8847_v42, %v8841_v56  ;;  %v5301_v53 = vmul.f32 %v8847_v42, %v8843_v58  ;;  %v5306_v63 = vmul.f32 %v8847_v42, %v8845_v6  ;;  %v9986_v58 = vld [vmem:[#allocation2 + $0x38] sm:$0xff] }
0x211a   : > { %v5272_v5 = vmul.f32 %v9868_v61, %v5271_v7  ;;  %v5277_v30 = vmul.f32 %v9871_v29, %v5276_v24  ;;  %v5282_v21 = vmul.f32 %v9874_v35, %v5281_v12  ;;  %v5274_v60 = vmul.f32 %v9961_v14, %v5271_v7  ;;  %v9989_v7 = vld [vmem:[#allocation3 + $0x38] sm:$0xff] }
0x211b   : > { %v5279_v15 = vmul.f32 %v9964_v4, %v5276_v24  ;;  %v5287_v37 = vmul.f32 %v9879_v39, %v5286_v31  ;;  %v5284_v52 = vmul.f32 %v9968_v43, %v5281_v12  ;;  %v5292_v46 = vmul.f32 %v9883_v50, %v5291_v57 }
0x211c   : > { %v5278_v32 = vadd.f32 %v5277_v30, %v5272_v5  ;;  %v5289_v33 = vmul.f32 %v9972_v48, %v5286_v31  ;;  %v5297_v41 = vmul.f32 %v9887_v22, %v5296_v25  ;;  %v5294_v44 = vmul.f32 %v9976_v16, %v5291_v57  ;;  %v5463_v5 = vpop.permute.xlu0 %5462 }
0x211d   : > { %v5280_v19 = vadd.f32 %v5279_v15, %v5274_v60  ;;  %v5302_v13 = vmul.f32 %v9891_v11, %v5301_v53  ;;  %v5299_v18 = vmul.f32 %v9980_v20, %v5296_v25  ;;  %v5304_v56 = vmul.f32 %v9983_v9, %v5301_v53 }
0x211e   : > { %v5283_v10 = vadd.f32 %v5282_v21, %v5278_v32  ;;  %v5307_v2 = vmul.f32 %v9986_v58, %v5306_v63  ;;  %v5309_v24 = vmul.f32 %v9989_v7, %v5306_v63  ;;  %v5311_v30 = vmul.f32 %v9811_v45, %v9928_v62 }
0x211f   : > { %v5285_v38 = vadd.f32 %v5284_v52, %v5280_v19 }
0x2120   : > { %v5288_v55 = vadd.f32 %v5287_v37, %v5283_v10 }
0x2121   : > { %v5290_v26 = vadd.f32 %v5289_v33, %v5285_v38 }
0x2122   : > { %v5293_v47 = vadd.f32 %v5292_v46, %v5288_v55 }
0x2123   : > { %v5295_v28 = vadd.f32 %v5294_v44, %v5290_v26 }
0x2124   : > { %v5298_v36 = vadd.f32 %v5297_v41, %v5293_v47 }
0x2125   : > { %v5300_v6 = vadd.f32 %v5299_v18, %v5295_v28 }
0x2126   : > { %v5303_v49 = vadd.f32 %v5302_v13, %v5298_v36 }
0x2127   : > { %v5305_v42 = vadd.f32 %v5304_v56, %v5300_v6 }
0x2128   : > { %v5308_v59 = vadd.f32 %v5307_v2, %v5303_v49 }
0x2129   : > { %v5310_v12 = vadd.f32 %v5309_v24, %v5305_v42  ;;  %v10029_v42 = vld [vmem:[#allocation4 + $0x8] sm:$0xff] }
0x212a   : > { %8328 = vmatmul.mubr.msk.f32.vlgmr.msra.gmra.mrb[54].mxu0 %vm1435_vm2, %v5308_v59  ;;  %v10025_v59 = vld [vmem:[%s9521_s5 + $0x20] ss:$0 sm:$0xff] }
0x212b   : > { %8571 = vmatpush3.bf16.msra.mxu0 %v9791_v27  ;;  %8341 = vmatprep.mubr.msk.f32.mxu0 %vm9130_vm0, %v9129_v0 }
0x212c   : > { %8335 = vmatmul.mubr.msk.f32.vlgmr.msra.gmra.mrb[54].mxu1 %vm1435_vm2, %v5310_v12  ;;  %8575 = vmatprep.subr.bf16.mxu0 %v9131_v17  ;;  %v10032_v12 = vld [vmem:[#allocation4] sm:$0xff] }
0x212d   : > { %8574 = vmatpush3.bf16.msra.mxu1 %v9765_v34  ;;  %8348 = vmatprep.mubr.msk.f32.mxu1 %vm9130_vm0, %v9129_v0 }
0x212e   : > { %8342 = vmatmul.mubr.msk.f32.vlgmr.msra.gmra.mrb[56].mxu0 %vm1435_vm2, %v5463_v5  ;;  %8578 = vmatprep.subr.bf16.mxu1 %v9131_v17 }
0x212f   : > { %8577 = vmatpush3.bf16.msra.mxu0 %v9768_v40  ;;  %8355 = vmatprep.mubr.msk.f32.mxu0 %vm9130_vm0, %v9129_v0 }
0x2130   : > { %8581 = vmatprep.subr.bf16.mxu0 %v9131_v17 }
0x21fd   : > { %v5381_v31 = vpop.f32.mrb[54].mxu0 }
0x21fe   : > { %v5385_v57 = vadd.f32 %v5381_v31, %v5311_v30  ;;  %v8329_v32 = vpop.f32.mrb[55].mxu0  ;;  %v10035_v30 = vld [vmem:[#allocation4 + $0x10] sm:$0xff]  ;;  %v10038_v31 = vld [vmem:[#allocation4 + $0x20] sm:$0xff] }
0x21ff   : > { %v5455_v21 = vpop.f32.mrb[54].mxu1  ;;  %v10041_v32 = vld [vmem:[#allocation4 + $0x18] sm:$0xff] }
0x2200   : > { %v5459_v60 = vadd.f32 %v5455_v21, %v5385_v57  ;;  %v8336_v15 = vpop.f32.mrb[55].mxu1 }
0x2201   : > { %v5532_v25 = vpop.f32.mrb[56].mxu0 }
0x2202   : > { %v5533_v10 = vadd.f32 %v9815_v51, %v5532_v25  ;;  %v8343_v37 = vpop.f32.mrb[57].mxu0  ;;  %v5460_v19 = vadd.f32 %v9820_v23, %v5459_v60  ;;  %v10044_v60 = vld [vmem:[#allocation4 + $0x30] sm:$0xff]  ;;  %v10047_v25 = vld [vmem:[#allocation4 + $0x28] sm:$0xff] }
0x2203   : > { %v10050_v37 = vld [vmem:[#allocation4 + $0x38] sm:$0xff] }
0x2204   : > { %5544 = vrot.lane.b32.xlu1 %v5533_v10, %s9133_s25  ;;  %v5536_v52 = vadd.f32 %v5533_v10, %v5460_v19 }
0x2206   : > { %v5537_v53 = vsub.f32 0.0, %v5536_v52 }
0x2208   : > { %v5538_v55 = vmul.f32 1.442695, %v5537_v53 }
0x220a   : > { %8848 = vpow2.f32 %v5538_v55  ;;  %v10054_v55 = vld [vmem:[%s9521_s5 + $0x22] ss:$0 sm:$0xff] }
0x2214   : > { %v8849_v46 = vpop.eup %8848 }
0x2215   : > { %v5540_v45 = vadd.f32 1.0, %v8849_v46 }
0x2217   : > { %8850 = vrcp.f32 %v5540_v45 }
0x2221   : > { %v8851_v38 = vpop.eup %8850 }
0x2222   : > { %v5554_v23 = vsub.f32 1.0, %v8851_v38  ;;  %v5560_v44 = vmul.f32 %v8851_v38, %v9921_v54 }
0x2276   : > { %v5545_v33 = vpop.permute.xlu1 %5544 }
0x2277   : > { %v5547_v63 = vmul.f32 %v8851_v38, %v5545_v33 }
0x2279   : > { %5549 = vrot.lane.b32.xlu1 %v5547_v63, %s9134_s26 }
0x22eb   : > { %v5550_v47 = vpop.permute.xlu1 %5549 }
0x22ec   : > { %v5552_v41 = vadd.f32 %v5550_v47, %v5460_v19 }
0x22ee   : > { %8852 = vtanh.f32 %v5552_v41 }
0x22f8   : > { %v8853_v51 = vpop.eup %8852 }
0x22f9   : > { %5556 = vrot.lane.b32.xlu0 %v8853_v51, %s9135_s27 }
0x236b   : > { %v5557_v26 = vpop.permute.xlu0 %5556 }
0x236c   : > { %v5559_v13 = vmul.f32 %v5557_v26, %v5554_v23 }
0x236e   : > { %v10015_v36 = vadd.f32 %v5560_v44, %v5559_v13 }
0x2370   : > { %v5562_v28 = vmul.f32 %v10015_v36, %v9828_v8 }
0x2372   : > { %5564 = vrot.lane.b32.xlu1 %v5562_v28, %s9135_s27 }
0x23e4   : > { %v5565_v18 = vpop.permute.xlu1 %5564 }
0x23e5   : > { %v5567_v56 = vsel %vm1435_vm2, %v5565_v18, 0.0 }
0x23e6   : > { %5568 = vadd.xlane.f32.xlu0 %v5567_v56 }
0x2473   : > { %v5569_v49 = vpop.xlane.xlu0 %5568 }
0x2474   : > { %v5570_v2 = vadd.f32 %v9835_v1, %v5569_v49 }
0x2476   : > { %5573 = vperm.xlu1 %8637, %v5570_v2  }
0x24f5   : > { %v10022_v6 = vpop.permute.xlu1 %5573 }
0x24f6   : > { %v5582_v54 = vmul.f32 %v10025_v59, %v10022_v6 }
0x24f8   : > { %v5589_v24 = vadd.f32 %v10029_v42, %v5582_v54  ;;  %v5583_v5 = vadd.f32 %v10032_v12, %v5582_v54  ;;  %v5595_v1 = vadd.f32 %v10035_v30, %v5582_v54  ;;  %v5607_v57 = vadd.f32 %v10038_v31, %v5582_v54 }
0x24f9   : > { %v5601_v21 = vadd.f32 %v10041_v32, %v5582_v54  ;;  %v5619_v15 = vadd.f32 %v10044_v60, %v5582_v54  ;;  %v5613_v10 = vadd.f32 %v10047_v25, %v5582_v54  ;;  %v5625_v19 = vadd.f32 %v10050_v37, %v5582_v54 }
0x24fa   : > { %8854 = vtanh.f32 %v5589_v24 }
0x24fb   : > { %8856 = vtanh.f32 %v5583_v5 }
0x24fc   : > { %8858 = vtanh.f32 %v5595_v1 }
0x24fd   : > { %8860 = vtanh.f32 %v5607_v57 }
0x24fe   : > { %8862 = vtanh.f32 %v5601_v21 }
0x24ff   : > { %8864 = vtanh.f32 %v5619_v15 }
0x2500   : > { %8866 = vtanh.f32 %v5613_v10 }
0x2501   : > { %8868 = vtanh.f32 %v5625_v19 }
0x2504   : > { %v8855_v52 = vpop.eup %8854 }
0x2505   : > { %v8857_v53 = vpop.eup %8856  ;;  %v5591_v46 = vmul.f32 %v10054_v55, %v8855_v52 }
0x2506   : > { %v8859_v45 = vpop.eup %8858  ;;  %v5585_v38 = vmul.f32 %v10054_v55, %v8857_v53 }
0x2507   : > { %v8861_v33 = vpop.eup %8860  ;;  %v5592_v63 = vsel %vm1435_vm2, %v5591_v46, 0.0  ;;  %v5597_v47 = vmul.f32 %v10054_v55, %v8859_v45 }
0x2508   : > { %v8863_v41 = vpop.eup %8862  ;;  %5593 = vadd.xlane.f32.xlu0 %v5592_v63  ;;  %v5586_v51 = vsel %vm1435_vm2, %v5585_v38, 0.0  ;;  %v5609_v23 = vmul.f32 %v10054_v55, %v8861_v33 }
0x2509   : > { %v8865_v26 = vpop.eup %8864  ;;  %5587 = vadd.xlane.f32.xlu1 %v5586_v51  ;;  %v5598_v44 = vsel %vm1435_vm2, %v5597_v47, 0.0  ;;  %v5603_v13 = vmul.f32 %v10054_v55, %v8863_v41 }
0x250a   : > { %v8867_v28 = vpop.eup %8866  ;;  %v5610_v18 = vsel %vm1435_vm2, %v5609_v23, 0.0  ;;  %v5621_v56 = vmul.f32 %v10054_v55, %v8865_v26 }
0x250b   : > { %v5604_v49 = vsel %vm1435_vm2, %v5603_v13, 0.0  ;;  %v5615_v2 = vmul.f32 %v10054_v55, %v8867_v28  ;;  %v8869_v54 = vpop.eup %8868 }
0x250c   : > { %5599 = vadd.xlane.f32.xlu0 %v5598_v44  ;;  %v5622_v24 = vsel %vm1435_vm2, %v5621_v56, 0.0  ;;  %v5627_v1 = vmul.f32 %v10054_v55, %v8869_v54 }
0x250d   : > { %5611 = vadd.xlane.f32.xlu1 %v5610_v18  ;;  %v5616_v5 = vsel %vm1435_vm2, %v5615_v2, 0.0 }
0x250e   : > { %v5628_v57 = vsel %vm1435_vm2, %v5627_v1, 0.0 }
0x2510   : > { %5605 = vadd.xlane.f32.xlu0 %v5604_v49 }
0x2511   : > { %5623 = vadd.xlane.f32.xlu1 %v5622_v24 }
0x2514   : > { %5617 = vadd.xlane.f32.xlu0 %v5616_v5 }
0x2518   : > { %5629 = vadd.xlane.f32.xlu0 %v5628_v57 }
0x2522   : > { %5862 = vrot.lane.b32.xlu1 %v10015_v36, %s9135_s27 }
0x2595   : > { %v5594_v21 = vpop.xlane.xlu0 %5593 }
0x2596   : > { %v5588_v15 = vpop.xlane.xlu1 %5587 }
0x2597   : > { %v5631_v19 = vmax.f32 %v5588_v15, %v5594_v21 }
0x2599   : > { %v5600_v10 = vpop.xlane.xlu0 %5599 }
0x259a   : > { %v5632_v52 = vmax.f32 %v5631_v19, %v5600_v10  ;;  %v5612_v53 = vpop.xlane.xlu1 %5611 }
0x259d   : > { %v5606_v46 = vpop.xlane.xlu0 %5605 }
0x259e   : > { %v5633_v45 = vmax.f32 %v5632_v52, %v5606_v46  ;;  %v5624_v47 = vpop.xlane.xlu1 %5623 }
0x25a0   : > { %v5634_v38 = vmax.f32 %v5633_v45, %v5612_v53 }
0x25a1   : > { %v5618_v33 = vpop.xlane.xlu0 %5617 }
0x25a2   : > { %v5635_v63 = vmax.f32 %v5634_v38, %v5618_v33 }
0x25a4   : > { %v5636_v41 = vmax.f32 %v5635_v63, %v5624_v47 }
0x25a5   : > { %v5630_v51 = vpop.xlane.xlu0 %5629 }
0x25a6   : > { %v5637_v23 = vmax.f32 %v5636_v41, %v5630_v51 }
0x25a8   : > { %v5638_v26 = vsub.f32 %v5588_v15, %v5637_v23  ;;  %v5641_v44 = vsub.f32 %v5594_v21, %v5637_v23  ;;  %v5644_v13 = vsub.f32 %v5600_v10, %v5637_v23  ;;  %v5647_v28 = vsub.f32 %v5606_v46, %v5637_v23 }
0x25a9   : > { %v5650_v2 = vsub.f32 %v5612_v53, %v5637_v23  ;;  %v5653_v24 = vsub.f32 %v5618_v33, %v5637_v23  ;;  %v5656_v1 = vsub.f32 %v5624_v47, %v5637_v23  ;;  %v5659_v19 = vsub.f32 %v5630_v51, %v5637_v23 }
0x25aa   : > { %v5639_v18 = vmul.f32 1.442695, %v5638_v26  ;;  %v5642_v56 = vmul.f32 1.442695, %v5641_v44  ;;  %v5645_v49 = vmul.f32 1.442695, %v5644_v13 }
0x25ab   : > { %v5648_v54 = vmul.f32 1.442695, %v5647_v28  ;;  %v5651_v5 = vmul.f32 1.442695, %v5650_v2  ;;  %v5654_v57 = vmul.f32 1.442695, %v5653_v24 }
0x25ac   : > { %8870 = vpow2.f32 %v5639_v18  ;;  %v5657_v52 = vmul.f32 1.442695, %v5656_v1  ;;  %v5660_v21 = vmul.f32 1.442695, %v5659_v19 }
0x25ad   : > { %8872 = vpow2.f32 %v5642_v56 }
0x25ae   : > { %8874 = vpow2.f32 %v5645_v49 }
0x25af   : > { %8876 = vpow2.f32 %v5648_v54 }
0x25b0   : > { %8878 = vpow2.f32 %v5651_v5 }
0x25b1   : > { %8880 = vpow2.f32 %v5654_v57 }
0x25b2   : > { %8882 = vpow2.f32 %v5657_v52 }
0x25b3   : > { %8884 = vpow2.f32 %v5660_v21 }
0x25b6   : > { %v8871_v15 = vpop.eup %8870 }
0x25b7   : > { %v8873_v10 = vpop.eup %8872 }
0x25b8   : > { %v5662_v46 = vadd.f32 %v8873_v10, %v8871_v15  ;;  %v8875_v45 = vpop.eup %8874 }
0x25b9   : > { %v8877_v38 = vpop.eup %8876 }
0x25ba   : > { %v5663_v53 = vadd.f32 %v8875_v45, %v5662_v46  ;;  %v8879_v33 = vpop.eup %8878 }
0x25bb   : > { %v8881_v26 = vpop.eup %8880 }
0x25bc   : > { %v5664_v63 = vadd.f32 %v8877_v38, %v5663_v53  ;;  %v8883_v44 = vpop.eup %8882 }
0x25bd   : > { %v8885_v51 = vpop.eup %8884 }
0x25be   : > { %v5665_v41 = vadd.f32 %v8879_v33, %v5664_v63 }
0x25c0   : > { %v5666_v47 = vadd.f32 %v8881_v26, %v5665_v41 }
0x25c2   : > { %v5667_v13 = vadd.f32 %v8883_v44, %v5666_v47 }
0x25c4   : > { %v5668_v23 = vadd.f32 %v8885_v51, %v5667_v13 }
0x25c6   : > { %8886 = vrcp.f32 %v5668_v23 }
0x25d0   : > { %v8887_v28 = vpop.eup %8886 }
0x25d1   : > { %v5671_v18 = vmul.f32 %v8887_v28, %v8871_v15  ;;  %v5676_v56 = vmul.f32 %v8887_v28, %v8873_v10  ;;  %v5681_v49 = vmul.f32 %v8887_v28, %v8875_v45  ;;  %v5686_v24 = vmul.f32 %v8887_v28, %v8877_v38 }
0x25d2   : > { %v5691_v5 = vmul.f32 %v8887_v28, %v8879_v33  ;;  %v5696_v21 = vmul.f32 %v8887_v28, %v8881_v26  ;;  %v5701_v45 = vmul.f32 %v8887_v28, %v8883_v44  ;;  %v5706_v33 = vmul.f32 %v8887_v28, %v8885_v51 }
0x25d3   : > { %v5672_v2 = vmul.f32 %v9868_v61, %v5671_v18  ;;  %v5677_v54 = vmul.f32 %v9871_v29, %v5676_v56  ;;  %v5682_v57 = vmul.f32 %v9874_v35, %v5681_v49  ;;  %v5674_v19 = vmul.f32 %v9961_v14, %v5671_v18 }
0x25d4   : > { %v5679_v52 = vmul.f32 %v9964_v4, %v5676_v56  ;;  %v5687_v53 = vmul.f32 %v9879_v39, %v5686_v24  ;;  %v5684_v10 = vmul.f32 %v9968_v43, %v5681_v49  ;;  %v5692_v29 = vmul.f32 %v9883_v50, %v5691_v5 }
0x25d5   : > { %v5678_v1 = vadd.f32 %v5677_v54, %v5672_v2  ;;  %v5689_v63 = vmul.f32 %v9972_v48, %v5686_v24  ;;  %v5697_v41 = vmul.f32 %v9887_v22, %v5696_v21  ;;  %v5694_v26 = vmul.f32 %v9976_v16, %v5691_v5  ;;  %v10106_v54 = vld [vmem:[%s9189_s24 + $0x68] ss:$0 sm:$0xff] }
0x25d6   : > { %v5680_v15 = vadd.f32 %v5679_v52, %v5674_v19  ;;  %v5702_v39 = vmul.f32 %v9891_v11, %v5701_v45  ;;  %v5699_v18 = vmul.f32 %v9980_v20, %v5696_v21  ;;  %v5707_v56 = vmul.f32 %v9986_v58, %v5706_v33  ;;  %v5863_v11 = vpop.permute.xlu1 %5862 }
0x25d7   : > { %v5683_v46 = vadd.f32 %v5682_v57, %v5678_v1  ;;  %v5704_v49 = vmul.f32 %v9983_v9, %v5701_v45  ;;  %v5709_v22 = vmul.f32 %v9989_v7, %v5706_v33  ;;  %v5711_v24 = vmul.f32 %v10106_v54, %v10022_v6  ;;  %v10116_v45 = vld [vmem:[%s9189_s24 + $0x69] ss:$0 sm:$0xff] }
0x25d8   : > { %v5685_v38 = vadd.f32 %v5684_v10, %v5680_v15 }
0x25d9   : > { %v5688_v61 = vadd.f32 %v5687_v53, %v5683_v46  ;;  %v10111_v53 = vld [vmem:[%s9189_s24 + $0x6a] ss:$0 sm:$0xff] }
0x25da   : > { %v5690_v47 = vadd.f32 %v5689_v63, %v5685_v38 }
0x25db   : > { %v5693_v35 = vadd.f32 %v5692_v29, %v5688_v61 }
0x25dc   : > { %v5695_v23 = vadd.f32 %v5694_v26, %v5690_v47 }
0x25dd   : > { %v5698_v13 = vadd.f32 %v5697_v41, %v5693_v35 }
0x25de   : > { %v5700_v50 = vadd.f32 %v5699_v18, %v5695_v23 }
0x25df   : > { %v5703_v44 = vadd.f32 %v5702_v39, %v5698_v13 }
0x25e0   : > { %v5705_v51 = vadd.f32 %v5704_v49, %v5700_v50 }
0x25e1   : > { %v5708_v2 = vadd.f32 %v5707_v56, %v5703_v44 }
0x25e2   : > { %v5710_v28 = vadd.f32 %v5709_v22, %v5705_v51 }
0x25e3   : > { %8349 = vmatmul.mubr.msk.f32.vlgmr.msra.gmra.mrb[56].mxu1 %vm1435_vm2, %v5708_v2 }
0x25e4   : > { %8580 = vmatpush3.bf16.msra.mxu1 %v9791_v27  ;;  %8362 = vmatprep.mubr.msk.f32.mxu1 %vm9130_vm0, %v9129_v0 }
0x25e5   : > { %8356 = vmatmul.mubr.msk.f32.vlgmr.msra.gmra.mrb[58].mxu0 %vm1435_vm2, %v5710_v28  ;;  %8584 = vmatprep.subr.bf16.mxu1 %v9131_v17 }
0x25e6   : > { %8583 = vmatpush3.bf16.msra.mxu0 %v9765_v34  ;;  %8369 = vmatprep.mubr.msk.f32.mxu0 %vm9130_vm0, %v9129_v0 }
0x25e7   : > { %8363 = vmatmul.mubr.msk.f32.vlgmr.msra.gmra.mrb[58].mxu1 %vm1435_vm2, %v5863_v11  ;;  %8587 = vmatprep.subr.bf16.mxu0 %v9131_v17  ;;  %v10129_v11 = vld [vmem:[%s9521_s5 + $0x24] ss:$0 sm:$0xff] }
0x25e8   : > { %8586 = vmatpush3.bf16.msra.mxu1 %v9768_v40  ;;  %8376 = vmatprep.mubr.msk.f32.mxu1 %vm9130_vm0, %v9129_v0 }
0x25e9   : > { %8590 = vmatprep.subr.bf16.mxu1 %v9131_v17 }
0x26b6   : > { %v5781_v5 = vpop.f32.mrb[56].mxu1 }
0x26b7   : > { %v5785_v1 = vadd.f32 %v5781_v5, %v5711_v24  ;;  %v8350_v57 = vpop.f32.mrb[57].mxu1 }
0x26b8   : > { %v5855_v19 = vpop.f32.mrb[58].mxu0 }
0x26b9   : > { %v5859_v52 = vadd.f32 %v5855_v19, %v5785_v1  ;;  %v8357_v21 = vpop.f32.mrb[59].mxu0 }
0x26ba   : > { %v5932_v46 = vpop.f32.mrb[58].mxu1 }
0x26bb   : > { %v5933_v15 = vadd.f32 %v10111_v53, %v5932_v46  ;;  %v8364_v10 = vpop.f32.mrb[59].mxu1  ;;  %v5860_v61 = vadd.f32 %v10116_v45, %v5859_v52 }
0x26bd   : > { %5944 = vrot.lane.b32.xlu0 %v5933_v15, %s9133_s25  ;;  %v5936_v29 = vadd.f32 %v5933_v15, %v5860_v61 }
0x26bf   : > { %v5937_v38 = vsub.f32 0.0, %v5936_v29 }
0x26c1   : > { %v5938_v63 = vmul.f32 1.442695, %v5937_v38 }
0x26c3   : > { %8888 = vpow2.f32 %v5938_v63 }
0x26cd   : > { %v8889_v33 = vpop.eup %8888 }
0x26ce   : > { %v5940_v35 = vadd.f32 1.0, %v8889_v33 }
0x26d0   : > { %8890 = vrcp.f32 %v5940_v35 }
0x26da   : > { %v8891_v41 = vpop.eup %8890 }
0x26db   : > { %v5954_v18 = vsub.f32 1.0, %v8891_v41  ;;  %v5960_v56 = vmul.f32 %v8891_v41, %v10015_v36 }
0x272f   : > { %v5945_v47 = vpop.permute.xlu0 %5944 }
0x2730   : > { %v5947_v26 = vmul.f32 %v8891_v41, %v5945_v47 }
0x2732   : > { %5949 = vrot.lane.b32.xlu1 %v5947_v26, %s9134_s26 }
0x27a4   : > { %v5950_v13 = vpop.permute.xlu1 %5949 }
0x27a5   : > { %v5952_v39 = vadd.f32 %v5950_v13, %v5860_v61 }
0x27a7   : > { %8892 = vtanh.f32 %v5952_v39 }
0x27b1   : > { %v8893_v23 = vpop.eup %8892 }
0x27b2   : > { %5956 = vrot.lane.b32.xlu1 %v8893_v23, %s9135_s27 }
0x2824   : > { %v5957_v44 = vpop.permute.xlu1 %5956 }
0x2825   : > { %v5959_v50 = vmul.f32 %v5957_v44, %v5954_v18 }
0x2827   : > { %v10122_v49 = vadd.f32 %v5960_v56, %v5959_v50 }
0x2829   : > { %v5962_v2 = vmul.f32 %v10122_v49, %v9828_v8 }
0x282b   : > { %5964 = vrot.lane.b32.xlu0 %v5962_v2, %s9135_s27 }
0x289d   : > { %v5965_v51 = vpop.permute.xlu0 %5964 }
0x289e   : > { %v5967_v22 = vsel %vm1435_vm2, %v5965_v51, 0.0 }
0x289f   : > { %5968 = vadd.xlane.f32.xlu1 %v5967_v22 }
0x292c   : > { %v5969_v28 = vpop.xlane.xlu1 %5968 }
0x292d   : > { %v5970_v24 = vadd.f32 %v10129_v11, %v5969_v28 }
0x292f   : > { %5973 = vperm.xlu0 %8636, %v5970_v24  }
0x29ae   : > { %v10132_v5 = vpop.permute.xlu0 %5973 }
0x29af   : > { %v5982_v36 = vmul.f32 %v10025_v59, %v10132_v5 }
0x29b1   : > { %v5989_v1 = vadd.f32 %v10029_v42, %v5982_v36  ;;  %v5983_v57 = vadd.f32 %v10032_v12, %v5982_v36  ;;  %v6001_v19 = vadd.f32 %v10041_v32, %v5982_v36  ;;  %v5995_v52 = vadd.f32 %v10035_v30, %v5982_v36 }
0x29b2   : > { %v6013_v21 = vadd.f32 %v10047_v25, %v5982_v36  ;;  %v6007_v46 = vadd.f32 %v10038_v31, %v5982_v36  ;;  %v6025_v15 = vadd.f32 %v10050_v37, %v5982_v36  ;;  %v6019_v10 = vadd.f32 %v10044_v60, %v5982_v36 }
0x29b3   : > { %8894 = vtanh.f32 %v5989_v1 }
0x29b4   : > { %8896 = vtanh.f32 %v5983_v57 }
0x29b5   : > { %8898 = vtanh.f32 %v6001_v19 }
0x29b6   : > { %8900 = vtanh.f32 %v5995_v52 }
0x29b7   : > { %8902 = vtanh.f32 %v6013_v21 }
0x29b8   : > { %8904 = vtanh.f32 %v6007_v46 }
0x29b9   : > { %8906 = vtanh.f32 %v6025_v15 }
0x29ba   : > { %8908 = vtanh.f32 %v6019_v10 }
0x29bd   : > { %v8895_v61 = vpop.eup %8894 }
0x29be   : > { %v8897_v29 = vpop.eup %8896  ;;  %v5991_v38 = vmul.f32 %v10054_v55, %v8895_v61 }
0x29bf   : > { %v8899_v63 = vpop.eup %8898  ;;  %v5985_v33 = vmul.f32 %v10054_v55, %v8897_v29 }
0x29c0   : > { %v8901_v35 = vpop.eup %8900  ;;  %v5992_v41 = vsel %vm1435_vm2, %v5991_v38, 0.0  ;;  %v6003_v47 = vmul.f32 %v10054_v55, %v8899_v63 }
0x29c1   : > { %v8903_v26 = vpop.eup %8902  ;;  %5993 = vadd.xlane.f32.xlu1 %v5992_v41  ;;  %v5986_v13 = vsel %vm1435_vm2, %v5985_v33, 0.0  ;;  %v5997_v39 = vmul.f32 %v10054_v55, %v8901_v35 }
0x29c2   : > { %v8905_v23 = vpop.eup %8904  ;;  %5987 = vadd.xlane.f32.xlu0 %v5986_v13  ;;  %v6004_v18 = vsel %vm1435_vm2, %v6003_v47, 0.0  ;;  %v6015_v44 = vmul.f32 %v10054_v55, %v8903_v26 }
0x29c3   : > { %v8907_v56 = vpop.eup %8906  ;;  %v5998_v50 = vsel %vm1435_vm2, %v5997_v39, 0.0  ;;  %v6009_v2 = vmul.f32 %v10054_v55, %v8905_v23 }
0x29c4   : > { %v8909_v51 = vpop.eup %8908  ;;  %v6016_v22 = vsel %vm1435_vm2, %v6015_v44, 0.0  ;;  %v6027_v28 = vmul.f32 %v10054_v55, %v8907_v56 }
0x29c5   : > { %6005 = vadd.xlane.f32.xlu1 %v6004_v18  ;;  %v6010_v24 = vsel %vm1435_vm2, %v6009_v2, 0.0  ;;  %v6021_v36 = vmul.f32 %v10054_v55, %v8909_v51 }
0x29c6   : > { %5999 = vadd.xlane.f32.xlu0 %v5998_v50  ;;  %v6028_v1 = vsel %vm1435_vm2, %v6027_v28, 0.0 }
0x29c7   : > { %v6022_v57 = vsel %vm1435_vm2, %v6021_v36, 0.0 }
0x29c9   : > { %6017 = vadd.xlane.f32.xlu1 %v6016_v22 }
0x29ca   : > { %6011 = vadd.xlane.f32.xlu0 %v6010_v24 }
0x29cd   : > { %6029 = vadd.xlane.f32.xlu1 %v6028_v1 }
0x29ce   : > { %6023 = vadd.xlane.f32.xlu0 %v6022_v57 }
0x29e4   : > { %6262 = vrot.lane.b32.xlu0 %v10122_v49, %s9135_s27 }
0x2a4e   : > { %v5994_v19 = vpop.xlane.xlu1 %5993 }
0x2a4f   : > { %v5988_v52 = vpop.xlane.xlu0 %5987 }
0x2a50   : > { %v6031_v21 = vmax.f32 %v5988_v52, %v5994_v19 }
0x2a52   : > { %v6006_v46 = vpop.xlane.xlu1 %6005 }
0x2a53   : > { %v6000_v15 = vpop.xlane.xlu0 %5999 }
0x2a54   : > { %v6032_v10 = vmax.f32 %v6031_v21, %v6000_v15 }
0x2a56   : > { %v6033_v61 = vmax.f32 %v6032_v10, %v6006_v46  ;;  %v6018_v29 = vpop.xlane.xlu1 %6017 }
0x2a57   : > { %v6012_v38 = vpop.xlane.xlu0 %6011 }
0x2a58   : > { %v6034_v63 = vmax.f32 %v6033_v61, %v6012_v38 }
0x2a5a   : > { %v6035_v33 = vmax.f32 %v6034_v63, %v6018_v29  ;;  %v6030_v47 = vpop.xlane.xlu1 %6029 }
0x2a5b   : > { %v6024_v35 = vpop.xlane.xlu0 %6023 }
0x2a5c   : > { %v6036_v41 = vmax.f32 %v6035_v33, %v6024_v35 }
0x2a5e   : > { %v6037_v26 = vmax.f32 %v6036_v41, %v6030_v47 }
0x2a60   : > { %v6038_v13 = vsub.f32 %v5988_v52, %v6037_v26  ;;  %v6041_v39 = vsub.f32 %v5994_v19, %v6037_v26  ;;  %v6044_v23 = vsub.f32 %v6000_v15, %v6037_v26  ;;  %v6047_v18 = vsub.f32 %v6006_v46, %v6037_v26 }
0x2a61   : > { %v6050_v2 = vsub.f32 %v6012_v38, %v6037_v26  ;;  %v6053_v22 = vsub.f32 %v6018_v29, %v6037_v26  ;;  %v6056_v24 = vsub.f32 %v6024_v35, %v6037_v26  ;;  %v6059_v1 = vsub.f32 %v6030_v47, %v6037_v26 }
0x2a62   : > { %v6039_v44 = vmul.f32 1.442695, %v6038_v13  ;;  %v6042_v56 = vmul.f32 1.442695, %v6041_v39  ;;  %v6045_v50 = vmul.f32 1.442695, %v6044_v23 }
0x2a63   : > { %v6048_v51 = vmul.f32 1.442695, %v6047_v18  ;;  %v6051_v28 = vmul.f32 1.442695, %v6050_v2  ;;  %v6054_v36 = vmul.f32 1.442695, %v6053_v22 }
0x2a64   : > { %8910 = vpow2.f32 %v6039_v44  ;;  %v6057_v57 = vmul.f32 1.442695, %v6056_v24  ;;  %v6060_v19 = vmul.f32 1.442695, %v6059_v1  ;;  %v10165_v2 = vld [vmem:[#allocation2 + $0x8] sm:$0xff] }
0x2a65   : > { %8912 = vpow2.f32 %v6042_v56  ;;  %v10162_v56 = vld [vmem:[#allocation2] sm:$0xff] }
0x2a66   : > { %8914 = vpow2.f32 %v6045_v50 }
0x2a67   : > { %8916 = vpow2.f32 %v6048_v51 }
0x2a68   : > { %8918 = vpow2.f32 %v6051_v28 }
0x2a69   : > { %8920 = vpow2.f32 %v6054_v36  ;;  %v10168_v36 = vld [vmem:[#allocation2 + $0x10] sm:$0xff] }
0x2a6a   : > { %8922 = vpow2.f32 %v6057_v57 }
0x2a6b   : > { %8924 = vpow2.f32 %v6060_v19 }
0x2a6e   : > { %v8911_v52 = vpop.eup %8910 }
0x2a6f   : > { %v8913_v21 = vpop.eup %8912 }
0x2a70   : > { %v6062_v46 = vadd.f32 %v8913_v21, %v8911_v52  ;;  %v8915_v15 = vpop.eup %8914 }
0x2a71   : > { %v8917_v61 = vpop.eup %8916 }
0x2a72   : > { %v6063_v10 = vadd.f32 %v8915_v15, %v6062_v46  ;;  %v8919_v29 = vpop.eup %8918  ;;  %v10173_v46 = vld [vmem:[#allocation2 + $0x18] sm:$0xff] }
0x2a73   : > { %v8921_v33 = vpop.eup %8920 }
0x2a74   : > { %v6064_v38 = vadd.f32 %v8917_v61, %v6063_v10  ;;  %v8923_v41 = vpop.eup %8922 }
0x2a75   : > { %v8925_v47 = vpop.eup %8924 }
0x2a76   : > { %v6065_v63 = vadd.f32 %v8919_v29, %v6064_v38 }
0x2a78   : > { %v6066_v35 = vadd.f32 %v8921_v33, %v6065_v63  ;;  %v10177_v63 = vld [vmem:[#allocation2 + $0x20] sm:$0xff] }
0x2a7a   : > { %v6067_v13 = vadd.f32 %v8923_v41, %v6066_v35 }
0x2a7c   : > { %v6068_v26 = vadd.f32 %v8925_v47, %v6067_v13 }
0x2a7e   : > { %8926 = vrcp.f32 %v6068_v26 }
0x2a88   : > { %v8927_v39 = vpop.eup %8926 }
0x2a89   : > { %v6071_v23 = vmul.f32 %v8927_v39, %v8911_v52  ;;  %v6076_v18 = vmul.f32 %v8927_v39, %v8913_v21  ;;  %v6081_v44 = vmul.f32 %v8927_v39, %v8915_v15  ;;  %v6086_v22 = vmul.f32 %v8927_v39, %v8917_v61 }
0x2a8a   : > { %v6091_v28 = vmul.f32 %v8927_v39, %v8919_v29  ;;  %v6096_v52 = vmul.f32 %v8927_v39, %v8921_v33  ;;  %v6101_v61 = vmul.f32 %v8927_v39, %v8923_v41  ;;  %v6106_v26 = vmul.f32 %v8927_v39, %v8925_v47  ;;  %v10181_v33 = vld [vmem:[#allocation2 + $0x28] sm:$0xff] }
0x2a8b   : > { %v6072_v50 = vmul.f32 %v10162_v56, %v6071_v23  ;;  %v6077_v51 = vmul.f32 %v10165_v2, %v6076_v18  ;;  %v6082_v1 = vmul.f32 %v10168_v36, %v6081_v44  ;;  %v6074_v57 = vmul.f32 %v9961_v14, %v6071_v23 }
0x2a8c   : > { %v6079_v19 = vmul.f32 %v9964_v4, %v6076_v18  ;;  %v6087_v15 = vmul.f32 %v10173_v46, %v6086_v22  ;;  %v6084_v38 = vmul.f32 %v9968_v43, %v6081_v44  ;;  %v6092_v35 = vmul.f32 %v10177_v63, %v6091_v28 }
0x2a8d   : > { %v6078_v24 = vadd.f32 %v6077_v51, %v6072_v50  ;;  %v6089_v14 = vmul.f32 %v9972_v48, %v6086_v22  ;;  %v6097_v23 = vmul.f32 %v10181_v33, %v6096_v52  ;;  %v6094_v50 = vmul.f32 %v9976_v16, %v6091_v28  ;;  %v10185_v51 = vld [vmem:[#allocation2 + $0x30] sm:$0xff] }
0x2a8e   : > { %v6080_v10 = vadd.f32 %v6079_v19, %v6074_v57  ;;  %v6102_v43 = vmul.f32 %v10185_v51, %v6101_v61  ;;  %v6107_v47 = vmul.f32 %v9986_v58, %v6106_v26  ;;  %v6109_v19 = vmul.f32 %v9989_v7, %v6106_v26 }
0x2a8f   : > { %v6083_v21 = vadd.f32 %v6082_v1, %v6078_v24  ;;  %v6099_v24 = vmul.f32 %v9980_v20, %v6096_v52  ;;  %v6104_v1 = vmul.f32 %v9983_v9, %v6101_v61  ;;  %v6263_v20 = vpop.permute.xlu0 %6262  ;;  %v6111_v9 = vmul.f32 %v10106_v54, %v10132_v5 }
0x2a90   : > { %v6085_v13 = vadd.f32 %v6084_v38, %v6080_v10 }
0x2a91   : > { %v6088_v29 = vadd.f32 %v6087_v15, %v6083_v21 }
0x2a92   : > { %v6090_v18 = vadd.f32 %v6089_v14, %v6085_v13 }
0x2a93   : > { %v6093_v4 = vadd.f32 %v6092_v35, %v6088_v29 }
0x2a94   : > { %v6095_v44 = vadd.f32 %v6094_v50, %v6090_v18 }
0x2a95   : > { %v6098_v41 = vadd.f32 %v6097_v23, %v6093_v4 }
0x2a96   : > { %v6100_v39 = vadd.f32 %v6099_v24, %v6095_v44 }
0x2a97   : > { %v6103_v48 = vadd.f32 %v6102_v43, %v6098_v41 }
0x2a98   : > { %v6105_v57 = vadd.f32 %v6104_v1, %v6100_v39 }
0x2a99   : > { %v6108_v22 = vadd.f32 %v6107_v47, %v6103_v48 }
0x2a9a   : > { %v6110_v16 = vadd.f32 %v6109_v19, %v6105_v57 }
0x2a9b   : > { %8370 = vmatmul.mubr.msk.f32.vlgmr.msra.gmra.mrb[60].mxu0 %vm1435_vm2, %v6108_v22 }
0x2a9c   : > { %8589 = vmatpush3.bf16.msra.mxu0 %v9791_v27  ;;  %8383 = vmatprep.mubr.msk.f32.mxu0 %vm9130_vm0, %v9129_v0 }
0x2a9d   : > { %8377 = vmatmul.mubr.msk.f32.vlgmr.msra.gmra.mrb[60].mxu1 %vm1435_vm2, %v6110_v16  ;;  %8593 = vmatprep.subr.bf16.mxu0 %v9131_v17 }
0x2a9e   : > { %8592 = vmatpush3.bf16.msra.mxu1 %v9765_v34  ;;  %8390 = vmatprep.mubr.msk.f32.mxu1 %vm9130_vm0, %v9129_v0 }
0x2a9f   : > { %8384 = vmatmul.mubr.msk.f32.vlgmr.msra.gmra.mrb[62].mxu0 %vm1435_vm2, %v6263_v20  ;;  %8596 = vmatprep.subr.bf16.mxu1 %v9131_v17 }
0x2aa0   : > { %8595 = vmatpush3.bf16.msra.mxu0 %v9768_v40  ;;  %8397 = vmatprep.mubr.msk.f32.mxu0 %vm9130_vm0, %v9129_v0 }
0x2aa1   : > { %8599 = vmatprep.subr.bf16.mxu0 %v9131_v17 }
0x2b6e   : > { %v6181_v58 = vpop.f32.mrb[60].mxu0 }
0x2b6f   : > { %v6185_v7 = vadd.f32 %v6181_v58, %v6111_v9  ;;  %v8371_v28 = vpop.f32.mrb[61].mxu0 }
0x2b70   : > { %v6255_v52 = vpop.f32.mrb[60].mxu1 }
0x2b71   : > { %v6259_v21 = vadd.f32 %v6255_v52, %v6185_v7  ;;  %v8378_v15 = vpop.f32.mrb[61].mxu1 }
0x2b72   : > { %v6332_v10 = vpop.f32.mrb[62].mxu0 }
0x2b73   : > { %v6333_v38 = vadd.f32 %v10111_v53, %v6332_v10  ;;  %v8385_v61 = vpop.f32.mrb[63].mxu0  ;;  %v6260_v29 = vadd.f32 %v10116_v45, %v6259_v21 }
0x2b75   : > { %6344 = vrot.lane.b32.xlu1 %v6333_v38, %s9133_s25  ;;  %v6336_v35 = vadd.f32 %v6333_v38, %v6260_v29 }
0x2b77   : > { %v6337_v13 = vsub.f32 0.0, %v6336_v35 }
0x2b79   : > { %v6338_v14 = vmul.f32 1.442695, %v6337_v13 }
0x2b7b   : > { %8928 = vpow2.f32 %v6338_v14 }
0x2b85   : > { %v8929_v26 = vpop.eup %8928 }
0x2b86   : > { %v6340_v4 = vadd.f32 1.0, %v8929_v26 }
0x2b88   : > { %8930 = vrcp.f32 %v6340_v4 }
0x2b92   : > { %v8931_v23 = vpop.eup %8930 }
0x2b93   : > { %v6354_v24 = vsub.f32 1.0, %v8931_v23  ;;  %v6360_v48 = vmul.f32 %v8931_v23, %v10122_v49 }
0x2be7   : > { %v6345_v18 = vpop.permute.xlu1 %6344 }
0x2be8   : > { %v6347_v50 = vmul.f32 %v8931_v23, %v6345_v18 }
0x2bea   : > { %6349 = vrot.lane.b32.xlu1 %v6347_v50, %s9134_s26 }
0x2c5c   : > { %v6350_v43 = vpop.permute.xlu1 %6349 }
0x2c5d   : > { %v6352_v41 = vadd.f32 %v6350_v43, %v6260_v29 }
0x2c5f   : > { %8932 = vtanh.f32 %v6352_v41 }
0x2c69   : > { %v8933_v44 = vpop.eup %8932 }
0x2c6a   : > { %6356 = vrot.lane.b32.xlu0 %v8933_v44, %s9135_s27 }
0x2cdc   : > { %v6357_v1 = vpop.permute.xlu0 %6356 }
0x2cdd   : > { %v6359_v47 = vmul.f32 %v6357_v1, %v6354_v24 }
0x2cdf   : > { %v10215_v39 = vadd.f32 %v6360_v48, %v6359_v47 }
0x2ce1   : > { %v6362_v22 = vmul.f32 %v10215_v39, %v9828_v8 }
0x2ce3   : > { %6364 = vrot.lane.b32.xlu1 %v6362_v22, %s9135_s27 }
0x2d55   : > { %v6365_v57 = vpop.permute.xlu1 %6364 }
0x2d56   : > { %v6367_v19 = vsel %vm1435_vm2, %v6365_v57, 0.0 }
0x2d57   : > { %6368 = vadd.xlane.f32.xlu0 %v6367_v19 }
0x2de4   : > { %v6369_v16 = vpop.xlane.xlu0 %6368 }
0x2de5   : > { %v6370_v20 = vadd.f32 %v10129_v11, %v6369_v16 }
0x2de7   : > { %6373 = vperm.xlu1 %8637, %v6370_v20  }
0x2e66   : > { %v10222_v9 = vpop.permute.xlu1 %6373 }
0x2e67   : > { %v6382_v49 = vmul.f32 %v10025_v59, %v10222_v9 }
0x2e69   : > { %v6389_v58 = vadd.f32 %v10029_v42, %v6382_v49  ;;  %v6383_v7 = vadd.f32 %v10032_v12, %v6382_v49  ;;  %v6395_v28 = vadd.f32 %v10035_v30, %v6382_v49  ;;  %v6407_v52 = vadd.f32 %v10038_v31, %v6382_v49 }
0x2e6a   : > { %v6401_v21 = vadd.f32 %v10041_v32, %v6382_v49  ;;  %v6419_v15 = vadd.f32 %v10044_v60, %v6382_v49  ;;  %v6413_v10 = vadd.f32 %v10047_v25, %v6382_v49  ;;  %v6425_v59 = vadd.f32 %v10050_v37, %v6382_v49 }
0x2e6b   : > { %8934 = vtanh.f32 %v6389_v58 }
0x2e6c   : > { %8936 = vtanh.f32 %v6383_v7 }
0x2e6d   : > { %8938 = vtanh.f32 %v6395_v28 }
0x2e6e   : > { %8940 = vtanh.f32 %v6407_v52 }
0x2e6f   : > { %8942 = vtanh.f32 %v6401_v21 }
0x2e70   : > { %8944 = vtanh.f32 %v6419_v15 }
0x2e71   : > { %8946 = vtanh.f32 %v6413_v10 }
0x2e72   : > { %8948 = vtanh.f32 %v6425_v59 }
0x2e75   : > { %v8935_v42 = vpop.eup %8934 }
0x2e76   : > { %v8937_v12 = vpop.eup %8936  ;;  %v6391_v30 = vmul.f32 %v10054_v55, %v8935_v42 }
0x2e77   : > { %v8939_v31 = vpop.eup %8938  ;;  %v6385_v38 = vmul.f32 %v10054_v55, %v8937_v12 }
0x2e78   : > { %v8941_v32 = vpop.eup %8940  ;;  %v6392_v60 = vsel %vm1435_vm2, %v6391_v30, 0.0  ;;  %v6397_v61 = vmul.f32 %v10054_v55, %v8939_v31 }
0x2e79   : > { %v8943_v29 = vpop.eup %8942  ;;  %6393 = vadd.xlane.f32.xlu0 %v6392_v60  ;;  %v6386_v25 = vsel %vm1435_vm2, %v6385_v38, 0.0  ;;  %v6409_v35 = vmul.f32 %v10054_v55, %v8941_v32 }
0x2e7a   : > { %v8945_v37 = vpop.eup %8944  ;;  %6387 = vadd.xlane.f32.xlu1 %v6386_v25  ;;  %v6398_v13 = vsel %vm1435_vm2, %v6397_v61, 0.0  ;;  %v6403_v14 = vmul.f32 %v10054_v55, %v8943_v29 }
0x2e7b   : > { %v8947_v26 = vpop.eup %8946  ;;  %v6410_v4 = vsel %vm1435_vm2, %v6409_v35, 0.0  ;;  %v6421_v23 = vmul.f32 %v10054_v55, %v8945_v37 }
0x2e7c   : > { %v6404_v18 = vsel %vm1435_vm2, %v6403_v14, 0.0  ;;  %v6415_v50 = vmul.f32 %v10054_v55, %v8947_v26  ;;  %v8949_v43 = vpop.eup %8948 }
0x2e7d   : > { %6399 = vadd.xlane.f32.xlu0 %v6398_v13  ;;  %v6422_v41 = vsel %vm1435_vm2, %v6421_v23, 0.0  ;;  %v6427_v24 = vmul.f32 %v10054_v55, %v8949_v43 }
0x2e7e   : > { %6411 = vadd.xlane.f32.xlu1 %v6410_v4  ;;  %v6416_v44 = vsel %vm1435_vm2, %v6415_v50, 0.0 }
0x2e7f   : > { %v6428_v1 = vsel %vm1435_vm2, %v6427_v24, 0.0 }
0x2e81   : > { %6405 = vadd.xlane.f32.xlu0 %v6404_v18 }
0x2e82   : > { %6423 = vadd.xlane.f32.xlu1 %v6422_v41 }
0x2e85   : > { %6417 = vadd.xlane.f32.xlu0 %v6416_v44 }
0x2e89   : > { %6429 = vadd.xlane.f32.xlu0 %v6428_v1 }
0x2e93   : > { %6662 = vrot.lane.b32.xlu1 %v10215_v39, %s9135_s27 }
0x2f06   : > { %v6394_v48 = vpop.xlane.xlu0 %6393 }
0x2f07   : > { %v6388_v47 = vpop.xlane.xlu1 %6387 }
0x2f08   : > { %v6431_v57 = vmax.f32 %v6388_v47, %v6394_v48 }
0x2f0a   : > { %v6400_v22 = vpop.xlane.xlu0 %6399 }
0x2f0b   : > { %v6432_v19 = vmax.f32 %v6431_v57, %v6400_v22  ;;  %v6412_v16 = vpop.xlane.xlu1 %6411 }
0x2f0e   : > { %v6406_v20 = vpop.xlane.xlu0 %6405 }
0x2f0f   : > { %v6433_v49 = vmax.f32 %v6432_v19, %v6406_v20  ;;  %v6424_v52 = vpop.xlane.xlu1 %6423 }
0x2f11   : > { %v6434_v58 = vmax.f32 %v6433_v49, %v6412_v16 }
0x2f12   : > { %v6418_v7 = vpop.xlane.xlu0 %6417 }
0x2f13   : > { %v6435_v28 = vmax.f32 %v6434_v58, %v6418_v7 }
0x2f15   : > { %v6436_v55 = vmax.f32 %v6435_v28, %v6424_v52 }
0x2f16   : > { %v6430_v21 = vpop.xlane.xlu0 %6429 }
0x2f17   : > { %v6437_v15 = vmax.f32 %v6436_v55, %v6430_v21 }
0x2f19   : > { %v6438_v10 = vsub.f32 %v6388_v47, %v6437_v15  ;;  %v6441_v59 = vsub.f32 %v6394_v48, %v6437_v15  ;;  %v6444_v42 = vsub.f32 %v6400_v22, %v6437_v15  ;;  %v6447_v12 = vsub.f32 %v6406_v20, %v6437_v15 }
0x2f1a   : > { %v6450_v32 = vsub.f32 %v6412_v16, %v6437_v15  ;;  %v6453_v61 = vsub.f32 %v6418_v7, %v6437_v15  ;;  %v6456_v25 = vsub.f32 %v6424_v52, %v6437_v15  ;;  %v6459_v37 = vsub.f32 %v6430_v21, %v6437_v15 }
0x2f1b   : > { %v6439_v30 = vmul.f32 1.442695, %v6438_v10  ;;  %v6442_v31 = vmul.f32 1.442695, %v6441_v59  ;;  %v6445_v38 = vmul.f32 1.442695, %v6444_v42 }
0x2f1c   : > { %v6448_v60 = vmul.f32 1.442695, %v6447_v12  ;;  %v6451_v29 = vmul.f32 1.442695, %v6450_v32  ;;  %v6454_v35 = vmul.f32 1.442695, %v6453_v61 }
0x2f1d   : > { %8950 = vpow2.f32 %v6439_v30  ;;  %v6457_v13 = vmul.f32 1.442695, %v6456_v25  ;;  %v6460_v14 = vmul.f32 1.442695, %v6459_v37  ;;  %v10255_v10 = vld [vmem:[#allocation3] sm:$0xff]  ;;  %v10258_v42 = vld [vmem:[#allocation3 + $0x8] sm:$0xff] }
0x2f1e   : > { %8952 = vpow2.f32 %v6442_v31 }
0x2f1f   : > { %8954 = vpow2.f32 %v6445_v38 }
0x2f20   : > { %8956 = vpow2.f32 %v6448_v60  ;;  %v10262_v60 = vld [vmem:[#allocation3 + $0x10] sm:$0xff] }
0x2f21   : > { %8958 = vpow2.f32 %v6451_v29 }
0x2f22   : > { %8960 = vpow2.f32 %v6454_v35 }
0x2f23   : > { %8962 = vpow2.f32 %v6457_v13  ;;  %v10266_v13 = vld [vmem:[#allocation3 + $0x18] sm:$0xff] }
0x2f24   : > { %8964 = vpow2.f32 %v6460_v14 }
0x2f27   : > { %v8951_v26 = vpop.eup %8950 }
0x2f28   : > { %v8953_v4 = vpop.eup %8952 }
0x2f29   : > { %v6462_v23 = vadd.f32 %v8953_v4, %v8951_v26  ;;  %v8955_v18 = vpop.eup %8954 }
0x2f2a   : > { %v8957_v43 = vpop.eup %8956 }
0x2f2b   : > { %v6463_v50 = vadd.f32 %v8955_v18, %v6462_v23  ;;  %v8959_v44 = vpop.eup %8958 }
0x2f2c   : > { %v8961_v1 = vpop.eup %8960 }
0x2f2d   : > { %v6464_v41 = vadd.f32 %v8957_v43, %v6463_v50  ;;  %v8963_v47 = vpop.eup %8962  ;;  %v10270_v50 = vld [vmem:[#allocation3 + $0x20] sm:$0xff] }
0x2f2e   : > { %v8965_v57 = vpop.eup %8964 }
0x2f2f   : > { %v6465_v24 = vadd.f32 %v8959_v44, %v6464_v41 }
0x2f31   : > { %v6466_v48 = vadd.f32 %v8961_v1, %v6465_v24 }
0x2f33   : > { %v6467_v22 = vadd.f32 %v8963_v47, %v6466_v48 }
0x2f35   : > { %v6468_v19 = vadd.f32 %v8965_v57, %v6467_v22  ;;  %v10277_v22 = vld [vmem:[#allocation2 + $0x38] sm:$0xff] }
0x2f37   : > { %8966 = vrcp.f32 %v6468_v19 }
0x2f41   : > { %v8967_v16 = vpop.eup %8966 }
0x2f42   : > { %v6471_v20 = vmul.f32 %v8967_v16, %v8951_v26  ;;  %v6476_v49 = vmul.f32 %v8967_v16, %v8953_v4  ;;  %v6481_v58 = vmul.f32 %v8967_v16, %v8955_v18  ;;  %v6486_v52 = vmul.f32 %v8967_v16, %v8957_v43 }
0x2f43   : > { %v6491_v55 = vmul.f32 %v8967_v16, %v8959_v44  ;;  %v6496_v30 = vmul.f32 %v8967_v16, %v8961_v1  ;;  %v6501_v29 = vmul.f32 %v8967_v16, %v8963_v47  ;;  %v6506_v26 = vmul.f32 %v8967_v16, %v8965_v57  ;;  %v10274_v1 = vld [vmem:[#allocation3 + $0x28] sm:$0xff]  ;;  %v10280_v16 = vld [vmem:[#allocation3 + $0x30] sm:$0xff] }
0x2f44   : > { %v6472_v7 = vmul.f32 %v10162_v56, %v6471_v20  ;;  %v6477_v28 = vmul.f32 %v10165_v2, %v6476_v49  ;;  %v6482_v15 = vmul.f32 %v10168_v36, %v6481_v58  ;;  %v6474_v59 = vmul.f32 %v10255_v10, %v6471_v20 }
0x2f45   : > { %v6479_v12 = vmul.f32 %v10258_v42, %v6476_v49  ;;  %v6487_v38 = vmul.f32 %v10173_v46, %v6486_v52  ;;  %v6484_v61 = vmul.f32 %v10262_v60, %v6481_v58  ;;  %v6492_v35 = vmul.f32 %v10177_v63, %v6491_v55 }
0x2f46   : > { %v6478_v21 = vadd.f32 %v6477_v28, %v6472_v7  ;;  %v6489_v14 = vmul.f32 %v10266_v13, %v6486_v52  ;;  %v6497_v23 = vmul.f32 %v10181_v33, %v6496_v30  ;;  %v6494_v43 = vmul.f32 %v10270_v50, %v6491_v55  ;;  %v10283_v7 = vld [vmem:[#allocation3 + $0x38] sm:$0xff]  ;;  %v6663_v55 = vpop.permute.xlu1 %6662 }
0x2f47   : > { %v6480_v32 = vadd.f32 %v6479_v12, %v6474_v59  ;;  %v6502_v44 = vmul.f32 %v10185_v51, %v6501_v29  ;;  %v6499_v48 = vmul.f32 %v10274_v1, %v6496_v30  ;;  %v6507_v57 = vmul.f32 %v10277_v22, %v6506_v26 }
0x2f48   : > { %v6483_v31 = vadd.f32 %v6482_v15, %v6478_v21  ;;  %v6504_v20 = vmul.f32 %v10280_v16, %v6501_v29  ;;  %v6509_v28 = vmul.f32 %v10283_v7, %v6506_v26  ;;  %v6511_v21 = vmul.f32 %v10106_v54, %v10222_v9 }
0x2f49   : > { %v6485_v37 = vadd.f32 %v6484_v61, %v6480_v32 }
0x2f4a   : > { %v6488_v25 = vadd.f32 %v6487_v38, %v6483_v31 }
0x2f4b   : > { %v6490_v18 = vadd.f32 %v6489_v14, %v6485_v37 }
0x2f4c   : > { %v6493_v4 = vadd.f32 %v6492_v35, %v6488_v25 }
0x2f4d   : > { %v6495_v24 = vadd.f32 %v6494_v43, %v6490_v18 }
0x2f4e   : > { %v6498_v41 = vadd.f32 %v6497_v23, %v6493_v4 }
0x2f4f   : > { %v6500_v19 = vadd.f32 %v6499_v48, %v6495_v24 }
0x2f50   : > { %v6503_v47 = vadd.f32 %v6502_v44, %v6498_v41 }
0x2f51   : > { %v6505_v58 = vadd.f32 %v6504_v20, %v6500_v19 }
0x2f52   : > { %v6508_v49 = vadd.f32 %v6507_v57, %v6503_v47 }
0x2f53   : > { %v6510_v52 = vadd.f32 %v6509_v28, %v6505_v58 }
0x2f54   : > { %8391 = vmatmul.mubr.msk.f32.vlgmr.msra.gmra.mrb[62].mxu1 %vm1435_vm2, %v6508_v49 }
0x2f55   : > { %8598 = vmatpush3.bf16.msra.mxu1 %v9791_v27  ;;  %8404 = vmatprep.mubr.msk.f32.mxu1 %vm9130_vm0, %v9129_v0 }
0x2f56   : > { %8398 = vmatmul.mubr.msk.f32.vlgmr.msra.gmra.mrb[64].mxu0 %vm1435_vm2, %v6510_v52  ;;  %8602 = vmatprep.subr.bf16.mxu1 %v9131_v17  ;;  %v10319_v52 = vld [vmem:[%s9521_s5 + $0x20] ss:$0 sm:$0xff] }
0x2f57   : > { %8601 = vmatpush3.bf16.msra.mxu0 %v9765_v34  ;;  %8411 = vmatprep.mubr.msk.f32.mxu0 %vm9130_vm0, %v9129_v0 }
0x2f58   : > { %8405 = vmatmul.mubr.msk.f32.vlgmr.msra.gmra.mrb[64].mxu1 %vm1435_vm2, %v6663_v55  ;;  %8605 = vmatprep.subr.bf16.mxu0 %v9131_v17  ;;  %v10323_v55 = vld [vmem:[#allocation4 + $0x8] sm:$0xff] }
0x2f59   : > { %8604 = vmatpush3.bf16.msra.mxu1 %v9768_v40  ;;  %8418 = vmatprep.mubr.msk.f32.mxu1 %vm9130_vm0, %v9129_v0 }
0x2f5a   : > { %8608 = vmatprep.subr.bf16.mxu1 %v9131_v17 }
0x3027   : > { %v6581_v15 = vpop.f32.mrb[62].mxu1 }
0x3028   : > { %v6585_v59 = vadd.f32 %v6581_v15, %v6511_v21  ;;  %v8392_v12 = vpop.f32.mrb[63].mxu1  ;;  %v10326_v15 = vld [vmem:[#allocation4] sm:$0xff] }
0x3029   : > { %v6655_v30 = vpop.f32.mrb[64].mxu0  ;;  %v10329_v12 = vld [vmem:[#allocation4 + $0x18] sm:$0xff] }
0x302a   : > { %v6659_v31 = vadd.f32 %v6655_v30, %v6585_v59  ;;  %v8399_v38 = vpop.f32.mrb[65].mxu0  ;;  %v10332_v30 = vld [vmem:[#allocation4 + $0x10] sm:$0xff] }
0x302b   : > { %v6732_v32 = vpop.f32.mrb[64].mxu1  ;;  %v10335_v38 = vld [vmem:[#allocation4 + $0x28] sm:$0xff] }
0x302c   : > { %v6733_v61 = vadd.f32 %v10111_v53, %v6732_v32  ;;  %v8406_v29 = vpop.f32.mrb[65].mxu1  ;;  %v6660_v25 = vadd.f32 %v10116_v45, %v6659_v31 }
0x302e   : > { %6744 = vrot.lane.b32.xlu0 %v6733_v61, %s9133_s25  ;;  %v6736_v35 = vadd.f32 %v6733_v61, %v6660_v25  ;;  %v10338_v61 = vld [vmem:[#allocation4 + $0x20] sm:$0xff] }
0x3030   : > { %v6737_v37 = vsub.f32 0.0, %v6736_v35 }
0x3032   : > { %v6738_v14 = vmul.f32 1.442695, %v6737_v37  ;;  %v10344_v37 = vld [vmem:[#allocation4 + $0x30] sm:$0xff] }
0x3034   : > { %8968 = vpow2.f32 %v6738_v14 }
0x303e   : > { %v8969_v26 = vpop.eup %8968 }
0x303f   : > { %v6740_v54 = vadd.f32 1.0, %v8969_v26 }
0x3041   : > { %8970 = vrcp.f32 %v6740_v54 }
0x304b   : > { %v8971_v4 = vpop.eup %8970 }
0x304c   : > { %v6754_v45 = vsub.f32 1.0, %v8971_v4  ;;  %v6760_v24 = vmul.f32 %v8971_v4, %v10215_v39 }
0x30a0   : > { %v6745_v23 = vpop.permute.xlu0 %6744 }
0x30a1   : > { %v6747_v18 = vmul.f32 %v8971_v4, %v6745_v23  ;;  %v10348_v4 = vld [vmem:[%s9521_s5 + $0x22] ss:$0 sm:$0xff] }
0x30a3   : > { %6749 = vrot.lane.b32.xlu1 %v6747_v18, %s9134_s26 }
0x3115   : > { %v6750_v43 = vpop.permute.xlu1 %6749 }
0x3116   : > { %v6752_v41 = vadd.f32 %v6750_v43, %v6660_v25  ;;  %v10341_v25 = vld [vmem:[#allocation4 + $0x38] sm:$0xff] }
0x3118   : > { %8972 = vtanh.f32 %v6752_v41 }
0x3122   : > { %v8973_v53 = vpop.eup %8972 }
0x3123   : > { %6756 = vrot.lane.b32.xlu1 %v8973_v53, %s9135_s27 }
0x3195   : > { %v6757_v44 = vpop.permute.xlu1 %6756 }
0x3196   : > { %v6759_v48 = vmul.f32 %v6757_v44, %v6754_v45 }
0x3198   : > { %v10309_v47 = vadd.f32 %v6760_v24, %v6759_v48 }
0x319a   : > { %v6762_v57 = vmul.f32 %v10309_v47, %v9828_v8 }
0x319c   : > { %6764 = vrot.lane.b32.xlu0 %v6762_v57, %s9135_s27 }
0x320e   : > { %v6765_v19 = vpop.permute.xlu0 %6764 }
0x320f   : > { %v6767_v20 = vsel %vm1435_vm2, %v6765_v19, 0.0 }
0x3210   : > { %6768 = vadd.xlane.f32.xlu1 %v6767_v20 }
0x329d   : > { %v6769_v49 = vpop.xlane.xlu1 %6768 }
0x329e   : > { %v6770_v58 = vadd.f32 %v10129_v11, %v6769_v49 }
0x32a0   : > { %6773 = vperm.xlu0 %8636, %v6770_v58  }
0x331f   : > { %v10316_v28 = vpop.permute.xlu0 %6773 }
0x3320   : > { %v6782_v39 = vmul.f32 %v10319_v52, %v10316_v28 }
0x3322   : > { %v6789_v21 = vadd.f32 %v10323_v55, %v6782_v39  ;;  %v6783_v59 = vadd.f32 %v10326_v15, %v6782_v39  ;;  %v6801_v11 = vadd.f32 %v10329_v12, %v6782_v39  ;;  %v6795_v31 = vadd.f32 %v10332_v30, %v6782_v39 }
0x3323   : > { %v6813_v32 = vadd.f32 %v10335_v38, %v6782_v39  ;;  %v6807_v29 = vadd.f32 %v10338_v61, %v6782_v39  ;;  %v6825_v35 = vadd.f32 %v10341_v25, %v6782_v39  ;;  %v6819_v14 = vadd.f32 %v10344_v37, %v6782_v39 }
0x3324   : > { %8974 = vtanh.f32 %v6789_v21 }
0x3325   : > { %8976 = vtanh.f32 %v6783_v59 }
0x3326   : > { %8978 = vtanh.f32 %v6801_v11 }
0x3327   : > { %8980 = vtanh.f32 %v6795_v31 }
0x3328   : > { %8982 = vtanh.f32 %v6813_v32 }
0x3329   : > { %8984 = vtanh.f32 %v6807_v29 }
0x332a   : > { %8986 = vtanh.f32 %v6825_v35 }
0x332b   : > { %8988 = vtanh.f32 %v6819_v14 }
0x332e   : > { %v8975_v26 = vpop.eup %8974 }
0x332f   : > { %v8977_v54 = vpop.eup %8976  ;;  %v6791_v23 = vmul.f32 %v10348_v4, %v8975_v26 }
0x3330   : > { %v8979_v18 = vpop.eup %8978  ;;  %v6785_v43 = vmul.f32 %v10348_v4, %v8977_v54 }
0x3331   : > { %v8981_v41 = vpop.eup %8980  ;;  %v6792_v53 = vsel %vm1435_vm2, %v6791_v23, 0.0  ;;  %v6803_v45 = vmul.f32 %v10348_v4, %v8979_v18 }
0x3332   : > { %v8983_v44 = vpop.eup %8982  ;;  %6793 = vadd.xlane.f32.xlu1 %v6792_v53  ;;  %v6786_v24 = vsel %vm1435_vm2, %v6785_v43, 0.0  ;;  %v6797_v48 = vmul.f32 %v10348_v4, %v8981_v41 }
0x3333   : > { %v8985_v57 = vpop.eup %8984  ;;  %6787 = vadd.xlane.f32.xlu0 %v6786_v24  ;;  %v6804_v19 = vsel %vm1435_vm2, %v6803_v45, 0.0  ;;  %v6815_v20 = vmul.f32 %v10348_v4, %v8983_v44 }
0x3334   : > { %v8987_v49 = vpop.eup %8986  ;;  %v6798_v58 = vsel %vm1435_vm2, %v6797_v48, 0.0  ;;  %v6809_v39 = vmul.f32 %v10348_v4, %v8985_v57 }
0x3335   : > { %v8989_v21 = vpop.eup %8988  ;;  %v6816_v59 = vsel %vm1435_vm2, %v6815_v20, 0.0  ;;  %v6827_v11 = vmul.f32 %v10348_v4, %v8987_v49 }
0x3336   : > { %6805 = vadd.xlane.f32.xlu1 %v6804_v19  ;;  %v6810_v31 = vsel %vm1435_vm2, %v6809_v39, 0.0  ;;  %v6821_v32 = vmul.f32 %v10348_v4, %v8989_v21 }
0x3337   : > { %6799 = vadd.xlane.f32.xlu0 %v6798_v58  ;;  %v6828_v29 = vsel %vm1435_vm2, %v6827_v11, 0.0 }
0x3338   : > { %v6822_v35 = vsel %vm1435_vm2, %v6821_v32, 0.0 }
0x333a   : > { %6817 = vadd.xlane.f32.xlu1 %v6816_v59 }
0x333b   : > { %6811 = vadd.xlane.f32.xlu0 %v6810_v31 }
0x333e   : > { %6829 = vadd.xlane.f32.xlu1 %v6828_v29 }
0x333f   : > { %6823 = vadd.xlane.f32.xlu0 %v6822_v35 }
0x3355   : > { %7062 = vrot.lane.b32.xlu0 %v10309_v47, %s9135_s27 }
0x33bf   : > { %v6794_v14 = vpop.xlane.xlu1 %6793 }
0x33c0   : > { %v6788_v26 = vpop.xlane.xlu0 %6787 }
0x33c1   : > { %v6831_v54 = vmax.f32 %v6788_v26, %v6794_v14 }
0x33c3   : > { %v6806_v23 = vpop.xlane.xlu1 %6805 }
0x33c4   : > { %v6800_v18 = vpop.xlane.xlu0 %6799 }
0x33c5   : > { %v6832_v43 = vmax.f32 %v6831_v54, %v6800_v18 }
0x33c7   : > { %v6833_v41 = vmax.f32 %v6832_v43, %v6806_v23  ;;  %v6818_v53 = vpop.xlane.xlu1 %6817 }
0x33c8   : > { %v6812_v45 = vpop.xlane.xlu0 %6811 }
0x33c9   : > { %v6834_v44 = vmax.f32 %v6833_v41, %v6812_v45 }
0x33cb   : > { %v6835_v24 = vmax.f32 %v6834_v44, %v6818_v53  ;;  %v6830_v19 = vpop.xlane.xlu1 %6829 }
0x33cc   : > { %v6824_v48 = vpop.xlane.xlu0 %6823 }
0x33cd   : > { %v6836_v57 = vmax.f32 %v6835_v24, %v6824_v48 }
0x33cf   : > { %v6837_v20 = vmax.f32 %v6836_v57, %v6830_v19 }
0x33d1   : > { %v6838_v49 = vsub.f32 %v6788_v26, %v6837_v20  ;;  %v6841_v58 = vsub.f32 %v6794_v14, %v6837_v20  ;;  %v6844_v39 = vsub.f32 %v6800_v18, %v6837_v20  ;;  %v6847_v21 = vsub.f32 %v6806_v23, %v6837_v20 }
0x33d2   : > { %v6850_v32 = vsub.f32 %v6812_v45, %v6837_v20  ;;  %v6853_v35 = vsub.f32 %v6818_v53, %v6837_v20  ;;  %v6856_v43 = vsub.f32 %v6824_v48, %v6837_v20  ;;  %v6859_v44 = vsub.f32 %v6830_v19, %v6837_v20 }
0x33d3   : > { %v6839_v59 = vmul.f32 1.442695, %v6838_v49  ;;  %v6842_v11 = vmul.f32 1.442695, %v6841_v58  ;;  %v6845_v31 = vmul.f32 1.442695, %v6844_v39 }
0x33d4   : > { %v6848_v29 = vmul.f32 1.442695, %v6847_v21  ;;  %v6851_v54 = vmul.f32 1.442695, %v6850_v32  ;;  %v6854_v41 = vmul.f32 1.442695, %v6853_v35 }
0x33d5   : > { %8990 = vpow2.f32 %v6839_v59  ;;  %v6857_v24 = vmul.f32 1.442695, %v6856_v43  ;;  %v6860_v14 = vmul.f32 1.442695, %v6859_v44 }
0x33d6   : > { %8992 = vpow2.f32 %v6842_v11 }
0x33d7   : > { %8994 = vpow2.f32 %v6845_v31 }
0x33d8   : > { %8996 = vpow2.f32 %v6848_v29 }
0x33d9   : > { %8998 = vpow2.f32 %v6851_v54 }
0x33da   : > { %9000 = vpow2.f32 %v6854_v41 }
0x33db   : > { %9002 = vpow2.f32 %v6857_v24 }
0x33dc   : > { %9004 = vpow2.f32 %v6860_v14 }
0x33df   : > { %v8991_v26 = vpop.eup %8990 }
0x33e0   : > { %v8993_v23 = vpop.eup %8992 }
0x33e1   : > { %v6862_v18 = vadd.f32 %v8993_v23, %v8991_v26  ;;  %v8995_v57 = vpop.eup %8994 }
0x33e2   : > { %v8997_v49 = vpop.eup %8996 }
0x33e3   : > { %v6863_v45 = vadd.f32 %v8995_v57, %v6862_v18  ;;  %v8999_v53 = vpop.eup %8998 }
0x33e4   : > { %v9001_v21 = vpop.eup %9000 }
0x33e5   : > { %v6864_v58 = vadd.f32 %v8997_v49, %v6863_v45  ;;  %v9003_v59 = vpop.eup %9002 }
0x33e6   : > { %v9005_v19 = vpop.eup %9004 }
0x33e7   : > { %v6865_v39 = vadd.f32 %v8999_v53, %v6864_v58 }
0x33e9   : > { %v6866_v48 = vadd.f32 %v9001_v21, %v6865_v39 }
0x33eb   : > { %v6867_v11 = vadd.f32 %v9003_v59, %v6866_v48 }
0x33ed   : > { %v6868_v20 = vadd.f32 %v9005_v19, %v6867_v11 }
0x33ef   : > { %9006 = vrcp.f32 %v6868_v20 }
0x33f9   : > { %v9007_v31 = vpop.eup %9006 }
0x33fa   : > { %v6871_v32 = vmul.f32 %v9007_v31, %v8991_v26  ;;  %v6876_v29 = vmul.f32 %v9007_v31, %v8993_v23  ;;  %v6881_v35 = vmul.f32 %v9007_v31, %v8995_v57  ;;  %v6886_v41 = vmul.f32 %v9007_v31, %v8997_v49 }
0x33fb   : > { %v6891_v44 = vmul.f32 %v9007_v31, %v8999_v53  ;;  %v6896_v58 = vmul.f32 %v9007_v31, %v9001_v21  ;;  %v6901_v57 = vmul.f32 %v9007_v31, %v9003_v59  ;;  %v6906_v11 = vmul.f32 %v9007_v31, %v9005_v19 }
0x33fc   : > { %v6872_v54 = vmul.f32 %v10162_v56, %v6871_v32  ;;  %v6877_v43 = vmul.f32 %v10165_v2, %v6876_v29  ;;  %v6882_v14 = vmul.f32 %v10168_v36, %v6881_v35  ;;  %v6874_v18 = vmul.f32 %v10255_v10, %v6871_v32 }
0x33fd   : > { %v6879_v45 = vmul.f32 %v10258_v42, %v6876_v29  ;;  %v6887_v48 = vmul.f32 %v10173_v46, %v6886_v41  ;;  %v6884_v23 = vmul.f32 %v10262_v60, %v6881_v35  ;;  %v6892_v2 = vmul.f32 %v10177_v63, %v6891_v44 }
0x33fe   : > { %v6878_v24 = vadd.f32 %v6877_v43, %v6872_v54  ;;  %v6889_v53 = vmul.f32 %v10266_v13, %v6886_v41  ;;  %v6897_v20 = vmul.f32 %v10181_v33, %v6896_v58  ;;  %v6894_v21 = vmul.f32 %v10270_v50, %v6891_v44  ;;  %v10399_v44 = vld [vmem:[%s9189_s24 + $0x68] ss:$0 sm:$0xff] }
0x33ff   : > { %v6880_v26 = vadd.f32 %v6879_v45, %v6874_v18  ;;  %v6902_v29 = vmul.f32 %v10185_v51, %v6901_v57  ;;  %v6899_v35 = vmul.f32 %v10274_v1, %v6896_v58  ;;  %v6904_v59 = vmul.f32 %v10280_v16, %v6901_v57  ;;  %v7063_v51 = vpop.permute.xlu0 %7062  ;;  %v10409_v57 = vld [vmem:[%s9189_s24 + $0x69] ss:$0 sm:$0xff] }
0x3400   : > { %v6883_v39 = vadd.f32 %v6882_v14, %v6878_v24  ;;  %v6907_v63 = vmul.f32 %v10277_v22, %v6906_v11  ;;  %v6909_v33 = vmul.f32 %v10283_v7, %v6906_v11  ;;  %v6911_v14 = vmul.f32 %v10399_v44, %v10316_v28 }
0x3401   : > { %v6885_v49 = vadd.f32 %v6884_v23, %v6880_v26  ;;  %v10404_v23 = vld [vmem:[%s9189_s24 + $0x6a] ss:$0 sm:$0xff] }
0x3402   : > { %v6888_v56 = vadd.f32 %v6887_v48, %v6883_v39 }
0x3403   : > { %v6890_v32 = vadd.f32 %v6889_v53, %v6885_v49 }
0x3404   : > { %v6893_v36 = vadd.f32 %v6892_v2, %v6888_v56 }
0x3405   : > { %v6895_v54 = vadd.f32 %v6894_v21, %v6890_v32 }
0x3406   : > { %v6898_v46 = vadd.f32 %v6897_v20, %v6893_v36 }
0x3407   : > { %v6900_v24 = vadd.f32 %v6899_v35, %v6895_v54 }
0x3408   : > { %v6903_v43 = vadd.f32 %v6902_v29, %v6898_v46 }
0x3409   : > { %v6905_v19 = vadd.f32 %v6904_v59, %v6900_v24 }
0x340a   : > { %v6908_v41 = vadd.f32 %v6907_v63, %v6903_v43 }
0x340b   : > { %v6910_v31 = vadd.f32 %v6909_v33, %v6905_v19 }
0x340c   : > { %8412 = vmatmul.mubr.msk.f32.vlgmr.msra.gmra.mrb[66].mxu0 %vm1435_vm2, %v6908_v41 }
0x340d   : > { %8607 = vmatpush3.bf16.msra.mxu0 %v9791_v27  ;;  %8425 = vmatprep.mubr.msk.f32.mxu0 %vm9130_vm0, %v9129_v0 }
0x340e   : > { %8419 = vmatmul.mubr.msk.f32.vlgmr.msra.gmra.mrb[66].mxu1 %vm1435_vm2, %v6910_v31  ;;  %8611 = vmatprep.subr.bf16.mxu0 %v9131_v17 }
0x340f   : > { %8610 = vmatpush3.bf16.msra.mxu1 %v9765_v34  ;;  %8432 = vmatprep.mubr.msk.f32.mxu1 %vm9130_vm0, %v9129_v0 }
0x3410   : > { %8426 = vmatmul.mubr.msk.f32.vlgmr.msra.gmra.mrb[68].mxu0 %vm1435_vm2, %v7063_v51  ;;  %8614 = vmatprep.subr.bf16.mxu1 %v9131_v17  ;;  %v10422_v51 = vld [vmem:[%s9521_s5 + $0x24] ss:$0 sm:$0xff] }
0x3411   : > { %8613 = vmatpush3.bf16.msra.mxu0 %v9768_v40  ;;  %8439 = vmatprep.mubr.msk.f32.mxu0 %vm9130_vm0, %v9129_v0 }
0x34df   : > { %v6981_v18 = vpop.f32.mrb[66].mxu0 }
0x34e0   : > { %v6985_v34 = vadd.f32 %v6981_v18, %v6911_v14  ;;  %v8413_v45 = vpop.f32.mrb[67].mxu0 }
0x34e1   : > { %v7055_v58 = vpop.f32.mrb[66].mxu1 }
0x34e2   : > { %v7059_v39 = vadd.f32 %v7055_v58, %v6985_v34  ;;  %v8420_v48 = vpop.f32.mrb[67].mxu1 }
0x34e3   : > { %v7132_v26 = vpop.f32.mrb[68].mxu0 }
0x34e4   : > { %v7133_v17 = vadd.f32 %v10404_v23, %v7132_v26  ;;  %v8427_v40 = vpop.f32.mrb[69].mxu0  ;;  %v7060_v56 = vadd.f32 %v10409_v57, %v7059_v39 }
0x34e6   : > { %7144 = vrot.lane.b32.xlu1 %v7133_v17, %s9133_s25  ;;  %v7136_v2 = vadd.f32 %v7133_v17, %v7060_v56 }
0x34e8   : > { %v7137_v49 = vsub.f32 0.0, %v7136_v2 }
0x34ea   : > { %v7138_v53 = vmul.f32 1.442695, %v7137_v49 }
0x34ec   : > { %9008 = vpow2.f32 %v7138_v53 }
0x34f6   : > { %v9009_v11 = vpop.eup %9008 }
0x34f7   : > { %v7140_v36 = vadd.f32 1.0, %v9009_v11 }
0x34f9   : > { %9010 = vrcp.f32 %v7140_v36 }
0x3503   : > { %v9011_v20 = vpop.eup %9010 }
0x3504   : > { %v7154_v35 = vsub.f32 1.0, %v9011_v20  ;;  %v7160_v43 = vmul.f32 %v9011_v20, %v10309_v47 }
0x3558   : > { %v7145_v32 = vpop.permute.xlu1 %7144 }
0x3559   : > { %v7147_v21 = vmul.f32 %v9011_v20, %v7145_v32 }
0x355b   : > { %7149 = vrot.lane.b32.xlu1 %v7147_v21, %s9134_s26 }
0x35cd   : > { %v7150_v29 = vpop.permute.xlu1 %7149 }
0x35ce   : > { %v7152_v46 = vadd.f32 %v7150_v29, %v7060_v56 }
0x35d0   : > { %9012 = vtanh.f32 %v7152_v46 }
0x35da   : > { %v9013_v54 = vpop.eup %9012 }
0x35db   : > { %7156 = vrot.lane.b32.xlu0 %v9013_v54, %s9135_s27 }
0x364d   : > { %v7157_v59 = vpop.permute.xlu0 %7156 }
0x364e   : > { %v7159_v63 = vmul.f32 %v7157_v59, %v7154_v35 }
0x3650   : > { %v10415_v24 = vadd.f32 %v7160_v43, %v7159_v63 }
0x3652   : > { %v7162_v41 = vmul.f32 %v10415_v24, %v9828_v8 }
0x3654   : > { %7164 = vrot.lane.b32.xlu1 %v7162_v41, %s9135_s27 }
0x36c6   : > { %v7165_v19 = vpop.permute.xlu1 %7164 }
0x36c7   : > { %v7167_v33 = vsel %vm1435_vm2, %v7165_v19, 0.0 }
0x36c8   : > { %7168 = vadd.xlane.f32.xlu0 %v7167_v33 }
0x3755   : > { %v7169_v31 = vpop.xlane.xlu0 %7168 }
0x3756   : > { %v7170_v14 = vadd.f32 %v10422_v51, %v7169_v31 }
0x3758   : > { %7173 = vperm.xlu1 %8637, %v7170_v14  }
0x37d7   : > { %v10425_v18 = vpop.permute.xlu1 %7173 }
0x37d8   : > { %v7182_v47 = vmul.f32 %v10319_v52, %v10425_v18 }
0x37da   : > { %v7189_v34 = vadd.f32 %v10323_v55, %v7182_v47  ;;  %v7183_v45 = vadd.f32 %v10326_v15, %v7182_v47  ;;  %v7195_v58 = vadd.f32 %v10332_v30, %v7182_v47  ;;  %v7207_v39 = vadd.f32 %v10338_v61, %v7182_v47 }
0x37db   : > { %v7201_v48 = vadd.f32 %v10329_v12, %v7182_v47  ;;  %v7219_v26 = vadd.f32 %v10344_v37, %v7182_v47  ;;  %v7213_v17 = vadd.f32 %v10335_v38, %v7182_v47  ;;  %v7225_v52 = vadd.f32 %v10341_v25, %v7182_v47 }
0x37dc   : > { %9014 = vtanh.f32 %v7189_v34 }
0x37dd   : > { %9016 = vtanh.f32 %v7183_v45 }
0x37de   : > { %9018 = vtanh.f32 %v7195_v58 }
0x37df   : > { %9020 = vtanh.f32 %v7207_v39 }
0x37e0   : > { %9022 = vtanh.f32 %v7201_v48 }
0x37e1   : > { %9024 = vtanh.f32 %v7219_v26 }
0x37e2   : > { %9026 = vtanh.f32 %v7213_v17 }
0x37e3   : > { %9028 = vtanh.f32 %v7225_v52 }
0x37e6   : > { %v9015_v55 = vpop.eup %9014 }
0x37e7   : > { %v9017_v15 = vpop.eup %9016  ;;  %v7191_v30 = vmul.f32 %v10348_v4, %v9015_v55 }
0x37e8   : > { %v9019_v61 = vpop.eup %9018  ;;  %v7185_v40 = vmul.f32 %v10348_v4, %v9017_v15 }
0x37e9   : > { %v9021_v12 = vpop.eup %9020  ;;  %v7192_v37 = vsel %vm1435_vm2, %v7191_v30, 0.0  ;;  %v7197_v56 = vmul.f32 %v10348_v4, %v9019_v61 }
0x37ea   : > { %v9023_v2 = vpop.eup %9022  ;;  %7193 = vadd.xlane.f32.xlu0 %v7192_v37  ;;  %v7186_v38 = vsel %vm1435_vm2, %v7185_v40, 0.0  ;;  %v7209_v49 = vmul.f32 %v10348_v4, %v9021_v12 }
0x37eb   : > { %v9025_v25 = vpop.eup %9024  ;;  %7187 = vadd.xlane.f32.xlu1 %v7186_v38  ;;  %v7198_v53 = vsel %vm1435_vm2, %v7197_v56, 0.0  ;;  %v7203_v11 = vmul.f32 %v10348_v4, %v9023_v2 }
0x37ec   : > { %v9027_v36 = vpop.eup %9026  ;;  %v7210_v20 = vsel %vm1435_vm2, %v7209_v49, 0.0  ;;  %v7221_v32 = vmul.f32 %v10348_v4, %v9025_v25 }
0x37ed   : > { %v7204_v21 = vsel %vm1435_vm2, %v7203_v11, 0.0  ;;  %v7215_v29 = vmul.f32 %v10348_v4, %v9027_v36  ;;  %v9029_v46 = vpop.eup %9028 }
0x37ee   : > { %7199 = vadd.xlane.f32.xlu0 %v7198_v53  ;;  %v7222_v54 = vsel %vm1435_vm2, %v7221_v32, 0.0  ;;  %v7227_v59 = vmul.f32 %v10348_v4, %v9029_v46 }
0x37ef   : > { %7211 = vadd.xlane.f32.xlu1 %v7210_v20  ;;  %v7216_v35 = vsel %vm1435_vm2, %v7215_v29, 0.0 }
0x37f0   : > { %v7228_v43 = vsel %vm1435_vm2, %v7227_v59, 0.0 }
0x37f2   : > { %7205 = vadd.xlane.f32.xlu0 %v7204_v21 }
0x37f3   : > { %7223 = vadd.xlane.f32.xlu1 %v7222_v54 }
0x37f6   : > { %7217 = vadd.xlane.f32.xlu0 %v7216_v35 }
0x37fa   : > { %7229 = vadd.xlane.f32.xlu0 %v7228_v43 }
0x3804   : > { %7462 = vrot.lane.b32.xlu1 %v10415_v24, %s9135_s27 }
0x3877   : > { %v7194_v63 = vpop.xlane.xlu0 %7193 }
0x3878   : > { %v7188_v41 = vpop.xlane.xlu1 %7187 }
0x3879   : > { %v7231_v33 = vmax.f32 %v7188_v41, %v7194_v63 }
0x387b   : > { %v7200_v19 = vpop.xlane.xlu0 %7199 }
0x387c   : > { %v7232_v31 = vmax.f32 %v7231_v33, %v7200_v19  ;;  %v7212_v14 = vpop.xlane.xlu1 %7211 }
0x387f   : > { %v7206_v47 = vpop.xlane.xlu0 %7205 }
0x3880   : > { %v7233_v34 = vmax.f32 %v7232_v31, %v7206_v47  ;;  %v7224_v48 = vpop.xlane.xlu1 %7223 }
0x3882   : > { %v7234_v45 = vmax.f32 %v7233_v34, %v7212_v14 }
0x3883   : > { %v7218_v58 = vpop.xlane.xlu0 %7217 }
0x3884   : > { %v7235_v39 = vmax.f32 %v7234_v45, %v7218_v58 }
0x3886   : > { %v7236_v4 = vmax.f32 %v7235_v39, %v7224_v48  ;;  %v9114_v39 = vld [vmem:[#allocation2] sm:$0xff] }
0x3887   : > { %v7230_v26 = vpop.xlane.xlu0 %7229 }
0x3888   : > { %v7237_v17 = vmax.f32 %v7236_v4, %v7230_v26  ;;  %v9115_v4 = vld [vmem:[#allocation2 + $0x8] sm:$0xff] }
0x388a   : > { %v7238_v52 = vsub.f32 %v7188_v41, %v7237_v17  ;;  %v7241_v55 = vsub.f32 %v7194_v63, %v7237_v17  ;;  %v7244_v15 = vsub.f32 %v7200_v19, %v7237_v17  ;;  %v7247_v30 = vsub.f32 %v7206_v47, %v7237_v17 }
0x388b   : > { %v7250_v37 = vsub.f32 %v7212_v14, %v7237_v17  ;;  %v7253_v2 = vsub.f32 %v7218_v58, %v7237_v17  ;;  %v7256_v49 = vsub.f32 %v7224_v48, %v7237_v17  ;;  %v7259_v53 = vsub.f32 %v7230_v26, %v7237_v17 }
0x388c   : > { %v7239_v61 = vmul.f32 1.442695, %v7238_v52  ;;  %v7242_v40 = vmul.f32 1.442695, %v7241_v55  ;;  %v7245_v12 = vmul.f32 1.442695, %v7244_v15 }
0x388d   : > { %v7248_v56 = vmul.f32 1.442695, %v7247_v30  ;;  %v7251_v38 = vmul.f32 1.442695, %v7250_v37  ;;  %v7254_v25 = vmul.f32 1.442695, %v7253_v2 }
0x388e   : > { %9030 = vpow2.f32 %v7239_v61  ;;  %v7257_v11 = vmul.f32 1.442695, %v7256_v49  ;;  %v7260_v36 = vmul.f32 1.442695, %v7259_v53  ;;  %v9116_v15 = vld [vmem:[#allocation2 + $0x10] sm:$0xff] }
0x388f   : > { %9032 = vpow2.f32 %v7242_v40 }
0x3890   : > { %9034 = vpow2.f32 %v7245_v12 }
0x3891   : > { %9036 = vpow2.f32 %v7248_v56  ;;  %v9117_v56 = vld [vmem:[#allocation2 + $0x18] sm:$0xff] }
0x3892   : > { %9038 = vpow2.f32 %v7251_v38 }
0x3893   : > { %9040 = vpow2.f32 %v7254_v25 }
0x3894   : > { %9042 = vpow2.f32 %v7257_v11  ;;  %v9118_v11 = vld [vmem:[#allocation2 + $0x20] sm:$0xff] }
0x3895   : > { %9044 = vpow2.f32 %v7260_v36 }
0x3898   : > { %v9031_v20 = vpop.eup %9030 }
0x3899   : > { %v9033_v32 = vpop.eup %9032 }
0x389a   : > { %v7262_v21 = vadd.f32 %v9033_v32, %v9031_v20  ;;  %v9035_v29 = vpop.eup %9034 }
0x389b   : > { %v9037_v54 = vpop.eup %9036 }
0x389c   : > { %v7263_v46 = vadd.f32 %v9035_v29, %v7262_v21  ;;  %v9039_v59 = vpop.eup %9038 }
0x389d   : > { %v9041_v63 = vpop.eup %9040 }
0x389e   : > { %v7264_v35 = vadd.f32 %v9037_v54, %v7263_v46  ;;  %v9043_v19 = vpop.eup %9042  ;;  %v9119_v46 = vld [vmem:[#allocation2 + $0x28] sm:$0xff] }
0x389f   : > { %v9045_v31 = vpop.eup %9044 }
0x38a0   : > { %v7265_v43 = vadd.f32 %v9039_v59, %v7264_v35 }
0x38a2   : > { %v7266_v41 = vadd.f32 %v9041_v63, %v7265_v43 }
0x38a4   : > { %v7267_v33 = vadd.f32 %v9043_v19, %v7266_v41 }
0x38a6   : > { %v7268_v14 = vadd.f32 %v9045_v31, %v7267_v33 }
0x38a8   : > { %9046 = vrcp.f32 %v7268_v14 }
0x38b2   : > { %v9047_v47 = vpop.eup %9046 }
0x38b3   : > { %v7271_v34 = vmul.f32 %v9047_v47, %v9031_v20  ;;  %v7276_v45 = vmul.f32 %v9047_v47, %v9033_v32  ;;  %v7281_v58 = vmul.f32 %v9047_v47, %v9035_v29  ;;  %v7286_v17 = vmul.f32 %v9047_v47, %v9037_v54 }
0x38b4   : > { %v7291_v52 = vmul.f32 %v9047_v47, %v9039_v59  ;;  %v7296_v12 = vmul.f32 %v9047_v47, %v9041_v63  ;;  %v7301_v25 = vmul.f32 %v9047_v47, %v9043_v19  ;;  %v7306_v21 = vmul.f32 %v9047_v47, %v9045_v31  ;;  %v9120_v59 = vld [vmem:[#allocation2 + $0x30] sm:$0xff] }
0x38b5   : > { %v7272_v48 = vmul.f32 %v9114_v39, %v7271_v34  ;;  %v7277_v26 = vmul.f32 %v9115_v4, %v7276_v45  ;;  %v7282_v30 = vmul.f32 %v9116_v15, %v7281_v58  ;;  %v7274_v61 = vmul.f32 %v10255_v10, %v7271_v34 }
0x38b6   : > { %v7279_v40 = vmul.f32 %v10258_v42, %v7276_v45  ;;  %v7287_v2 = vmul.f32 %v9117_v56, %v7286_v17  ;;  %v7284_v49 = vmul.f32 %v10262_v60, %v7281_v58  ;;  %v7292_v36 = vmul.f32 %v9118_v11, %v7291_v52 }
0x38b7   : > { %v7278_v55 = vadd.f32 %v7277_v26, %v7272_v48  ;;  %v7289_v32 = vmul.f32 %v10266_v13, %v7286_v17  ;;  %v7297_v10 = vmul.f32 %v9119_v46, %v7296_v12  ;;  %v7294_v42 = vmul.f32 %v10270_v50, %v7291_v52  ;;  %v7463_v50 = vpop.permute.xlu1 %7462 }
0x38b8   : > { %v7280_v38 = vadd.f32 %v7279_v40, %v7274_v61  ;;  %v7302_v43 = vmul.f32 %v9120_v59, %v7301_v25  ;;  %v7299_v60 = vmul.f32 %v10274_v1, %v7296_v12  ;;  %v7307_v19 = vmul.f32 %v10277_v22, %v7306_v21 }
0x38b9   : > { %v7283_v37 = vadd.f32 %v7282_v30, %v7278_v55  ;;  %v7304_v14 = vmul.f32 %v10280_v16, %v7301_v25  ;;  %v7309_v47 = vmul.f32 %v10283_v7, %v7306_v21  ;;  %v7311_v1 = vmul.f32 %v10399_v44, %v10425_v18 }
0x38ba   : > { %v7285_v20 = vadd.f32 %v7284_v49, %v7280_v38 }
0x38bb   : > { %v7288_v53 = vadd.f32 %v7287_v2, %v7283_v37 }
0x38bc   : > { %v7290_v54 = vadd.f32 %v7289_v32, %v7285_v20  ;;  %v4776_v20 = vlaneseq }
0x38bd   : > { %v7293_v29 = vadd.f32 %v7292_v36, %v7288_v53 }
0x38be   : > { %v7295_v63 = vadd.f32 %v7294_v42, %v7290_v54  ;;  %v4777_v32 = vshrl.u32 %v4776_v20, 7 }
0x38bf   : > { %v7298_v35 = vadd.f32 %v7297_v10, %v7293_v29  ;;  %v3119_v29 = vld [vmem:[%s248_s10] sm:$0xff] }
0x38c0   : > { %v7300_v33 = vadd.f32 %v7299_v60, %v7295_v63  ;;  %v5578_v21 = vsub.s32 2, %v4777_v32  ;;  %v5978_v10 = vsub.s32 3, %v4777_v32 }
0x38c1   : > { %v7303_v41 = vadd.f32 %v7302_v43, %v7298_v35  ;;  %v6378_v35 = vsub.s32 4, %v4777_v32  ;;  %v6778_v43 = vsub.s32 5, %v4777_v32 }
0x38c2   : > { %v7305_v31 = vadd.f32 %v7304_v14, %v7300_v33  ;;  %v5579_v42 = vrot.slane %v3119_v29, %v5578_v21  ;;  %v5979_v59 = vrot.slane %v3119_v29, %v5978_v10 }
0x38c3   : > { %v7308_v13 = vadd.f32 %v7307_v19, %v7303_v41  ;;  %v6379_v41 = vrot.slane %v3119_v29, %v6378_v35  ;;  %v7178_v19 = vsub.s32 6, %v4777_v32 }
0x38c4   : > { %v7310_v34 = vadd.f32 %v7309_v47, %v7305_v31  ;;  %v5580_v60 = vmul.f32 %v5579_v42, %v10022_v6  ;;  %v5980_v14 = vmul.f32 %v5979_v59, %v10132_v5 }
0x38c5   : > { %8433 = vmatmul.mubr.msk.f32.vlgmr.msra.gmra.mrb[68].mxu1 %vm1435_vm2, %v7308_v13  ;;  %v6779_v13 = vrot.slane %v3119_v29, %v6778_v43  ;;  %v6380_v47 = vmul.f32 %v6379_v41, %v10222_v9 }
0x38c6   : > { %8616 = vmatpush3.bf16.msra.mxu1 %v9791_v27  ;;  %8446 = vmatprep.mubr.msk.f32.mxu1 %vm9130_vm0, %v9129_v0 }
0x38c7   : > { %8440 = vmatmul.mubr.msk.f32.vlgmr.msra.gmra.mrb[70].mxu0 %vm1435_vm2, %v7310_v34  ;;  %v7179_v34 = vrot.slane %v3119_v29, %v7178_v19 }
0x38c9   : > { %8447 = vmatmul.mubr.msk.f32.vlgmr.msra.gmra.mrb[70].mxu1 %vm1435_vm2, %v7463_v50  ;;  %v7578_v50 = vsub.s32 7, %v4777_v32 }
0x3998   : > { %v7381_v22 = vpop.f32.mrb[68].mxu1 }
0x3999   : > { %v7385_v16 = vadd.f32 %v7381_v22, %v7311_v1  ;;  %v8434_v45 = vpop.f32.mrb[69].mxu1 }
0x399a   : > { %v7455_v7 = vpop.f32.mrb[70].mxu0 }
0x399b   : > { %v7459_v58 = vadd.f32 %v7455_v7, %v7385_v16  ;;  %v8441_v39 = vpop.f32.mrb[71].mxu0  ;;  %v7579_v16 = vrot.slane %v3119_v29, %v7578_v50 }
0x399c   : > { %v7532_v48 = vpop.f32.mrb[70].mxu1 }
0x399d   : > { %v7533_v27 = vadd.f32 %v10404_v23, %v7532_v48  ;;  %v8448_v4 = vpop.f32.mrb[71].mxu1  ;;  %v7460_v0 = vadd.f32 %v10409_v57, %v7459_v58 }
0x399f   : > { %7544 = vrot.lane.b32.xlu0 %v7533_v27, %s9133_s25  ;;  %v7536_v26 = vadd.f32 %v7533_v27, %v7460_v0 }
0x39a1   : > { %v7537_v17 = vsub.f32 0.0, %v7536_v26 }
0x39a3   : > { %v7538_v52 = vmul.f32 1.442695, %v7537_v17 }
0x39a5   : > { %9048 = vpow2.f32 %v7538_v52 }
0x39af   : > { %v9049_v55 = vpop.eup %9048 }
0x39b0   : > { %v7540_v44 = vadd.f32 1.0, %v9049_v55 }
0x39b2   : > { %9050 = vrcp.f32 %v7540_v44 }
0x39bc   : > { %v9051_v15 = vpop.eup %9050 }
0x39bd   : > { %v7554_v57 = vsub.f32 1.0, %v9051_v15  ;;  %v7560_v56 = vmul.f32 %v9051_v15, %v10415_v24  ;;  %v5178_v24 = vsub.s32 1, %v4777_v32 }
0x39bf   : > { %v5179_v46 = vrot.slane %v3119_v29, %v5178_v24 }
0x3a11   : > { %v7545_v30 = vpop.permute.xlu0 %7544 }
0x3a12   : > { %v7547_v61 = vmul.f32 %v9051_v15, %v7545_v30 }
0x3a14   : > { %7549 = vrot.lane.b32.xlu1 %v7547_v61, %s9134_s26 }
0x3a86   : > { %v7550_v40 = vpop.permute.xlu1 %7549 }
0x3a87   : > { %v7552_v12 = vadd.f32 %v7550_v40, %v7460_v0 }
0x3a89   : > { %9052 = vtanh.f32 %v7552_v12 }
0x3a93   : > { %v9053_v23 = vpop.eup %9052 }
0x3a94   : > { %7556 = vrot.lane.b32.xlu1 %v9053_v23, %s9135_s27 }
0x3b06   : > { %v7557_v37 = vpop.permute.xlu1 %7556 }
0x3b07   : > { %v7559_v2 = vmul.f32 %v7557_v37, %v7554_v57 }
0x3b09   : > { %v7561_v38 = vadd.f32 %v7560_v56, %v7559_v2 }
0x3b0b   : > { %v7562_v49 = vmul.f32 %v7561_v38, %v9828_v8  ;;  %v4778_v8 = vsub.s32 0, %v4777_v32 }
0x3b0d   : > { %7564 = vrot.lane.b32.xlu0 %v7562_v49, %s9135_s27  ;;  %v4779_v54 = vrot.slane %v3119_v29, %v4778_v8 }
0x3b0f   : > { %v4780_v63 = vmul.f32 %v4779_v54, %v9838_v3  ;;  %v7180_v3 = vmul.f32 %v7179_v34, %v10425_v18 }
0x3b7f   : > { %v7565_v25 = vpop.permute.xlu0 %7564 }
0x3b80   : > { %v7567_v53 = vsel %vm1435_vm2, %v7565_v25, 0.0 }
0x3b81   : > { %7568 = vadd.xlane.f32.xlu1 %v7567_v53 }
0x3c0e   : > { %v7569_v11 = vpop.xlane.xlu1 %7568 }
0x3c0f   : > { %v7570_v36 = vadd.f32 %v10422_v51, %v7569_v11  ;;  %v5180_v51 = vmul.f32 %v5179_v46, %v9928_v62  ;;  %v6780_v62 = vmul.f32 %v6779_v13, %v10316_v28 }
0x3c11   : > { %7573 = vperm.xlu0 %8636, %v7570_v36   ;;  %v5181_v33 = vadd.f32 %v5180_v51, %v4780_v63 }
0x3c13   : > { %v5581_v31 = vadd.f32 %v5580_v60, %v5181_v33 }
0x3c15   : > { %v5981_v1 = vadd.f32 %v5980_v14, %v5581_v31 }
0x3c17   : > { %v6381_v22 = vadd.f32 %v6380_v47, %v5981_v1 }
0x3c19   : > { %v6781_v6 = vadd.f32 %v6780_v62, %v6381_v22 }
0x3c1b   : > { %v7181_v7 = vadd.f32 %v7180_v3, %v6781_v6 }
0x3c90   : > { %v7574_v45 = vpop.permute.xlu0 %7573 }
0x3c91   : > { %v7580_v58 = vmul.f32 %v7579_v16, %v7574_v45 }
0x3c93   : > { %v7581_v5 = vadd.f32 %v7580_v58, %v7181_v7 }
0x3c95   : > { %7582 = vst.msk [vmem:[%s252_s13] sm:$0xff] %vm268_vm1, %v7581_v5 }
0x3c96 PF: > { %s14_s15 = sadd.s32 1, %s9127_s15  }
0x3c97   : > { %p11_p4 = scmp.ge.s32.totalorder %s14_s15, 4  }
0x3c99   :  { %13 = sbr.rel (!%p11_p4) target bundleno = 1 (0x1), region = 103 }

</bundles_post_ra>
